<compile_context>
chip_gen: v7x
topology: tpu7x:2x2x1
jax: 0.10.0
libtpu: 0.0.40
codegen_flags: <defaults>
</compile_context>

<pallas_src>
import jax
import jax.numpy as jnp
from jax import lax
from jax.experimental import pallas as pl
from jax.experimental.pallas import tpu as pltpu


# ----------------------------- Pallas kernel ---------------------------------
def _composed_fwd_kernel(
    ctx_emb_ref,   # [TB, L, D]   bf16  context word(+position) embeddings
    ctx_len_ref,   # [TB, 1]      int32 per-row context length (mask built in-kernel)
    mention_ref,   # [TB, D]      bf16  precomputed mention vector (masked mean)
    wa_ref,        # [D, A]       bf16  attention hidden weight (A = true size, no pad)
    va_ref,        # [1, A]       f32   attention scoring vector
    w1_ref,        # [2D, H]      bf16  CommonNetwork layer 1 (fused mention|context halves)
    b1_ref,        # [1, H]       f32
    w2_ref,        # [H, H]       bf16  CommonNetwork layer 2
    b2_ref,        # [1, H]       f32
    wp_ref,        # [H, POUT]    bf16  fused projectors: [euclidean | hyperbolic | zero pad]
    bp_ref,        # [1, POUT]    f32
    out_ref,       # [TB, POUT]   f32   lane-dense fused projector output
):
    f32 = jnp.float32
    bf16 = jnp.bfloat16

    ctx = ctx_emb_ref[...]                                    # [TB, L, D] bf16
    TB, L, D = ctx.shape
    A = wa_ref.shape[1]

    # ---- context encoder: position-aware attentive pooling (Shimaoka-style) ----
    # bf16 MXU matmul with f32 accumulation; (TB, L) collapse is a free relayout (L % 16 == 0).
    att_h = jnp.tanh(
        jnp.dot(ctx.reshape(TB * L, D), wa_ref[...], preferred_element_type=f32)
    ).reshape(TB, L, A)                                       # [TB, L, A] f32

    # Scoring vector applied as a lane reduce (VPU mul + XLU reduce); softmax stays [TB, L, 1].
    scores = jnp.sum(att_h * va_ref[...], axis=-1, keepdims=True)     # [TB, L, 1] f32

    # Context mask built in-kernel from per-row lengths (no [B, L, 1] HBM stream).
    clen = ctx_len_ref[...]                                   # [TB, 1] int32
    iota_l = lax.broadcasted_iota(jnp.int32, (TB, L, 1), 1)
    cmask = (iota_l < clen[:, None, :]).astype(f32)           # [TB, L, 1]

    scores = scores - jnp.max(scores, axis=1, keepdims=True)  # sublane reduce
    e = jnp.exp(scores) * cmask
    denom = jnp.maximum(jnp.sum(e, axis=1, keepdims=True), 1e-30)
    probs = e * pl.reciprocal(denom, approx=False)            # exact recip (parity-grade)
    # bf16 VPU product (largest elementwise tensor), f32 accumulation over L.
    context_vec = jnp.sum((probs.astype(bf16) * ctx).astype(f32), axis=1)   # [TB, D] f32

    # ---- CommonNetwork: concat((mention, context)) fed to one fused K=2D matmul ----
    mention_vec = mention_ref[...]                            # [TB, D] bf16 (precomputed)
    xcat = jnp.concatenate([mention_vec, context_vec.astype(bf16)], axis=-1)  # [TB, 2D] bf16

    h1 = jnp.dot(xcat, w1_ref[...], preferred_element_type=f32) + b1_ref[...]
    h1 = jnp.maximum(h1, 0.0)
    h2 = jnp.dot(h1.astype(bf16), w2_ref[...], preferred_element_type=f32) + b2_ref[...]
    h2 = jnp.maximum(h2, 0.0)

    # ---- MultiProjectorManager: both projectors fused into one lane-dense matmul ----
    out_ref[...] = (
        jnp.dot(h2.astype(bf16), wp_ref[...], preferred_element_type=f32) + bp_ref[...]
    ).astype(out_ref.dtype)


# ------------------------------- wrapper --------------------------------------
def composed_forward_pallas(ctx_emb, ctx_len, mention_vec, params, p1, p2, tb=64):
    B, L, D = ctx_emb.shape
    A = params["wa"].shape[1]
    H = params["w2"].shape[0]
    POUT = params["wp"].shape[1]

    # Pad batch to a multiple of the batch tile (padded rows have ctx_len=0 -> safe, sliced off).
    Bp = ((B + tb - 1) // tb) * tb
    if Bp != B:
        pad = Bp - B
        ctx_emb = jnp.pad(ctx_emb, ((0, pad), (0, 0), (0, 0)))
        ctx_len = jnp.pad(ctx_len, ((0, pad), (0, 0)))
        mention_vec = jnp.pad(mention_vec, ((0, pad), (0, 0)))

    grid = (Bp // tb,)   # keep >= 2 steps so "parallel" can split across v7x's two TCs

    flops = 2 * Bp * (L * D * A + 2 * D * H + H * H + H * POUT)
    transcendentals = Bp * L * (A + 1)
    bytes_accessed = (
        ctx_emb.size * 2 + ctx_len.size * 4 + mention_vec.size * 2
        + (D * A + 2 * D * H + H * H + H * POUT) * 2
        + (A + 2 * H + POUT) * 4
        + Bp * POUT * 4
    )

    fn = pl.pallas_call(
        _composed_fwd_kernel,
        out_shape=jax.ShapeDtypeStruct((Bp, POUT), jnp.float32),
        grid=grid,
        in_specs=[
            pl.BlockSpec((tb, L, D), lambda i: (i, 0, 0)),    # ctx_emb (batch tiled)
            pl.BlockSpec((tb, 1), lambda i: (i, 0)),          # ctx_len (per-row lengths)
            pl.BlockSpec((tb, D), lambda i: (i, 0)),          # mention_vec
            pl.BlockSpec((D, A), lambda i: (0, 0)),           # wa   (resident weights)
            pl.BlockSpec((1, A), lambda i: (0, 0)),           # va
            pl.BlockSpec((2 * D, H), lambda i: (0, 0)),       # w1 (fused K=2D)
            pl.BlockSpec((1, H), lambda i: (0, 0)),           # b1
            pl.BlockSpec((H, H), lambda i: (0, 0)),           # w2
            pl.BlockSpec((1, H), lambda i: (0, 0)),           # b2
            pl.BlockSpec((H, POUT), lambda i: (0, 0)),        # wp (fused projectors)
            pl.BlockSpec((1, POUT), lambda i: (0, 0)),        # bp
        ],
        out_specs=pl.BlockSpec((tb, POUT), lambda i: (i, 0)),
        compiler_params=pltpu.CompilerParams(dimension_semantics=("parallel",)),
        cost_estimate=pl.CostEstimate(
            flops=flops, transcendentals=transcendentals, bytes_accessed=bytes_accessed),
    )
    out = fn(
        ctx_emb, ctx_len, mention_vec,
        params["wa"], params["va"],
        params["w1"], params["b1"],
        params["w2"], params["b2"],
        params["wp"], params["bp"],
    )[:B]
    # forward returns {'projections': {...}} — slice the fused lane-padded output.
    return {"projections": {"euclidean": out[:, :p1], "hyperbolic": out[:, p1:p1 + p2]}}


# ----------------------------- pure-JAX reference -----------------------------
def composed_forward_ref(ctx_emb, ctx_len, mention_vec, params, p1, p2):
    f32 = jnp.float32
    bf16 = jnp.bfloat16
    B, L, D = ctx_emb.shape
    att_h = jnp.tanh(
        jnp.dot(ctx_emb.reshape(B * L, D), params["wa"],
                preferred_element_type=f32)).reshape(B, L, -1)
    scores = jnp.sum(att_h * params["va"], axis=-1, keepdims=True)
    iota = jnp.arange(L, dtype=jnp.int32)[None, :, None]
    cmask = (iota < ctx_len[:, None, :]).astype(f32)
    scores = scores - jnp.max(scores, axis=1, keepdims=True)
    e = jnp.exp(scores) * cmask
    denom = jnp.maximum(jnp.sum(e, axis=1, keepdims=True), 1e-30)
    probs = e / denom
    context_vec = jnp.sum((probs.astype(bf16) * ctx_emb).astype(f32), axis=1)

    xcat = jnp.concatenate([mention_vec, context_vec.astype(bf16)], axis=-1)
    h1 = jnp.maximum(
        jnp.dot(xcat, params["w1"], preferred_element_type=f32) + params["b1"], 0.0)
    h2 = jnp.maximum(
        jnp.dot(h1.astype(bf16), params["w2"], preferred_element_type=f32) + params["b2"], 0.0)
    out = jnp.dot(h2.astype(bf16), params["wp"], preferred_element_type=f32) + params["bp"]
    return {"projections": {"euclidean": out[:, :p1], "hyperbolic": out[:, p1:p1 + p2]}}


# ------------------------------------ main ------------------------------------
if __name__ == "__main__":
    # Tile-friendly synthetic shapes (batch big enough to fill the MXU rows; grid of 2 steps).
    B = 128      # batch
    L = 16       # context length (multiple of 16 -> free reshape)
    M = 4        # mention length (handled in XLA glue)
    D = 128      # word embedding dim
    A = 64       # attention hidden dim (true size, no lane padding)
    H = 128      # CommonNetwork hidden dim
    P1, P2 = 32, 32          # projector output dims (euclidean / hyperbolic)
    POUT = 128               # fused projector output padded to 128 lanes (lane-dense store)
    V = 100
    NPOS = 2 * L + 1
    TB = 64                  # batch tile per grid step -> grid = (2,)

    key = jax.random.PRNGKey(0)
    keys = jax.random.split(key, 16)

    # Deterministic synthetic "checkpoint" (f32 master weights).
    word_table = jax.random.normal(keys[0], (V, D), jnp.float32) * 0.1
    pos_table = jax.random.normal(keys[1], (NPOS, D), jnp.float32) * 0.1
    wa = jax.random.normal(keys[2], (D, A), jnp.float32) * 0.1
    va = jax.random.normal(keys[3], (A, 1), jnp.float32) * 0.1
    w1 = jax.random.normal(keys[4], (2 * D, H), jnp.float32) * 0.05
    w2 = jax.random.normal(keys[5], (H, H), jnp.float32) * 0.05
    wp1 = jax.random.normal(keys[6], (H, P1), jnp.float32) * 0.05
    wp2 = jax.random.normal(keys[7], (H, P2), jnp.float32) * 0.05
    b1 = jax.random.normal(keys[13], (1, H), jnp.float32) * 0.05
    b2 = jax.random.normal(keys[14], (1, H), jnp.float32) * 0.05

    params = {
        # attention weights: bf16 MXU operand, true A=64 (no padding -> half the tanh work)
        "wa": wa.astype(jnp.bfloat16),
        "va": va.T.astype(jnp.float32),                        # [1, A]
        # CommonNetwork layer 1 fused (mention rows 0..D-1, context rows D..2D-1)
        "w1": w1.astype(jnp.bfloat16),
        "b1": b1,
        "w2": w2.astype(jnp.bfloat16),
        "b2": b2,
        # fused projectors: [euclidean | hyperbolic | zero pad] -> one lane-dense matmul
        "wp": jnp.pad(jnp.concatenate([wp1, wp2], axis=1),
                      ((0, 0), (0, POUT - P1 - P2))).astype(jnp.bfloat16),
        "bp": jnp.zeros((1, POUT), jnp.float32),
    }

    # Synthetic batch mirroring input[0..5] of the PyTorch forward.
    contexts = jax.random.randint(keys[8], (B, L), 1, V)                    # input[0]
    positions = jnp.broadcast_to(
        jnp.clip(jnp.arange(L)[None, :] - 3, -L, L) + L, (B, L))            # input[1]
    context_len = jax.random.randint(keys[9], (B,), 4, L + 1)               # input[2]
    mentions = jax.random.randint(keys[10], (B, M), 1, V)                   # input[3]
    mention_chars = jax.random.randint(keys[11], (B, M, 8), 1, 30)          # input[4] (unused, see TODO)
    type_indexes = jax.random.randint(keys[12], (B,), 0, 10)                # input[5] (labels; unused in forward)

    # ---- glue (plain JAX): embedding/position gathers, mention masked-mean, lengths ----
    ctx_emb = (jnp.take(word_table, contexts, axis=0)
               + jnp.take(pos_table, positions, axis=0)).astype(jnp.bfloat16)   # [B, L, D]
    ctx_len = context_len.astype(jnp.int32)[:, None]                            # [B, 1]

    men_emb = jnp.take(word_table, mentions, axis=0)                            # [B, M, D] f32
    men_mask = (mentions > 0).astype(jnp.float32)[:, :, None]
    men_cnt = jnp.maximum(jnp.sum(men_mask, axis=1), 1.0)
    mention_vec = (jnp.sum(men_emb * men_mask, axis=1) / men_cnt).astype(jnp.bfloat16)  # [B, D]

    out = composed_forward_pallas(ctx_emb, ctx_len, mention_vec, params, P1, P2, tb=TB)
    jax.block_until_ready(out)

    ref = composed_forward_ref(ctx_emb, ctx_len, mention_vec, params, P1, P2)
    for k in out["projections"]:
        o = out["projections"][k]
        r = ref["projections"][k]
        assert o.shape == r.shape, (k, o.shape, r.shape)
        assert bool(jnp.all(jnp.isfinite(o))), k
        assert jnp.allclose(o, r, atol=5e-3, rtol=5e-2), (k, float(jnp.max(jnp.abs(o - r))))

    print("KERNEL_OK")
</pallas_src>

<mosaic_0001>
module attributes {stable_mosaic.version = 11 : i64} {
  func.func @_composed_fwd_kernel(%arg0: i32, %arg1: memref<64x16x128xbf16, #tpu.memory_space<vmem>>, %arg2: memref<64x1xi32, #tpu.memory_space<vmem>>, %arg3: memref<64x128xbf16, #tpu.memory_space<vmem>>, %arg4: memref<128x64xbf16, #tpu.memory_space<vmem>>, %arg5: memref<1x64xf32, #tpu.memory_space<vmem>>, %arg6: memref<256x128xbf16, #tpu.memory_space<vmem>>, %arg7: memref<1x128xf32, #tpu.memory_space<vmem>>, %arg8: memref<128x128xbf16, #tpu.memory_space<vmem>>, %arg9: memref<1x128xf32, #tpu.memory_space<vmem>>, %arg10: memref<128x128xbf16, #tpu.memory_space<vmem>>, %arg11: memref<1x128xf32, #tpu.memory_space<vmem>>, %arg12: memref<64x128xf32, #tpu.memory_space<vmem>>) attributes {dimension_semantics = [#tpu.dimension_semantics<parallel>], iteration_bounds = array<i64: 2>, scalar_prefetch = 0 : i64, scratch_operands = 0 : i64, tpu.core_type = #tpu.core_type<tc>, window_params = [{transform_indices = @transform_0, window_bounds = array<i64: 64, 16, 128>}, {transform_indices = @transform_1, window_bounds = array<i64: 64, 1>}, {transform_indices = @transform_2, window_bounds = array<i64: 64, 128>}, {pipeline_mode = #tpu.pipeline_mode<synchronous>, transform_indices = @transform_3, window_bounds = array<i64: 128, 64>}, {pipeline_mode = #tpu.pipeline_mode<synchronous>, transform_indices = @transform_4, window_bounds = array<i64: 1, 64>}, {pipeline_mode = #tpu.pipeline_mode<synchronous>, transform_indices = @transform_5, window_bounds = array<i64: 256, 128>}, {pipeline_mode = #tpu.pipeline_mode<synchronous>, transform_indices = @transform_6, window_bounds = array<i64: 1, 128>}, {pipeline_mode = #tpu.pipeline_mode<synchronous>, transform_indices = @transform_7, window_bounds = array<i64: 128, 128>}, {pipeline_mode = #tpu.pipeline_mode<synchronous>, transform_indices = @transform_8, window_bounds = array<i64: 1, 128>}, {pipeline_mode = #tpu.pipeline_mode<synchronous>, transform_indices = @transform_9, window_bounds = array<i64: 128, 128>}, {pipeline_mode = #tpu.pipeline_mode<synchronous>, transform_indices = @transform_10, window_bounds = array<i64: 1, 128>}, {transform_indices = @transform_11, window_bounds = array<i64: 64, 128>}]} {
    %c0 = arith.constant 0 : index
    %c0_0 = arith.constant 0 : index
    %c0_1 = arith.constant 0 : index
    %0 = vector.load %arg1[%c0, %c0_0, %c0_1] : memref<64x16x128xbf16, #tpu.memory_space<vmem>>, vector<64x16x128xbf16>
    %1 = vector.shape_cast %0 : vector<64x16x128xbf16> to vector<1024x128xbf16>
    %c0_2 = arith.constant 0 : index
    %c0_3 = arith.constant 0 : index
    %2 = vector.load %arg4[%c0_2, %c0_3] : memref<128x64xbf16, #tpu.memory_space<vmem>>, vector<128x64xbf16>
    %cst = arith.constant dense<0.000000e+00> : vector<1024x64xf32>
    %3 = tpu.matmul %1, %2, %cst {dimension_numbers = #tpu.dot_dimension_numbers<[1], [0], [0], [1], [0, 0, 1, 1], [], []>} : vector<1024x128xbf16>, vector<128x64xbf16>, vector<1024x64xf32> -> vector<1024x64xf32>
    %4 = math.tanh %3 : vector<1024x64xf32>
    %5 = vector.shape_cast %4 : vector<1024x64xf32> to vector<64x16x64xf32>
    %c0_4 = arith.constant 0 : index
    %c0_5 = arith.constant 0 : index
    %6 = vector.load %arg5[%c0_4, %c0_5] : memref<1x64xf32, #tpu.memory_space<vmem>>, vector<1x64xf32>
    %7 = vector.shape_cast %6 : vector<1x64xf32> to vector<1x1x64xf32>
    %8 = vector.broadcast %7 : vector<1x1x64xf32> to vector<64x16x64xf32>
    %9 = arith.mulf %5, %8 : vector<64x16x64xf32>
    %cst_6 = arith.constant dense<0.000000e+00> : vector<64x16xf32>
    %10 = vector.multi_reduction <add>, %9, %cst_6 [2] : vector<64x16x64xf32> to vector<64x16xf32>
    %11 = vector.shape_cast %10 : vector<64x16xf32> to vector<64x16x1xf32>
    %c0_7 = arith.constant 0 : index
    %c0_8 = arith.constant 0 : index
    %12 = vector.load %arg2[%c0_7, %c0_8] : memref<64x1xi32, #tpu.memory_space<vmem>>, vector<64x1xi32>
    %13 = tpu.iota {dimensions = array<i32: 1>} : vector<64x16x1xi32>
    %14 = vector.shape_cast %12 : vector<64x1xi32> to vector<64x1x1xi32>
    %15 = vector.broadcast %14 : vector<64x1x1xi32> to vector<64x16x1xi32>
    %16 = arith.cmpi slt, %13, %15 : vector<64x16x1xi32>
    %17 = arith.extui %16 : vector<64x16x1xi1> to vector<64x16x1xi32>
    %18 = arith.sitofp %17 : vector<64x16x1xi32> to vector<64x16x1xf32>
    %cst_9 = arith.constant dense<0xFF800000> : vector<64x1xf32>
    %19 = vector.multi_reduction <maximumf>, %11, %cst_9 [1] : vector<64x16x1xf32> to vector<64x1xf32>
    %20 = vector.shape_cast %19 : vector<64x1xf32> to vector<64x1x1xf32>
    %21 = vector.broadcast %20 : vector<64x1x1xf32> to vector<64x16x1xf32>
    %22 = arith.subf %11, %21 : vector<64x16x1xf32>
    %23 = math.exp %22 : vector<64x16x1xf32>
    %24 = arith.mulf %23, %18 : vector<64x16x1xf32>
    %cst_10 = arith.constant dense<0.000000e+00> : vector<64x1xf32>
    %25 = vector.multi_reduction <add>, %24, %cst_10 [1] : vector<64x16x1xf32> to vector<64x1xf32>
    %26 = vector.shape_cast %25 : vector<64x1xf32> to vector<64x1x1xf32>
    %cst_11 = arith.constant 1.000000e-30 : f32
    %27 = vector.broadcast %cst_11 : f32 to vector<64x1x1xf32>
    %28 = arith.maximumf %26, %27 : vector<64x1x1xf32>
    %29 = tpu.reciprocal %28 : vector<64x1x1xf32> -> vector<64x1x1xf32>
    %30 = vector.broadcast %29 : vector<64x1x1xf32> to vector<64x16x1xf32>
    %31 = arith.mulf %24, %30 : vector<64x16x1xf32>
    %32 = arith.truncf %31 : vector<64x16x1xf32> to vector<64x16x1xbf16>
    %33 = vector.broadcast %32 : vector<64x16x1xbf16> to vector<64x16x128xbf16>
    %34 = arith.mulf %33, %0 : vector<64x16x128xbf16>
    %35 = arith.extf %34 : vector<64x16x128xbf16> to vector<64x16x128xf32>
    %cst_12 = arith.constant dense<0.000000e+00> : vector<64x128xf32>
    %36 = vector.multi_reduction <add>, %35, %cst_12 [1] : vector<64x16x128xf32> to vector<64x128xf32>
    %c0_13 = arith.constant 0 : index
    %c0_14 = arith.constant 0 : index
    %37 = vector.load %arg3[%c0_13, %c0_14] : memref<64x128xbf16, #tpu.memory_space<vmem>>, vector<64x128xbf16>
    %38 = arith.truncf %36 : vector<64x128xf32> to vector<64x128xbf16>
    %39 = tpu.concatenate %37, %38 in 1 : vector<64x128xbf16>, vector<64x128xbf16> -> vector<64x256xbf16>
    %c0_15 = arith.constant 0 : index
    %c0_16 = arith.constant 0 : index
    %40 = vector.load %arg6[%c0_15, %c0_16] : memref<256x128xbf16, #tpu.memory_space<vmem>>, vector<256x128xbf16>
    %cst_17 = arith.constant dense<0.000000e+00> : vector<64x128xf32>
    %41 = tpu.matmul %39, %40, %cst_17 {dimension_numbers = #tpu.dot_dimension_numbers<[1], [0], [0], [1], [0, 0, 1, 1], [], []>} : vector<64x256xbf16>, vector<256x128xbf16>, vector<64x128xf32> -> vector<64x128xf32>
    %c0_18 = arith.constant 0 : index
    %c0_19 = arith.constant 0 : index
    %42 = vector.load %arg7[%c0_18, %c0_19] : memref<1x128xf32, #tpu.memory_space<vmem>>, vector<1x128xf32>
    %43 = vector.broadcast %42 : vector<1x128xf32> to vector<64x128xf32>
    %44 = arith.addf %41, %43 : vector<64x128xf32>
    %cst_20 = arith.constant 0.000000e+00 : f32
    %45 = vector.broadcast %cst_20 : f32 to vector<64x128xf32>
    %46 = arith.maximumf %44, %45 : vector<64x128xf32>
    %47 = arith.truncf %46 : vector<64x128xf32> to vector<64x128xbf16>
    %c0_21 = arith.constant 0 : index
    %c0_22 = arith.constant 0 : index
    %48 = vector.load %arg8[%c0_21, %c0_22] : memref<128x128xbf16, #tpu.memory_space<vmem>>, vector<128x128xbf16>
    %cst_23 = arith.constant dense<0.000000e+00> : vector<64x128xf32>
    %49 = tpu.matmul %47, %48, %cst_23 {dimension_numbers = #tpu.dot_dimension_numbers<[1], [0], [0], [1], [0, 0, 1, 1], [], []>} : vector<64x128xbf16>, vector<128x128xbf16>, vector<64x128xf32> -> vector<64x128xf32>
    %c0_24 = arith.constant 0 : index
    %c0_25 = arith.constant 0 : index
    %50 = vector.load %arg9[%c0_24, %c0_25] : memref<1x128xf32, #tpu.memory_space<vmem>>, vector<1x128xf32>
    %51 = vector.broadcast %50 : vector<1x128xf32> to vector<64x128xf32>
    %52 = arith.addf %49, %51 : vector<64x128xf32>
    %cst_26 = arith.constant 0.000000e+00 : f32
    %53 = vector.broadcast %cst_26 : f32 to vector<64x128xf32>
    %54 = arith.maximumf %52, %53 : vector<64x128xf32>
    %55 = arith.truncf %54 : vector<64x128xf32> to vector<64x128xbf16>
    %c0_27 = arith.constant 0 : index
    %c0_28 = arith.constant 0 : index
    %56 = vector.load %arg10[%c0_27, %c0_28] : memref<128x128xbf16, #tpu.memory_space<vmem>>, vector<128x128xbf16>
    %cst_29 = arith.constant dense<0.000000e+00> : vector<64x128xf32>
    %57 = tpu.matmul %55, %56, %cst_29 {dimension_numbers = #tpu.dot_dimension_numbers<[1], [0], [0], [1], [0, 0, 1, 1], [], []>} : vector<64x128xbf16>, vector<128x128xbf16>, vector<64x128xf32> -> vector<64x128xf32>
    %c0_30 = arith.constant 0 : index
    %c0_31 = arith.constant 0 : index
    %58 = vector.load %arg11[%c0_30, %c0_31] : memref<1x128xf32, #tpu.memory_space<vmem>>, vector<1x128xf32>
    %59 = vector.broadcast %58 : vector<1x128xf32> to vector<64x128xf32>
    %60 = arith.addf %57, %59 : vector<64x128xf32>
    %c0_32 = arith.constant 0 : index
    %c0_33 = arith.constant 0 : index
    %61 = vector.load %arg12[%c0_32, %c0_33] : memref<64x128xf32, #tpu.memory_space<vmem>>, vector<64x128xf32>
    tpu.vector_store %arg12[%c0_32, %c0_33], %60 {strides = array<i32>} : memref<64x128xf32, #tpu.memory_space<vmem>>, vector<64x128xf32>,
    return
  }
  func.func @transform_0(%arg0: i32) -> (i32, i32, i32) {
    %c0_i32 = arith.constant 0 : i32
    %c0_i32_0 = arith.constant 0 : i32
    %c0_i32_1 = arith.constant 0 : i32
    return %arg0, %c0_i32, %c0_i32_0 : i32, i32, i32
  }
  func.func @transform_1(%arg0: i32) -> (i32, i32) {
    %c0_i32 = arith.constant 0 : i32
    %c0_i32_0 = arith.constant 0 : i32
    return %arg0, %c0_i32 : i32, i32
  }
  func.func @transform_2(%arg0: i32) -> (i32, i32) {
    %c0_i32 = arith.constant 0 : i32
    %c0_i32_0 = arith.constant 0 : i32
    return %arg0, %c0_i32 : i32, i32
  }
  func.func @transform_3(%arg0: i32) -> (i32, i32) {
    %c0_i32 = arith.constant 0 : i32
    %c0_i32_0 = arith.constant 0 : i32
    %c0_i32_1 = arith.constant 0 : i32
    return %c0_i32, %c0_i32_0 : i32, i32
  }
  func.func @transform_4(%arg0: i32) -> (i32, i32) {
    %c0_i32 = arith.constant 0 : i32
    %c0_i32_0 = arith.constant 0 : i32
    %c0_i32_1 = arith.constant 0 : i32
    return %c0_i32, %c0_i32_0 : i32, i32
  }
  func.func @transform_5(%arg0: i32) -> (i32, i32) {
    %c0_i32 = arith.constant 0 : i32
    %c0_i32_0 = arith.constant 0 : i32
    %c0_i32_1 = arith.constant 0 : i32
    return %c0_i32, %c0_i32_0 : i32, i32
  }
  func.func @transform_6(%arg0: i32) -> (i32, i32) {
    %c0_i32 = arith.constant 0 : i32
    %c0_i32_0 = arith.constant 0 : i32
    %c0_i32_1 = arith.constant 0 : i32
    return %c0_i32, %c0_i32_0 : i32, i32
  }
  func.func @transform_7(%arg0: i32) -> (i32, i32) {
    %c0_i32 = arith.constant 0 : i32
    %c0_i32_0 = arith.constant 0 : i32
    %c0_i32_1 = arith.constant 0 : i32
    return %c0_i32, %c0_i32_0 : i32, i32
  }
  func.func @transform_8(%arg0: i32) -> (i32, i32) {
    %c0_i32 = arith.constant 0 : i32
    %c0_i32_0 = arith.constant 0 : i32
    %c0_i32_1 = arith.constant 0 : i32
    return %c0_i32, %c0_i32_0 : i32, i32
  }
  func.func @transform_9(%arg0: i32) -> (i32, i32) {
    %c0_i32 = arith.constant 0 : i32
    %c0_i32_0 = arith.constant 0 : i32
    %c0_i32_1 = arith.constant 0 : i32
    return %c0_i32, %c0_i32_0 : i32, i32
  }
  func.func @transform_10(%arg0: i32) -> (i32, i32) {
    %c0_i32 = arith.constant 0 : i32
    %c0_i32_0 = arith.constant 0 : i32
    %c0_i32_1 = arith.constant 0 : i32
    return %c0_i32, %c0_i32_0 : i32, i32
  }
  func.func @transform_11(%arg0: i32) -> (i32, i32) {
    %c0_i32 = arith.constant 0 : i32
    %c0_i32_0 = arith.constant 0 : i32
    return %arg0, %c0_i32 : i32, i32
  }
}

</mosaic_0001>

<bundles_post_ra>
// kernel: tpu_custom_call.1
= control target key start
LH: loop header
LB: loop body
LE: loop exit
PB: predicated region body
PF: predicated region fallthrough
CT: control target
= control target key end

     0   :  { %s12483_s0 = inlined_call_operand.hbm [shape: bf16[128,16,128], index: 0, kind: input, shape index: {}]   ;;  %s12484_s1 = inlined_call_operand.vmem [shape: s32[128,1], index: 1, kind: input, shape index: {}]   ;;  %s12485_s2 = inlined_call_operand.vmem [shape: bf16[128,128], index: 2, kind: input, shape index: {}]   ;;  %s12486_s3 = inlined_call_operand.vmem [shape: bf16[128,64], index: 3, kind: input, shape index: {}]   ;;  %s12487_s4 = inlined_call_operand.vmem [shape: f32[1,64], index: 4, kind: input, shape index: {}]   ;;  %s12488_s5 = inlined_call_operand.vmem [shape: bf16[256,128], index: 5, kind: input, shape index: {}]   ;;  %s12489_s6 = inlined_call_operand.vmem [shape: f32[1,128], index: 6, kind: input, shape index: {}]   ;;  %s12490_s7 = inlined_call_operand.hbm [shape: bf16[128,128], index: 7, kind: input, shape index: {}]   ;;  %s12491_s8 = inlined_call_operand.vmem [shape: f32[1,128], index: 8, kind: input, shape index: {}]   ;;  %s12492_s9 = inlined_call_operand.vmem [shape: bf16[128,128], index: 9, kind: input, shape index: {}]   ;;  %s12493_s10 = inlined_call_operand.vmem [shape: f32[1,128], index: 10, kind: input, shape index: {}]   ;;  %s12494_s11 = inlined_call_operand.hbm [shape: f32[128,128], index: 11, kind: output, shape index: {}]  }
   0x1   :  { %12531 = sst [smem:[#allocation50_spill]] %s12494_s11 }
   0x2   :  { %16 = vsyncpa [#allocation3], 0 }
   0x3   :  { %18 = vsyncpa [#allocation3 + $0x1], 0 }
   0x4   :  { %19 = vsyncpa [#allocation6], 0 }
   0x5   :  { %20 = vsyncpa [#allocation4], 0 }
   0x6   :  { %22 = vsyncpa [#allocation4 + $0x1], 0  ;;  %s8719_s17 = smov 0   ;;  %s8721_s18 = smov 0  }
   0x7   :  { %s8723_s19 = smov 0   ;;  %s8725_s20 = smov 0  }
   0x8 LB: > { %12532 = sst [smem:[#allocation11_spill]] %s8635_s17  ;;  %s8740_s21 = sadd.s32 4294967295, %s8647_s20   ;;  %s8647_s20 = sphi %s8725_s20, %s12742_s20   ;;  %s8643_s19 = sphi %s8723_s19, %s12745_s19   ;;  %s8639_s18 = sphi %s8721_s18, %s12744_s18   ;;  %s8635_s17 = sphi %s8719_s17, %s12743_s17  }
   0x9   : > { %s7017_s22 = sadd.s32 4294967294, %s8647_s20   ;;  %p48_p0 = scmp.ne.s32.totalorder %s8639_s18, %s8635_s17 }
   0xa   : > { %p12498_p1 = scmp.eq.s32.totalorder %s8740_s21, 0  ;;  %p298_p3 = scmp.eq.s32.totalorder %s7017_s22, 1 }
   0xb   : > { %p7018_p5 = scmp.ge.s32.totalorder %s8647_s20, 1  ;;  %p305_p7 = scmp.lt.s32.totalorder %s8647_s20, 3 }
   0xc   : > { %p8749_p4 = por %p12498_p1, %p48_p0  ;;  %p8754_p6 = por %p298_p3, %p48_p0 }
   0xd   : > { %p8759_p8 = pnand %p7018_p5, %p305_p7  ;;  %s8649_s26 = smov [#allocation5]  }
   0xe   : > { %s12533_s23 = scalar_select %p8749_p4, 1, 0 }
   0xf   : > { %s12534_s24 = scalar_select %p8754_p6, 1, 0 }
  0x10   : > { %s12536_s25 = scalar_select %p8759_p8, 1, 0 }
  0x11   : > { %12535 = sst [smem:[#allocation12_spill]] %s12534_s24  ;;  %s329_s27 = sshll.u32 %s8649_s26, 4  ;;  %s8763_s27 = int_to_ptr.vmem [resolvable:$true] %s329_s27 }
  0x12   : > { %p7633_p9 = pneg %p8759_p8  ;;  %s8775_s29 = sadd.s32 1, %s8647_s20  }
  0x13   : > { %12538 = sst [smem:[#allocation13_spill]] %s8775_s29  ;;  %s35_s30 = sadd.s32 1, %s8643_s19 }
  0x14   : > { %p8770_p11 = pnand %p7633_p9, %p12498_p1  ;;  %s32_s12 = ssub.s32 %s8647_s20, %s8775_s29 }
  0x15   : > { %s8519_s15 = scalar_lea.hbm %s12490_s7, 1024 }
  0x16   : > { %p8520_p12 = scmp.ne.s32.totalorder %s12490_s7, %s8519_s15  ;;  %p8521_p13 = pneg %p8770_p11 }
  0x17   : > { %p8526_p5 = scmp.lt.u32.totalorder %s8519_s15, %s12490_s7 }
  0x18   : > { %p8522_p0 = pnand %p8521_p13, %p8520_p12 }
  0x1a   : > { %p8523_p3 = pneg %p8522_p0 }
  0x1c   : > { %p8528_p7 = pnand %p8526_p5, %p8523_p3 }
  0x1e   : > { %8531 = shalt.err (!%p8528_p7)
}
  0x1f   : > { %s8532_s29 = scalar_lea.vmem %s8763_s27, 1024  ;;  %p8540_p2 = scmp.lt.s32.totalorder %s8763_s27, %s8763_s27 }
  0x20   : > { %p8533_p9 = scmp.ne.s32.totalorder %s8763_s27, %s8532_s29  ;;  %p8541_p6 = scmp.lt.s32.totalorder %s8532_s29, %s8532_s29 }
  0x22   : > { %p8535_p10 = pnand %p8533_p9, %p8521_p13  ;;  %p8542_p4 = por %p8541_p6, %p8540_p2 }
  0x24   : > { %p8536_p1 = pneg %p8535_p10 }
  0x26   : > { %p8543_p8 = pnand %p8542_p4, %p8536_p1 }
  0x28   : > { %8546 = shalt.err (!%p8543_p8)
}
  0x29   : > { %s12503_s13 = smov 64   ;;  %s8651_s24 = smov 4  }
  0x2a   : > { %7636 = dma.hbm_to_vmem [thread:$0]  (!%p8770_p11), %s12490_s7, 1024, %s8763_s27, [#allocation6], %s12503_s13, %s12503_s13, %s8651_s24  }
  0x2b   : > { %p33_p1 = scmp.eq.s32.totalorder %s32_s12, 0  ;;  %p42_p2 = scmp.ne.s32.totalorder %s8643_s19, %s8639_s18 }
  0x2c   : > { %p43_p4 = scmp.eq.s32.totalorder %s8647_s20, 0  ;;  %p7646_p6 = scmp.lt.s32.totalorder %s8647_s20, 2 }
  0x2d   : > { %s8809_s15 = scalar_select %p33_p1, %s8643_s19, %s35_s30  }
  0x2e   : > { %p44_p8 = por %p43_p4, %p42_p2  ;;  %p12539_p10 = scmp.eq.s32.totalorder %s8740_s21, 1 }
  0x2f   : > { %s352_s28 = sand.u32 1, %s8643_s19   ;;  %s7279_s22 = sshll.u32 %s8647_s20, 13 }
  0x30   : > { %p8813_p12 = por %p12539_p10, %p42_p2  ;;  %s7021_s26 = sshll.u32 %s352_s28, 9 }
  0x31   : > { %s8822_s29 = scalar_lea.hbm %s12483_s0, %s7279_s22  ;;  %s356_s27 = scalar_lea.vmem [#allocation2], %s7021_s26 }
  0x32   : > { %s364_s30 = sshll.u32 %s356_s27, 4  ;;  %p8824_p11 = pnand %p7646_p6, %p44_p8  ;;  %s8828_s30 = int_to_ptr.vmem [resolvable:$true] %s364_s30 }
  0x33   : > { %s8830_s14 = scalar_lea.sflag [#allocation3], %s352_s28  ;;  %s8547_s13 = scalar_lea.hbm %s8822_s29, 8192 }
  0x34   : > { %p8548_p13 = scmp.ne.s32.totalorder %s8822_s29, %s8547_s13  ;;  %p8549_p0 = pneg %p8824_p11 }
  0x35   : > { %s8552_s22 = scalar_lea.hbm %s12483_s0, 16384  ;;  %p8553_p7 = scmp.lt.u32.totalorder %s8822_s29, %s12483_s0 }
  0x36   : > { %p8550_p3 = pnand %p8549_p0, %p8548_p13  ;;  %p8554_p9 = scmp.lt.u32.totalorder %s8552_s22, %s8547_s13 }
  0x37   : > { %p8556_p2 = scmp.lt.u32.totalorder %s8547_s13, %s8822_s29 }
  0x38   : > { %p8551_p5 = pneg %p8550_p3  ;;  %p8555_p1 = por %p8554_p9, %p8553_p7 }
  0x3a   : > { %p8557_p4 = por %p8556_p2, %p8555_p1 }
  0x3c   : > { %p8558_p6 = pnand %p8557_p4, %p8551_p5 }
  0x3e   : > { %8561 = shalt.err (!%p8558_p6)
}
  0x3f   : > { %s8562_s28 = scalar_lea.vmem %s8828_s30, 8192  ;;  %s8652_s11 = smov [#allocation2]  }
  0x40   : > { %p8563_p8 = scmp.ne.s32.totalorder %s8828_s30, %s8562_s28  ;;  %s8567_s17 = sshll.u32 %s8652_s11, 4  ;;  %s8568_s17 = int_to_ptr.vmem [resolvable:$false] %s8567_s17 }
  0x41   : > { %s8569_s26 = scalar_lea.vmem %s8568_s17, 16384  ;;  %p8570_p3 = scmp.lt.s32.totalorder %s8828_s30, %s8568_s17 }
  0x42   : > { %p8565_p10 = pnand %p8563_p8, %p8549_p0  ;;  %p8571_p7 = scmp.lt.s32.totalorder %s8569_s26, %s8562_s28 }
  0x44   : > { %p8566_p13 = pneg %p8565_p10  ;;  %p8572_p9 = por %p8571_p7, %p8570_p3 }
  0x46   : > { %p8573_p1 = pnand %p8572_p9, %p8566_p13 }
  0x48   : > { %8576 = shalt.err (!%p8573_p1)
}
  0x49   : > { %s12542_s13 = smov 64   ;;  %p12543_p0 = scmp.ne.s32.totalorder %s12536_s25, 0 }
  0x4a   : > { %7640 = dma.hbm_to_vmem [thread:$0]  (!%p8824_p11), %s8822_s29, 8192, %s8828_s30, %s8830_s14, %s12542_s13, %s12542_s13, %s8651_s24  }
  0x4b   : > { %394 = sbr.rel (%p12543_p0) target bundleno = 2012 (0x7dc), region = 64 }
  0x52   : > { %s8864_s22 = sand.u32 1, %s8639_s18   ;;  %p12544_p5 = scmp.ne.s32.totalorder %s12533_s23, 0 }
  0x53   : > { %s7026_s27 = sshll.u32 %s8864_s22, 9  ;;  %s397_s28 = scalar_lea.sflag [#allocation3], %s8864_s22 }
  0x54   : > { %s8868_s11 = scalar_lea.vmem [#allocation2], %s7026_s27 }
  0x55   : > { %8622 = dma.done.wait (%p12544_p5), %s397_s28, 8192  }
  0x56   : > { %8624 = vsyncadd (%p12544_p5), %s397_s28, 4294959104  ;;  %p12545_p11 = scmp.eq.s32.totalorder %s8740_s21, 0 }
  0x58   : > { %8626 = dma.done.wait (%p12545_p11), [#allocation6], 1024   ;;  %p12546_p2 = pmov %p12545_p11 }
  0x59   : > { %v7691_v0 = vld [vmem:[%s12486_s3] sm:$0xff]   ;;  %v7692_v1 = vld [vmem:[%s12486_s3 + $0x8] sm:$0xff]   ;;  %v7693_v2 = vld [vmem:[%s12486_s3 + $0x10] sm:$0xff]   ;;  %vm1852_vm0 = vcmask 523264   ;;  %s7029_s14 = sshll.u32 %s8740_s21, 3  ;;  %vm4240_vm11 = vcmask 7168  }
  0x5a   : > { %8628 = vsyncadd (%p12546_p2), [#allocation6], 4294966272  ;;  %7417 = vmatprep.subr.bf16.mxu0 %v7691_v0  ;;  %7609 = vmatprep.subr.bf16.mxu1 %v7691_v0  ;;  %v7694_v3 = vld [vmem:[%s12486_s3 + $0x18] sm:$0xff]   ;;  %v7699_v4 = vld [vmem:[%s8868_s11] sm:$0xff]   ;;  %p455_p4 = scmp.lt.s32.totalorder %s7029_s14, 15  ;;  %s7028_s30 = sshll.u32 %s8864_s22, 6 }
  0x5b   : > { %7418 = vmatpush3.bf16.msra.mxu0 %v7691_v0  ;;  %7617 = vmatpush3.bf16.msra.mxu1 %v7691_v0  ;;  %v7700_v5 = vld [vmem:[%s8868_s11 + $0x150] sm:$0xff]   ;;  %v7695_v6 = vld [vmem:[%s12486_s3 + $0x20] sm:$0xff]   ;;  %v7696_v7 = vld [vmem:[%s12486_s3 + $0x28] sm:$0xff]   ;;  %s12737_s13 = sld [smem:[#allocation50_spill]] }
  0x5c   : > { %7419 = vmatprep.subr.bf16.mxu0 %v7692_v1  ;;  %7610 = vmatprep.subr.bf16.mxu1 %v7692_v1  ;;  %v7697_v8 = vld [vmem:[%s12486_s3 + $0x30] sm:$0xff]   ;;  %v7698_v9 = vld [vmem:[%s12486_s3 + $0x38] sm:$0xff]   ;;  %v7701_v10 = vld [vmem:[%s8868_s11 + $0x8] sm:$0xff]   ;;  %s12747_s14 = smov (!%p455_p4, %s7029_s14), 15 }
  0x5d   : > { %7433 = vmatprep.mubr.bf16.mxu0 %v7699_v4  ;;  %7517 = vmatprep.mubr.bf16.mxu1 %v7700_v5  ;;  %v7702_v11 = vld [vmem:[%s8868_s11 + $0x158] sm:$0xff]   ;;  %v7703_v12 = vld [vmem:[%s8868_s11 + $0x10] sm:$0xff]   ;;  %v7705_v13 = vld [vmem:[%s8868_s11 + $0x160] sm:$0xff]   ;;  %s7030_s17 = sshll.u32 %s12747_s14, 3  ;;  %s7032_s24 = sshll.u32 %s12747_s14, 2 }
  0x5e   : > { %v7704_v14 = vld [vmem:[%s8868_s11 + $0x18] sm:$0xff]   ;;  %v7706_v15 = vld [vmem:[%s8868_s11 + $0x168] sm:$0xff]   ;;  %v7707_v16 = vld [vmem:[%s8868_s11 + $0x20] sm:$0xff]   ;;  %s9357_s27 = scalar_lea.vmem %s12484_s1, %s7030_s17  ;;  %s7280_s17 = sshll.u32 %s8740_s21, 10 }
  0x5f   : > { %7420 = vmatpush3.bf16.msra.mxu0 %v7692_v1  ;;  %7618 = vmatpush3.bf16.msra.mxu1 %v7692_v1  ;;  %v7709_v17 = vld [vmem:[%s8868_s11 + $0x170] sm:$0xff]   ;;  %v7708_v18 = vld [vmem:[%s8868_s11 + $0x28] sm:$0xff]   ;;  %v7710_v19 = vld [vmem:[%s8868_s11 + $0x178] sm:$0xff]   ;;  %s6897_s21 = scalar_lea.sflag [#allocation4], %s8864_s22 }
  0x60   : > { %7421 = vmatprep.subr.bf16.mxu0 %v7693_v2  ;;  %7611 = vmatprep.subr.bf16.mxu1 %v7693_v2  ;;  %v7711_v20 = vld [vmem:[%s8868_s11 + $0x30] sm:$0xff]   ;;  %v7713_v21 = vld [vmem:[%s8868_s11 + $0x180] sm:$0xff]   ;;  %v7712_v22 = vld [vmem:[%s8868_s11 + $0x38] sm:$0xff]  }
  0x61   : > { %v7714_v23 = vld [vmem:[%s8868_s11 + $0x188] sm:$0xff]   ;;  %v7715_v24 = vld [vmem:[%s8868_s11 + $0x40] sm:$0xff]   ;;  %v7717_v25 = vld [vmem:[%s8868_s11 + $0x190] sm:$0xff]   ;;  %s12439_s28 = scalar_lea.hbm %s12737_s13, %s7280_s17 }
  0x62   : > { %v7716_v26 = vld [vmem:[%s8868_s11 + $0x48] sm:$0xff]   ;;  %v7718_v27 = vld [vmem:[%s8868_s11 + $0x198] sm:$0xff]   ;;  %v7719_v28 = vld [vmem:[%s8868_s11 + $0x50] sm:$0xff]  }
  0x63   : > { %7422 = vmatpush3.bf16.msra.mxu0 %v7693_v2  ;;  %7619 = vmatpush3.bf16.msra.mxu1 %v7693_v2  ;;  %v7721_v29 = vld [vmem:[%s8868_s11 + $0x1a0] sm:$0xff]   ;;  %v7720_v30 = vld [vmem:[%s8868_s11 + $0x58] sm:$0xff]   ;;  %v7722_v31 = vld [vmem:[%s8868_s11 + $0x1a8] sm:$0xff]  }
  0x64   : > { %7423 = vmatprep.subr.bf16.mxu0 %v7694_v3  ;;  %7612 = vmatprep.subr.bf16.mxu1 %v7694_v3  ;;  %v7723_v32 = vld [vmem:[%s8868_s11 + $0x60] sm:$0xff]   ;;  %v7725_v33 = vld [vmem:[%s8868_s11 + $0x1b0] sm:$0xff]   ;;  %v7724_v34 = vld [vmem:[%s8868_s11 + $0x68] sm:$0xff]  }
  0x65   : > { %v7726_v35 = vld [vmem:[%s8868_s11 + $0x1b8] sm:$0xff]   ;;  %v7727_v36 = vld [vmem:[%s8868_s11 + $0x70] sm:$0xff]   ;;  %v7729_v37 = vld [vmem:[%s8868_s11 + $0x1c0] sm:$0xff]  }
  0x66   : > { %v7728_v38 = vld [vmem:[%s8868_s11 + $0x78] sm:$0xff]   ;;  %v7730_v39 = vld [vmem:[%s8868_s11 + $0x1c8] sm:$0xff]   ;;  %v7731_v40 = vld [vmem:[%s8868_s11 + $0x80] sm:$0xff]  }
  0x67   : > { %7424 = vmatpush3.bf16.msra.mxu0 %v7694_v3  ;;  %7620 = vmatpush3.bf16.msra.mxu1 %v7694_v3  ;;  %v7733_v41 = vld [vmem:[%s8868_s11 + $0x1d0] sm:$0xff]   ;;  %v7732_v42 = vld [vmem:[%s8868_s11 + $0x88] sm:$0xff]   ;;  %v7734_v43 = vld [vmem:[%s8868_s11 + $0x1d8] sm:$0xff]  }
  0x68   : > { %7425 = vmatprep.subr.bf16.mxu0 %v7695_v6  ;;  %7613 = vmatprep.subr.bf16.mxu1 %v7695_v6  ;;  %v7735_v44 = vld [vmem:[%s8868_s11 + $0x90] sm:$0xff]   ;;  %v7737_v45 = vld [vmem:[%s8868_s11 + $0x1e0] sm:$0xff]   ;;  %v7736_v46 = vld [vmem:[%s8868_s11 + $0x98] sm:$0xff]  }
  0x69   : > { %v7738_v47 = vld [vmem:[%s8868_s11 + $0x1e8] sm:$0xff]   ;;  %v7739_v48 = vld [vmem:[%s8868_s11 + $0xa0] sm:$0xff]   ;;  %v7741_v49 = vld [vmem:[%s8868_s11 + $0x1f0] sm:$0xff]  }
  0x6a   : > { %v7740_v50 = vld [vmem:[%s8868_s11 + $0xa8] sm:$0xff]   ;;  %v7742_v51 = vld [vmem:[%s8868_s11 + $0x1f8] sm:$0xff]   ;;  %v7743_v52 = vld [vmem:[%s8868_s11 + $0xb0] sm:$0xff]  }
  0x6b   : > { %7426 = vmatpush3.bf16.msra.mxu0 %v7695_v6  ;;  %7621 = vmatpush3.bf16.msra.mxu1 %v7695_v6  ;;  %v7744_v53 = vld [vmem:[%s8868_s11 + $0xb8] sm:$0xff]   ;;  %v7745_v54 = vld [vmem:[%s8868_s11 + $0xc0] sm:$0xff]   ;;  %v7746_v55 = vld [vmem:[%s8868_s11 + $0xc8] sm:$0xff]  }
  0x6c   : > { %7427 = vmatprep.subr.bf16.mxu0 %v7696_v7  ;;  %7614 = vmatprep.subr.bf16.mxu1 %v7696_v7  ;;  %v7747_v56 = vld [vmem:[%s8868_s11 + $0xd0] sm:$0xff]   ;;  %v7748_v57 = vld [vmem:[%s8868_s11 + $0xd8] sm:$0xff]   ;;  %v7749_v58 = vld [vmem:[%s8868_s11 + $0xe0] sm:$0xff]  }
  0x6d   : > { %v7750_v59 = vld [vmem:[%s8868_s11 + $0xe8] sm:$0xff]   ;;  %v7751_v60 = vld [vmem:[%s8868_s11 + $0xf0] sm:$0xff]   ;;  %v7752_v61 = vld [vmem:[%s8868_s11 + $0xf8] sm:$0xff]  }
  0x6e   : > { %v7753_v62 = vld [vmem:[%s8868_s11 + $0x100] sm:$0xff]   ;;  %v7754_v63 = vld [vmem:[%s8868_s11 + $0x108] sm:$0xff]   ;;  %v7755_v0 = vld [vmem:[%s8868_s11 + $0x110] sm:$0xff]  }
  0x6f   : > { %7428 = vmatpush3.bf16.msra.mxu0 %v7696_v7  ;;  %7622 = vmatpush3.bf16.msra.mxu1 %v7696_v7  ;;  %v7756_v1 = vld [vmem:[%s8868_s11 + $0x118] sm:$0xff]   ;;  %v7757_v2 = vld [vmem:[%s8868_s11 + $0x120] sm:$0xff]   ;;  %v7758_v3 = vld [vmem:[%s8868_s11 + $0x128] sm:$0xff]  }
  0x70   : > { %7429 = vmatprep.subr.bf16.mxu0 %v7697_v8  ;;  %7615 = vmatprep.subr.bf16.mxu1 %v7697_v8  ;;  %v7759_v4 = vld [vmem:[%s8868_s11 + $0x130] sm:$0xff]   ;;  %v7760_v5 = vld [vmem:[%s8868_s11 + $0x138] sm:$0xff]   ;;  %v7761_v6 = vld [vmem:[%s8868_s11 + $0x140] sm:$0xff]  }
  0x71   : > { %v7762_v7 = vld [vmem:[%s8868_s11 + $0x148] sm:$0xff]  }
  0x73   : > { %7430 = vmatpush3.bf16.msra.mxu0 %v7697_v8  ;;  %7623 = vmatpush3.bf16.msra.mxu1 %v7697_v8 }
  0x74   : > { %7431 = vmatprep.subr.bf16.mxu0 %v7698_v9  ;;  %7616 = vmatprep.subr.bf16.mxu1 %v7698_v9 }
  0x77   : > { %7432 = vmatpush3.bf16.msra.mxu0 %v7698_v9  ;;  %7624 = vmatpush3.bf16.msra.mxu1 %v7698_v9 }
  0x7a   : > { %7434 = vmatmul.mubr.bf16.vlgmr.msra.gmra.mrb[0].mxu0 %v7701_v10  ;;  %7518 = vmatmul.mubr.bf16.vlgmr.msra.gmra.mrb[0].mxu1 %v7702_v11 }
  0x7b   : > { %7437 = vmatprep.mubr.bf16.mxu0 %v7703_v12  ;;  %7521 = vmatprep.mubr.bf16.mxu1 %v7705_v13 }
  0x82   : > { %7438 = vmatmul.mubr.bf16.gmra.mrb[4].mxu0 %v7704_v14  ;;  %7522 = vmatmul.mubr.bf16.gmra.mrb[4].mxu1 %v7706_v15 }
  0x83   : > { %7441 = vmatprep.mubr.bf16.mxu0 %v7707_v16  ;;  %7525 = vmatprep.mubr.bf16.mxu1 %v7709_v17 }
  0x8a   : > { %7442 = vmatmul.mubr.bf16.gmra.mrb[8].mxu0 %v7708_v18  ;;  %7526 = vmatmul.mubr.bf16.gmra.mrb[8].mxu1 %v7710_v19  ;;  %v8969_v19 = vld [vmem:[%s12487_s4] ss:$0 sm:$0xff] }
  0x8b   : > { %7445 = vmatprep.mubr.bf16.mxu0 %v7711_v20  ;;  %7529 = vmatprep.mubr.bf16.mxu1 %v7713_v21 }
  0x92   : > { %7446 = vmatmul.mubr.bf16.gmra.mrb[12].mxu0 %v7712_v22  ;;  %7530 = vmatmul.mubr.bf16.gmra.mrb[12].mxu1 %v7714_v23 }
  0x93   : > { %7449 = vmatprep.mubr.bf16.mxu0 %v7715_v24  ;;  %7533 = vmatprep.mubr.bf16.mxu1 %v7717_v25 }
  0x9a   : > { %7450 = vmatmul.mubr.bf16.gmra.mrb[16].mxu0 %v7716_v26  ;;  %7534 = vmatmul.mubr.bf16.gmra.mrb[16].mxu1 %v7718_v27 }
  0x9b   : > { %7453 = vmatprep.mubr.bf16.mxu0 %v7719_v28  ;;  %7537 = vmatprep.mubr.bf16.mxu1 %v7721_v29 }
  0xa2   : > { %7454 = vmatmul.mubr.bf16.gmra.mrb[20].mxu0 %v7720_v30  ;;  %7538 = vmatmul.mubr.bf16.gmra.mrb[20].mxu1 %v7722_v31 }
  0xa3   : > { %7457 = vmatprep.mubr.bf16.mxu0 %v7723_v32  ;;  %7541 = vmatprep.mubr.bf16.mxu1 %v7725_v33 }
  0xaa   : > { %7458 = vmatmul.mubr.bf16.gmra.mrb[24].mxu0 %v7724_v34  ;;  %7542 = vmatmul.mubr.bf16.gmra.mrb[24].mxu1 %v7726_v35 }
  0xab   : > { %7461 = vmatprep.mubr.bf16.mxu0 %v7727_v36  ;;  %7545 = vmatprep.mubr.bf16.mxu1 %v7729_v37 }
  0xb2   : > { %7462 = vmatmul.mubr.bf16.gmra.mrb[28].mxu0 %v7728_v38  ;;  %7546 = vmatmul.mubr.bf16.gmra.mrb[28].mxu1 %v7730_v39 }
  0xb3   : > { %7465 = vmatprep.mubr.bf16.mxu0 %v7731_v40  ;;  %7549 = vmatprep.mubr.bf16.mxu1 %v7733_v41 }
  0xba   : > { %7466 = vmatmul.mubr.bf16.gmra.mrb[32].mxu0 %v7732_v42  ;;  %7550 = vmatmul.mubr.bf16.gmra.mrb[32].mxu1 %v7734_v43 }
  0xbb   : > { %7469 = vmatprep.mubr.bf16.mxu0 %v7735_v44  ;;  %7553 = vmatprep.mubr.bf16.mxu1 %v7737_v45 }
  0xc2   : > { %7470 = vmatmul.mubr.bf16.gmra.mrb[36].mxu0 %v7736_v46  ;;  %7554 = vmatmul.mubr.bf16.gmra.mrb[36].mxu1 %v7738_v47 }
  0xc3   : > { %7473 = vmatprep.mubr.bf16.mxu0 %v7739_v48  ;;  %7557 = vmatprep.mubr.bf16.mxu1 %v7741_v49 }
  0xca   : > { %7474 = vmatmul.mubr.bf16.gmra.mrb[40].mxu0 %v7740_v50  ;;  %7558 = vmatmul.mubr.bf16.gmra.mrb[40].mxu1 %v7742_v51 }
  0xcb   : > { %7477 = vmatprep.mubr.bf16.mxu0 %v7743_v52 }
  0xd2   : > { %7478 = vmatmul.mubr.bf16.gmra.mrb[44].mxu0 %v7744_v53 }
  0xd3   : > { %7481 = vmatprep.mubr.bf16.mxu0 %v7745_v54 }
  0xda   : > { %7482 = vmatmul.mubr.bf16.gmra.mrb[48].mxu0 %v7746_v55 }
  0xdb   : > { %7485 = vmatprep.mubr.bf16.mxu0 %v7747_v56 }
  0xe2   : > { %7486 = vmatmul.mubr.bf16.gmra.mrb[52].mxu0 %v7748_v57 }
  0xe3   : > { %7489 = vmatprep.mubr.bf16.mxu0 %v7749_v58 }
  0xea   : > { %7490 = vmatmul.mubr.bf16.gmra.mrb[56].mxu0 %v7750_v59 }
  0xeb   : > { %7493 = vmatprep.mubr.bf16.mxu0 %v7751_v60 }
  0xf2   : > { %7494 = vmatmul.mubr.bf16.gmra.mrb[60].mxu0 %v7752_v61 }
  0xf3   : > { %7497 = vmatprep.mubr.bf16.mxu0 %v7753_v62 }
  0xfa   : > { %7498 = vmatmul.mubr.bf16.gmra.mrb[64].mxu0 %v7754_v63 }
  0xfb   : > { %7501 = vmatprep.mubr.bf16.mxu0 %v7755_v0 }
 0x102   : > { %7502 = vmatmul.mubr.bf16.gmra.mrb[68].mxu0 %v7756_v1 }
 0x103   : > { %7505 = vmatprep.mubr.bf16.mxu0 %v7757_v2 }
 0x10a   : > { %7506 = vmatmul.mubr.bf16.gmra.mrb[72].mxu0 %v7758_v3 }
 0x10b   : > { %7509 = vmatprep.mubr.bf16.mxu0 %v7759_v4 }
 0x112   : > { %7510 = vmatmul.mubr.bf16.gmra.mrb[76].mxu0 %v7760_v5 }
 0x113   : > { %7513 = vmatprep.mubr.bf16.mxu0 %v7761_v6 }
 0x11a   : > { %7514 = vmatmul.mubr.bf16.gmra.mrb[80].mxu0 %v7762_v7 }
 0x14d   : > { %v7435_v8 = vpop.f32.mrb[0].mxu0  ;;  %v7519_v9 = vpop.f32.mrb[0].mxu1 }
 0x14e   : > { %7807 = vtanh.f32 %v7435_v8  ;;  %v1078_v10 = vpop.f32.mrb[1].mxu0  ;;  %v1414_v11 = vpop.f32.mrb[1].mxu1 }
 0x14f   : > { %7809 = vtanh.f32 %v7519_v9  ;;  %v7436_v12 = vpop.f32.mrb[2].mxu0  ;;  %v7520_v13 = vpop.f32.mrb[2].mxu1 }
 0x150   : > { %7811 = vtanh.f32 %v1078_v10  ;;  %v1081_v14 = vpop.f32.mrb[3].mxu0  ;;  %v1417_v15 = vpop.f32.mrb[3].mxu1 }
 0x151   : > { %7813 = vtanh.f32 %v7436_v12 }
 0x152   : > { %7815 = vtanh.f32 %v1414_v11 }
 0x153   : > { %7817 = vtanh.f32 %v7520_v13 }
 0x154   : > { %7819 = vtanh.f32 %v1417_v15 }
 0x155   : > { %v7439_v16 = vpop.f32.mrb[4].mxu0  ;;  %v7523_v17 = vpop.f32.mrb[4].mxu1  ;;  %7821 = vtanh.f32 %v1081_v14 }
 0x156   : > { %v1094_v18 = vpop.f32.mrb[5].mxu0  ;;  %v1430_v20 = vpop.f32.mrb[5].mxu1 }
 0x157   : > { %v7440_v21 = vpop.f32.mrb[6].mxu0  ;;  %v7524_v22 = vpop.f32.mrb[6].mxu1 }
 0x158   : > { %v7808_v23 = vpop.eup %7807  ;;  %v1097_v24 = vpop.f32.mrb[7].mxu0  ;;  %7823 = vtanh.f32 %v7440_v21 }
 0x159   : > { %v1433_v25 = vpop.f32.mrb[7].mxu1  ;;  %v7810_v26 = vpop.eup %7809  ;;  %v1726_v27 = vmul.f32 %v7808_v23, %v8969_v19  ;;  %7825 = vtanh.f32 %v7439_v16 }
 0x15a   : > { %v7812_v28 = vpop.eup %7811  ;;  %v1810_v29 = vmul.f32 %v7810_v26, %v8969_v19  ;;  %7827 = vtanh.f32 %v7524_v22 }
 0x15b   : > { %v7814_v30 = vpop.eup %7813  ;;  %v1859_v31 = vsel %vm1852_vm0, %v1726_v27, 0.0  ;;  %v1724_v33 = vmul.f32 %v7812_v28, %v8969_v19  ;;  %7829 = vtanh.f32 %v7523_v17 }
 0x15c   : > { %v2111_v32 = vsel %vm1852_vm0, %v1810_v29, 0.0  ;;  %1860 = vadd.xlane.f32.xlu1 %v1859_v31  ;;  %v1727_v34 = vmul.f32 %v7814_v30, %v8969_v19  ;;  %v7816_v35 = vpop.eup %7815  ;;  %7831 = vtanh.f32 %v1097_v24 }
 0x15d   : > { %2112 = vadd.xlane.f32.xlu0 %v2111_v32  ;;  %v7443_v36 = vpop.f32.mrb[8].mxu0  ;;  %v7527_v37 = vpop.f32.mrb[8].mxu1  ;;  %v1853_v46 = vsel %vm1852_vm0, %v1724_v33, 0.0  ;;  %v1808_v47 = vmul.f32 %v7816_v35, %v8969_v19  ;;  %7833 = vtanh.f32 %v1094_v18 }
 0x15e   : > { %v7818_v38 = vpop.eup %7817  ;;  %v8977_v39 = vpop.f32.mrb[9].mxu0  ;;  %v1862_v41 = vsel %vm1852_vm0, %v1727_v34, 0.0  ;;  %7835 = vtanh.f32 %v1433_v25 }
 0x15f   : > { %v8979_v40 = vpop.f32.mrb[9].mxu1  ;;  %v1811_v42 = vmul.f32 %v7818_v38, %v8969_v19  ;;  %v7444_v43 = vpop.f32.mrb[10].mxu0  ;;  %v2105_v54 = vsel %vm1852_vm0, %v1808_v47, 0.0  ;;  %7837 = vtanh.f32 %v1430_v20 }
 0x160   : > { %v7528_v44 = vpop.f32.mrb[10].mxu1  ;;  %v7820_v45 = vpop.eup %7819  ;;  %1863 = vadd.xlane.f32.xlu1 %v1862_v41  ;;  %7839 = vtanh.f32 %v7444_v43 }
 0x161   : > { %v1113_v48 = vpop.f32.mrb[11].mxu0  ;;  %v8985_v49 = vpop.f32.mrb[11].mxu1  ;;  %1854 = vadd.xlane.f32.xlu0 %v1853_v46  ;;  %v2114_v51 = vsel %vm1852_vm0, %v1811_v42, 0.0  ;;  %v1809_v52 = vmul.f32 %v7820_v45, %v8969_v19  ;;  %7841 = vtanh.f32 %v7443_v36 }
 0x162   : > { %v7822_v50 = vpop.eup %7821  ;;  %7843 = vtanh.f32 %v7528_v44 }
 0x163   : > { %v7824_v53 = vpop.eup %7823  ;;  %v1725_v55 = vmul.f32 %v7822_v50, %v8969_v19  ;;  %v2108_v61 = vsel %vm1852_vm0, %v1809_v52, 0.0  ;;  %7845 = vtanh.f32 %v7527_v37 }
 0x164   : > { %2115 = vadd.xlane.f32.xlu1 %v2114_v51  ;;  %v7826_v56 = vpop.eup %7825  ;;  %v1731_v62 = vmul.f32 %v7824_v53, %v8969_v19  ;;  %7847 = vtanh.f32 %v1113_v48 }
 0x165   : > { %2106 = vadd.xlane.f32.xlu0 %v2105_v54  ;;  %v8991_v57 = vpop.f32.mrb[12].mxu0  ;;  %v8993_v58 = vpop.f32.mrb[12].mxu1  ;;  %v1856_v2 = vsel %vm1852_vm0, %v1725_v55, 0.0  ;;  %v1730_v3 = vmul.f32 %v7826_v56, %v8969_v19  ;;  %7849 = vtanh.f32 %v8977_v39 }
 0x166   : > { %v8995_v59 = vpop.f32.mrb[13].mxu0  ;;  %v8997_v60 = vpop.f32.mrb[13].mxu1  ;;  %v1874_v7 = vsel %vm1852_vm0, %v1731_v62, 0.0  ;;  %7851 = vtanh.f32 %v8985_v49 }
 0x167   : > { %v9001_v63 = vpop.f32.mrb[14].mxu0  ;;  %v9003_v0 = vpop.f32.mrb[14].mxu1  ;;  %v1871_v10 = vsel %vm1852_vm0, %v1730_v3, 0.0  ;;  %7853 = vtanh.f32 %v8979_v40 }
 0x168   : > { %v7828_v1 = vpop.eup %7827  ;;  %2109 = vadd.xlane.f32.xlu1 %v2108_v61  ;;  %v9007_v4 = vpop.f32.mrb[15].mxu0  ;;  %7855 = vtanh.f32 %v9001_v63 }
 0x169   : > { %v9009_v5 = vpop.f32.mrb[15].mxu1  ;;  %v7830_v6 = vpop.eup %7829  ;;  %1857 = vadd.xlane.f32.xlu0 %v1856_v2  ;;  %v1815_v8 = vmul.f32 %v7828_v1, %v8969_v19  ;;  %7857 = vtanh.f32 %v8991_v57 }
 0x16a   : > { %v7832_v9 = vpop.eup %7831  ;;  %v1814_v11 = vmul.f32 %v7830_v6, %v8969_v19  ;;  %7859 = vtanh.f32 %v9003_v0 }
 0x16b   : > { %v7834_v12 = vpop.eup %7833  ;;  %v2126_v17 = vsel %vm1852_vm0, %v1815_v8, 0.0  ;;  %v1729_v18 = vmul.f32 %v7832_v9, %v8969_v19  ;;  %7861 = vtanh.f32 %v8993_v58 }
 0x16c   : > { %1875 = vadd.xlane.f32.xlu1 %v1874_v7  ;;  %v7836_v22 = vpop.eup %7835  ;;  %v2123_v23 = vsel %vm1852_vm0, %v1814_v11, 0.0  ;;  %v1728_v24 = vmul.f32 %v7834_v12, %v8969_v19  ;;  %7863 = vtanh.f32 %v9007_v4 }
 0x16d   : > { %1872 = vadd.xlane.f32.xlu0 %v1871_v10  ;;  %v9015_v13 = vpop.f32.mrb[16].mxu0  ;;  %v9017_v14 = vpop.f32.mrb[16].mxu1  ;;  %v1868_v28 = vsel %vm1852_vm0, %v1729_v18, 0.0  ;;  %v1813_v29 = vmul.f32 %v7836_v22, %v8969_v19  ;;  %7865 = vtanh.f32 %v8995_v59 }
 0x16e   : > { %v9019_v15 = vpop.f32.mrb[17].mxu0  ;;  %v9021_v16 = vpop.f32.mrb[17].mxu1  ;;  %v1865_v31 = vsel %vm1852_vm0, %v1728_v24, 0.0  ;;  %7867 = vtanh.f32 %v9009_v5 }
 0x16f   : > { %v9025_v20 = vpop.f32.mrb[18].mxu0  ;;  %v9027_v21 = vpop.f32.mrb[18].mxu1  ;;  %v2120_v38 = vsel %vm1852_vm0, %v1813_v29, 0.0 }
 0x170   : > { %2127 = vadd.xlane.f32.xlu1 %v2126_v17  ;;  %v9031_v25 = vpop.f32.mrb[19].mxu0  ;;  %v9033_v26 = vpop.f32.mrb[19].mxu1 }
 0x171   : > { %v7838_v27 = vpop.eup %7837  ;;  %2124 = vadd.xlane.f32.xlu0 %v2123_v23  ;;  %7869 = vtanh.f32 %v8997_v60 }
 0x172   : > { %v7840_v30 = vpop.eup %7839  ;;  %v1812_v32 = vmul.f32 %v7838_v27, %v8969_v19  ;;  %7871 = vtanh.f32 %v9025_v20 }
 0x173   : > { %v7842_v33 = vpop.eup %7841  ;;  %v1735_v39 = vmul.f32 %v7840_v30, %v8969_v19  ;;  %7873 = vtanh.f32 %v9015_v13 }
 0x174   : > { %1869 = vadd.xlane.f32.xlu1 %v1868_v28  ;;  %v7844_v43 = vpop.eup %7843  ;;  %v2117_v44 = vsel %vm1852_vm0, %v1812_v32, 0.0  ;;  %v1734_v45 = vmul.f32 %v7842_v33, %v8969_v19  ;;  %7875 = vtanh.f32 %v9027_v21 }
 0x175   : > { %1866 = vadd.xlane.f32.xlu0 %v1865_v31  ;;  %v9040_v34 = vpop.f32.mrb[20].mxu0  ;;  %v9042_v35 = vpop.f32.mrb[20].mxu1  ;;  %v1886_v40 = vsel %vm1852_vm0, %v1735_v39, 0.0  ;;  %v1819_v49 = vmul.f32 %v7844_v43, %v8969_v19 }
 0x176   : > { %v9045_v36 = vpop.f32.mrb[21].mxu0  ;;  %v9047_v37 = vpop.f32.mrb[21].mxu1  ;;  %v1883_v51 = vsel %vm1852_vm0, %v1734_v45, 0.0 }
 0x177   : > { %v9052_v41 = vpop.f32.mrb[22].mxu0  ;;  %v9054_v42 = vpop.f32.mrb[22].mxu1  ;;  %v2138_v61 = vsel %vm1852_vm0, %v1819_v49, 0.0 }
 0x178   : > { %2121 = vadd.xlane.f32.xlu1 %v2120_v38  ;;  %v9058_v46 = vpop.f32.mrb[23].mxu0  ;;  %v9060_v47 = vpop.f32.mrb[23].mxu1 }
 0x179   : > { %v7846_v48 = vpop.eup %7845  ;;  %2118 = vadd.xlane.f32.xlu0 %v2117_v44  ;;  %7877 = vtanh.f32 %v9017_v14 }
 0x17a   : > { %v7848_v50 = vpop.eup %7847  ;;  %v1818_v52 = vmul.f32 %v7846_v48, %v8969_v19  ;;  %7879 = vtanh.f32 %v9031_v25 }
 0x17b   : > { %v7850_v53 = vpop.eup %7849  ;;  %v1733_v62 = vmul.f32 %v7848_v50, %v8969_v19  ;;  %7881 = vtanh.f32 %v9019_v15 }
 0x17c   : > { %1887 = vadd.xlane.f32.xlu1 %v1886_v40  ;;  %v7852_v2 = vpop.eup %7851  ;;  %v2135_v3 = vsel %vm1852_vm0, %v1818_v52, 0.0  ;;  %v1732_v0 = vmul.f32 %v7850_v53, %v8969_v19  ;;  %7883 = vtanh.f32 %v9033_v26 }
 0x17d   : > { %1884 = vadd.xlane.f32.xlu0 %v1883_v51  ;;  %v9068_v54 = vpop.f32.mrb[24].mxu0  ;;  %v9070_v55 = vpop.f32.mrb[24].mxu1  ;;  %v1880_v58 = vsel %vm1852_vm0, %v1733_v62, 0.0  ;;  %v1817_v9 = vmul.f32 %v7852_v2, %v8969_v19 }
 0x17e   : > { %v9073_v56 = vpop.f32.mrb[25].mxu0  ;;  %v9075_v57 = vpop.f32.mrb[25].mxu1  ;;  %v1877_v11 = vsel %vm1852_vm0, %v1732_v0, 0.0 }
 0x17f   : > { %v9080_v63 = vpop.f32.mrb[26].mxu0  ;;  %v9082_v1 = vpop.f32.mrb[26].mxu1  ;;  %v2132_v23 = vsel %vm1852_vm0, %v1817_v9, 0.0 }
 0x180   : > { %2139 = vadd.xlane.f32.xlu1 %v2138_v61  ;;  %v9086_v6 = vpop.f32.mrb[27].mxu0  ;;  %v9088_v7 = vpop.f32.mrb[27].mxu1 }
 0x181   : > { %v7854_v8 = vpop.eup %7853  ;;  %2136 = vadd.xlane.f32.xlu0 %v2135_v3  ;;  %7885 = vtanh.f32 %v9021_v16 }
 0x182   : > { %v7856_v10 = vpop.eup %7855  ;;  %v1816_v12 = vmul.f32 %v7854_v8, %v8969_v19  ;;  %7887 = vtanh.f32 %v9052_v41 }
 0x183   : > { %v7858_v17 = vpop.eup %7857  ;;  %v1739_v24 = vmul.f32 %v7856_v10, %v8969_v19  ;;  %7889 = vtanh.f32 %v9040_v34 }
 0x184   : > { %1881 = vadd.xlane.f32.xlu1 %v1880_v58  ;;  %v7860_v29 = vpop.eup %7859  ;;  %v2129_v30 = vsel %vm1852_vm0, %v1816_v12, 0.0  ;;  %v1738_v5 = vmul.f32 %v7858_v17, %v8969_v19  ;;  %7891 = vtanh.f32 %v9054_v42 }
 0x185   : > { %1878 = vadd.xlane.f32.xlu0 %v1877_v11  ;;  %v9096_v18 = vpop.f32.mrb[28].mxu0  ;;  %v9098_v22 = vpop.f32.mrb[28].mxu1  ;;  %v1898_v60 = vsel %vm1852_vm0, %v1739_v24, 0.0  ;;  %v1823_v38 = vmul.f32 %v7860_v29, %v8969_v19 }
 0x186   : > { %v9101_v4 = vpop.f32.mrb[29].mxu0  ;;  %v9103_v59 = vpop.f32.mrb[29].mxu1  ;;  %v1895_v43 = vsel %vm1852_vm0, %v1738_v5, 0.0 }
 0x187   : > { %v9108_v27 = vpop.f32.mrb[30].mxu0  ;;  %v9110_v28 = vpop.f32.mrb[30].mxu1  ;;  %v2150_v49 = vsel %vm1852_vm0, %v1823_v38, 0.0 }
 0x188   : > { %2133 = vadd.xlane.f32.xlu1 %v2132_v23  ;;  %v9114_v31 = vpop.f32.mrb[31].mxu0  ;;  %v9116_v32 = vpop.f32.mrb[31].mxu1 }
 0x189   : > { %v7862_v33 = vpop.eup %7861  ;;  %2130 = vadd.xlane.f32.xlu0 %v2129_v30  ;;  %7893 = vtanh.f32 %v9042_v35 }
 0x18a   : > { %v7864_v39 = vpop.eup %7863  ;;  %v1822_v44 = vmul.f32 %v7862_v33, %v8969_v19  ;;  %7895 = vtanh.f32 %v9058_v46 }
 0x18b   : > { %v7866_v45 = vpop.eup %7865  ;;  %v1737_v50 = vmul.f32 %v7864_v39, %v8969_v19  ;;  %7897 = vtanh.f32 %v9045_v36 }
 0x18c   : > { %1899 = vadd.xlane.f32.xlu1 %v1898_v60  ;;  %v7868_v53 = vpop.eup %7867  ;;  %v2147_v61 = vsel %vm1852_vm0, %v1822_v44, 0.0  ;;  %v1736_v21 = vmul.f32 %v7866_v45, %v8969_v19  ;;  %7899 = vtanh.f32 %v9060_v47 }
 0x18d   : > { %1896 = vadd.xlane.f32.xlu0 %v1895_v43  ;;  %v9124_v48 = vpop.f32.mrb[32].mxu0  ;;  %v9126_v40 = vpop.f32.mrb[32].mxu1  ;;  %v1892_v14 = vsel %vm1852_vm0, %v1737_v50, 0.0  ;;  %v1821_v0 = vmul.f32 %v7868_v53, %v8969_v19 }
 0x18e   : > { %v9129_v20 = vpop.f32.mrb[33].mxu0  ;;  %v9131_v13 = vpop.f32.mrb[33].mxu1  ;;  %v1889_v58 = vsel %vm1852_vm0, %v1736_v21, 0.0 }
 0x18f   : > { %v9136_v51 = vpop.f32.mrb[34].mxu0  ;;  %v9138_v52 = vpop.f32.mrb[34].mxu1  ;;  %v2144_v17 = vsel %vm1852_vm0, %v1821_v0, 0.0 }
 0x190   : > { %2151 = vadd.xlane.f32.xlu1 %v2150_v49  ;;  %v9142_v62 = vpop.f32.mrb[35].mxu0  ;;  %v9144_v2 = vpop.f32.mrb[35].mxu1 }
 0x191   : > { %v7870_v3 = vpop.eup %7869  ;;  %2148 = vadd.xlane.f32.xlu0 %v2147_v61  ;;  %7901 = vtanh.f32 %v9047_v37 }
 0x192   : > { %v7872_v8 = vpop.eup %7871  ;;  %v1820_v9 = vmul.f32 %v7870_v3, %v8969_v19  ;;  %7903 = vtanh.f32 %v9080_v63 }
 0x193   : > { %v7874_v10 = vpop.eup %7873  ;;  %v1743_v23 = vmul.f32 %v7872_v8, %v8969_v19  ;;  %7905 = vtanh.f32 %v9068_v54 }
 0x194   : > { %1893 = vadd.xlane.f32.xlu1 %v1892_v14  ;;  %v7876_v30 = vpop.eup %7875  ;;  %v2141_v5 = vsel %vm1852_vm0, %v1820_v9, 0.0  ;;  %v1742_v26 = vmul.f32 %v7874_v10, %v8969_v19  ;;  %7907 = vtanh.f32 %v9086_v6 }
 0x195   : > { %1890 = vadd.xlane.f32.xlu0 %v1889_v58  ;;  %v9152_v11 = vpop.f32.mrb[36].mxu0  ;;  %v9154_v12 = vpop.f32.mrb[36].mxu1  ;;  %v1910_v16 = vsel %vm1852_vm0, %v1743_v23, 0.0  ;;  %v1827_v39 = vmul.f32 %v7876_v30, %v8969_v19 }
 0x196   : > { %v9157_v25 = vpop.f32.mrb[37].mxu0  ;;  %v9159_v15 = vpop.f32.mrb[37].mxu1  ;;  %v1907_v44 = vsel %vm1852_vm0, %v1742_v26, 0.0 }
 0x197   : > { %v9164_v24 = vpop.f32.mrb[38].mxu0  ;;  %v9166_v29 = vpop.f32.mrb[38].mxu1  ;;  %v2162_v61 = vsel %vm1852_vm0, %v1827_v39, 0.0 }
 0x198   : > { %2145 = vadd.xlane.f32.xlu1 %v2144_v17  ;;  %v9170_v33 = vpop.f32.mrb[39].mxu0  ;;  %v9172_v60 = vpop.f32.mrb[39].mxu1 }
 0x199   : > { %v7878_v38 = vpop.eup %7877  ;;  %2142 = vadd.xlane.f32.xlu0 %v2141_v5  ;;  %7909 = vtanh.f32 %v9073_v56 }
 0x19a   : > { %v7880_v43 = vpop.eup %7879  ;;  %v1826_v45 = vmul.f32 %v7878_v38, %v8969_v19  ;;  %7911 = vtanh.f32 %v9088_v7 }
 0x19b   : > { %v7882_v49 = vpop.eup %7881  ;;  %v1741_v21 = vmul.f32 %v7880_v43, %v8969_v19  ;;  %7913 = vtanh.f32 %v9075_v57 }
 0x19c   : > { %1911 = vadd.xlane.f32.xlu1 %v1910_v16  ;;  %v7884_v0 = vpop.eup %7883  ;;  %v2159_v8 = vsel %vm1852_vm0, %v1826_v45, 0.0  ;;  %v1740_v42 = vmul.f32 %v7882_v49, %v8969_v19  ;;  %7915 = vtanh.f32 %v9108_v27 }
 0x19d   : > { %1908 = vadd.xlane.f32.xlu0 %v1907_v44  ;;  %v9180_v50 = vpop.f32.mrb[40].mxu0  ;;  %v9182_v53 = vpop.f32.mrb[40].mxu1  ;;  %v1904_v35 = vsel %vm1852_vm0, %v1741_v21, 0.0  ;;  %v1825_v17 = vmul.f32 %v7884_v0, %v8969_v19 }
 0x19e   : > { %v9185_v41 = vpop.f32.mrb[41].mxu0  ;;  %v9187_v34 = vpop.f32.mrb[41].mxu1  ;;  %v1901_v30 = vsel %vm1852_vm0, %v1740_v42, 0.0 }
 0x19f   : > { %v9192_v3 = vpop.f32.mrb[42].mxu0  ;;  %v9194_v14 = vpop.f32.mrb[42].mxu1  ;;  %v2156_v36 = vsel %vm1852_vm0, %v1825_v17, 0.0 }
 0x1a0   : > { %2163 = vadd.xlane.f32.xlu1 %v2162_v61  ;;  %v9198_v58 = vpop.f32.mrb[43].mxu0  ;;  %v9200_v9 = vpop.f32.mrb[43].mxu1 }
 0x1a1   : > { %v7886_v10 = vpop.eup %7885  ;;  %2160 = vadd.xlane.f32.xlu0 %v2159_v8  ;;  %7917 = vtanh.f32 %v9096_v18 }
 0x1a2   : > { %v7888_v23 = vpop.eup %7887  ;;  %v1824_v5 = vmul.f32 %v7886_v10, %v8969_v19  ;;  %7919 = vtanh.f32 %v9110_v28 }
 0x1a3   : > { %v7890_v26 = vpop.eup %7889  ;;  %v1747_v46 = vmul.f32 %v7888_v23, %v8969_v19  ;;  %7921 = vtanh.f32 %v9098_v22 }
 0x1a4   : > { %1905 = vadd.xlane.f32.xlu1 %v1904_v35  ;;  %v7892_v43 = vpop.eup %7891  ;;  %v2153_v44 = vsel %vm1852_vm0, %v1824_v5, 0.0  ;;  %v1746_v45 = vmul.f32 %v7890_v26, %v8969_v19  ;;  %7923 = vtanh.f32 %v9114_v31 }
 0x1a5   : > { %1902 = vadd.xlane.f32.xlu0 %v1901_v30  ;;  %v9208_v38 = vpop.f32.mrb[44].mxu0  ;;  %v7894_v61 = vpop.eup %7893  ;;  %v1922_v37 = vsel %vm1852_vm0, %v1747_v46, 0.0  ;;  %v1831_v47 = vmul.f32 %v7892_v43, %v8969_v19  ;;  %7925 = vtanh.f32 %v9101_v4 }
 0x1a6   : > { %v9211_v16 = vpop.f32.mrb[45].mxu0  ;;  %v7896_v21 = vpop.eup %7895  ;;  %v1919_v0 = vsel %vm1852_vm0, %v1746_v45, 0.0  ;;  %v1830_v8 = vmul.f32 %v7894_v61, %v8969_v19  ;;  %7927 = vtanh.f32 %v9116_v32 }
 0x1a7   : > { %v9216_v39 = vpop.f32.mrb[46].mxu0  ;;  %v7898_v42 = vpop.eup %7897  ;;  %v2174_v54 = vsel %vm1852_vm0, %v1831_v47, 0.0  ;;  %v1745_v63 = vmul.f32 %v7896_v21, %v8969_v19  ;;  %7929 = vtanh.f32 %v9103_v59 }
 0x1a8   : > { %2157 = vadd.xlane.f32.xlu1 %v2156_v36  ;;  %v9220_v49 = vpop.f32.mrb[47].mxu0  ;;  %v7900_v23 = vpop.eup %7899  ;;  %v2171_v30 = vsel %vm1852_vm0, %v1830_v8, 0.0  ;;  %v1744_v5 = vmul.f32 %v7898_v42, %v8969_v19  ;;  %7931 = vtanh.f32 %v9136_v51 }
 0x1a9   : > { %2154 = vadd.xlane.f32.xlu0 %v2153_v44  ;;  %v7902_v36 = vpop.eup %7901  ;;  %v1916_v56 = vsel %vm1852_vm0, %v1745_v63, 0.0  ;;  %v1829_v6 = vmul.f32 %v7900_v23, %v8969_v19  ;;  %7933 = vtanh.f32 %v9124_v48 }
 0x1aa   : > { %v7904_v46 = vpop.eup %7903  ;;  %v1913_v43 = vsel %vm1852_vm0, %v1744_v5, 0.0  ;;  %v1828_v44 = vmul.f32 %v7902_v36, %v8969_v19  ;;  %7935 = vtanh.f32 %v9138_v52 }
 0x1ab   : > { %v7906_v45 = vpop.eup %7905  ;;  %v2168_v57 = vsel %vm1852_vm0, %v1829_v6, 0.0  ;;  %v1751_v7 = vmul.f32 %v7904_v46, %v8969_v19  ;;  %7937 = vtanh.f32 %v9126_v40 }
 0x1ac   : > { %1923 = vadd.xlane.f32.xlu1 %v1922_v37  ;;  %v7908_v21 = vpop.eup %7907  ;;  %v1750_v8 = vmul.f32 %v7906_v45, %v8969_v19  ;;  %7939 = vtanh.f32 %v9142_v62 }
 0x1ad   : > { %1920 = vadd.xlane.f32.xlu0 %v1919_v0  ;;  %v9228_v10 = vpop.f32.mrb[48].mxu0  ;;  %v2165_v0 = vsel %vm1852_vm0, %v1828_v44, 0.0  ;;  %v1934_v18 = vsel %vm1852_vm0, %v1751_v7, 0.0  ;;  %v1749_v27 = vmul.f32 %v7908_v21, %v8969_v19 }
 0x1ae   : > { %v9231_v35 = vpop.f32.mrb[49].mxu0  ;;  %v1931_v23 = vsel %vm1852_vm0, %v1750_v8, 0.0 }
 0x1af   : > { %v9236_v17 = vpop.f32.mrb[50].mxu0  ;;  %v1928_v22 = vsel %vm1852_vm0, %v1749_v27, 0.0 }
 0x1b0   : > { %2175 = vadd.xlane.f32.xlu1 %v2174_v54  ;;  %v9240_v26 = vpop.f32.mrb[51].mxu0  ;;  %v7910_v54 = vpop.eup %7909  ;;  %7941 = vtanh.f32 %v9129_v20 }
 0x1b1   : > { %2172 = vadd.xlane.f32.xlu0 %v2171_v30  ;;  %v7912_v63 = vpop.eup %7911  ;;  %v1748_v30 = vmul.f32 %v7910_v54, %v8969_v19  ;;  %7943 = vtanh.f32 %v9144_v2  ;;  %v2245_v2 = vlaneseq }
 0x1b2   : > { %v7914_v5 = vpop.eup %7913  ;;  %v1833_v28 = vmul.f32 %v7912_v63, %v8969_v19  ;;  %7945 = vtanh.f32 %v9131_v13 }
 0x1b3   : > { %v7916_v46 = vpop.eup %7915  ;;  %v1832_v44 = vmul.f32 %v7914_v5, %v8969_v19  ;;  %7947 = vtanh.f32 %v9164_v24 }
 0x1b4   : > { %1917 = vadd.xlane.f32.xlu1 %v1916_v56  ;;  %v2180_v4 = vsel %vm1852_vm0, %v1833_v28, 0.0  ;;  %v1755_v31 = vmul.f32 %v7916_v46, %v8969_v19 }
 0x1b5   : > { %1914 = vadd.xlane.f32.xlu0 %v1913_v43  ;;  %v9248_v61 = vpop.f32.mrb[52].mxu0  ;;  %v1925_v43 = vsel %vm1852_vm0, %v1748_v30, 0.0  ;;  %v2177_v21 = vsel %vm1852_vm0, %v1832_v44, 0.0 }
 0x1b6   : > { %v9251_v37 = vpop.f32.mrb[53].mxu0  ;;  %v1946_v59 = vsel %vm1852_vm0, %v1755_v31, 0.0 }
 0x1b7   : > { %v9256_v47 = vpop.f32.mrb[54].mxu0 }
 0x1b8   : > { %2169 = vadd.xlane.f32.xlu1 %v2168_v57  ;;  %v9260_v42 = vpop.f32.mrb[55].mxu0  ;;  %v7918_v57 = vpop.eup %7917  ;;  %7949 = vtanh.f32 %v9152_v11  ;;  %v9347_v11 = vshrl.u32 %v2245_v2, 7 }
 0x1b9   : > { %2166 = vadd.xlane.f32.xlu0 %v2165_v0  ;;  %v7920_v7 = vpop.eup %7919  ;;  %v1754_v0 = vmul.f32 %v7918_v57, %v8969_v19  ;;  %7951 = vtanh.f32 %v9166_v29 }
 0x1ba   : > { %v7922_v8 = vpop.eup %7921  ;;  %v1839_v32 = vmul.f32 %v7920_v7, %v8969_v19  ;;  %12547 = vst [vmem:[#allocation14_spill] sm:$0xff] %v9347_v11  ;;  %7953 = vtanh.f32 %v9154_v12 }
 0x1bb   : > { %v7924_v63 = vpop.eup %7923  ;;  %v1838_v30 = vmul.f32 %v7922_v8, %v8969_v19  ;;  %7955 = vtanh.f32 %v9170_v33 }
 0x1bc   : > { %1935 = vadd.xlane.f32.xlu1 %v1934_v18  ;;  %v7926_v51 = vpop.eup %7925  ;;  %v2198_v48 = vsel %vm1852_vm0, %v1839_v32, 0.0  ;;  %7957 = vtanh.f32 %v9157_v25 }
 0x1bd   : > { %1932 = vadd.xlane.f32.xlu0 %v1931_v23  ;;  %v9268_v36 = vpop.f32.mrb[56].mxu0  ;;  %v1943_v23 = vsel %vm1852_vm0, %v1754_v0, 0.0  ;;  %v7928_v28 = vpop.eup %7927  ;;  %v2195_v46 = vsel %vm1852_vm0, %v1838_v30, 0.0  ;;  %7959 = vtanh.f32 %v9070_v55 }
 0x1be   : > { %v9271_v56 = vpop.f32.mrb[57].mxu0  ;;  %v7930_v44 = vpop.eup %7929  ;;  %v1837_v52 = vmul.f32 %v7928_v28, %v8969_v19  ;;  %7961 = vtanh.f32 %v9082_v1 }
 0x1bf   : > { %v9276_v6 = vpop.f32.mrb[58].mxu0  ;;  %v7932_v7 = vpop.eup %7931  ;;  %v1836_v0 = vmul.f32 %v7930_v44, %v8969_v19  ;;  %7963 = vtanh.f32 %v9172_v60 }
 0x1c0   : > { %1929 = vadd.xlane.f32.xlu1 %v1928_v22  ;;  %v9280_v45 = vpop.f32.mrb[59].mxu0  ;;  %v1753_v22 = vmul.f32 %v7924_v63, %v8969_v19  ;;  %v7934_v62 = vpop.eup %7933  ;;  %v2192_v20 = vsel %vm1852_vm0, %v1837_v52, 0.0  ;;  %7965 = vtanh.f32 %v9159_v15 }
 0x1c1   : > { %1926 = vadd.xlane.f32.xlu0 %v1925_v43  ;;  %v1752_v43 = vmul.f32 %v7926_v51, %v8969_v19  ;;  %v7936_v32 = vpop.eup %7935  ;;  %v2189_v63 = vsel %vm1852_vm0, %v1836_v0, 0.0  ;;  %7967 = vtanh.f32 %v9180_v50 }
 0x1c2   : > { %v1940_v40 = vsel %vm1852_vm0, %v1753_v22, 0.0  ;;  %v7938_v30 = vpop.eup %7937  ;;  %7969 = vtanh.f32 %v9185_v41 }
 0x1c3   : > { %v7940_v44 = vpop.eup %7939  ;;  %v1842_v24 = vmul.f32 %v7938_v30, %v8969_v19  ;;  %7971 = vtanh.f32 %v9192_v3 }
 0x1c4   : > { %2181 = vadd.xlane.f32.xlu1 %v2180_v4 }
 0x1c5   : > { %2178 = vadd.xlane.f32.xlu0 %v2177_v21  ;;  %v9288_v54 = vpop.f32.mrb[60].mxu0  ;;  %v1937_v21 = vsel %vm1852_vm0, %v1752_v43, 0.0 }
 0x1c6   : > { %v9291_v18 = vpop.f32.mrb[61].mxu0 }
 0x1c7   : > { %v9296_v27 = vpop.f32.mrb[62].mxu0 }
 0x1c8   : > { %1947 = vadd.xlane.f32.xlu1 %v1946_v59  ;;  %v9300_v5 = vpop.f32.mrb[63].mxu0  ;;  %v1759_v59 = vmul.f32 %v7932_v7, %v8969_v19  ;;  %v7942_v7 = vpop.eup %7941  ;;  %7973 = vtanh.f32 %v9198_v58 }
 0x1c9   : > { %1944 = vadd.xlane.f32.xlu0 %v1943_v23  ;;  %v1758_v23 = vmul.f32 %v7934_v62, %v8969_v19  ;;  %v1757_v62 = vmul.f32 %v7940_v44, %v8969_v19 }
 0x1ca   : > { %v1958_v28 = vsel %vm1852_vm0, %v1759_v59, 0.0  ;;  %v2207_v59 = vsel %vm1852_vm0, %v1842_v24, 0.0 }
 0x1cb   : > { %v1952_v30 = vsel %vm1852_vm0, %v1757_v62, 0.0 }
 0x1cc   : > { %2199 = vadd.xlane.f32.xlu1 %v2198_v48  ;;  %v8653_v48 = vmov 1966171168  }
 0x1cd   : > { %2196 = vadd.xlane.f32.xlu0 %v2195_v46  ;;  %v9308_v57 = vpop.f32.mrb[64].mxu0  ;;  %v2250_v22 = vunpack.c.l.s4 %v8653_v48  ;;  %v1843_v46 = vmul.f32 %v7936_v32, %v8969_v19  ;;  %v1756_v32 = vmul.f32 %v7942_v7, %v8969_v19 }
 0x1ce   : > { %v9311_v4 = vpop.f32.mrb[65].mxu0 }
 0x1cf   : > { %v9317_v31 = vpop.f32.mrb[66].mxu0  ;;  %v2210_v0 = vsel %vm1852_vm0, %v1843_v46, 0.0  ;;  %v1949_v33 = vsel %vm1852_vm0, %v1756_v32, 0.0 }
 0x1d0   : > { %1941 = vadd.xlane.f32.xlu1 %v1940_v40  ;;  %v9321_v8 = vpop.f32.mrb[67].mxu0  ;;  %v1955_v40 = vsel %vm1852_vm0, %v1758_v23, 0.0 }
 0x1d1   : > { %1938 = vadd.xlane.f32.xlu0 %v1937_v21  ;;  %v2251_v21 = vunpack.c.0.s8 %v2250_v22  ;;  %v9373_v22 = vld [vmem:[%s9357_s27] sm:$0xff] }
 0x1d2   : > { %12550 = vst [vmem:[#allocation17_spill] sm:$0xff] %v9373_v22 }
 0x1d3   : > { %v9365_v23 = vsub.s32 %v2251_v21, %v9347_v11 }
 0x1d4   : > { %2193 = vadd.xlane.f32.xlu1 %v2192_v20  ;;  %v7944_v20 = vpop.eup %7943  ;;  %7975 = vtanh.f32 %v9182_v53 }
 0x1d5   : > { %2190 = vadd.xlane.f32.xlu0 %v2189_v63  ;;  %v9329_v51 = vpop.f32.mrb[68].mxu0  ;;  %v7946_v29 = vpop.eup %7945  ;;  %v1841_v2 = vmul.f32 %v7944_v20, %v8969_v19  ;;  %v9387_v24 = vrot.slane %v9373_v22, %v9365_v23  ;;  %7977 = vtanh.f32 %v9187_v34  ;;  %v9433_v34 = vld [vmem:[%s12487_s4] ss:$0 sm:$0xff] }
 0x1d6   : > { %v9334_v13 = vpop.f32.mrb[69].mxu0  ;;  %v7948_v46 = vpop.eup %7947  ;;  %v1840_v44 = vmul.f32 %v7946_v29, %v8969_v19  ;;  %7979 = vtanh.f32 %v9194_v14 }
 0x1d7   : > { %v9339_v43 = vpop.f32.mrb[70].mxu0  ;;  %v7950_v25 = vpop.eup %7949  ;;  %v2204_v55 = vsel %vm1852_vm0, %v1841_v2, 0.0  ;;  %v1763_v7 = vmul.f32 %v7948_v46, %v8969_v19  ;;  %v2263_v20 = vcombine.high %v9387_v24, %v9387_v24  ;;  %7981 = vtanh.f32 %v9200_v9 }
 0x1d8   : > { %1959 = vadd.xlane.f32.xlu1 %v1958_v28  ;;  %v9343_v52 = vpop.f32.mrb[71].mxu0  ;;  %v9376_v28 = vld.sshfl [vmem:[%s9357_s27 + $0x28] sm:$0xff pattern:$0x75316420]  ;;  %v7952_v21 = vpop.eup %7951  ;;  %v1762_v1 = vmul.f32 %v7950_v25, %v8969_v19  ;;  %7983 = vtanh.f32 %v9208_v38 }
 0x1d9   : > { %1956 = vadd.xlane.f32.xlu0 %v1955_v40  ;;  %v7954_v62 = vpop.eup %7953  ;;  %v1970_v50 = vsel %vm1852_vm0, %v1763_v7, 0.0  ;;  %v1847_v32 = vmul.f32 %v7952_v21, %v8969_v19  ;;  %v2285_v25 = vrot.slane %v2263_v20, %v9365_v23  ;;  %7985 = vtanh.f32 %v9211_v16 }
 0x1da   : > { %v7956_v41 = vpop.eup %7955  ;;  %v1846_v3 = vmul.f32 %v7954_v62, %v8969_v19  ;;  %v8654_v62 = vmov 0   ;;  %7987 = vtanh.f32 %v9216_v39 }
 0x1db   : > { %v7958_v46 = vpop.eup %7957  ;;  %v2222_v7 = vsel %vm1852_vm0, %v1847_v32, 0.0  ;;  %v1761_v14 = vmul.f32 %v9433_v34, %v7956_v41  ;;  %7690 = vset.pattern.permute.xlu0 %v8654_v62  ;;  %7689 = vset.pattern.permute.xlu1 %v8654_v62  ;;  %7989 = vtanh.f32 %v9220_v49  ;;  %v9458_v62 = vadd.s32 8, %v9347_v11 }
 0x1dc   : > { %2211 = vadd.xlane.f32.xlu1 %v2210_v0  ;;  %v2201_v0 = vsel %vm1852_vm0, %v1840_v44, 0.0  ;;  %v7960_v58 = vpop.eup %7959  ;;  %7991 = vtanh.f32 %v9228_v10 }
 0x1dd   : > { %2208 = vadd.xlane.f32.xlu0 %v2207_v59  ;;  %v9359_v12 = vpop.f32.mrb[72].mxu0  ;;  %v2508_v59 = vcombine.high %v9376_v28, %v9376_v28  ;;  %v7962_v53 = vpop.eup %7961  ;;  %12561 = vst [vmem:[#allocation28_spill] sm:$0xff] %v9458_v62  ;;  %7993 = vtanh.f32 %v9231_v35 }
 0x1de   : > { %v9362_v63 = vpop.f32.mrb[73].mxu0  ;;  %v7964_v21 = vpop.eup %7963  ;;  %7995 = vtanh.f32 %v9236_v17 }
 0x1df   : > { %12548 = vst [vmem:[#allocation15_spill] sm:$0xff] %v9362_v63  ;;  %v9370_v48 = vpop.f32.mrb[74].mxu0  ;;  %v9426_v19 = vrot.slane %v2508_v59, %v9365_v23  ;;  %v7966_v20 = vpop.eup %7965  ;;  %v1845_v16 = vmul.f32 %v9433_v34, %v7964_v21  ;;  %v1835_v21 = vmul.f32 %v9433_v34, %v7962_v53  ;;  %7997 = vtanh.f32 %v9240_v26 }
 0x1e0   : > { %12549 = vst [vmem:[#allocation16_spill] sm:$0xff] %v9370_v48  ;;  %1953 = vadd.xlane.f32.xlu1 %v1952_v30  ;;  %v9381_v40 = vpop.f32.mrb[75].mxu0  ;;  %v1967_v30 = vsel %vm1852_vm0, %v1762_v1, 0.0  ;;  %v1760_v1 = vmul.f32 %v9433_v34, %v7958_v46 }
 0x1e1   : > { %12551 = vst [vmem:[#allocation18_spill] sm:$0xff] %v9381_v40  ;;  %1950 = vadd.xlane.f32.xlu0 %v1949_v33  ;;  %12556 = vst [vmem:[#allocation23_spill] sm:$0xff] %v9426_v19 }
 0x1e4   : > { %2205 = vadd.xlane.f32.xlu1 %v2204_v55  ;;  %v9423_v55 = vsub.s32 0, %v9347_v11 }
 0x1e5   : > { %2202 = vadd.xlane.f32.xlu0 %v2201_v0  ;;  %v9396_v60 = vpop.f32.mrb[76].mxu0  ;;  %v2219_v0 = vsel %vm1852_vm0, %v1846_v3, 0.0  ;;  %v2540_v3 = vcombine.high %v9426_v19, %v9426_v19 }
 0x1e6   : > { %12552 = vst [vmem:[#allocation19_spill] sm:$0xff] %v9396_v60  ;;  %v9399_v15 = vpop.f32.mrb[77].mxu0  ;;  %v2647_v38 = vrot.slane %v2285_v25, %v9423_v55 }
 0x1e7   : > { %12553 = vst [vmem:[#allocation20_spill] sm:$0xff] %v9399_v15  ;;  %v9408_v29 = vpop.f32.mrb[78].mxu0 }
 0x1e8   : > { %12554 = vst [vmem:[#allocation21_spill] sm:$0xff] %v9408_v29  ;;  %1971 = vadd.xlane.f32.xlu1 %v1970_v50  ;;  %v9413_v2 = vpop.f32.mrb[79].mxu0  ;;  %v7968_v50 = vpop.eup %7967  ;;  %vm2898_vm1 = vcmp.lt.s32.totalorder %v9347_v11, %v2647_v38  ;;  %vm2899_vm2 = vcmp.lt.s32.totalorder %v9458_v62, %v2647_v38  ;;  %7999 = vtanh.f32 %v9248_v61 }
 0x1e9   : > { %12555 = vst [vmem:[#allocation22_spill] sm:$0xff] %v9413_v2  ;;  %1968 = vadd.xlane.f32.xlu0 %v1967_v30  ;;  %v9415_v33 = vpop.xlane.xlu1 %1860  ;;  %v2295_v30 = vcombine.high %v2285_v25, %v2285_v25  ;;  %v7970_v46 = vpop.eup %7969  ;;  %v1844_v25 = vmul.f32 %v9433_v34, %v7966_v20  ;;  %v1766_v17 = vmul.f32 %v9433_v34, %v7968_v50  ;;  %8001 = vtanh.f32 %v9251_v37 }
 0x1ea   : > { %v9418_v44 = vpop.xlane.xlu0 %2112  ;;  %v7972_v39 = vpop.eup %7971  ;;  %8003 = vtanh.f32 %v9256_v47 }
 0x1eb   : > { %v2655_v10 = vrot.slane %v2295_v30, %v9423_v55  ;;  %v1767_v35 = vmul.f32 %v9433_v34, %v7972_v39  ;;  %v2213_v53 = vsel %vm1852_vm0, %v1844_v25, 0.0 }
 0x1ec   : > { %2223 = vadd.xlane.f32.xlu1 %v2222_v7  ;;  %v1964_v7 = vsel %vm1852_vm0, %v1761_v14, 0.0  ;;  %v7974_v14 = vpop.eup %7973  ;;  %8005 = vtanh.f32 %v9260_v42 }
 0x1ed   : > { %2220 = vadd.xlane.f32.xlu0 %v2219_v0  ;;  %v9439_v9 = vpop.xlane.xlu1 %1863  ;;  %v9442_v59 = vpop.f32.mrb[80].mxu0  ;;  %vm2902_vm3 = vcmp.lt.s32.totalorder %v9347_v11, %v2655_v10  ;;  %vm2903_vm4 = vcmp.lt.s32.totalorder %v9458_v62, %v2655_v10 }
 0x1ee   : > { %12557 = vst [vmem:[#allocation24_spill] sm:$0xff] %v9442_v59  ;;  %v9444_v32 = vpop.xlane.xlu0 %1854  ;;  %v9447_v41 = vpop.f32.mrb[81].mxu0  ;;  %v3287_v38 = vmax.f32 %v9415_v33, %v9439_v9 }
 0x1ef   : > { %12558 = vst [vmem:[#allocation25_spill] sm:$0xff] %v9444_v32  ;;  %12559 = vst [vmem:[#allocation26_spill] sm:$0xff] %v9447_v41  ;;  %v9455_v0 = vpop.f32.mrb[82].mxu0  ;;  %v1961_v41 = vsel %vm1852_vm0, %v1760_v1, 0.0  ;;  %v7976_v59 = vpop.eup %7975  ;;  %v2815_v1 = vrot.slane %v2540_v3, %v9423_v55  ;;  %8007 = vtanh.f32 %v9268_v36 }
 0x1f0   : > { %12560 = vst [vmem:[#allocation27_spill] sm:$0xff] %v9455_v0  ;;  %1965 = vadd.xlane.f32.xlu1 %v1964_v7  ;;  %v9463_v19 = vpop.f32.mrb[83].mxu0  ;;  %v1834_v0 = vmul.f32 %v9433_v34, %v7960_v58  ;;  %v7978_v20 = vpop.eup %7977  ;;  %v9487_v7 = vsel %vm1852_vm0, %v1835_v21, 0.0  ;;  %v1764_v21 = vmul.f32 %v9433_v34, %v7970_v46  ;;  %v3288_v29 = vrot.slane %v3287_v38, 4 }
 0x1f1   : > { %12562 = vst [vmem:[#allocation29_spill] sm:$0xff] %v9463_v19  ;;  %1962 = vadd.xlane.f32.xlu0 %v1961_v41  ;;  %v9465_v49 = vpop.xlane.xlu1 %2115  ;;  %v2216_v41 = vsel %vm1852_vm0, %v1845_v16, 0.0  ;;  %v7980_v58 = vpop.eup %7979  ;;  %12563 = vst [vmem:[#allocation30_spill] sm:$0xff] %v9487_v7  ;;  %v12506_v16 = vmov 0.0   ;;  %vm2982_vm5 = vcmp.lt.s32.totalorder %v9347_v11, %v2815_v1  ;;  %vm2983_vm6 = vcmp.lt.s32.totalorder %v9458_v62, %v2815_v1 }
 0x1f2   : > { %v9470_v22 = vpop.xlane.xlu0 %2106  ;;  %v7982_v30 = vpop.eup %7981  ;;  %v9490_v26 = vsel %vm1852_vm0, %v1834_v0, 0.0  ;;  %v9495_v39 = vsel %vm2898_vm1, 1.0, %v12506_v16  ;;  %v9502_v25 = vsel %vm2899_vm2, 1.0, %v12506_v16  ;;  %v1982_v0 = vsel %vm1852_vm0, %v1767_v35, 0.0 }
 0x1f3   : > { %12564 = vst [vmem:[#allocation31_spill] sm:$0xff] %v9490_v26  ;;  %12565 = vst [vmem:[#allocation32_spill] sm:$0xff] %v9495_v39  ;;  %v7984_v50 = vpop.eup %7983  ;;  %v1979_v16 = vsel %vm1852_vm0, %v1766_v17, 0.0  ;;  %v1850_v26 = vmul.f32 %v9433_v34, %v7976_v59  ;;  %v1848_v46 = vmul.f32 %v9433_v34, %v7978_v20  ;;  %v1851_v47 = vmul.f32 %v9433_v34, %v7980_v58 }
 0x1f4   : > { %2217 = vadd.xlane.f32.xlu1 %v2216_v41  ;;  %12566 = vst [vmem:[#allocation33_spill] sm:$0xff] %v9502_v25  ;;  %v7986_v37 = vpop.eup %7985  ;;  %v1765_v41 = vmul.f32 %v9433_v34, %v7974_v14  ;;  %v1849_v14 = vmul.f32 %v9433_v34, %v7982_v30  ;;  %v1770_v17 = vmul.f32 %v9433_v34, %v7984_v50  ;;  %v12567_v59 = vmov 0.0  }
 0x1f5   : > { %2214 = vadd.xlane.f32.xlu0 %v2213_v53  ;;  %v9483_v3 = vpop.xlane.xlu1 %2109  ;;  %v7988_v53 = vpop.eup %7987  ;;  %v9533_v20 = vsel %vm2903_vm4, 1.0, %v12567_v59  ;;  %v9538_v42 = vsel %vm2982_vm5, 1.0, %v12567_v59  ;;  %v1973_v30 = vsel %vm1852_vm0, %v1764_v21, 0.0  ;;  %v1768_v50 = vmul.f32 %v9433_v34, %v7986_v37 }
 0x1f6   : > { %v9497_v61 = vpop.xlane.xlu0 %1857  ;;  %v7990_v7 = vpop.eup %7989  ;;  %12569 = vst [vmem:[#allocation35_spill] sm:$0xff] %v9533_v20  ;;  %12570 = vst [vmem:[#allocation36_spill] sm:$0xff] %v9538_v42  ;;  %v1771_v20 = vmul.f32 %v9433_v34, %v7988_v53  ;;  %v9551_v42 = vsel %vm1852_vm0, %v1850_v26, 0.0  ;;  %v2225_v37 = vsel %vm1852_vm0, %v1848_v46, 0.0  ;;  %v2228_v1 = vsel %vm1852_vm0, %v1849_v14, 0.0 }
 0x1f7   : > { %v7992_v19 = vpop.eup %7991  ;;  %12572 = vst [vmem:[#allocation38_spill] sm:$0xff] %v9551_v42  ;;  %8009 = vtanh.f32 %v9271_v56  ;;  %v1991_v36 = vsel %vm1852_vm0, %v1770_v17, 0.0  ;;  %v1769_v26 = vmul.f32 %v9433_v34, %v7990_v7  ;;  %v1985_v56 = vsel %vm1852_vm0, %v1768_v50, 0.0 }
 0x1f8   : > { %1983 = vadd.xlane.f32.xlu1 %v1982_v0  ;;  %v9528_v0 = vsel %vm2902_vm3, 1.0, %v12567_v59  ;;  %v7994_v58 = vpop.eup %7993  ;;  %8011 = vtanh.f32 %v9276_v6  ;;  %v9573_v14 = vrot.slane %v9387_v24, %v9365_v23  ;;  %v1994_v7 = vsel %vm1852_vm0, %v1771_v20, 0.0 }
 0x1f9   : > { %1980 = vadd.xlane.f32.xlu0 %v1979_v16  ;;  %v9516_v35 = vpop.xlane.xlu1 %1875  ;;  %12568 = vst [vmem:[#allocation34_spill] sm:$0xff] %v9528_v0  ;;  %v1976_v16 = vsel %vm1852_vm0, %v1765_v41, 0.0  ;;  %v9546_v0 = vsel %vm2983_vm6, 1.0, %v12567_v59  ;;  %v7996_v10 = vpop.eup %7995  ;;  %v1772_v42 = vmul.f32 %v9433_v34, %v7994_v58  ;;  %8013 = vtanh.f32 %v9280_v45 }
 0x1fa   : > { %v9522_v2 = vpop.xlane.xlu0 %1872  ;;  %12571 = vst [vmem:[#allocation37_spill] sm:$0xff] %v9546_v0  ;;  %v7998_v21 = vpop.eup %7997  ;;  %v9559_v0 = vsel %vm1852_vm0, %v1851_v47, 0.0  ;;  %v3289_v47 = vmax.f32 %v3287_v38, %v3288_v29  ;;  %v1988_v38 = vsel %vm1852_vm0, %v1769_v26, 0.0  ;;  %8015 = vtanh.f32 %v9288_v54 }
 0x1fb   : > { %12574 = vst [vmem:[#allocation40_spill] sm:$0xff] %v9559_v0  ;;  %v3301_v58 = vmax.f32 %v9522_v2, %v9516_v35  ;;  %v1773_v6 = vmul.f32 %v9433_v34, %v7998_v21  ;;  %v9589_v20 = vsel %vm1852_vm0, %v1772_v42, 0.0  ;;  %v2643_v21 = vrot.slane %v9573_v14, %v9423_v55 }
 0x1fc   : > { %1977 = vadd.xlane.f32.xlu1 %v1976_v16  ;;  %v8000_v16 = vpop.eup %7999  ;;  %8017 = vtanh.f32 %v9291_v18 }
 0x1fd   : > { %1974 = vadd.xlane.f32.xlu0 %v1973_v30  ;;  %v9553_v41 = vpop.xlane.xlu1 %2127  ;;  %v1774_v30 = vmul.f32 %v9433_v34, %v7992_v19  ;;  %v8002_v25 = vpop.eup %8001  ;;  %v1775_v19 = vmul.f32 %v9433_v34, %v7996_v10  ;;  %v1778_v24 = vmul.f32 %v9433_v34, %v8000_v16  ;;  %v3290_v16 = vrot.slane %v3289_v47, 2 }
 0x1fe   : > { %12573 = vst [vmem:[#allocation39_spill] sm:$0xff] %v9553_v41  ;;  %v9561_v53 = vpop.xlane.xlu0 %2124  ;;  %v8004_v17 = vpop.eup %8003  ;;  %v1776_v10 = vmul.f32 %v9433_v34, %v8002_v25  ;;  %v2000_v15 = vsel %vm1852_vm0, %v1773_v6, 0.0  ;;  %8019 = vtanh.f32 %v9296_v27  ;;  %v2293_v27 = vcombine.high %v9573_v14, %v9573_v14 }
 0x1ff   : > { %v3595_v46 = vmax.f32 %v9561_v53, %v9553_v41  ;;  %v2003_v45 = vsel %vm1852_vm0, %v1774_v30, 0.0  ;;  %v2006_v26 = vsel %vm1852_vm0, %v1775_v19, 0.0  ;;  %v1779_v42 = vmul.f32 %v9433_v34, %v8004_v17 }
 0x200   : > { %2229 = vadd.xlane.f32.xlu1 %v2228_v1  ;;  %v8006_v1 = vpop.eup %8005  ;;  %v3302_v30 = vrot.slane %v3301_v58, 4  ;;  %v9605_v54 = vsel %vm1852_vm0, %v1778_v24, 0.0  ;;  %8021 = vtanh.f32 %v9300_v5  ;;  %v9611_v18 = vsel %vm1852_vm0, %v1776_v10, 0.0 }
 0x201   : > { %v3596_v0 = vrot.slane %v3595_v46, 4  ;;  %2226 = vadd.xlane.f32.xlu0 %v2225_v37  ;;  %v9580_v50 = vpop.xlane.xlu1 %1869  ;;  %v3581_v37 = vmax.f32 %v9418_v44, %v9465_v49  ;;  %vm2896_vm7 = vcmp.lt.s32.totalorder %v9347_v11, %v2643_v21  ;;  %v3291_v24 = vmax.f32 %v3289_v47, %v3290_v16 }
 0x202   : > { %v9584_v29 = vpop.xlane.xlu0 %1866  ;;  %v9620_v5 = vsel %vm1852_vm0, %v1779_v42, 0.0  ;;  %vm2897_vm8 = vcmp.lt.s32.totalorder %v9458_v62, %v2643_v21  ;;  %8023 = vtanh.f32 %v9308_v57  ;;  %v9637_v16 = vrot.slane %v2293_v27, %v9423_v55 }
 0x203   : > { %v3597_v39 = vmax.f32 %v3595_v46, %v3596_v0  ;;  %v8008_v0 = vpop.eup %8007  ;;  %v3582_v17 = vrot.slane %v3581_v37, 4  ;;  %8025 = vtanh.f32 %v9311_v4  ;;  %v9642_v57 = vsel %vm2897_vm8, 1.0, %v12567_v59 }
 0x204   : > { %1995 = vadd.xlane.f32.xlu1 %v1994_v7  ;;  %v8010_v19 = vpop.eup %8009  ;;  %v1782_v14 = vmul.f32 %v9433_v34, %v8008_v0  ;;  %12577 = vst [vmem:[#allocation43_spill] sm:$0xff] %v9642_v57  ;;  %v3292_v42 = vrot.slane %v3291_v24, 1  ;;  %8027 = vtanh.f32 %v9317_v31  ;;  %vm2900_vm9 = vcmp.lt.s32.totalorder %v9347_v11, %v9637_v16 }
 0x205   : > { %1992 = vadd.xlane.f32.xlu0 %v1991_v36  ;;  %v9600_v25 = vpop.xlane.xlu1 %2121  ;;  %v3598_v46 = vrot.slane %v3597_v39, 2  ;;  %v1777_v36 = vmul.f32 %v9433_v34, %v8006_v1  ;;  %v8012_v10 = vpop.eup %8011  ;;  %v3303_v1 = vmax.f32 %v3301_v58, %v3302_v30  ;;  %v9634_v58 = vsel %vm2896_vm7, 1.0, %v12567_v59 }
 0x206   : > { %12575 = vst [vmem:[#allocation41_spill] sm:$0xff] %v9600_v25  ;;  %v9607_v7 = vpop.xlane.xlu0 %2118  ;;  %v8014_v63 = vpop.eup %8013  ;;  %12576 = vst [vmem:[#allocation42_spill] sm:$0xff] %v9634_v58  ;;  %v1783_v0 = vmul.f32 %v9433_v34, %v8012_v10  ;;  %8029 = vtanh.f32 %v9321_v8  ;;  %vm2901_vm10 = vcmp.lt.s32.totalorder %v9458_v62, %v9637_v16 }
 0x207   : > { %v3588_v6 = vmax.f32 %v9607_v7, %v9600_v25  ;;  %v3599_v60 = vmax.f32 %v3597_v39, %v3598_v46  ;;  %v1780_v39 = vmul.f32 %v9433_v34, %v8010_v19  ;;  %v9647_v4 = vsel %vm1852_vm0, %v1777_v36, 0.0  ;;  %v8016_v46 = vpop.eup %8015 }
 0x208   : > { %1989 = vadd.xlane.f32.xlu1 %v1988_v38  ;;  %v1781_v21 = vmul.f32 %v9433_v34, %v8014_v63  ;;  %v1786_v8 = vmul.f32 %v9433_v34, %v8016_v46  ;;  %8031 = vtanh.f32 %v9329_v51 }
 0x209   : > { %v3589_v40 = vrot.slane %v3588_v6, 4  ;;  %1986 = vadd.xlane.f32.xlu0 %v1985_v56  ;;  %v9623_v48 = vpop.xlane.xlu1 %1887  ;;  %v3600_v32 = vrot.slane %v3599_v60, 1  ;;  %v3583_v56 = vmax.f32 %v3581_v37, %v3582_v17  ;;  %v3304_v37 = vrot.slane %v3303_v1, 2 }
 0x20a   : > { %v9627_v47 = vpop.xlane.xlu0 %1884  ;;  %v9653_v17 = vsel %vm1852_vm0, %v1782_v14, 0.0  ;;  %v9680_v57 = vsel %vm1852_vm0, %v1781_v21, 0.0  ;;  %8033 = vtanh.f32 %v9334_v13 }
 0x20b   : > { %v3590_v38 = vmax.f32 %v3588_v6, %v3589_v40  ;;  %v9644_v30 = vmax.f32 %v3599_v60, %v3600_v32  ;;  %v8018_v6 = vpop.eup %8017  ;;  %v3584_v27 = vrot.slane %v3583_v56, 2  ;;  %v3293_v60 = vmax.f32 %v3291_v24, %v3292_v42 }
 0x20c   : > { %2007 = vadd.xlane.f32.xlu1 %v2006_v26  ;;  %v8020_v36 = vpop.eup %8019  ;;  %v9672_v32 = vsel %vm1852_vm0, %v1783_v0, 0.0  ;;  %v3305_v31 = vmax.f32 %v3303_v1, %v3304_v37  ;;  %v1784_v42 = vmul.f32 %v9433_v34, %v8018_v6  ;;  %v9691_v1 = vsel %vm2900_vm9, 1.0, %v12567_v59 }
 0x20d   : > { %v3591_v40 = vrot.slane %v3590_v38, 2  ;;  %2004 = vadd.xlane.f32.xlu0 %v2003_v45  ;;  %v9650_v19 = vpop.xlane.xlu1 %2139  ;;  %v9664_v45 = vsel %vm1852_vm0, %v1780_v39, 0.0  ;;  %v8022_v14 = vpop.eup %8021  ;;  %12580 = vst [vmem:[#allocation46_spill] sm:$0xff] %v9691_v1  ;;  %v3585_v0 = vmax.f32 %v3583_v56, %v3584_v27  ;;  %v3730_v46 = vsub.f32 %v9415_v33, %v3293_v60 }
 0x20e   : > { %12578 = vst [vmem:[#allocation44_spill] sm:$0xff] %v9650_v19  ;;  %v9660_v26 = vpop.xlane.xlu0 %2136  ;;  %v1785_v58 = vmul.f32 %v9433_v34, %v8022_v14  ;;  %v3294_v6 = vmax.f32 %v9584_v29, %v9580_v50  ;;  %v3306_v1 = vrot.slane %v3305_v31, 1  ;;  %8035 = vtanh.f32 %v9339_v43 }
 0x20f   : > { %12579 = vst [vmem:[#allocation45_spill] sm:$0xff] %v9660_v26  ;;  %v3592_v10 = vmax.f32 %v3590_v38, %v3591_v40  ;;  %v3609_v63 = vmax.f32 %v9660_v26, %v9650_v19  ;;  %v3586_v14 = vrot.slane %v3585_v0, 1  ;;  %8037 = vtanh.f32 %v9343_v52 }
 0x210   : > { %2001 = vadd.xlane.f32.xlu1 %v2000_v15  ;;  %v1787_v15 = vmul.f32 %v9433_v34, %v8020_v36  ;;  %v3731_v36 = vsub.f32 %v9439_v9, %v3293_v60  ;;  %v9712_v60 = vsel %vm1852_vm0, %v1786_v8, 0.0  ;;  %v3860_v8 = vmul.f32 1.442695, %v3730_v46 }
 0x211   : > { %v3593_v39 = vrot.slane %v3592_v10, 1  ;;  %v3610_v38 = vrot.slane %v3609_v63, 4  ;;  %1998 = vadd.xlane.f32.xlu0 %v9589_v20  ;;  %v9677_v40 = vpop.xlane.xlu1 %1881  ;;  %v8024_v20 = vpop.eup %8023  ;;  %v3307_v56 = vmax.f32 %v3305_v31, %v3306_v1  ;;  %v9737_v13 = vsel %vm1852_vm0, %v1785_v58, 0.0 }
 0x212   : > { %v9682_v24 = vpop.xlane.xlu0 %1878  ;;  %v8026_v41 = vpop.eup %8025  ;;  %v1790_v51 = vmul.f32 %v9433_v34, %v8024_v20  ;;  %v3862_v16 = vmul.f32 1.442695, %v3731_v36  ;;  %v3587_v31 = vmax.f32 %v3585_v0, %v3586_v14  ;;  %v9751_v43 = vrot.slane %v9376_v28, %v9365_v23 }
 0x213   : > { %v9693_v37 = vmax.f32 %v3592_v10, %v3593_v39  ;;  %v3611_v21 = vmax.f32 %v3609_v63, %v3610_v38  ;;  %v9722_v63 = vsel %vm2901_vm10, 1.0, %v12567_v59  ;;  %v1788_v39 = vmul.f32 %v9433_v34, %v8026_v41  ;;  %v8028_v38 = vpop.eup %8027 }
 0x214   : > { %2019 = vadd.xlane.f32.xlu1 %v9620_v5  ;;  %v9715_v5 = vsel %vm1852_vm0, %v1784_v42, 0.0  ;;  %v3295_v42 = vrot.slane %v3294_v6, 4  ;;  %v8030_v41 = vpop.eup %8029  ;;  %12581 = vst [vmem:[#allocation47_spill] sm:$0xff] %v9751_v43  ;;  %8039 = vpow2.f32 %v3860_v8  ;;  %v3574_v52 = vmax.f32 %v9470_v22, %v9483_v3 }
 0x215   : > { %v3612_v10 = vrot.slane %v3611_v21, 2  ;;  %2016 = vadd.xlane.f32.xlu0 %v9605_v54  ;;  %v9707_v33 = vpop.xlane.xlu1 %2133  ;;  %v9726_v54 = vsel %vm1852_vm0, %v1787_v15, 0.0  ;;  %v9747_v1 = vsel %vm1852_vm0, %v1788_v39, 0.0  ;;  %8041 = vpow2.f32 %v3862_v16  ;;  %v8032_v14 = vpop.eup %8031  ;;  %v12585_v16 = vld [vmem:[#allocation15_spill] sm:$0xff] }
 0x216   : > { %v9709_v9 = vpop.xlane.xlu0 %2130  ;;  %v3296_v58 = vmax.f32 %v3294_v6, %v3295_v42  ;;  %v3734_v0 = vsub.f32 %v9522_v2, %v3307_v56  ;;  %v1789_v28 = vmul.f32 %v9433_v34, %v8030_v41  ;;  %v3735_v6 = vsub.f32 %v9516_v35, %v3307_v56  ;;  %v12584_v56 = vld [vmem:[#allocation25_spill] sm:$0xff]  ;;  %v8034_v41 = vpop.eup %8033 }
 0x217   : > { %v3613_v27 = vmax.f32 %v3611_v21, %v3612_v10  ;;  %v3602_v20 = vmax.f32 %v9709_v9, %v9707_v33  ;;  %v3814_v2 = vsub.f32 %v9418_v44, %v3587_v31  ;;  %8043 = vtanh.f32 %v9359_v12 }
 0x218   : > { %2013 = vadd.xlane.f32.xlu1 %v9647_v4  ;;  %v9743_v4 = vsel %vm1852_vm0, %v1790_v51, 0.0  ;;  %v2538_v8 = vcombine.high %v9751_v43, %v9751_v43  ;;  %v3815_v35 = vsub.f32 %v9465_v49, %v3587_v31  ;;  %v3280_v42 = vmax.f32 %v12584_v56, %v9497_v61  ;;  %v12586_v43 = vld [vmem:[#allocation16_spill] sm:$0xff]  ;;  %v8036_v31 = vpop.eup %8035 }
 0x219   : > { %2010 = vadd.xlane.f32.xlu0 %v9611_v18  ;;  %v9733_v25 = vpop.xlane.xlu1 %1899  ;;  %v3614_v15 = vrot.slane %v3613_v27, 1  ;;  %v3603_v46 = vrot.slane %v3602_v20, 4  ;;  %v1791_v18 = vmul.f32 %v9433_v34, %v8028_v38  ;;  %8045 = vtanh.f32 %v12585_v16  ;;  %v8038_v26 = vpop.eup %8037 }
 0x21a   : > { %v9739_v21 = vpop.xlane.xlu0 %1896  ;;  %v3868_v44 = vmul.f32 1.442695, %v3734_v0  ;;  %8047 = vtanh.f32 %v12586_v43  ;;  %v1794_v49 = vmul.f32 %v9433_v34, %v8032_v14  ;;  %v4028_v19 = vmul.f32 1.442695, %v3814_v2 }
 0x21b   : > { %v9753_v36 = vmax.f32 %v3613_v27, %v3614_v15  ;;  %v3604_v10 = vmax.f32 %v3602_v20, %v3603_v46  ;;  %v3297_v20 = vrot.slane %v3296_v58, 2  ;;  %v2054_v12 = vsel %vm1852_vm0, %v1791_v18, 0.0 }
 0x21c   : > { %2031 = vadd.xlane.f32.xlu1 %v9672_v32  ;;  %v3575_v32 = vrot.slane %v3574_v52, 4  ;;  %v3870_v27 = vmul.f32 1.442695, %v3735_v6  ;;  %v2811_v16 = vrot.slane %v2538_v8, %v9423_v55  ;;  %v4030_v0 = vmul.f32 1.442695, %v3815_v35 }
 0x21d   : > { %12582 = vst [vmem:[#allocation48_spill] sm:$0xff] %v9753_v36  ;;  %2028 = vadd.xlane.f32.xlu0 %v9653_v17  ;;  %v9760_v51 = vpop.xlane.xlu1 %2151  ;;  %v3605_v39 = vrot.slane %v3604_v10, 2  ;;  %v2048_v14 = vsel %vm1852_vm0, %v1789_v28, 0.0  ;;  %v1793_v35 = vmul.f32 %v9433_v34, %v8038_v26 }
 0x21e   : > { %12583 = vst [vmem:[#allocation49_spill] sm:$0xff] %v9760_v51  ;;  %v9768_v38 = vpop.xlane.xlu0 %2148  ;;  %v8040_v6 = vpop.eup %8039  ;;  %v3576_v2 = vmax.f32 %v3574_v52, %v3575_v32  ;;  %vm2980_vm12 = vcmp.lt.s32.totalorder %v9347_v11, %v2811_v16  ;;  %v12588_v32 = vld [vmem:[#allocation19_spill] sm:$0xff]  ;;  %vm2981_vm13 = vcmp.lt.s32.totalorder %v9458_v62, %v2811_v16 }
 0x21f   : > { %v3623_v17 = vmax.f32 %v9768_v38, %v9760_v51  ;;  %v3606_v15 = vmax.f32 %v3604_v10, %v3605_v39  ;;  %v3281_v10 = vrot.slane %v3280_v42, 4  ;;  %v3298_v39 = vmax.f32 %v3296_v58, %v3297_v20 }
 0x220   : > { %2025 = vadd.xlane.f32.xlu1 %v9680_v57  ;;  %v1792_v58 = vmul.f32 %v9433_v34, %v8034_v41  ;;  %v3577_v41 = vrot.slane %v3576_v2, 2 }
 0x221   : > { %v3624_v46 = vrot.slane %v3623_v17, 4  ;;  %2022 = vadd.xlane.f32.xlu0 %v9664_v45  ;;  %v3607_v36 = vrot.slane %v3606_v15, 1  ;;  %v12587_v45 = vld [vmem:[#allocation18_spill] sm:$0xff]  ;;  %v3299_v28 = vrot.slane %v3298_v39, 1 }
 0x222   : > { %8049 = vtanh.f32 %v12587_v45 }
 0x223   : > { %v3625_v57 = vmax.f32 %v3623_v17, %v3624_v46  ;;  %8051 = vpow2.f32 %v3868_v44  ;;  %v9788_v18 = vmax.f32 %v3606_v15, %v3607_v36  ;;  %v9793_v17 = vsel %vm1852_vm0, %v1794_v49, 0.0  ;;  %v12590_v15 = vld [vmem:[#allocation20_spill] sm:$0xff]  ;;  %v12593_v49 = vld [vmem:[#allocation33_spill] sm:$0xff] }
 0x224   : > { %2043 = vadd.xlane.f32.xlu1 %v9726_v54  ;;  %8053 = vpow2.f32 %v3870_v27  ;;  %v8042_v54 = vpop.eup %8041  ;;  %v12591_v46 = vld [vmem:[#allocation32_spill] sm:$0xff]  ;;  %v3308_v36 = vmax.f32 %v9682_v24, %v9677_v40 }
 0x225   : > { %v3626_v43 = vrot.slane %v3625_v57, 2  ;;  %2040 = vadd.xlane.f32.xlu0 %v9712_v60  ;;  %8055 = vpow2.f32 %v4028_v19  ;;  %v3282_v60 = vmax.f32 %v3280_v42, %v3281_v10  ;;  %v8044_v27 = vpop.eup %8043  ;;  %v1795_v19 = vmul.f32 %v9433_v34, %v8036_v31 }
 0x226   : > { %8057 = vpow2.f32 %v4030_v0  ;;  %v8046_v20 = vpop.eup %8045  ;;  %v9808_v42 = vsel %vm1852_vm0, %v1792_v58, 0.0  ;;  %v9819_v26 = vmul.f32 %v8040_v6, %v12591_v46  ;;  %v9822_v31 = vmul.f32 %v8042_v54, %v12593_v49  ;;  %v9849_v46 = vpop.xlane.xlu1 %1893 }
 0x227   : > { %v3627_v52 = vmax.f32 %v3625_v57, %v3626_v43  ;;  %8059 = vtanh.f32 %v12588_v32  ;;  %v8048_v57 = vpop.eup %8047  ;;  %v3283_v0 = vrot.slane %v3282_v60, 2  ;;  %v3300_v10 = vmax.f32 %v3298_v39, %v3299_v28 }
 0x228   : > { %2037 = vadd.xlane.f32.xlu1 %v9737_v13  ;;  %v9813_v13 = vsel %vm2980_vm12, 1.0, %v12567_v59  ;;  %8061 = vtanh.f32 %v12590_v15  ;;  %12592 = vst [vmem:[#allocation15_spill] sm:$0xff] %v9819_v26  ;;  %12594 = vst [vmem:[#allocation16_spill] sm:$0xff] %v9822_v31  ;;  %v1798_v43 = vmul.f32 %v9433_v34, %v8044_v27  ;;  %v2066_v58 = vsel %vm1852_vm0, %v1795_v19, 0.0  ;;  %v12597_v19 = vld [vmem:[#allocation22_spill] sm:$0xff] }
 0x229   : > { %2034 = vadd.xlane.f32.xlu0 %v9715_v5  ;;  %v3628_v44 = vrot.slane %v3627_v52, 1  ;;  %12589 = vst [vmem:[#allocation25_spill] sm:$0xff] %v9813_v13  ;;  %v3315_v5 = vmax.f32 %v9627_v47, %v9623_v48  ;;  %v2060_v32 = vsel %vm1852_vm0, %v1793_v35, 0.0  ;;  %v1796_v6 = vmul.f32 %v9433_v34, %v8046_v20 }
 0x22a   : > { %v9834_v54 = vsel %vm2981_vm13, 1.0, %v12567_v59  ;;  %v3578_v39 = vmax.f32 %v3576_v2, %v3577_v41  ;;  %v4250_v35 = vsel %vm4240_vm11, %v9819_v26, 0.0  ;;  %v4251_v16 = vsel %vm4240_vm11, %v9822_v31, 0.0  ;;  %v12605_v26 = vld [vmem:[#allocation27_spill] sm:$0xff] }
 0x22b   : > { %v9824_v45 = vmax.f32 %v3627_v52, %v3628_v44  ;;  %12595 = vst [vmem:[#allocation18_spill] sm:$0xff] %v9834_v54  ;;  %v3316_v27 = vrot.slane %v3315_v5, 4  ;;  %v3284_v2 = vmax.f32 %v3282_v60, %v3283_v0  ;;  %v3732_v41 = vsub.f32 %v9584_v29, %v3300_v10  ;;  %v9847_v44 = vpop.xlane.xlu0 %1890 }
 0x22c   : > { %2055 = vadd.xlane.f32.xlu1 %v2054_v12  ;;  %v8050_v15 = vpop.eup %8049  ;;  %v9852_v49 = vsel %vm1852_vm0, %v1798_v43, 0.0  ;;  %v3733_v12 = vsub.f32 %v9580_v50, %v3300_v10  ;;  %v1799_v29 = vmul.f32 %v9433_v34, %v8048_v57  ;;  %v9862_v60 = vsel %vm1852_vm0, %v1796_v6, 0.0  ;;  %v12599_v43 = vld [vmem:[#allocation24_spill] sm:$0xff]  ;;  %v12600_v50 = vld [vmem:[#allocation26_spill] sm:$0xff] }
 0x22d   : > { %2052 = vadd.xlane.f32.xlu0 %v9743_v4  ;;  %v12596_v4 = vld [vmem:[#allocation21_spill] sm:$0xff]  ;;  %v8052_v52 = vpop.eup %8051  ;;  %v3579_v0 = vrot.slane %v3578_v39, 1  ;;  %v1797_v8 = vmul.f32 %v9433_v34, %v8050_v15  ;;  %v3317_v13 = vmax.f32 %v3315_v5, %v3316_v27  ;;  %v12601_v10 = vld [vmem:[#allocation34_spill] sm:$0xff]  ;;  %v3285_v57 = vrot.slane %v3284_v2, 1  ;;  %v12607_v5 = vld [vmem:[#allocation36_spill] sm:$0xff] }
 0x22e   : > { %8063 = vtanh.f32 %v12596_v4  ;;  %v8054_v20 = vpop.eup %8053  ;;  %v12598_v4 = vld [vmem:[#allocation17_spill] sm:$0xff]  ;;  %v9868_v51 = vmul.f32 %v8052_v52, %v12601_v10  ;;  %v3864_v6 = vmul.f32 1.442695, %v3732_v41 }
 0x22f   : > { %8065 = vtanh.f32 %v12597_v19  ;;  %v2248_v19 = vcombine.high %v12598_v4, %v12598_v4  ;;  %v8056_v28 = vpop.eup %8055  ;;  %v4252_v4 = vadd.f32 %v4251_v16, %v4250_v35  ;;  %v3866_v35 = vmul.f32 1.442695, %v3733_v12  ;;  %v12609_v52 = vld [vmem:[#allocation37_spill] sm:$0xff]  ;;  %v9884_v10 = vpop.xlane.xlu0 %2142 }
 0x230   : > { %2049 = vadd.xlane.f32.xlu1 %v2048_v14  ;;  %v8058_v14 = vpop.eup %8057  ;;  %8067 = vtanh.f32 %v12599_v43  ;;  %12602 = vst [vmem:[#allocation19_spill] sm:$0xff] %v9868_v51  ;;  %v3309_v16 = vrot.slane %v3308_v36, 4  ;;  %v9879_v27 = vmul.f32 %v8056_v28, %v12607_v5  ;;  %v3318_v12 = vrot.slane %v3317_v13, 2 }
 0x231   : > { %2046 = vadd.xlane.f32.xlu0 %v9747_v1  ;;  %v8060_v54 = vpop.eup %8059  ;;  %8069 = vtanh.f32 %v12600_v50  ;;  %v12603_v1 = vld [vmem:[#allocation35_spill] sm:$0xff]  ;;  %v9875_v43 = vrot.slane %v2248_v19, %v9365_v23  ;;  %v9882_v50 = vmul.f32 %v8058_v14, %v12609_v52  ;;  %v4253_v19 = vrot.slane %v4252_v4, 4 }
 0x232   : > { %v9871_v31 = vmul.f32 %v8054_v20, %v12603_v1  ;;  %8071 = vtanh.f32 %v12605_v26  ;;  %v8062_v15 = vpop.eup %8061  ;;  %12608 = vst [vmem:[#allocation33_spill] sm:$0xff] %v9879_v27  ;;  %v3580_v20 = vmax.f32 %v3578_v39, %v3579_v0  ;;  %v2078_v26 = vsel %vm1852_vm0, %v1799_v29, 0.0 }
 0x233   : > { %12606 = vst [vmem:[#allocation32_spill] sm:$0xff] %v9875_v43  ;;  %12610 = vst [vmem:[#allocation21_spill] sm:$0xff] %v9882_v50  ;;  %v1802_v41 = vmul.f32 %v9433_v34, %v8060_v54  ;;  %v4268_v28 = vsel %vm4240_vm11, %v9868_v51, 0.0  ;;  %v3286_v0 = vmax.f32 %v3284_v2, %v3285_v57  ;;  %8073 = vpow2.f32 %v3864_v6 }
 0x234   : > { %12604 = vst [vmem:[#allocation20_spill] sm:$0xff] %v9871_v31  ;;  %2067 = vadd.xlane.f32.xlu1 %v2066_v58  ;;  %v9886_v58 = vpop.xlane.xlu1 %2145  ;;  %v4269_v14 = vsel %vm4240_vm11, %v9871_v31, 0.0  ;;  %v1800_v1 = vmul.f32 %v9433_v34, %v8062_v15  ;;  %v2264_v54 = vcombine.high %v9875_v43, %v9875_v43  ;;  %8075 = vpow2.f32 %v3866_v35 }
 0x235   : > { %2064 = vadd.xlane.f32.xlu0 %v9793_v17  ;;  %v3329_v17 = vmax.f32 %v9739_v21, %v9733_v25  ;;  %v3310_v5 = vmax.f32 %v3308_v36, %v3309_v16  ;;  %v4628_v52 = vsel %vm4240_vm11, %v9879_v27, 0.0  ;;  %v4629_v31 = vsel %vm4240_vm11, %v9882_v50, 0.0  ;;  %v9909_v16 = vpop.xlane.xlu0 %1908  ;;  %v12611_v50 = vld [vmem:[#allocation29_spill] sm:$0xff] }
 0x236   : > { %v3812_v2 = vsub.f32 %v9470_v22, %v3580_v20  ;;  %v4254_v57 = vadd.f32 %v4253_v19, %v4252_v4  ;;  %v4270_v6 = vadd.f32 %v4269_v14, %v4268_v28  ;;  %v3813_v15 = vsub.f32 %v9483_v3, %v3580_v20 }
 0x237   : > { %v3319_v43 = vmax.f32 %v3317_v13, %v3318_v12  ;;  %v3330_v51 = vrot.slane %v3329_v17, 4  ;;  %8077 = vtanh.f32 %v12611_v50  ;;  %v2087_v22 = vsel %vm1852_vm0, %v1802_v41, 0.0 }
 0x238   : > { %v8064_v39 = vpop.eup %8063  ;;  %2061 = vadd.xlane.f32.xlu1 %v2060_v32  ;;  %v2072_v32 = vsel %vm1852_vm0, %v1797_v8, 0.0  ;;  %v9911_v27 = vpop.xlane.xlu1 %1911  ;;  %v4630_v8 = vadd.f32 %v4629_v31, %v4628_v52  ;;  %v3729_v3 = vsub.f32 %v9497_v61, %v3286_v0  ;;  %v3311_v13 = vrot.slane %v3310_v5, 2 }
 0x239   : > { %v8066_v29 = vpop.eup %8065  ;;  %2058 = vadd.xlane.f32.xlu0 %v9808_v42  ;;  %v1803_v36 = vmul.f32 %v9433_v34, %v8064_v39  ;;  %v3728_v42 = vsub.f32 %v12584_v56, %v3286_v0  ;;  %v2081_v20 = vsel %vm1852_vm0, %v1800_v1, 0.0  ;;  %v9919_v56 = vrot.slane %v2264_v54, %v9365_v23 }
 0x23a   : > { %v8068_v35 = vpop.eup %8067  ;;  %v4024_v12 = vmul.f32 1.442695, %v3812_v2  ;;  %v4255_v28 = vrot.slane %v4254_v57, 2  ;;  %v4271_v50 = vrot.slane %v4270_v6, 4  ;;  %v4026_v14 = vmul.f32 1.442695, %v3813_v15 }
 0x23b   : > { %v8070_v4 = vpop.eup %8069  ;;  %12612 = vst [vmem:[#allocation22_spill] sm:$0xff] %v9919_v56  ;;  %v3320_v41 = vrot.slane %v3319_v43, 1  ;;  %v3331_v31 = vmax.f32 %v3329_v17, %v3330_v51  ;;  %v2090_v39 = vsel %vm1852_vm0, %v1803_v36, 0.0  ;;  %v3856_v61 = vmul.f32 1.442695, %v3728_v42  ;;  %v9931_v17 = vpop.xlane.xlu0 %2160 }
 0x23c   : > { %2079 = vadd.xlane.f32.xlu1 %v2078_v26  ;;  %v8072_v19 = vpop.eup %8071  ;;  %v1801_v26 = vmul.f32 %v9433_v34, %v8066_v29  ;;  %v1804_v0 = vmul.f32 %v9433_v34, %v8070_v4  ;;  %v4631_v1 = vrot.slane %v4630_v8, 4  ;;  %v3858_v54 = vmul.f32 1.442695, %v3729_v3 }
 0x23d   : > { %2076 = vadd.xlane.f32.xlu0 %v9852_v49  ;;  %v1806_v49 = vmul.f32 %v9433_v34, %v8068_v35  ;;  %v3312_v52 = vmax.f32 %v3310_v5, %v3311_v13  ;;  %v1807_v29 = vmul.f32 %v9433_v34, %v8072_v19  ;;  %v9929_v2 = vrot.slane %v9919_v56, %v9423_v55  ;;  %v8074_v51 = vpop.eup %8073 }
 0x23e   : > { %8079 = vpow2.f32 %v4024_v12  ;;  %v2084_v15 = vsel %vm1852_vm0, %v1801_v26, 0.0  ;;  %v4256_v36 = vadd.f32 %v4255_v28, %v4254_v57  ;;  %v4272_v35 = vadd.f32 %v4271_v50, %v4270_v6  ;;  %v8076_v42 = vpop.eup %8075  ;;  %v12614_v50 = vld [vmem:[#allocation46_spill] sm:$0xff] }
 0x23f   : > { %8081 = vpow2.f32 %v4026_v14  ;;  %v3321_v5 = vmax.f32 %v3319_v43, %v3320_v41  ;;  %v3322_v34 = vmax.f32 %v9847_v44, %v9849_v46  ;;  %v2099_v4 = vsel %vm1852_vm0, %v1806_v49, 0.0 }
 0x240   : > { %2073 = vadd.xlane.f32.xlu1 %v2072_v32  ;;  %v9933_v32 = vpop.xlane.xlu1 %2163  ;;  %8083 = vpow2.f32 %v3856_v61  ;;  %v9940_v3 = vsel %vm1852_vm0, %v1804_v0, 0.0  ;;  %v4632_v13 = vadd.f32 %v4631_v1, %v4630_v8  ;;  %v12613_v57 = vsub.f32 %v9561_v53, %v9644_v30  ;;  %v12615_v8 = vld [vmem:[#allocation39_spill] sm:$0xff] }
 0x241   : > { %2070 = vadd.xlane.f32.xlu0 %v9862_v60  ;;  %v3332_v60 = vrot.slane %v3331_v31, 2  ;;  %8085 = vpow2.f32 %v3858_v54  ;;  %v3313_v19 = vrot.slane %v3312_v52, 1  ;;  %v9946_v43 = vsel %vm1852_vm0, %v1807_v29, 0.0  ;;  %v8078_v12 = vpop.eup %8077 }
 0x242   : > { %v4036_v6 = vmul.f32 1.442695, %v12613_v57  ;;  %v4257_v26 = vrot.slane %v4256_v36, 1  ;;  %v4273_v28 = vrot.slane %v4272_v35, 2  ;;  %v9949_v14 = vmul.f32 %v8074_v51, %v12614_v50  ;;  %v9964_v51 = vpop.xlane.xlu0 %1902 }
 0x243   : > { %v9952_v41 = vmul.f32 %v8076_v42, %v9722_v63  ;;  %v3738_v53 = vsub.f32 %v9627_v47, %v3321_v5  ;;  %v3333_v49 = vmax.f32 %v3331_v31, %v3332_v60  ;;  %v12617_v0 = vsub.f32 %v9607_v7, %v9693_v37  ;;  %v12618_v42 = vld [vmem:[#allocation41_spill] sm:$0xff] }
 0x244   : > { %2091 = vadd.xlane.f32.xlu1 %v2090_v39  ;;  %v12616_v39 = vsub.f32 %v12615_v8, %v9644_v30  ;;  %v3739_v54 = vsub.f32 %v9623_v48, %v3321_v5  ;;  %v3616_v29 = vmax.f32 %v9884_v10, %v9886_v58  ;;  %v9966_v63 = vpop.xlane.xlu1 %1905  ;;  %v4633_v30 = vrot.slane %v4632_v13, 2  ;;  %v8448_v48 = vld [vmem:[%s12487_s4] ss:$0 sm:$0xff] }
 0x245   : > { %2088 = vadd.xlane.f32.xlu0 %v2087_v22  ;;  %v3323_v22 = vrot.slane %v3322_v34, 4  ;;  %v4032_v1 = vmul.f32 1.442695, %v12617_v0  ;;  %8087 = vpow2.f32 %v4036_v6  ;;  %v12619_v47 = vsub.f32 %v12618_v42, %v9693_v37 }
 0x246   : > { %v4038_v61 = vmul.f32 1.442695, %v12616_v39  ;;  %v3314_v60 = vmax.f32 %v3312_v52, %v3313_v19  ;;  %v9974_v7 = vmul.f32 %v8448_v48, %v8078_v12  ;;  %v4258_v5 = vadd.f32 %v4257_v26, %v4256_v36  ;;  %v12620_v39 = vld [vmem:[#allocation30_spill] sm:$0xff]  ;;  %v12622_v26 = vld [vmem:[#allocation48_spill] sm:$0xff] }
 0x247   : > { %v4034_v31 = vmul.f32 1.442695, %v12619_v47  ;;  %v4274_v57 = vadd.f32 %v4273_v28, %v4272_v35  ;;  %v4259_v50 = vsel %vm4240_vm11, %v9949_v14, 0.0  ;;  %v3876_v6 = vmul.f32 1.442695, %v3738_v53  ;;  %v12621_v35 = vld [vmem:[#allocation45_spill] sm:$0xff] }
 0x248   : > { %2085 = vadd.xlane.f32.xlu1 %v2084_v15  ;;  %v4260_v15 = vsel %vm4240_vm11, %v9952_v41, 0.0  ;;  %8089 = vpow2.f32 %v4038_v61  ;;  %v3334_v37 = vrot.slane %v3333_v49, 1  ;;  %v3324_v8 = vmax.f32 %v3322_v34, %v3323_v22  ;;  %v9980_v52 = vpop.eup %8079 }
 0x249   : > { %2082 = vadd.xlane.f32.xlu0 %v2081_v20  ;;  %8091 = vpow2.f32 %v4032_v1  ;;  %v3878_v20 = vmul.f32 1.442695, %v3739_v54  ;;  %v3617_v19 = vrot.slane %v3616_v29, 4  ;;  %v4634_v12 = vadd.f32 %v4633_v30, %v4632_v13  ;;  %v9983_v36 = vpop.eup %8081  ;;  %v9994_v1 = vpop.xlane.xlu0 %2154 }
 0x24a   : > { %v12623_v28 = vsub.f32 %v12621_v35, %v12622_v26  ;;  %v3736_v42 = vsub.f32 %v9682_v24, %v3314_v60  ;;  %v3343_v61 = vmax.f32 %v9909_v16, %v9911_v27  ;;  %v4261_v34 = vadd.f32 %v4260_v15, %v4259_v50  ;;  %v9991_v53 = vpop.eup %8083  ;;  %v9996_v13 = vpop.xlane.xlu1 %2157  ;;  %v12624_v24 = vld [vmem:[#allocation44_spill] sm:$0xff] }
 0x24b   : > { %8093 = vpow2.f32 %v4034_v31  ;;  %v3737_v22 = vsub.f32 %v9677_v40, %v3314_v60  ;;  %v4818_v54 = vmax.f32 %v4258_v5, 1e-30  ;;  %v4275_v30 = vrot.slane %v4274_v57, 1  ;;  %v9998_v47 = vpop.eup %8085  ;;  %v12626_v15 = vld [vmem:[#allocation40_spill] sm:$0xff] }
 0x24c   : > { %2187 = vadd.xlane.f32.xlu1 %v12620_v39  ;;  %v4044_v0 = vmul.f32 1.442695, %v12623_v28  ;;  %8095 = vpow2.f32 %v3876_v6  ;;  %v12625_v48 = vsub.f32 %v12624_v24, %v12622_v26  ;;  %v3325_v50 = vrot.slane %v3324_v8, 2 }
 0x24d   : > { %2100 = vadd.xlane.f32.xlu0 %v2099_v4  ;;  %v10003_v4 = vmax.f32 %v3333_v49, %v3334_v37  ;;  %8097 = vpow2.f32 %v3878_v20  ;;  %v3618_v31 = vmax.f32 %v3616_v29, %v3617_v19  ;;  %v4635_v40 = vrot.slane %v4634_v12, 1 }
 0x24e   : > { %v4046_v39 = vmul.f32 1.442695, %v12625_v48  ;;  %v4262_v60 = vrot.slane %v4261_v34, 4  ;;  %vm2906_vm14 = vcmp.lt.s32.totalorder %v9347_v11, %v9929_v2  ;;  %8099 = vpow2.f32 %v4044_v0 }
 0x24f   : > { %v3872_v5 = vmul.f32 1.442695, %v3736_v42  ;;  %v3344_v35 = vrot.slane %v3343_v61, 4  ;;  %v3637_v6 = vmax.f32 %v9931_v17, %v9933_v32  ;;  %v3874_v49 = vmul.f32 1.442695, %v3737_v22  ;;  %v10011_v29 = vpop.eup %8087  ;;  %v10021_v22 = vpop.xlane.xlu0 %1920 }
 0x250   : > { %2235 = vadd.xlane.f32.xlu1 %v12626_v15  ;;  %8101 = vrcp.f32 %v4818_v54  ;;  %v4276_v37 = vadd.f32 %v4275_v30, %v4274_v57  ;;  %v4263_v20 = vadd.f32 %v4262_v60, %v4261_v34  ;;  %12627 = vst [vmem:[#allocation17_spill] sm:$0xff] %v10011_v29  ;;  %v12628_v19 = vsub.f32 %v9709_v9, %v9788_v18  ;;  %v10023_v57 = vpop.xlane.xlu1 %1923 }
 0x251   : > { %2094 = vadd.xlane.f32.xlu0 %v9940_v3  ;;  %8103 = vpow2.f32 %v4046_v39  ;;  %v3742_v28 = vsub.f32 %v9739_v21, %v10003_v4  ;;  %v3326_v0 = vmax.f32 %v3324_v8, %v3325_v50  ;;  %v12629_v42 = vsub.f32 %v9707_v33, %v9788_v18  ;;  %v12631_v8 = vld [vmem:[#allocation31_spill] sm:$0xff] }
 0x252   : > { %v4040_v26 = vmul.f32 1.442695, %v12628_v19  ;;  %v3619_v3 = vrot.slane %v3618_v31, 2  ;;  %v4636_v34 = vadd.f32 %v4635_v40, %v4634_v12  ;;  %v4264_v54 = vrot.slane %v4263_v20, 2  ;;  %v10026_v30 = vpop.eup %8089 }
 0x253   : > { %v4042_v24 = vmul.f32 1.442695, %v12629_v42  ;;  %12630 = vst [vmem:[#allocation24_spill] sm:$0xff] %v10026_v30  ;;  %8105 = vpow2.f32 %v3872_v5  ;;  %v3345_v9 = vmax.f32 %v3343_v61, %v3344_v35  ;;  %v3638_v48 = vrot.slane %v3637_v6, 4  ;;  %v10031_v33 = vpop.eup %8091 }
 0x254   : > { %2103 = vadd.xlane.f32.xlu1 %v9946_v43  ;;  %v3336_v21 = vmax.f32 %v9964_v51, %v9966_v63  ;;  %12632 = vst [vmem:[#allocation26_spill] sm:$0xff] %v10031_v33  ;;  %8107 = vpow2.f32 %v3874_v49  ;;  %v2096_v18 = vsel %vm1852_vm0, %v9974_v7, 0.0  ;;  %v4820_v39 = vmax.f32 %v4276_v37, 1e-30  ;;  %v12634_v37 = vld [vmem:[#allocation38_spill] sm:$0xff]  ;;  %v10050_v19 = vpop.xlane.xlu1 %2175  ;;  %v12644_v33 = vld [vmem:[#allocation16_spill] sm:$0xff] }
 0x255   : > { %2184 = vadd.xlane.f32.xlu0 %v12631_v8  ;;  %v4265_v43 = vadd.f32 %v4264_v54, %v4263_v20  ;;  %8109 = vpow2.f32 %v4040_v26  ;;  %v3743_v12 = vsub.f32 %v9733_v25, %v10003_v4  ;;  %v3884_v50 = vmul.f32 1.442695, %v3742_v28  ;;  %v10037_v15 = vpop.eup %8093  ;;  %v12635_v26 = vld [vmem:[#allocation42_spill] sm:$0xff] }
 0x256   : > { %v3327_v61 = vrot.slane %v3326_v0, 1  ;;  %12633 = vst [vmem:[#allocation34_spill] sm:$0xff] %v10037_v15  ;;  %8111 = vpow2.f32 %v4042_v24  ;;  %v3620_v40 = vmax.f32 %v3618_v31, %v3619_v3  ;;  %v4860_v60 = vmax.f32 %v4636_v34, 1e-30  ;;  %v10041_v5 = vpop.eup %8095  ;;  %v10048_v31 = vpop.xlane.xlu0 %2172 }
 0x257   : > { %vm2907_vm15 = vcmp.lt.s32.totalorder %v9458_v62, %v9929_v2  ;;  %v3346_v7 = vrot.slane %v3345_v9, 2  ;;  %v3639_v35 = vmax.f32 %v3637_v6, %v3638_v48  ;;  %v3337_v49 = vrot.slane %v3336_v21, 4  ;;  %v10044_v25 = vpop.eup %8097  ;;  %v12636_v6 = vld [vmem:[#allocation43_spill] sm:$0xff] }
 0x258   : > { %2097 = vadd.xlane.f32.xlu1 %v2096_v18  ;;  %v4266_v20 = vrot.slane %v4265_v43, 1  ;;  %v3630_v4 = vmax.f32 %v9994_v1, %v9996_v13  ;;  %8113 = vrcp.f32 %v4820_v39  ;;  %v10054_v28 = vmul.f32 %v9991_v53, %v12635_v26  ;;  %v10060_v24 = vpop.eup %8099  ;;  %v10096_v15 = vpop.xlane.xlu1 %1917 }
 0x259   : > { %2232 = vadd.xlane.f32.xlu0 %v12634_v37  ;;  %v10058_v42 = vmul.f32 %v9998_v47, %v12636_v6  ;;  %12638 = vst [vmem:[#allocation27_spill] sm:$0xff] %v10060_v24  ;;  %8115 = vpow2.f32 %v3884_v50  ;;  %v3886_v3 = vmul.f32 1.442695, %v3743_v12  ;;  %v3328_v34 = vmax.f32 %v3326_v0, %v3327_v61  ;;  %v8449_v47 = vld [vmem:[%s9357_s27 + $0x28] sm:$0xff] }
 0x25a   : > { %v10066_v54 = vsel %vm2906_vm14, 1.0, %v12567_v59  ;;  %v8102_v48 = vpop.eup %8101  ;;  %v3621_v8 = vrot.slane %v3620_v40, 1  ;;  %8117 = vrcp.f32 %v4860_v60  ;;  %v10072_v53 = vsel %vm2907_vm15, 1.0, %v12567_v59 }
 0x25b   : > { %12637 = vst [vmem:[#allocation35_spill] sm:$0xff] %v10058_v42  ;;  %v2493_v18 = vcombine.high %v8449_v47, %v8449_v47  ;;  %v10075_v39 = vpop.eup %8103  ;;  %v3347_v0 = vmax.f32 %v3345_v9, %v3346_v7  ;;  %v3640_v12 = vrot.slane %v3639_v35, 2  ;;  %v3357_v50 = vmax.f32 %v10021_v22, %v10023_v57 }
 0x25c   : > { %12639 = vst [vmem:[#allocation36_spill] sm:$0xff] %v10075_v39  ;;  %v4267_v61 = vadd.f32 %v4266_v20, %v4265_v43  ;;  %v3338_v37 = vmax.f32 %v3336_v21, %v3337_v49  ;;  %v3631_v26 = vrot.slane %v3630_v4, 4  ;;  %v4241_v60 = vsel %vm4240_vm11, %v10054_v28, 0.0  ;;  %v12642_v39 = vld [vmem:[#allocation15_spill] sm:$0xff]  ;;  %v10094_v20 = vpop.xlane.xlu0 %1914 }
 0x25d   : > { %v4242_v2 = vsel %vm4240_vm11, %v10058_v42, 0.0  ;;  %v10083_v6 = vpop.eup %8105  ;;  %8119 = vpow2.f32 %v3886_v3  ;;  %v12641_v47 = vsub.f32 %v9768_v38, %v9824_v45  ;;  %v3740_v7 = vsub.f32 %v9847_v44, %v3328_v34  ;;  %v12646_v38 = vld [vmem:[#allocation49_spill] sm:$0xff] }
 0x25e   : > { %12640 = vst [vmem:[#allocation37_spill] sm:$0xff] %v10083_v6  ;;  %v4947_v24 = vmul.f32 %v8102_v48, %v12642_v39  ;;  %v10090_v43 = vpop.eup %8107  ;;  %v3622_v21 = vmax.f32 %v3620_v40, %v3621_v8  ;;  %v3651_v49 = vmax.f32 %v10048_v31, %v10050_v19  ;;  %v4948_v3 = vmul.f32 %v8102_v48, %v12644_v33 }
 0x25f   : > { %v4052_v9 = vmul.f32 1.442695, %v12641_v47  ;;  %12643 = vst [vmem:[#allocation29_spill] sm:$0xff] %v10090_v43  ;;  %v4819_v56 = vmax.f32 %v4267_v61, 1e-30  ;;  %v10099_v30 = vpop.eup %8109  ;;  %v12647_v44 = vsub.f32 %v12646_v38, %v9824_v45  ;;  %v3641_v39 = vmax.f32 %v3639_v35, %v3640_v12 }
 0x260   : > { %12645 = vst [vmem:[#allocation46_spill] sm:$0xff] %v10099_v30  ;;  %v3358_v29 = vrot.slane %v3357_v50, 4  ;;  %v4243_v43 = vadd.f32 %v4242_v2, %v4241_v60  ;;  %v10104_v40 = vpop.eup %8111  ;;  %v3741_v8 = vsub.f32 %v9849_v46, %v3328_v34  ;;  %v3348_v6 = vrot.slane %v3347_v0, 1  ;;  %v12651_v30 = vld [vmem:[#allocation20_spill] sm:$0xff]  ;;  %v10123_v42 = vpop.xlane.xlu0 %2166 }
 0x261   : > { %v4054_v47 = vmul.f32 1.442695, %v12647_v44  ;;  %12648 = vst [vmem:[#allocation39_spill] sm:$0xff] %v10104_v40  ;;  %v3339_v59 = vrot.slane %v3338_v37, 2  ;;  %v3632_v62 = vmax.f32 %v3630_v4, %v3631_v26  ;;  %8121 = vpow2.f32 %v4052_v9  ;;  %v12650_v44 = vld [vmem:[#allocation19_spill] sm:$0xff] }
 0x262   : > { %v3880_v11 = vmul.f32 1.442695, %v3740_v7  ;;  %v3350_v33 = vmax.f32 %v10094_v20, %v10096_v15  ;;  %v10110_v48 = vrot.slane %v2493_v18, %v9365_v23  ;;  %v8114_v45 = vpop.eup %8113  ;;  %v3824_v35 = vsub.f32 %v9884_v10, %v3622_v21 }
 0x263   : > { %v3652_v12 = vrot.slane %v3651_v49, 4  ;;  %v5074_v61 = vpack.c.bf16 %v4948_v3, %v4947_v24  ;;  %8123 = vrcp.f32 %v4819_v56  ;;  %v10113_v60 = vpop.eup %8115  ;;  %v3642_v46 = vrot.slane %v3641_v39, 1 }
 0x264   : > { %12649 = vst [vmem:[#allocation41_spill] sm:$0xff] %v10113_v60  ;;  %8125 = vpow2.f32 %v4054_v47  ;;  %v3359_v34 = vmax.f32 %v3357_v50, %v3358_v29  ;;  %v4244_v4 = vrot.slane %v4243_v43, 4  ;;  %v8118_v26 = vpop.eup %8117  ;;  %v3882_v2 = vmul.f32 1.442695, %v3741_v8  ;;  %v12652_v8 = vld [vmem:[#allocation33_spill] sm:$0xff] }
 0x265   : > { %v3349_v9 = vmax.f32 %v3347_v0, %v3348_v6  ;;  %v3340_v7 = vmax.f32 %v3338_v37, %v3339_v59  ;;  %v3633_v38 = vrot.slane %v3632_v62, 2  ;;  %8127 = vpow2.f32 %v3880_v11  ;;  %v12653_v59 = vld [vmem:[#allocation21_spill] sm:$0xff] }
 0x266   : > { %v3351_v18 = vrot.slane %v3350_v33, 4  ;;  %v4951_v40 = vmul.f32 %v8114_v45, %v12650_v44  ;;  %v4952_v10 = vmul.f32 %v8114_v45, %v12651_v30  ;;  %v3825_v24 = vsub.f32 %v9886_v58, %v3622_v21  ;;  %v10125_v30 = vpop.xlane.xlu1 %2169 }
 0x267   : > { %v4048_v56 = vmul.f32 1.442695, %v3824_v35  ;;  %v3653_v3 = vmax.f32 %v3651_v49, %v3652_v12  ;;  %v4245_v60 = vadd.f32 %v4244_v4, %v4243_v43  ;;  %v10118_v47 = vpop.eup %8119  ;;  %v3643_v29 = vmax.f32 %v3641_v39, %v3642_v46 }
 0x268   : > { %v3360_v50 = vrot.slane %v3359_v34, 2  ;;  %v5031_v0 = vmul.f32 %v8118_v26, %v12652_v8  ;;  %v5032_v37 = vmul.f32 %v8118_v26, %v12653_v59  ;;  %v3746_v11 = vsub.f32 %v9909_v16, %v3349_v9 }
 0x269   : > { %5144 = vperm.xlu1 %7689, %v5074_v61   ;;  %v3341_v6 = vrot.slane %v3340_v7, 1  ;;  %v3634_v44 = vmax.f32 %v3632_v62, %v3633_v38  ;;  %v4246_v58 = vrot.slane %v4245_v60, 2  ;;  %8129 = vpow2.f32 %v3882_v2 }
 0x26a   : > { %v3352_v43 = vmax.f32 %v3350_v33, %v3351_v18  ;;  %v5076_v21 = vpack.c.bf16 %v4952_v10, %v4951_v40  ;;  %v2509_v49 = vcombine.high %v10110_v48, %v10110_v48  ;;  %8131 = vpow2.f32 %v4048_v56  ;;  %v10148_v10 = vpop.xlane.xlu1 %1935 }
 0x26b   : > { %v4050_v39 = vmul.f32 1.442695, %v3825_v24  ;;  %v3747_v45 = vsub.f32 %v9911_v27, %v3349_v9  ;;  %v3654_v35 = vrot.slane %v3653_v3, 2  ;;  %v10130_v12 = vpop.eup %8121  ;;  %v3830_v62 = vsub.f32 %v9931_v17, %v3643_v29 }
 0x26c   : > { %v3361_v16 = vmax.f32 %v3359_v34, %v3360_v50  ;;  %v5116_v61 = vpack.c.bf16 %v5032_v37, %v5031_v0  ;;  %v4247_v46 = vadd.f32 %v4246_v58, %v4245_v60  ;;  %v3892_v26 = vmul.f32 1.442695, %v3746_v11 }
 0x26d   : > { %5154 = vperm.xlu1 %7689, %v5076_v21   ;;  %v8124_v4 = vpop.eup %8123  ;;  %v3342_v33 = vmax.f32 %v3340_v7, %v3341_v6  ;;  %v3635_v40 = vrot.slane %v3634_v44, 1  ;;  %v3644_v2 = vmax.f32 %v10123_v42, %v10125_v30  ;;  %v3353_v18 = vrot.slane %v3352_v43, 2  ;;  %v10146_v7 = vpop.xlane.xlu0 %1932 }
 0x26e   : > { %v10135_v38 = vpop.eup %8125  ;;  %v4949_v27 = vmul.f32 %v8124_v4, %v9949_v14  ;;  %v10140_v17 = vmul.f32 %v10041_v5, %v10066_v54  ;;  %v10144_v60 = vmul.f32 %v10044_v25, %v10072_v53  ;;  %8133 = vpow2.f32 %v4050_v39 }
 0x26f   : > { %5354 = vperm.xlu0 %7690, %v5116_v61   ;;  %v3894_v34 = vmul.f32 1.442695, %v3747_v45  ;;  %v3655_v9 = vmax.f32 %v3653_v3, %v3654_v35  ;;  %v4950_v24 = vmul.f32 %v8124_v4, %v9952_v41  ;;  %v10151_v56 = vpop.eup %8127  ;;  %v3831_v14 = vsub.f32 %v9933_v32, %v3643_v29 }
 0x270   : > { %v4060_v50 = vmul.f32 1.442695, %v3830_v62  ;;  %v3362_v5 = vrot.slane %v3361_v16, 1  ;;  %v4248_v54 = vrot.slane %v4247_v46, 1  ;;  %v3744_v8 = vsub.f32 %v9964_v51, %v3342_v33 }
 0x271   : > { %v3636_v25 = vmax.f32 %v3634_v44, %v3635_v40  ;;  %v3645_v53 = vrot.slane %v3644_v2, 4  ;;  %v5075_v0 = vpack.c.bf16 %v4950_v24, %v4949_v27  ;;  %v3354_v59 = vmax.f32 %v3352_v43, %v3353_v18 }
 0x272   : > { %v3371_v3 = vmax.f32 %v10146_v7, %v10148_v10  ;;  %v4286_v37 = vsel %vm4240_vm11, %v10140_v17, 0.0  ;;  %v4287_v41 = vsel %vm4240_vm11, %v10144_v60, 0.0  ;;  %8135 = vpow2.f32 %v3892_v26 }
 0x273   : > { %v3745_v32 = vsub.f32 %v9966_v63, %v3342_v33  ;;  %v3656_v29 = vrot.slane %v3655_v9, 1  ;;  %5149 = vperm.xlu1 %7689, %v5075_v0   ;;  %v4249_v11 = vadd.f32 %v4248_v54, %v4247_v46  ;;  %v10162_v51 = vpop.eup %8129  ;;  %8137 = vpow2.f32 %v3894_v34  ;;  %v10174_v33 = vpop.xlane.xlu1 %1929 }
 0x274   : > { %v4062_v6 = vmul.f32 1.442695, %v3831_v14  ;;  %v3363_v44 = vmax.f32 %v3361_v16, %v3362_v5  ;;  %v10165_v58 = vrot.slane %v2509_v49, %v9365_v23  ;;  %v10167_v43 = vpop.eup %8131  ;;  %v3828_v21 = vsub.f32 %v9994_v1, %v3636_v25  ;;  %v10172_v16 = vpop.xlane.xlu0 %1926  ;;  %v12654_v1 = vld [vmem:[#allocation25_spill] sm:$0xff]  ;;  %v12655_v14 = vld [vmem:[#allocation18_spill] sm:$0xff] }
 0x275   : > { %v3646_v39 = vmax.f32 %v3644_v2, %v3645_v53  ;;  %v4817_v45 = vmax.f32 %v4249_v11, 1e-30  ;;  %v4288_v35 = vadd.f32 %v4287_v41, %v4286_v37  ;;  %8139 = vpow2.f32 %v4060_v50 }
 0x276   : > { %v3888_v63 = vmul.f32 1.442695, %v3744_v8  ;;  %v3355_v62 = vrot.slane %v3354_v59, 1  ;;  %v3372_v61 = vrot.slane %v3371_v3, 4  ;;  %v3890_v46 = vmul.f32 1.442695, %v3745_v32 }
 0x277   : > { %v3829_v4 = vsub.f32 %v9996_v13, %v3636_v25  ;;  %v3657_v26 = vmax.f32 %v3655_v9, %v3656_v29  ;;  %8141 = vrcp.f32 %v4817_v45  ;;  %v3750_v49 = vsub.f32 %v10021_v22, %v3363_v44 }
 0x278   : > { %8143 = vpow2.f32 %v4062_v6  ;;  %v10178_v40 = vmul.f32 %v9980_v52, %v12654_v1  ;;  %v10182_v2 = vrot.slane %v10165_v58, %v9423_v55  ;;  %v10184_v18 = vpop.eup %8133  ;;  %v4056_v13 = vmul.f32 1.442695, %v3828_v21 }
 0x279   : > { %v3751_v27 = vsub.f32 %v10023_v57, %v3363_v44  ;;  %v3647_v34 = vrot.slane %v3646_v39, 2  ;;  %v4289_v9 = vrot.slane %v4288_v35, 4  ;;  %8145 = vpow2.f32 %v3888_v63  ;;  %v12656_v44 = vld [vmem:[#allocation32_spill] sm:$0xff] }
 0x27a   : > { %v3356_v22 = vmax.f32 %v3354_v59, %v3355_v62  ;;  %v3373_v24 = vmax.f32 %v3371_v3, %v3372_v61  ;;  %v10189_v50 = vmul.f32 %v9983_v36, %v12655_v14  ;;  %8147 = vpow2.f32 %v3890_v46  ;;  %v10211_v61 = vpop.xlane.xlu0 %2178  ;;  %v10213_v46 = vpop.xlane.xlu1 %2181 }
 0x27b   : > { %v4058_v52 = vmul.f32 1.442695, %v3829_v4  ;;  %v3834_v5 = vsub.f32 %v10048_v31, %v3657_v26  ;;  %v3364_v54 = vmax.f32 %v10172_v16, %v10174_v33  ;;  %v3900_v8 = vmul.f32 1.442695, %v3750_v49 }
 0x27c   : > { %v4290_v25 = vadd.f32 %v4289_v9, %v4288_v35  ;;  %v4619_v57 = vsel %vm4240_vm11, %v10178_v40, 0.0  ;;  %v4620_v53 = vsel %vm4240_vm11, %v10189_v50, 0.0  ;;  %v10198_v0 = vpop.eup %8135  ;;  %8149 = vpow2.f32 %v4056_v13 }
 0x27d   : > { %v3902_v36 = vmul.f32 1.442695, %v3751_v27  ;;  %v3835_v59 = vsub.f32 %v10050_v19, %v3657_v26  ;;  %v3648_v3 = vmax.f32 %v3646_v39, %v3647_v34  ;;  %v10201_v37 = vpop.eup %8137  ;;  %v3748_v31 = vsub.f32 %v10094_v20, %v3356_v22 }
 0x27e   : > { %v3374_v41 = vrot.slane %v3373_v24, 2  ;;  %v4291_v32 = vrot.slane %v4290_v25, 2  ;;  %v4621_v29 = vadd.f32 %v4620_v53, %v4619_v57  ;;  %8151 = vpow2.f32 %v4058_v52  ;;  %v12661_v53 = vld [vmem:[#allocation28_spill] sm:$0xff] }
 0x27f   : > { %v4068_v11 = vmul.f32 1.442695, %v3834_v5  ;;  %v3365_v6 = vrot.slane %v3364_v54, 4  ;;  %v10206_v21 = vrot.slane %v12656_v44, %v9365_v23  ;;  %v10208_v45 = vpop.eup %8139  ;;  %8153 = vpow2.f32 %v3900_v8 }
 0x280   : > { %v3749_v19 = vsub.f32 %v10096_v15, %v3356_v22  ;;  %v4292_v39 = vadd.f32 %v4291_v32, %v4290_v25  ;;  %v4622_v35 = vrot.slane %v4621_v29, 4  ;;  %8155 = vpow2.f32 %v3902_v36  ;;  %v12657_v15 = vld [vmem:[#allocation35_spill] sm:$0xff]  ;;  %v12659_v25 = vld [vmem:[#allocation14_spill] sm:$0xff] }
 0x281   : > { %v8142_v63 = vpop.eup %8141  ;;  %v4070_v20 = vmul.f32 1.442695, %v3835_v59  ;;  %v3649_v62 = vrot.slane %v3648_v3, 1  ;;  %v2659_v4 = vrot.slane %v10206_v21, %v9423_v55  ;;  %v3896_v49 = vmul.f32 1.442695, %v3748_v31 }
 0x282   : > { %v10217_v26 = vpop.eup %8143  ;;  %v3375_v1 = vmax.f32 %v3373_v24, %v3374_v41  ;;  %v4945_v13 = vmul.f32 %v8142_v63, %v10054_v28  ;;  %v4946_v27 = vmul.f32 %v8142_v63, %v12657_v15  ;;  %8157 = vpow2.f32 %v4068_v11  ;;  %v12666_v63 = vld [vmem:[#allocation29_spill] sm:$0xff] }
 0x283   : > { %v3366_v34 = vmax.f32 %v3364_v54, %v3365_v6  ;;  %v4293_v9 = vrot.slane %v4292_v39, 1  ;;  %v4623_v22 = vadd.f32 %v4622_v35, %v4621_v29  ;;  %v10221_v14 = vpop.eup %8145  ;;  %v3898_v52 = vmul.f32 1.442695, %v3749_v19  ;;  %v12664_v19 = vld [vmem:[#allocation37_spill] sm:$0xff] }
 0x284   : > { %12658 = vst [vmem:[#allocation30_spill] sm:$0xff] %v10221_v14  ;;  %v3658_v5 = vmax.f32 %v10211_v61, %v10213_v46  ;;  %v5073_v8 = vpack.c.bf16 %v4946_v27, %v4945_v13  ;;  %vm2904_vm0 = vcmp.lt.s32.totalorder %v12659_v25, %v2659_v4  ;;  %v10226_v57 = vpop.eup %8147  ;;  %8159 = vpow2.f32 %v4070_v20 }
 0x285   : > { %12660 = vst [vmem:[#allocation45_spill] sm:$0xff] %v10226_v57  ;;  %v4294_v24 = vadd.f32 %v4293_v9, %v4292_v39  ;;  %v4624_v28 = vrot.slane %v4623_v22, 2  ;;  %vm2905_vm1 = vcmp.lt.s32.totalorder %v12661_v53, %v2659_v4  ;;  %8161 = vpow2.f32 %v3896_v49  ;;  %v10253_v9 = vpop.xlane.xlu0 %1944 }
 0x286   : > { %v3650_v54 = vmax.f32 %v3648_v3, %v3649_v62  ;;  %v3376_v36 = vrot.slane %v3375_v1, 1  ;;  %5139 = vperm.xlu0 %7690, %v5073_v8   ;;  %v10229_v59 = vpop.eup %8149  ;;  %v12663_v32 = vmov 0.0   ;;  %8163 = vpow2.f32 %v3898_v52 }
 0x287   : > { %12662 = vst [vmem:[#allocation48_spill] sm:$0xff] %v10229_v59  ;;  %v4822_v31 = vmax.f32 %v4294_v24, 1e-30  ;;  %v4625_v41 = vadd.f32 %v4624_v28, %v4623_v22  ;;  %v7114_v29 = vsel %vm2904_vm0, 1.0, %v12663_v32  ;;  %v7115_v11 = vsel %vm2905_vm1, 1.0, %v12663_v32  ;;  %v10255_v22 = vpop.xlane.xlu1 %1947 }
 0x288   : > { %v3367_v6 = vrot.slane %v3366_v34, 2  ;;  %v3659_v44 = vrot.slane %v3658_v5, 4  ;;  %v10234_v39 = vmul.f32 %v12664_v19, %v7114_v29  ;;  %v10236_v35 = vpop.eup %8151  ;;  %v10239_v20 = vmul.f32 %v12666_v63, %v7115_v11  ;;  %v12671_v29 = vld [vmem:[#allocation24_spill] sm:$0xff] }
 0x289   : > { %12665 = vst [vmem:[#allocation44_spill] sm:$0xff] %v10236_v35  ;;  %8165 = vrcp.f32 %v4822_v31  ;;  %v4626_v3 = vrot.slane %v4625_v41, 1  ;;  %vm2986_vm2 = vcmp.lt.s32.totalorder %v12659_v25, %v10182_v2  ;;  %v10243_v62 = vpop.eup %8153  ;;  %v3832_v4 = vsub.f32 %v10123_v42, %v3650_v54 }
 0x28a   : > { %12667 = vst [vmem:[#allocation40_spill] sm:$0xff] %v10243_v62  ;;  %v3833_v49 = vsub.f32 %v10125_v30, %v3650_v54  ;;  %v4277_v13 = vsel %vm4240_vm11, %v10234_v39, 0.0  ;;  %vm2987_vm3 = vcmp.lt.s32.totalorder %v12661_v53, %v10182_v2  ;;  %v10251_v15 = vpop.eup %8155  ;;  %v3377_v27 = vmax.f32 %v3375_v1, %v3376_v36  ;;  %v12669_v54 = vld [vmem:[#allocation17_spill] sm:$0xff] }
 0x28b   : > { %12668 = vst [vmem:[#allocation31_spill] sm:$0xff] %v10251_v15  ;;  %v4627_v52 = vadd.f32 %v4626_v3, %v4625_v41  ;;  %v4278_v8 = vsel %vm4240_vm11, %v10239_v20, 0.0  ;;  %v7196_v42 = vsel %vm2986_vm2, 1.0, %v12663_v32  ;;  %v3368_v30 = vmax.f32 %v3366_v34, %v3367_v6  ;;  %v12672_v41 = vld [vmem:[#allocation22_spill] sm:$0xff] }
 0x28c   : > { %v4279_v24 = vadd.f32 %v4278_v8, %v4277_v13  ;;  %v7197_v28 = vsel %vm2987_vm3, 1.0, %v12663_v32  ;;  %v10262_v31 = vmul.f32 %v12669_v54, %v7196_v42  ;;  %v10264_v2 = vpop.eup %8157  ;;  %v10266_v1 = vmax.f32 %v3658_v5, %v3659_v44 }
 0x28d   : > { %12670 = vst [vmem:[#allocation38_spill] sm:$0xff] %v10264_v2  ;;  %v4859_v36 = vmax.f32 %v4627_v52, 1e-30  ;;  %v10269_v11 = vmul.f32 %v12671_v29, %v7197_v28  ;;  %v2296_v19 = vcombine.high %v12672_v41, %v12672_v41  ;;  %v4064_v3 = vmul.f32 1.442695, %v3832_v4 }
 0x28e   : > { %v3385_v34 = vmax.f32 %v10253_v9, %v10255_v22  ;;  %v4280_v6 = vrot.slane %v4279_v24, 4  ;;  %v4646_v63 = vsel %vm4240_vm11, %v10262_v31, 0.0  ;;  %v10277_v13 = vpop.eup %8159  ;;  %v4066_v8 = vmul.f32 1.442695, %v3833_v49 }
 0x28f   : > { %12673 = vst [vmem:[#allocation42_spill] sm:$0xff] %v10277_v13  ;;  %8167 = vrcp.f32 %v4859_v36  ;;  %v4647_v5 = vsel %vm4240_vm11, %v10269_v11, 0.0  ;;  %v2671_v44 = vrot.slane %v2296_v19, %v9423_v55  ;;  %v10282_v52 = vpop.eup %8161  ;;  %v3754_v4 = vsub.f32 %v10146_v7, %v3377_v27 }
 0x290   : > { %12674 = vst [vmem:[#allocation43_spill] sm:$0xff] %v10282_v52  ;;  %v3755_v42 = vsub.f32 %v10148_v10, %v3377_v27  ;;  %v4281_v28 = vadd.f32 %v4280_v6, %v4279_v24  ;;  %v4648_v54 = vadd.f32 %v4647_v5, %v4646_v63  ;;  %v3369_v29 = vrot.slane %v3368_v30, 1  ;;  %v10292_v36 = vpop.eup %8163  ;;  %v12676_v6 = vld [vmem:[#allocation41_spill] sm:$0xff]  ;;  %v10300_v5 = vpop.xlane.xlu0 %2196 }
 0x291   : > { %vm2910_vm4 = vcmp.lt.s32.totalorder %v12659_v25, %v2671_v44  ;;  %vm2911_vm5 = vcmp.lt.s32.totalorder %v12661_v53, %v2671_v44  ;;  %v10290_v49 = vrot.slane %v10110_v48, %v9365_v23  ;;  %12675 = vst [vmem:[#allocation15_spill] sm:$0xff] %v10292_v36  ;;  %v3661_v41 = vrot.slane %v10266_v1, 2  ;;  %v10302_v48 = vpop.xlane.xlu1 %2199 }
 0x292   : > { %v4282_v19 = vrot.slane %v4281_v28, 2  ;;  %v4649_v13 = vrot.slane %v4648_v54, 4  ;;  %v7120_v7 = vsel %vm2910_vm4, 1.0, %v12663_v32  ;;  %8169 = vpow2.f32 %v4064_v3 }
 0x293   : > { %v8166_v10 = vpop.eup %8165  ;;  %v3386_v27 = vrot.slane %v3385_v34, 4  ;;  %v7121_v24 = vsel %vm2911_vm5, 1.0, %v12663_v32  ;;  %v10298_v63 = vmul.f32 %v12676_v6, %v7120_v7  ;;  %v3908_v15 = vmul.f32 1.442695, %v3754_v4 }
 0x294   : > { %v4955_v44 = vmul.f32 %v8166_v10, %v10140_v17  ;;  %v4956_v2 = vmul.f32 %v8166_v10, %v10144_v60  ;;  %v4283_v36 = vadd.f32 %v4282_v19, %v4281_v28  ;;  %v4650_v52 = vadd.f32 %v4649_v13, %v4648_v54  ;;  %v12677_v19 = vld [vmem:[#allocation26_spill] sm:$0xff] }
 0x295   : > { %v10307_v62 = vmul.f32 %v10118_v47, %v7121_v24  ;;  %v4304_v3 = vsel %vm4240_vm11, %v10298_v63, 0.0  ;;  %v2819_v7 = vrot.slane %v10290_v49, %v9423_v55  ;;  %v3910_v6 = vmul.f32 1.442695, %v3755_v42 }
 0x296   : > { %v5078_v35 = vpack.c.bf16 %v4956_v2, %v4955_v44  ;;  %v4284_v59 = vrot.slane %v4283_v36, 1  ;;  %v4651_v57 = vrot.slane %v4650_v52, 2  ;;  %v3679_v17 = vmax.f32 %v10300_v5, %v10302_v48 }
 0x297   : > { %v4305_v60 = vsel %vm4240_vm11, %v10307_v62, 0.0  ;;  %vm2984_vm6 = vcmp.lt.s32.totalorder %v12659_v25, %v2819_v7  ;;  %vm2985_vm7 = vcmp.lt.s32.totalorder %v12661_v53, %v2819_v7  ;;  %8171 = vpow2.f32 %v4066_v8 }
 0x298   : > { %5164 = vperm.xlu1 %7689, %v5078_v35   ;;  %v4285_v47 = vadd.f32 %v4284_v59, %v4283_v36  ;;  %v4652_v13 = vadd.f32 %v4651_v57, %v4650_v52  ;;  %v4306_v4 = vadd.f32 %v4305_v60, %v4304_v3  ;;  %v7194_v28 = vsel %vm2984_vm6, 1.0, %v12663_v32  ;;  %v12678_v52 = vld [vmem:[#allocation34_spill] sm:$0xff] }
 0x299   : > { %v8168_v42 = vpop.eup %8167  ;;  %v3370_v2 = vmax.f32 %v3368_v30, %v3369_v29  ;;  %v7195_v54 = vsel %vm2985_vm7, 1.0, %v12663_v32  ;;  %v10322_v10 = vmul.f32 %v12677_v19, %v7194_v28  ;;  %v3662_v59 = vmax.f32 %v10266_v1, %v3661_v41 }
 0x29a   : > { %v5029_v24 = vmul.f32 %v8168_v42, %v10178_v40  ;;  %v5030_v44 = vmul.f32 %v8168_v42, %v10189_v50  ;;  %v4821_v14 = vmax.f32 %v4285_v47, 1e-30  ;;  %v4653_v7 = vrot.slane %v4652_v13, 1  ;;  %v10340_v47 = vpop.xlane.xlu0 %1938 }
 0x29b   : > { %v3387_v57 = vmax.f32 %v3385_v34, %v3386_v27  ;;  %v4307_v35 = vrot.slane %v4306_v4, 4  ;;  %v10328_v36 = vmul.f32 %v12678_v52, %v7195_v54  ;;  %v4637_v29 = vsel %vm4240_vm11, %v10322_v10, 0.0 }
 0x29c   : > { %v5115_v8 = vpack.c.bf16 %v5030_v44, %v5029_v24  ;;  %8173 = vrcp.f32 %v4821_v14  ;;  %v4654_v30 = vadd.f32 %v4653_v7, %v4652_v13  ;;  %v10332_v3 = vpop.eup %8169  ;;  %v3680_v40 = vrot.slane %v3679_v17, 4  ;;  %v10342_v13 = vpop.xlane.xlu1 %1941 }
 0x29d   : > { %12679 = vst [vmem:[#allocation16_spill] sm:$0xff] %v10332_v3  ;;  %8175 = vpow2.f32 %v3908_v15  ;;  %v4308_v50 = vadd.f32 %v4307_v35, %v4306_v4  ;;  %v4638_v60 = vsel %vm4240_vm11, %v10328_v36, 0.0  ;;  %v2294_v41 = vcombine.high %v10206_v21, %v10206_v21 }
 0x29e   : > { %8177 = vpow2.f32 %v3910_v6  ;;  %5349 = vperm.xlu0 %7690, %v5115_v8   ;;  %v4862_v1 = vmax.f32 %v4654_v30, 1e-30  ;;  %v4639_v34 = vadd.f32 %v4638_v60, %v4637_v29  ;;  %v3752_v14 = vsub.f32 %v10172_v16, %v3370_v2 }
 0x29f   : > { %v3753_v27 = vsub.f32 %v10174_v33, %v3370_v2  ;;  %v4309_v15 = vrot.slane %v4308_v50, 2  ;;  %v2541_v4 = vcombine.high %v10165_v58, %v10165_v58  ;;  %v3663_v28 = vrot.slane %v3662_v59, 1 }
 0x2a0   : > { %8179 = vrcp.f32 %v4862_v1  ;;  %v4640_v6 = vrot.slane %v4639_v34, 4  ;;  %v2667_v42 = vrot.slane %v2294_v41, %v9423_v55  ;;  %v3388_v54 = vrot.slane %v3387_v57, 2 }
 0x2a1   : > { %v3681_v19 = vmax.f32 %v3679_v17, %v3680_v40  ;;  %v4310_v21 = vadd.f32 %v4309_v15, %v4308_v50  ;;  %v2831_v16 = vrot.slane %v2541_v4, %v9423_v55  ;;  %v3378_v33 = vmax.f32 %v10340_v47, %v10342_v13  ;;  %v10352_v24 = vpop.eup %8171 }
 0x2a2   : > { %v4641_v2 = vadd.f32 %v4640_v6, %v4639_v34  ;;  %vm2908_vm8 = vcmp.lt.s32.totalorder %v12659_v25, %v2667_v42  ;;  %vm2909_vm9 = vcmp.lt.s32.totalorder %v12661_v53, %v2667_v42  ;;  %12680 = vst [vmem:[#allocation49_spill] sm:$0xff] %v10352_v24  ;;  %v3904_v17 = vmul.f32 1.442695, %v3752_v14 }
 0x2a3   : > { %v4311_v58 = vrot.slane %v4310_v21, 1  ;;  %v7118_v44 = vsel %vm2908_vm8, 1.0, %v12663_v32  ;;  %v7119_v7 = vsel %vm2909_vm9, 1.0, %v12663_v32  ;;  %vm2990_vm10 = vcmp.lt.s32.totalorder %v12659_v25, %v2831_v16 }
 0x2a4   : > { %v4642_v35 = vrot.slane %v4641_v2, 2  ;;  %v10358_v52 = vmul.f32 %v10151_v56, %v7118_v44  ;;  %v10361_v8 = vmul.f32 %v10162_v51, %v7119_v7  ;;  %v3906_v30 = vmul.f32 1.442695, %v3753_v27  ;;  %v12682_v7 = vld [vmem:[#allocation36_spill] sm:$0xff] }
 0x2a5   : > { %v3664_v29 = vmax.f32 %v3662_v59, %v3663_v28  ;;  %v4312_v40 = vadd.f32 %v4311_v58, %v4310_v21  ;;  %vm2991_vm12 = vcmp.lt.s32.totalorder %v12661_v53, %v2831_v16  ;;  %v7200_v41 = vsel %vm2990_vm10, 1.0, %v12663_v32 }
 0x2a6   : > { %v8174_v50 = vpop.eup %8173  ;;  %v4643_v60 = vadd.f32 %v4642_v35, %v4641_v2  ;;  %v4295_v1 = vsel %vm4240_vm11, %v10358_v52, 0.0  ;;  %v4296_v34 = vsel %vm4240_vm11, %v10361_v8, 0.0  ;;  %v3389_v4 = vmax.f32 %v3387_v57, %v3388_v54  ;;  %v12681_v2 = vld [vmem:[#allocation27_spill] sm:$0xff] }
 0x2a7   : > { %v10369_v56 = vpop.eup %8175  ;;  %v4953_v51 = vmul.f32 %v8174_v50, %v10234_v39  ;;  %v4954_v14 = vmul.f32 %v8174_v50, %v10239_v20  ;;  %v4824_v59 = vmax.f32 %v4312_v40, 1e-30  ;;  %v4297_v27 = vadd.f32 %v4296_v34, %v4295_v1  ;;  %v10387_v1 = vld.sshfl [vmem:[%s9357_s27 + $0x30] sm:$0xff pattern:$0x75316420] }
 0x2a8   : > { %v10373_v15 = vpop.eup %8177  ;;  %v3682_v28 = vrot.slane %v3681_v19, 2  ;;  %v4644_v6 = vrot.slane %v4643_v60, 1  ;;  %v7201_v42 = vsel %vm2991_vm12, 1.0, %v12663_v32  ;;  %v10377_v58 = vmul.f32 %v12681_v2, %v7200_v41  ;;  %v10409_v2 = vld [vmem:[%s9357_s27 + $0x8] sm:$0xff] }
 0x2a9   : > { %v5077_v21 = vpack.c.bf16 %v4954_v14, %v4953_v51  ;;  %8181 = vrcp.f32 %v4824_v59  ;;  %v4298_v16 = vrot.slane %v4297_v27, 4  ;;  %v3379_v39 = vrot.slane %v3378_v33, 4 }
 0x2aa   : > { %v8180_v44 = vpop.eup %8179  ;;  %8183 = vpow2.f32 %v3904_v17  ;;  %v4645_v20 = vadd.f32 %v4644_v6, %v4643_v60  ;;  %v10380_v35 = vmul.f32 %v12682_v7, %v7201_v42  ;;  %v4664_v50 = vsel %vm4240_vm11, %v10377_v58, 0.0  ;;  %v10397_v6 = vpop.xlane.xlu1 %2193 }
 0x2ab   : > { %5159 = vperm.xlu1 %7689, %v5077_v21   ;;  %v5035_v57 = vmul.f32 %v8180_v44, %v10262_v31  ;;  %v5036_v54 = vmul.f32 %v8180_v44, %v10269_v11  ;;  %v4299_v40 = vadd.f32 %v4298_v16, %v4297_v27  ;;  %v3836_v34 = vsub.f32 %v10211_v61, %v3664_v29  ;;  %v10395_v27 = vpop.xlane.xlu0 %2190 }
 0x2ac   : > { %v3837_v17 = vsub.f32 %v10213_v46, %v3664_v29  ;;  %v4861_v41 = vmax.f32 %v4645_v20, 1e-30  ;;  %v4665_v60 = vsel %vm4240_vm11, %v10380_v35, 0.0  ;;  %v3390_v51 = vrot.slane %v3389_v4, 1 }
 0x2ad   : > { %v5118_v14 = vpack.c.bf16 %v5036_v54, %v5035_v57  ;;  %v4300_v59 = vrot.slane %v4299_v40, 2  ;;  %v4666_v31 = vadd.f32 %v4665_v60, %v4664_v50  ;;  %v10393_v11 = vmax.f32 %v3681_v19, %v3682_v28 }
 0x2ae   : > { %8185 = vrcp.f32 %v4861_v41  ;;  %v2539_v61 = vcombine.high %v10290_v49, %v10290_v49  ;;  %v10401_v46 = vmax.f32 %v3378_v33, %v3379_v39  ;;  %v4072_v21 = vmul.f32 1.442695, %v3836_v34 }
 0x2af   : > { %8187 = vpow2.f32 %v3906_v30  ;;  %5364 = vperm.xlu0 %7690, %v5118_v14   ;;  %v4301_v29 = vadd.f32 %v4300_v59, %v4299_v40  ;;  %v4667_v42 = vrot.slane %v4666_v31, 4  ;;  %v4074_v16 = vmul.f32 1.442695, %v3837_v17 }
 0x2b0   : > { %v10405_v19 = vrot.slane %v10387_v1, %v9365_v23  ;;  %v2827_v28 = vrot.slane %v2539_v61, %v9423_v55  ;;  %v10411_v44 = vmax.f32 %v3389_v4, %v3390_v51  ;;  %v10415_v49 = vmax.f32 %v10395_v27, %v10397_v6 }
 0x2b1   : > { %v4302_v33 = vrot.slane %v4301_v29, 1  ;;  %v4668_v30 = vadd.f32 %v4667_v42, %v4666_v31  ;;  %v3684_v39 = vrot.slane %v10393_v11, 1  ;;  %v3381_v57 = vrot.slane %v10401_v46, 2 }
 0x2b2   : > { %v2835_v20 = vrot.slane %v10405_v19, %v9423_v55  ;;  %vm2988_vm13 = vcmp.lt.s32.totalorder %v12659_v25, %v2827_v28  ;;  %vm2989_vm14 = vcmp.lt.s32.totalorder %v12661_v53, %v2827_v28  ;;  %v10425_v40 = vrot.slane %v10409_v2, %v9365_v23 }
 0x2b3   : > { %v8182_v7 = vpop.eup %8181  ;;  %v4303_v4 = vadd.f32 %v4302_v33, %v4301_v29  ;;  %v4669_v54 = vrot.slane %v4668_v30, 2  ;;  %v7198_v41 = vsel %vm2988_vm13, 1.0, %v12663_v32  ;;  %v7199_v60 = vsel %vm2989_vm14, 1.0, %v12663_v32  ;;  %v12683_v33 = vld [vmem:[#allocation46_spill] sm:$0xff] }
 0x2b4   : > { %v10427_v50 = vpop.eup %8183  ;;  %v4959_v34 = vmul.f32 %v8182_v7, %v10298_v63  ;;  %v4960_v17 = vmul.f32 %v8182_v7, %v10307_v62  ;;  %vm2992_vm15 = vcmp.lt.s32.totalorder %v12659_v25, %v2835_v20  ;;  %vm2993_vm0 = vcmp.lt.s32.totalorder %v12661_v53, %v2835_v20 }
 0x2b5   : > { %v4823_v51 = vmax.f32 %v4303_v4, 1e-30  ;;  %v4670_v14 = vadd.f32 %v4669_v54, %v4668_v30  ;;  %8189 = vpow2.f32 %v4072_v21  ;;  %v7202_v31 = vsel %vm2992_vm15, 1.0, %v12663_v32  ;;  %v12684_v30 = vld [vmem:[#allocation39_spill] sm:$0xff] }
 0x2b6   : > { %v5080_v59 = vpack.c.bf16 %v4960_v17, %v4959_v34  ;;  %v2557_v61 = vcombine.high %v10387_v1, %v10387_v1  ;;  %v7203_v62 = vsel %vm2993_vm0, 1.0, %v12663_v32  ;;  %v10440_v29 = vmul.f32 %v10167_v43, %v7202_v31 }
 0x2b7   : > { %8191 = vrcp.f32 %v4823_v51  ;;  %v4671_v63 = vrot.slane %v4670_v14, 1  ;;  %v10443_v28 = vmul.f32 %v10184_v18, %v7203_v62  ;;  %v10446_v21 = vmul.f32 %v12683_v33, %v7198_v41 }
 0x2b8   : > { %v8186_v42 = vpop.eup %8185  ;;  %5174 = vperm.xlu1 %7689, %v5080_v59   ;;  %v10449_v20 = vmul.f32 %v12684_v30, %v7199_v60  ;;  %v2312_v1 = vcombine.high %v10425_v40, %v10425_v40  ;;  %v3673_v4 = vrot.slane %v10415_v49, 4  ;;  %v4673_v18 = vsel %vm4240_vm11, %v10440_v29, 0.0 }
 0x2b9   : > { %v10453_v7 = vpop.eup %8187  ;;  %v5033_v43 = vmul.f32 %v8186_v42, %v10322_v10  ;;  %v5034_v54 = vmul.f32 %v8186_v42, %v10328_v36  ;;  %v4672_v34 = vadd.f32 %v4671_v63, %v4670_v14  ;;  %v4674_v17 = vsel %vm4240_vm11, %v10443_v28, 0.0  ;;  %v10474_v63 = vpop.xlane.xlu0 %1956 }
 0x2ba   : > { %v4655_v41 = vsel %vm4240_vm11, %v10446_v21, 0.0  ;;  %v4656_v60 = vsel %vm4240_vm11, %v10449_v20, 0.0  ;;  %v4675_v31 = vadd.f32 %v4674_v17, %v4673_v18  ;;  %8193 = vpow2.f32 %v4074_v16  ;;  %v10476_v42 = vpop.xlane.xlu1 %1959 }
 0x2bb   : > { %v5117_v51 = vpack.c.bf16 %v5034_v54, %v5033_v43  ;;  %v4864_v59 = vmax.f32 %v4672_v34, 1e-30  ;;  %v4657_v62 = vadd.f32 %v4656_v60, %v4655_v41  ;;  %v10467_v10 = vrot.slane %v2312_v1, %v9365_v23 }
 0x2bc   : > { %v10470_v36 = vrot.slane %v2557_v61, %v9365_v23  ;;  %v3758_v14 = vsub.f32 %v10253_v9, %v10411_v44  ;;  %v4676_v33 = vrot.slane %v4675_v31, 4  ;;  %v3759_v16 = vsub.f32 %v10255_v22, %v10411_v44 }
 0x2bd   : > { %5359 = vperm.xlu0 %7690, %v5117_v51   ;;  %8195 = vrcp.f32 %v4864_v59  ;;  %v4658_v30 = vrot.slane %v4657_v62, 4  ;;  %v10481_v1 = vmax.f32 %v10393_v11, %v3684_v39  ;;  %v2679_v61 = vrot.slane %v10467_v10, %v9423_v55 }
 0x2be   : > { %v2839_v9 = vrot.slane %v10470_v36, %v9423_v55  ;;  %v10488_v43 = vmax.f32 %v10401_v46, %v3381_v57  ;;  %v10491_v54 = vmax.f32 %v10415_v49, %v3673_v4  ;;  %v4677_v34 = vadd.f32 %v4676_v33, %v4675_v31 }
 0x2bf   : > { %v4659_v18 = vadd.f32 %v4658_v30, %v4657_v62  ;;  %v10493_v17 = vpop.eup %8189  ;;  %v10497_v22 = vmax.f32 %v10474_v63, %v10476_v42  ;;  %vm2914_vm1 = vcmp.lt.s32.totalorder %v12659_v25, %v2679_v61  ;;  %vm2915_vm2 = vcmp.lt.s32.totalorder %v12661_v53, %v2679_v61 }
 0x2c0   : > { %12685 = vst [vmem:[#allocation19_spill] sm:$0xff] %v10493_v17  ;;  %vm2994_vm3 = vcmp.lt.s32.totalorder %v12659_v25, %v2839_v9  ;;  %v4678_v46 = vrot.slane %v4677_v34, 2  ;;  %v7124_v49 = vsel %vm2914_vm1, 1.0, %v12663_v32  ;;  %v7125_v39 = vsel %vm2915_vm2, 1.0, %v12663_v32 }
 0x2c1   : > { %v8192_v11 = vpop.eup %8191  ;;  %v4660_v44 = vrot.slane %v4659_v18, 2  ;;  %v3916_v57 = vmul.f32 1.442695, %v3758_v14  ;;  %v10507_v60 = vmul.f32 %v10198_v0, %v7124_v49  ;;  %v10510_v31 = vmul.f32 %v10201_v37, %v7125_v39 }
 0x2c2   : > { %v4957_v4 = vmul.f32 %v8192_v11, %v10358_v52  ;;  %v4958_v41 = vmul.f32 %v8192_v11, %v10361_v8  ;;  %v4679_v51 = vadd.f32 %v4678_v46, %v4677_v34  ;;  %vm2995_vm4 = vcmp.lt.s32.totalorder %v12661_v53, %v2839_v9 }
 0x2c3   : > { %v4661_v59 = vadd.f32 %v4660_v44, %v4659_v18  ;;  %v4322_v33 = vsel %vm4240_vm11, %v10507_v60, 0.0  ;;  %v7204_v52 = vsel %vm2994_vm3, 1.0, %v12663_v32  ;;  %v2297_v8 = vcombine.high %v10409_v2, %v10409_v2 }
 0x2c4   : > { %v5079_v62 = vpack.c.bf16 %v4958_v41, %v4957_v4  ;;  %v4680_v0 = vrot.slane %v4679_v51, 1  ;;  %v4323_v30 = vsel %vm4240_vm11, %v10510_v31, 0.0  ;;  %v7205_v37 = vsel %vm2995_vm4, 1.0, %v12663_v32  ;;  %v10523_v61 = vpop.eup %8193 }
 0x2c5   : > { %v4662_v14 = vrot.slane %v4661_v59, 1  ;;  %12686 = vst [vmem:[#allocation20_spill] sm:$0xff] %v10523_v61  ;;  %v3918_v34 = vmul.f32 1.442695, %v3759_v16  ;;  %v3842_v18 = vsub.f32 %v10300_v5, %v10481_v1  ;;  %v4324_v11 = vadd.f32 %v4323_v30, %v4322_v33 }
 0x2c6   : > { %5169 = vperm.xlu1 %7689, %v5079_v62   ;;  %v10528_v9 = vmul.f32 %v10130_v12, %v7204_v52  ;;  %v4681_v2 = vadd.f32 %v4680_v0, %v4679_v51  ;;  %v10531_v49 = vmul.f32 %v10135_v38, %v7205_v37  ;;  %v2589_v39 = vcombine.high %v10470_v36, %v10470_v36  ;;  %v10552_v0 = vpop.xlane.xlu0 %2208 }
 0x2c7   : > { %v8196_v46 = vpop.eup %8195  ;;  %v4663_v44 = vadd.f32 %v4662_v14, %v4661_v59  ;;  %v3843_v16 = vsub.f32 %v10302_v48, %v10481_v1  ;;  %v10540_v41 = vrot.slane %v2297_v8, %v9365_v23  ;;  %v4325_v51 = vrot.slane %v4324_v11, 4  ;;  %v10554_v14 = vpop.xlane.xlu1 %2211 }
 0x2c8   : > { %v5039_v4 = vmul.f32 %v8196_v46, %v10377_v58  ;;  %v5040_v5 = vmul.f32 %v8196_v46, %v10380_v35  ;;  %v4865_v12 = vmax.f32 %v4681_v2, 1e-30  ;;  %v4682_v38 = vsel %vm4240_vm11, %v10528_v9, 0.0 }
 0x2c9   : > { %v4863_v62 = vmax.f32 %v4663_v44, 1e-30  ;;  %8197 = vpow2.f32 %v3916_v57  ;;  %v3383_v59 = vrot.slane %v10488_v43, 1  ;;  %v4683_v48 = vsel %vm4240_vm11, %v10531_v49, 0.0 }
 0x2ca   : > { %v5120_v36 = vpack.c.bf16 %v5040_v5, %v5039_v4  ;;  %8199 = vrcp.f32 %v4865_v12  ;;  %v4326_v58 = vadd.f32 %v4325_v51, %v4324_v11  ;;  %v4684_v1 = vadd.f32 %v4683_v48, %v4682_v38 }
 0x2cb   : > { %v2847_v35 = vrot.slane %v2589_v39, %v9423_v55  ;;  %v3675_v33 = vrot.slane %v10491_v54, 2  ;;  %v3400_v52 = vrot.slane %v10497_v22, 4  ;;  %8201 = vrcp.f32 %v4863_v62 }
 0x2cc   : > { %5374 = vperm.xlu0 %7690, %v5120_v36   ;;  %v2313_v57 = vcombine.high %v10540_v41, %v10540_v41  ;;  %v4084_v8 = vmul.f32 1.442695, %v3842_v18  ;;  %v4327_v30 = vrot.slane %v4326_v58, 2  ;;  %v4685_v37 = vrot.slane %v4684_v1, 4 }
 0x2cd   : > { %vm2998_vm5 = vcmp.lt.s32.totalorder %v12659_v25, %v2847_v35  ;;  %v4086_v11 = vmul.f32 1.442695, %v3843_v16  ;;  %vm2999_vm6 = vcmp.lt.s32.totalorder %v12661_v53, %v2847_v35  ;;  %8203 = vpow2.f32 %v3918_v34 }
 0x2ce   : > { %v7208_v46 = vsel %vm2998_vm5, 1.0, %v12663_v32  ;;  %v10560_v2 = vrot.slane %v2313_v57, %v9365_v23  ;;  %v4328_v44 = vadd.f32 %v4327_v30, %v4326_v58  ;;  %v4686_v39 = vadd.f32 %v4685_v37, %v4684_v1 }
 0x2cf   : > { %v7209_v18 = vsel %vm2999_vm6, 1.0, %v12663_v32  ;;  %v10564_v4 = vmul.f32 %v10208_v45, %v7208_v46  ;;  %v3693_v5 = vmax.f32 %v10552_v0, %v10554_v14  ;;  %v10574_v62 = vmax.f32 %v10488_v43, %v3383_v59 }
 0x2d0   : > { %v10569_v16 = vmul.f32 %v10217_v26, %v7209_v18  ;;  %v2695_v12 = vrot.slane %v10560_v2, %v9423_v55  ;;  %v4329_v51 = vrot.slane %v4328_v44, 1  ;;  %v4687_v38 = vrot.slane %v4686_v39, 2 }
 0x2d1   : > { %v4700_v36 = vsel %vm4240_vm11, %v10564_v4, 0.0  ;;  %v10579_v45 = vmax.f32 %v10491_v54, %v3675_v33  ;;  %v10582_v34 = vmax.f32 %v10497_v22, %v3400_v52  ;;  %8205 = vpow2.f32 %v4084_v8 }
 0x2d2   : > { %v4701_v26 = vsel %vm4240_vm11, %v10569_v16, 0.0  ;;  %vm2922_vm7 = vcmp.lt.s32.totalorder %v12659_v25, %v2695_v12  ;;  %v4330_v48 = vadd.f32 %v4329_v51, %v4328_v44  ;;  %v4688_v58 = vadd.f32 %v4687_v38, %v4686_v39 }
 0x2d3   : > { %v4702_v43 = vadd.f32 %v4701_v26, %v4700_v36  ;;  %vm2923_vm8 = vcmp.lt.s32.totalorder %v12661_v53, %v2695_v12  ;;  %v10588_v59 = vpop.eup %8197  ;;  %v3694_v1 = vrot.slane %v3693_v5, 4  ;;  %v7132_v54 = vsel %vm2922_vm7, 1.0, %v12663_v32 }
 0x2d4   : > { %v7133_v35 = vsel %vm2923_vm8, 1.0, %v12663_v32  ;;  %v8200_v22 = vpop.eup %8199  ;;  %v4826_v33 = vmax.f32 %v4330_v48, 1e-30  ;;  %v4689_v52 = vrot.slane %v4688_v58, 1  ;;  %v10593_v30 = vmul.f32 %v10369_v56, %v7132_v54  ;;  %v10624_v54 = vpop.xlane.xlu0 %1950 }
 0x2d5   : > { %v4703_v57 = vrot.slane %v4702_v43, 4  ;;  %v8202_v37 = vpop.eup %8201  ;;  %v5041_v46 = vmul.f32 %v8200_v22, %v10440_v29  ;;  %v5042_v44 = vmul.f32 %v8200_v22, %v10443_v28  ;;  %v10598_v39 = vmul.f32 %v10373_v15, %v7133_v35  ;;  %v10626_v35 = vpop.xlane.xlu1 %1953 }
 0x2d6   : > { %v10602_v8 = vrot.slane %v10425_v40, %v9365_v23  ;;  %v5037_v18 = vmul.f32 %v8202_v37, %v10446_v21  ;;  %v5038_v12 = vmul.f32 %v8202_v37, %v10449_v20  ;;  %8207 = vrcp.f32 %v4826_v33 }
 0x2d7   : > { %v4690_v51 = vadd.f32 %v4689_v52, %v4688_v58  ;;  %8209 = vpow2.f32 %v4086_v11  ;;  %v5121_v56 = vpack.c.bf16 %v5042_v44, %v5041_v46  ;;  %v4704_v38 = vadd.f32 %v4703_v57, %v4702_v43  ;;  %v10612_v26 = vpop.eup %8203  ;;  %v12687_v44 = vld [vmem:[#allocation30_spill] sm:$0xff] }
 0x2d8   : > { %v4358_v29 = vsel %vm4240_vm11, %v10593_v30, 0.0  ;;  %v3756_v15 = vsub.f32 %v10340_v47, %v10574_v62  ;;  %v5119_v28 = vpack.c.bf16 %v5038_v12, %v5037_v18  ;;  %v4359_v40 = vsel %vm4240_vm11, %v10598_v39, 0.0  ;;  %v12688_v12 = vld [vmem:[#allocation45_spill] sm:$0xff] }
 0x2d9   : > { %v4866_v36 = vmax.f32 %v4690_v51, 1e-30  ;;  %5379 = vperm.xlu1 %7689, %v5121_v56   ;;  %v4705_v21 = vrot.slane %v4704_v38, 2  ;;  %v4360_v20 = vadd.f32 %v4359_v40, %v4358_v29  ;;  %v2675_v11 = vrot.slane %v10602_v8, %v9423_v55 }
 0x2da   : > { %v10618_v48 = vrot.slane %v10540_v41, %v9365_v23  ;;  %v3757_v47 = vsub.f32 %v10342_v13, %v10574_v62  ;;  %v3677_v58 = vrot.slane %v10579_v45, 1  ;;  %v3402_v43 = vrot.slane %v10582_v34, 2  ;;  %5369 = vperm.xlu0 %7690, %v5119_v28  }
 0x2db   : > { %8211 = vrcp.f32 %v4866_v36  ;;  %v4706_v22 = vadd.f32 %v4705_v21, %v4704_v38  ;;  %v4361_v33 = vrot.slane %v4360_v20, 4  ;;  %vm2912_vm9 = vcmp.lt.s32.totalorder %v12659_v25, %v2675_v11  ;;  %v10636_v57 = vpop.eup %8205 }
 0x2dc   : > { %vm2913_vm10 = vcmp.lt.s32.totalorder %v12661_v53, %v2675_v11  ;;  %v10630_v41 = vmax.f32 %v3693_v5, %v3694_v1  ;;  %v7122_v13 = vsel %vm2912_vm9, 1.0, %v12663_v32  ;;  %v2691_v52 = vrot.slane %v10618_v48, %v9423_v55 }
 0x2dd   : > { %v7123_v62 = vsel %vm2913_vm10, 1.0, %v12663_v32  ;;  %v4707_v37 = vrot.slane %v4706_v22, 1  ;;  %v4362_v46 = vadd.f32 %v4361_v33, %v4360_v20  ;;  %v10639_v18 = vmul.f32 %v12687_v44, %v7122_v13 }
 0x2de   : > { %v10642_v51 = vmul.f32 %v12688_v12, %v7123_v62  ;;  %v3912_v56 = vmul.f32 1.442695, %v3756_v15  ;;  %v3392_v5 = vmax.f32 %v10624_v54, %v10626_v35  ;;  %vm2920_vm12 = vcmp.lt.s32.totalorder %v12659_v25, %v2691_v52 }
 0x2df   : > { %vm2921_vm13 = vcmp.lt.s32.totalorder %v12661_v53, %v2691_v52  ;;  %v4708_v1 = vadd.f32 %v4707_v37, %v4706_v22  ;;  %v4363_v38 = vrot.slane %v4362_v46, 2  ;;  %v4313_v29 = vsel %vm4240_vm11, %v10639_v18, 0.0 }
 0x2e0   : > { %v4314_v28 = vsel %vm4240_vm11, %v10642_v51, 0.0  ;;  %v8208_v36 = vpop.eup %8207  ;;  %v3914_v40 = vmul.f32 1.442695, %v3757_v47  ;;  %v7130_v15 = vsel %vm2920_vm12, 1.0, %v12663_v32  ;;  %v7131_v20 = vsel %vm2921_vm13, 1.0, %v12663_v32 }
 0x2e1   : > { %v4315_v21 = vadd.f32 %v4314_v28, %v4313_v29  ;;  %v10654_v11 = vpop.eup %8209  ;;  %v4963_v33 = vmul.f32 %v8208_v36, %v10507_v60  ;;  %v4964_v22 = vmul.f32 %v8208_v36, %v10510_v31  ;;  %v4868_v13 = vmax.f32 %v4708_v1, 1e-30 }
 0x2e2   : > { %v4364_v62 = vadd.f32 %v4363_v38, %v4362_v46  ;;  %v3678_v52 = vmax.f32 %v10579_v45, %v3677_v58  ;;  %v10660_v44 = vmul.f32 %v10427_v50, %v7130_v15  ;;  %v2587_v47 = vcombine.high %v10405_v19, %v10405_v19 }
 0x2e3   : > { %v4316_v37 = vrot.slane %v4315_v21, 4  ;;  %v5082_v12 = vpack.c.bf16 %v4964_v22, %v4963_v33  ;;  %8213 = vrcp.f32 %v4868_v13  ;;  %v10665_v28 = vmul.f32 %v10453_v7, %v7131_v20 }
 0x2e4   : > { %v4365_v29 = vrot.slane %v4364_v62, 1  ;;  %v3403_v31 = vmax.f32 %v10582_v34, %v3402_v43  ;;  %v3696_v46 = vrot.slane %v10630_v41, 2  ;;  %v4349_v45 = vsel %vm4240_vm11, %v10660_v44, 0.0 }
 0x2e5   : > { %v8212_v60 = vpop.eup %8211  ;;  %v4317_v1 = vadd.f32 %v4316_v37, %v4315_v21  ;;  %5184 = vperm.xlu1 %7689, %v5082_v12   ;;  %v4350_v38 = vsel %vm4240_vm11, %v10665_v28, 0.0  ;;  %8215 = vpow2.f32 %v3912_v56  ;;  %v3393_v7 = vrot.slane %v3392_v5, 4 }
 0x2e6   : > { %v5043_v50 = vmul.f32 %v8212_v60, %v10528_v9  ;;  %v5044_v19 = vmul.f32 %v8212_v60, %v10531_v49  ;;  %v4366_v58 = vadd.f32 %v4365_v29, %v4364_v62  ;;  %v4351_v15 = vadd.f32 %v4350_v38, %v4349_v45  ;;  %v12690_v60 = vld [vmem:[#allocation44_spill] sm:$0xff] }
 0x2e7   : > { %v4318_v36 = vrot.slane %v4317_v1, 2  ;;  %v3840_v34 = vsub.f32 %v10395_v27, %v3678_v52  ;;  %v2843_v20 = vrot.slane %v2587_v47, %v9423_v55  ;;  %8217 = vpow2.f32 %v3914_v40  ;;  %v12689_v47 = vld [vmem:[#allocation48_spill] sm:$0xff] }
 0x2e8   : > { %v5122_v43 = vpack.c.bf16 %v5044_v19, %v5043_v50  ;;  %v4830_v21 = vmax.f32 %v4366_v58, 1e-30  ;;  %v4352_v22 = vrot.slane %v4351_v15, 4  ;;  %v2345_v9 = vcombine.high %v10560_v2, %v10560_v2  ;;  %v10702_v19 = vpop.xlane.xlu1 %2205 }
 0x2e9   : > { %v4319_v33 = vadd.f32 %v4318_v36, %v4317_v1  ;;  %v3841_v49 = vsub.f32 %v10397_v6, %v3678_v52  ;;  %vm2996_vm14 = vcmp.lt.s32.totalorder %v12659_v25, %v2843_v20  ;;  %vm2997_vm15 = vcmp.lt.s32.totalorder %v12661_v53, %v2843_v20 }
 0x2ea   : > { %5384 = vperm.xlu0 %7690, %v5122_v43   ;;  %8219 = vrcp.f32 %v4830_v21  ;;  %v3404_v56 = vrot.slane %v3403_v31, 1  ;;  %v4353_v13 = vadd.f32 %v4352_v22, %v4351_v15  ;;  %v7206_v62 = vsel %vm2996_vm14, 1.0, %v12663_v32 }
 0x2eb   : > { %v4320_v27 = vrot.slane %v4319_v33, 1  ;;  %v10684_v40 = vmax.f32 %v10630_v41, %v3696_v46  ;;  %v7207_v37 = vsel %vm2997_vm15, 1.0, %v12663_v32  ;;  %v10688_v2 = vmul.f32 %v12689_v47, %v7206_v62  ;;  %v10700_v46 = vpop.xlane.xlu0 %2202 }
 0x2ec   : > { %v2703_v6 = vrot.slane %v2345_v9, %v9423_v55  ;;  %v10691_v52 = vmax.f32 %v3392_v5, %v3393_v7  ;;  %v4354_v29 = vrot.slane %v4353_v13, 2  ;;  %v10694_v1 = vmul.f32 %v12690_v60, %v7207_v37 }
 0x2ed   : > { %v4321_v12 = vadd.f32 %v4320_v27, %v4319_v33  ;;  %v8214_v45 = vpop.eup %8213  ;;  %v4080_v50 = vmul.f32 1.442695, %v3840_v34  ;;  %v4691_v41 = vsel %vm4240_vm11, %v10688_v2, 0.0  ;;  %v4082_v36 = vmul.f32 1.442695, %v3841_v49 }
 0x2ee   : > { %vm2926_vm0 = vcmp.lt.s32.totalorder %v12659_v25, %v2703_v6  ;;  %vm2927_vm1 = vcmp.lt.s32.totalorder %v12661_v53, %v2703_v6  ;;  %v5047_v5 = vmul.f32 %v8214_v45, %v10564_v4  ;;  %v5048_v58 = vmul.f32 %v8214_v45, %v10569_v16  ;;  %v10731_v6 = vld.sshfl [vmem:[%s9357_s27 + $0x38] sm:$0xff pattern:$0x75316420] }
 0x2ef   : > { %v4825_v38 = vmax.f32 %v4321_v12, 1e-30  ;;  %v4355_v7 = vadd.f32 %v4354_v29, %v4353_v13  ;;  %v4692_v15 = vsel %vm4240_vm11, %v10694_v1, 0.0  ;;  %v7136_v34 = vsel %vm2926_vm0, 1.0, %v12663_v32  ;;  %v10710_v21 = vpop.eup %8215 }
 0x2f0   : > { %v7137_v43 = vsel %vm2927_vm1, 1.0, %v12663_v32  ;;  %v5124_v20 = vpack.c.bf16 %v5048_v58, %v5047_v5  ;;  %v4693_v22 = vadd.f32 %v4692_v15, %v4691_v41  ;;  %v3405_v4 = vmax.f32 %v3403_v31, %v3404_v56 }
 0x2f1   : > { %8221 = vrcp.f32 %v4825_v38  ;;  %v4356_v33 = vrot.slane %v4355_v7, 1  ;;  %v3686_v16 = vmax.f32 %v10700_v46, %v10702_v19  ;;  %v10715_v9 = vmul.f32 %v10588_v59, %v7136_v34  ;;  %v10720_v27 = vpop.eup %8217 }
 0x2f2   : > { %v10718_v49 = vmul.f32 %v10612_v26, %v7137_v43  ;;  %v3698_v13 = vrot.slane %v10684_v40, 1  ;;  %5394 = vperm.xlu1 %7689, %v5124_v20   ;;  %v4694_v37 = vrot.slane %v4693_v22, 4  ;;  %v2344_v47 = vcombine.high %v10467_v10, %v10467_v10  ;;  %v10744_v43 = vpop.xlane.xlu0 %1968  ;;  %v10746_v20 = vpop.xlane.xlu1 %1971 }
 0x2f3   : > { %v4357_v62 = vadd.f32 %v4356_v33, %v4355_v7  ;;  %8223 = vpow2.f32 %v4080_v50  ;;  %v3395_v56 = vrot.slane %v10691_v52, 2  ;;  %v4376_v59 = vsel %vm4240_vm11, %v10715_v9, 0.0  ;;  %v12691_v33 = vld [vmem:[#allocation40_spill] sm:$0xff] }
 0x2f4   : > { %v8220_v31 = vpop.eup %8219  ;;  %v4377_v26 = vsel %vm4240_vm11, %v10718_v49, 0.0  ;;  %v4695_v45 = vadd.f32 %v4694_v37, %v4693_v22  ;;  %8225 = vpow2.f32 %v4082_v36  ;;  %v3687_v10 = vrot.slane %v3686_v16, 4 }
 0x2f5   : > { %v4971_v12 = vmul.f32 %v8220_v31, %v10593_v30  ;;  %v4972_v29 = vmul.f32 %v8220_v31, %v10598_v39  ;;  %v4829_v60 = vmax.f32 %v4357_v62, 1e-30  ;;  %v4378_v41 = vadd.f32 %v4377_v26, %v4376_v59 }
 0x2f6   : > { %v2687_v50 = vrot.slane %v2344_v47, %v9423_v55  ;;  %v4696_v58 = vrot.slane %v4695_v45, 2  ;;  %v3762_v38 = vsub.f32 %v10474_v63, %v3405_v4  ;;  %v3763_v7 = vsub.f32 %v10476_v42, %v3405_v4  ;;  %v12692_v47 = vld [vmem:[#allocation31_spill] sm:$0xff] }
 0x2f7   : > { %v5086_v5 = vpack.c.bf16 %v4972_v29, %v4971_v12  ;;  %8227 = vrcp.f32 %v4829_v60  ;;  %v4379_v15 = vrot.slane %v4378_v41, 4  ;;  %v2606_v36 = vcombine.high %v10731_v6, %v10731_v6 }
 0x2f8   : > { %vm2918_vm2 = vcmp.lt.s32.totalorder %v12659_v25, %v2687_v50  ;;  %v4697_v30 = vadd.f32 %v4696_v58, %v4695_v45  ;;  %vm2919_vm3 = vcmp.lt.s32.totalorder %v12661_v53, %v2687_v50  ;;  %v3699_v34 = vmax.f32 %v10684_v40, %v3698_v13 }
 0x2f9   : > { %5204 = vperm.xlu0 %7690, %v5086_v5   ;;  %v7128_v39 = vsel %vm2918_vm2, 1.0, %v12663_v32  ;;  %v4380_v63 = vadd.f32 %v4379_v15, %v4378_v41  ;;  %v7129_v42 = vsel %vm2919_vm3, 1.0, %v12663_v32  ;;  %v3396_v62 = vmax.f32 %v10691_v52, %v3395_v56 }
 0x2fa   : > { %v10750_v22 = vmul.f32 %v12691_v33, %v7128_v39  ;;  %v4698_v37 = vrot.slane %v4697_v30, 1  ;;  %v10754_v31 = vmul.f32 %v12692_v47, %v7129_v42  ;;  %v10757_v59 = vrot.slane %v2606_v36, %v9365_v23 }
 0x2fb   : > { %v8222_v4 = vpop.eup %8221  ;;  %v3688_v40 = vmax.f32 %v3686_v16, %v3687_v10  ;;  %v4381_v12 = vrot.slane %v4380_v63, 2  ;;  %v3413_v29 = vmax.f32 %v10744_v43, %v10746_v20  ;;  %v3924_v41 = vmul.f32 1.442695, %v3762_v38 }
 0x2fc   : > { %v4961_v13 = vmul.f32 %v8222_v4, %v10639_v18  ;;  %v4962_v26 = vmul.f32 %v8222_v4, %v10642_v51  ;;  %v4699_v60 = vadd.f32 %v4698_v37, %v4697_v30  ;;  %v4340_v52 = vsel %vm4240_vm11, %v10750_v22, 0.0 }
 0x2fd   : > { %v4341_v56 = vsel %vm4240_vm11, %v10754_v31, 0.0  ;;  %v10767_v45 = vpop.eup %8223  ;;  %v4382_v16 = vadd.f32 %v4381_v12, %v4380_v63  ;;  %v3926_v18 = vmul.f32 1.442695, %v3763_v7  ;;  %v3846_v51 = vsub.f32 %v10552_v0, %v3699_v34 }
 0x2fe   : > { %v5081_v50 = vpack.c.bf16 %v4962_v26, %v4961_v13  ;;  %v4342_v10 = vadd.f32 %v4341_v56, %v4340_v52  ;;  %v4867_v5 = vmax.f32 %v4699_v60, 1e-30  ;;  %v2871_v58 = vrot.slane %v10757_v59, %v9423_v55  ;;  %v10772_v15 = vpop.eup %8225 }
 0x2ff   : > { %v3847_v30 = vsub.f32 %v10554_v14, %v3699_v34  ;;  %v3397_v39 = vrot.slane %v3396_v62, 1  ;;  %v4383_v36 = vrot.slane %v4382_v16, 1  ;;  %v2342_v0 = vcombine.high %v10602_v8, %v10602_v8 }
 0x300   : > { %5179 = vperm.xlu1 %7689, %v5081_v50   ;;  %v4343_v42 = vrot.slane %v4342_v10, 4  ;;  %8229 = vrcp.f32 %v4867_v5  ;;  %vm3010_vm4 = vcmp.lt.s32.totalorder %v12659_v25, %v2871_v58  ;;  %vm3011_vm5 = vcmp.lt.s32.totalorder %v12661_v53, %v2871_v58 }
 0x301   : > { %v8228_v33 = vpop.eup %8227  ;;  %v3689_v38 = vrot.slane %v3688_v40, 2  ;;  %v4384_v4 = vadd.f32 %v4383_v36, %v4382_v16  ;;  %v3414_v14 = vrot.slane %v3413_v29, 4  ;;  %v7220_v37 = vsel %vm3010_vm4, 1.0, %v12663_v32 }
 0x302   : > { %v4969_v7 = vmul.f32 %v8228_v33, %v10660_v44  ;;  %v4970_v63 = vmul.f32 %v8228_v33, %v10665_v28  ;;  %v4344_v34 = vadd.f32 %v4343_v42, %v4342_v10  ;;  %v7221_v47 = vsel %vm3011_vm5, 1.0, %v12663_v32 }
 0x303   : > { %v4832_v26 = vmax.f32 %v4384_v4, 1e-30  ;;  %v10784_v12 = vmul.f32 %v10636_v57, %v7220_v37  ;;  %v10787_v60 = vmul.f32 %v10654_v11, %v7221_v47  ;;  %8231 = vpow2.f32 %v3924_v41 }
 0x304   : > { %v5085_v13 = vpack.c.bf16 %v4970_v63, %v4969_v7  ;;  %v4345_v8 = vrot.slane %v4344_v34, 2  ;;  %v2683_v44 = vrot.slane %v2342_v0, %v9423_v55  ;;  %v2343_v28 = vcombine.high %v10618_v48, %v10618_v48  ;;  %v12694_v0 = vld [vmem:[#allocation15_spill] sm:$0xff] }
 0x305   : > { %v4092_v52 = vmul.f32 1.442695, %v3846_v51  ;;  %8233 = vrcp.f32 %v4832_v26  ;;  %v4754_v56 = vsel %vm4240_vm11, %v10784_v12, 0.0  ;;  %v4755_v57 = vsel %vm4240_vm11, %v10787_v60, 0.0 }
 0x306   : > { %5199 = vperm.xlu0 %7690, %v5085_v13   ;;  %v4094_v50 = vmul.f32 1.442695, %v3847_v30  ;;  %v4346_v16 = vadd.f32 %v4345_v8, %v4344_v34  ;;  %v4756_v11 = vadd.f32 %v4755_v57, %v4754_v56  ;;  %vm2916_vm6 = vcmp.lt.s32.totalorder %v12659_v25, %v2683_v44  ;;  %v12693_v30 = vld [vmem:[#allocation43_spill] sm:$0xff]  ;;  %v10830_v56 = vpop.xlane.xlu0 %2220  ;;  %v10832_v57 = vpop.xlane.xlu1 %2223 }
 0x307   : > { %8235 = vpow2.f32 %v3926_v18  ;;  %vm2917_vm7 = vcmp.lt.s32.totalorder %v12661_v53, %v2683_v44  ;;  %v7126_v41 = vsel %vm2916_vm6, 1.0, %v12663_v32  ;;  %v2699_v48 = vrot.slane %v2343_v28, %v9423_v55 }
 0x308   : > { %v10800_v10 = vmax.f32 %v3396_v62, %v3397_v39  ;;  %v4347_v51 = vrot.slane %v4346_v16, 1  ;;  %v4757_v5 = vrot.slane %v4756_v11, 4  ;;  %v7127_v58 = vsel %vm2917_vm7, 1.0, %v12663_v32 }
 0x309   : > { %v3690_v36 = vmax.f32 %v3688_v40, %v3689_v38  ;;  %v10803_v42 = vmax.f32 %v3413_v29, %v3414_v14  ;;  %v10806_v33 = vmul.f32 %v12693_v30, %v7126_v41  ;;  %v10809_v18 = vmul.f32 %v12694_v0, %v7127_v58 }
 0x30a   : > { %v8230_v7 = vpop.eup %8229  ;;  %v4348_v63 = vadd.f32 %v4347_v51, %v4346_v16  ;;  %v4758_v4 = vadd.f32 %v4757_v5, %v4756_v11  ;;  %vm2924_vm8 = vcmp.lt.s32.totalorder %v12659_v25, %v2699_v48  ;;  %vm2925_vm9 = vcmp.lt.s32.totalorder %v12661_v53, %v2699_v48  ;;  %v10844_v48 = vld [vmem:[%s9357_s27 + $0x10] sm:$0xff] }
 0x30b   : > { %v5045_v62 = vmul.f32 %v8230_v7, %v10688_v2  ;;  %v5046_v39 = vmul.f32 %v8230_v7, %v10694_v1  ;;  %v4331_v40 = vsel %vm4240_vm11, %v10806_v33, 0.0  ;;  %v4332_v29 = vsel %vm4240_vm11, %v10809_v18, 0.0 }
 0x30c   : > { %8237 = vpow2.f32 %v4092_v52  ;;  %v4828_v38 = vmax.f32 %v4348_v63, 1e-30  ;;  %v4759_v14 = vrot.slane %v4758_v4, 2  ;;  %v4333_v34 = vadd.f32 %v4332_v29, %v4331_v40  ;;  %v10865_v40 = vpop.xlane.xlu0 %1962  ;;  %v10867_v29 = vpop.xlane.xlu1 %1965 }
 0x30d   : > { %8239 = vpow2.f32 %v4094_v50  ;;  %v5123_v37 = vpack.c.bf16 %v5046_v39, %v5045_v62  ;;  %v7134_v47 = vsel %vm2924_vm8, 1.0, %v12663_v32  ;;  %v7135_v13 = vsel %vm2925_vm9, 1.0, %v12663_v32  ;;  %v10821_v26 = vpop.eup %8231 }
 0x30e   : > { %8241 = vrcp.f32 %v4828_v38  ;;  %v4760_v2 = vadd.f32 %v4759_v14, %v4758_v4  ;;  %v4334_v1 = vrot.slane %v4333_v34, 4  ;;  %v10824_v8 = vmul.f32 %v10710_v21, %v7134_v47 }
 0x30f   : > { %v8234_v44 = vpop.eup %8233  ;;  %v3760_v28 = vsub.f32 %v10624_v54, %v10800_v10  ;;  %v3761_v52 = vsub.f32 %v10626_v35, %v10800_v10  ;;  %5389 = vperm.xlu1 %7689, %v5123_v37   ;;  %v10835_v50 = vmul.f32 %v10720_v27, %v7135_v13  ;;  %v10839_v16 = vrot.slane %v10731_v6, %v9365_v23 }
 0x310   : > { %v3691_v21 = vrot.slane %v3690_v36, 1  ;;  %v4975_v11 = vmul.f32 %v8234_v44, %v10715_v9  ;;  %v4976_v54 = vmul.f32 %v8234_v44, %v10718_v49  ;;  %v4761_v41 = vrot.slane %v4760_v2, 1 }
 0x311   : > { %v10846_v35 = vpop.eup %8235  ;;  %v3416_v10 = vrot.slane %v10803_v42, 2  ;;  %v4335_v51 = vadd.f32 %v4334_v1, %v4333_v34  ;;  %v4367_v27 = vsel %vm4240_vm11, %v10824_v8, 0.0  ;;  %v4368_v6 = vsel %vm4240_vm11, %v10835_v50, 0.0 }
 0x312   : > { %v5088_v5 = vpack.c.bf16 %v4976_v54, %v4975_v11  ;;  %v4762_v58 = vadd.f32 %v4761_v41, %v4760_v2  ;;  %v4369_v30 = vadd.f32 %v4368_v6, %v4367_v27  ;;  %v2867_v9 = vrot.slane %v10839_v16, %v9423_v55 }
 0x313   : > { %v3920_v49 = vmul.f32 1.442695, %v3760_v28  ;;  %v3707_v0 = vmax.f32 %v10830_v56, %v10832_v57  ;;  %v4336_v7 = vrot.slane %v4335_v51, 2  ;;  %v10859_v63 = vrot.slane %v10844_v48, %v9365_v23 }
 0x314   : > { %5214 = vperm.xlu0 %7690, %v5088_v5   ;;  %v4874_v4 = vmax.f32 %v4762_v58, 1e-30  ;;  %v4370_v62 = vrot.slane %v4369_v30, 4  ;;  %vm3008_vm10 = vcmp.lt.s32.totalorder %v12659_v25, %v2867_v9  ;;  %vm3009_vm12 = vcmp.lt.s32.totalorder %v12661_v53, %v2867_v9 }
 0x315   : > { %v10863_v39 = vmax.f32 %v3690_v36, %v3691_v21  ;;  %v4337_v38 = vadd.f32 %v4336_v7, %v4335_v51  ;;  %v7218_v14 = vsel %vm3008_vm10, 1.0, %v12663_v32  ;;  %v7219_v34 = vsel %vm3009_vm12, 1.0, %v12663_v32  ;;  %v10894_v7 = vpop.xlane.xlu0 %2214 }
 0x316   : > { %v10871_v37 = vpop.eup %8237  ;;  %8243 = vrcp.f32 %v4874_v4  ;;  %v4371_v47 = vadd.f32 %v4370_v62, %v4369_v30  ;;  %v10874_v13 = vmul.f32 %v10767_v45, %v7218_v14  ;;  %v10877_v2 = vmul.f32 %v10772_v15, %v7219_v34  ;;  %v10896_v4 = vpop.xlane.xlu1 %2217 }
 0x317   : > { %v10879_v36 = vpop.eup %8239  ;;  %v3922_v1 = vmul.f32 1.442695, %v3761_v52  ;;  %v3708_v44 = vrot.slane %v3707_v0, 4  ;;  %v4338_v28 = vrot.slane %v4337_v38, 1  ;;  %v2361_v21 = vcombine.high %v10859_v63, %v10859_v63 }
 0x318   : > { %v8242_v11 = vpop.eup %8241  ;;  %v3406_v54 = vmax.f32 %v10865_v40, %v10867_v29  ;;  %v4372_v41 = vrot.slane %v4371_v47, 2  ;;  %v4745_v45 = vsel %vm4240_vm11, %v10874_v13, 0.0  ;;  %v4746_v15 = vsel %vm4240_vm11, %v10877_v2, 0.0 }
 0x319   : > { %v3417_v51 = vmax.f32 %v10803_v42, %v3416_v10  ;;  %v4967_v52 = vmul.f32 %v8242_v11, %v10750_v22  ;;  %v4968_v27 = vmul.f32 %v8242_v11, %v10754_v31  ;;  %v4339_v6 = vadd.f32 %v4338_v28, %v4337_v38 }
 0x31a   : > { %8245 = vpow2.f32 %v3920_v49  ;;  %v3844_v5 = vsub.f32 %v10700_v46, %v10863_v39  ;;  %v4373_v58 = vadd.f32 %v4372_v41, %v4371_v47  ;;  %v4747_v30 = vadd.f32 %v4746_v15, %v4745_v45  ;;  %v10910_v41 = vpop.xlane.xlu0 %1980  ;;  %v10912_v45 = vpop.xlane.xlu1 %1983 }
 0x31b   : > { %v3709_v9 = vmax.f32 %v3707_v0, %v3708_v44  ;;  %v5084_v62 = vpack.c.bf16 %v4968_v27, %v4967_v52  ;;  %v4827_v14 = vmax.f32 %v4339_v6, 1e-30  ;;  %v10899_v42 = vrot.slane %v2361_v21, %v9365_v23 }
 0x31c   : > { %8247 = vpow2.f32 %v3922_v1  ;;  %v3407_v22 = vrot.slane %v3406_v54, 4  ;;  %v4374_v31 = vrot.slane %v4373_v58, 1  ;;  %v4748_v10 = vrot.slane %v4747_v30, 4 }
 0x31d   : > { %v3845_v49 = vsub.f32 %v10702_v19, %v10863_v39  ;;  %5194 = vperm.xlu1 %7689, %v5084_v62   ;;  %8249 = vrcp.f32 %v4827_v14  ;;  %v2711_v46 = vrot.slane %v10899_v42, %v9423_v55  ;;  %v4088_v0 = vmul.f32 1.442695, %v3844_v5 }
 0x31e   : > { %v3418_v38 = vrot.slane %v3417_v51, 1  ;;  %v4375_v34 = vadd.f32 %v4374_v31, %v4373_v58  ;;  %v4749_v47 = vadd.f32 %v4748_v10, %v4747_v30  ;;  %v3710_v44 = vrot.slane %v3709_v9, 2 }
 0x31f   : > { %vm2930_vm13 = vcmp.lt.s32.totalorder %v12659_v25, %v2711_v46  ;;  %vm2931_vm14 = vcmp.lt.s32.totalorder %v12661_v53, %v2711_v46  ;;  %v2638_v1 = vcombine.high %v10757_v59, %v10757_v59  ;;  %v3408_v21 = vmax.f32 %v3406_v54, %v3407_v22 }
 0x320   : > { %v8244_v28 = vpop.eup %8243  ;;  %v4831_v19 = vmax.f32 %v4375_v34, 1e-30  ;;  %v4750_v39 = vrot.slane %v4749_v47, 2  ;;  %v7140_v11 = vsel %vm2930_vm13, 1.0, %v12663_v32  ;;  %v7141_v27 = vsel %vm2931_vm14, 1.0, %v12663_v32 }
 0x321   : > { %v5059_v15 = vmul.f32 %v8244_v28, %v10784_v12  ;;  %v5060_v52 = vmul.f32 %v8244_v28, %v10787_v60  ;;  %v10918_v6 = vmul.f32 %v10821_v26, %v7140_v11  ;;  %v3419_v59 = vmax.f32 %v3417_v51, %v3418_v38 }
 0x322   : > { %8251 = vrcp.f32 %v4831_v19  ;;  %v4751_v54 = vadd.f32 %v4750_v39, %v4749_v47  ;;  %v10921_v5 = vmul.f32 %v10846_v35, %v7141_v27  ;;  %v3711_v58 = vmax.f32 %v3709_v9, %v3710_v44  ;;  %v10939_v44 = vpop.xlane.xlu0 %1974 }
 0x323   : > { %v5130_v30 = vpack.c.bf16 %v5060_v52, %v5059_v15  ;;  %v4394_v62 = vsel %vm4240_vm11, %v10918_v6, 0.0  ;;  %v2879_v12 = vrot.slane %v2638_v1, %v9423_v55  ;;  %v4090_v60 = vmul.f32 1.442695, %v3845_v49  ;;  %v10941_v1 = vpop.xlane.xlu1 %1977 }
 0x324   : > { %v10926_v14 = vpop.eup %8245  ;;  %v3427_v26 = vmax.f32 %v10910_v41, %v10912_v45  ;;  %v4752_v22 = vrot.slane %v4751_v54, 1  ;;  %v4395_v51 = vsel %vm4240_vm11, %v10921_v5, 0.0  ;;  %v3409_v31 = vrot.slane %v3408_v21, 2 }
 0x325   : > { %5424 = vperm.xlu0 %7690, %v5130_v30   ;;  %v4396_v35 = vadd.f32 %v4395_v51, %v4394_v62  ;;  %vm3014_vm15 = vcmp.lt.s32.totalorder %v12659_v25, %v2879_v12  ;;  %vm3015_vm0 = vcmp.lt.s32.totalorder %v12661_v53, %v2879_v12  ;;  %v3766_v10 = vsub.f32 %v10744_v43, %v3419_v59 }
 0x326   : > { %v10934_v9 = vpop.eup %8247  ;;  %v3767_v49 = vsub.f32 %v10746_v20, %v3419_v59  ;;  %v4753_v46 = vadd.f32 %v4752_v22, %v4751_v54  ;;  %v7224_v38 = vsel %vm3014_vm15, 1.0, %v12663_v32  ;;  %v3712_v47 = vrot.slane %v3711_v58, 1 }
 0x327   : > { %v8250_v34 = vpop.eup %8249  ;;  %v4397_v28 = vrot.slane %v4396_v35, 4  ;;  %v7225_v19 = vsel %vm3015_vm0, 1.0, %v12663_v32  ;;  %v10945_v39 = vmul.f32 %v10871_v37, %v7224_v38  ;;  %v3428_v11 = vrot.slane %v3427_v26, 4 }
 0x328   : > { %v4965_v43 = vmul.f32 %v8250_v34, %v10806_v33  ;;  %v4966_v20 = vmul.f32 %v8250_v34, %v10809_v18  ;;  %v4873_v15 = vmax.f32 %v4753_v46, 1e-30  ;;  %8253 = vpow2.f32 %v4088_v0 }
 0x329   : > { %v3410_v52 = vmax.f32 %v3408_v21, %v3409_v31  ;;  %v4398_v27 = vadd.f32 %v4397_v28, %v4396_v35  ;;  %v10950_v59 = vmul.f32 %v10879_v36, %v7225_v19  ;;  %v3932_v54 = vmul.f32 1.442695, %v3766_v10  ;;  %v10960_v31 = vpop.xlane.xlu0 %2226  ;;  %v10962_v35 = vpop.xlane.xlu1 %2229 }
 0x32a   : > { %v5083_v30 = vpack.c.bf16 %v4966_v20, %v4965_v43  ;;  %8255 = vrcp.f32 %v4873_v15  ;;  %v4772_v62 = vsel %vm4240_vm11, %v10945_v39, 0.0  ;;  %v3934_v37 = vmul.f32 1.442695, %v3767_v49 }
 0x32b   : > { %8257 = vpow2.f32 %v4090_v60  ;;  %v4399_v12 = vrot.slane %v4398_v27, 2  ;;  %v4773_v33 = vsel %vm4240_vm11, %v10950_v59, 0.0  ;;  %v3713_v22 = vmax.f32 %v3711_v58, %v3712_v47 }
 0x32c   : > { %v8252_v18 = vpop.eup %8251  ;;  %v3429_v0 = vmax.f32 %v3427_v26, %v3428_v11  ;;  %5189 = vperm.xlu1 %7689, %v5083_v30   ;;  %v4774_v21 = vadd.f32 %v4773_v33, %v4772_v62  ;;  %v10958_v36 = vrot.slane %v10859_v63, %v9365_v23  ;;  %v3411_v51 = vrot.slane %v3410_v52, 1 }
 0x32d   : > { %v4973_v60 = vmul.f32 %v8252_v18, %v10824_v8  ;;  %v4974_v10 = vmul.f32 %v8252_v18, %v10835_v50  ;;  %v4400_v49 = vadd.f32 %v4399_v12, %v4398_v27  ;;  %8259 = vpow2.f32 %v3932_v54  ;;  %v10981_v54 = vpop.xlane.xlu0 %1992 }
 0x32e   : > { %v3420_v58 = vmax.f32 %v10939_v44, %v10941_v1  ;;  %v4775_v26 = vrot.slane %v4774_v21, 4  ;;  %v2707_v46 = vrot.slane %v10958_v36, %v9423_v55  ;;  %8261 = vpow2.f32 %v3934_v37 }
 0x32f   : > { %v5087_v63 = vpack.c.bf16 %v4974_v10, %v4973_v60  ;;  %v4401_v38 = vrot.slane %v4400_v49, 1  ;;  %v3850_v34 = vsub.f32 %v10830_v56, %v3713_v22  ;;  %v3430_v47 = vrot.slane %v3429_v0, 2 }
 0x330   : > { %v4776_v28 = vadd.f32 %v4775_v26, %v4774_v21  ;;  %vm2928_vm1 = vcmp.lt.s32.totalorder %v12659_v25, %v2707_v46  ;;  %v10972_v8 = vmax.f32 %v3410_v52, %v3411_v51  ;;  %vm2929_vm2 = vcmp.lt.s32.totalorder %v12661_v53, %v2707_v46  ;;  %v10983_v52 = vpop.xlane.xlu1 %1995 }
 0x331   : > { %5209 = vperm.xlu0 %7690, %v5087_v63   ;;  %v4402_v50 = vadd.f32 %v4401_v38, %v4400_v49  ;;  %v7138_v19 = vsel %vm2928_vm1, 1.0, %v12663_v32  ;;  %v3421_v11 = vrot.slane %v3420_v58, 4  ;;  %v7139_v20 = vsel %vm2929_vm2, 1.0, %v12663_v32 }
 0x332   : > { %v4777_v43 = vrot.slane %v4776_v28, 2  ;;  %v10978_v15 = vmul.f32 %v10926_v14, %v7138_v19  ;;  %v8254_v56 = vpop.eup %8253  ;;  %v3851_v27 = vsub.f32 %v10832_v57, %v3713_v22  ;;  %v10986_v62 = vmul.f32 %v10934_v9, %v7139_v20 }
 0x333   : > { %v4834_v30 = vmax.f32 %v4402_v50, 1e-30  ;;  %v2636_v37 = vcombine.high %v10839_v16, %v10839_v16  ;;  %v3700_v33 = vmax.f32 %v10894_v7, %v10896_v4  ;;  %v3431_v14 = vmax.f32 %v3429_v0, %v3430_v47 }
 0x334   : > { %v8256_v12 = vpop.eup %8255  ;;  %v4778_v18 = vadd.f32 %v4777_v43, %v4776_v28  ;;  %v4385_v57 = vsel %vm4240_vm11, %v10978_v15, 0.0  ;;  %v4386_v9 = vsel %vm4240_vm11, %v10986_v62, 0.0  ;;  %v3764_v16 = vsub.f32 %v10865_v40, %v10972_v8  ;;  %v11013_v19 = vpop.xlane.xlu1 %1989 }
 0x335   : > { %v8258_v22 = vpop.eup %8257  ;;  %v5057_v21 = vmul.f32 %v8256_v12, %v10874_v13  ;;  %v5058_v51 = vmul.f32 %v8256_v12, %v10877_v2  ;;  %8263 = vrcp.f32 %v4834_v30  ;;  %v3422_v60 = vmax.f32 %v3420_v58, %v3421_v11 }
 0x336   : > { %v4779_v10 = vrot.slane %v4778_v18, 1  ;;  %v4387_v49 = vadd.f32 %v4386_v9, %v4385_v57  ;;  %v4100_v0 = vmul.f32 1.442695, %v3850_v34  ;;  %v3441_v26 = vmax.f32 %v10981_v54, %v10983_v52  ;;  %v11011_v34 = vpop.xlane.xlu0 %1986 }
 0x337   : > { %v5129_v46 = vpack.c.bf16 %v5058_v51, %v5057_v21  ;;  %v2875_v63 = vrot.slane %v2636_v37, %v9423_v55  ;;  %v11003_v13 = vpop.eup %8259  ;;  %v11005_v2 = vmul.f32 1.442695, %v3851_v27  ;;  %v3701_v38 = vrot.slane %v3700_v33, 4 }
 0x338   : > { %v4780_v47 = vadd.f32 %v4779_v10, %v4778_v18  ;;  %v4388_v28 = vrot.slane %v4387_v49, 4  ;;  %v11007_v50 = vpop.eup %8261  ;;  %v3765_v40 = vsub.f32 %v10867_v29, %v10972_v8  ;;  %v3432_v58 = vrot.slane %v3431_v14, 1 }
 0x339   : > { %5419 = vperm.xlu1 %7689, %v5129_v46   ;;  %vm3012_vm3 = vcmp.lt.s32.totalorder %v12659_v25, %v2875_v63  ;;  %vm3013_vm4 = vcmp.lt.s32.totalorder %v12661_v53, %v2875_v63  ;;  %v3928_v11 = vmul.f32 1.442695, %v3764_v16  ;;  %v3423_v43 = vrot.slane %v3422_v60, 2 }
 0x33a   : > { %v4876_v20 = vmax.f32 %v4780_v47, 1e-30  ;;  %v4389_v27 = vadd.f32 %v4388_v28, %v4387_v49  ;;  %v3442_v30 = vrot.slane %v3441_v26, 4  ;;  %v7222_v37 = vsel %vm3012_vm3, 1.0, %v12663_v32  ;;  %v11033_v63 = vpop.xlane.xlu0 %2004 }
 0x33b   : > { %v7223_v12 = vsel %vm3013_vm4, 1.0, %v12663_v32  ;;  %v2393_v29 = vcombine.high %v10899_v42, %v10899_v42  ;;  %v11021_v18 = vmul.f32 %v8254_v56, %v7222_v37  ;;  %v11025_v21 = vmax.f32 %v3700_v33, %v3701_v38  ;;  %v11035_v33 = vpop.xlane.xlu1 %2007 }
 0x33c   : > { %8265 = vrcp.f32 %v4876_v20  ;;  %v4390_v8 = vrot.slane %v4389_v27, 2  ;;  %v11023_v57 = vmul.f32 %v8258_v22, %v7223_v12  ;;  %v3433_v51 = vmax.f32 %v3431_v14, %v3432_v58 }
 0x33d   : > { %8267 = vpow2.f32 %v4100_v0  ;;  %v3434_v9 = vmax.f32 %v11011_v34, %v11013_v19  ;;  %v3930_v16 = vmul.f32 1.442695, %v3765_v40  ;;  %v4763_v49 = vsel %vm4240_vm11, %v11021_v18, 0.0 }
 0x33e   : > { %v4391_v10 = vadd.f32 %v4390_v8, %v4389_v27  ;;  %v4764_v42 = vsel %vm4240_vm11, %v11023_v57, 0.0  ;;  %8269 = vpow2.f32 %v3928_v11  ;;  %v3424_v56 = vmax.f32 %v3422_v60, %v3423_v43 }
 0x33f   : > { %v8264_v46 = vpop.eup %8263  ;;  %v3443_v22 = vmax.f32 %v3441_v26, %v3442_v30  ;;  %v4765_v14 = vadd.f32 %v4764_v42, %v4763_v49  ;;  %v2719_v28 = vrot.slane %v2393_v29, %v9423_v55  ;;  %v3703_v40 = vrot.slane %v11025_v21, 2 }
 0x340   : > { %v4979_v0 = vmul.f32 %v8264_v46, %v10918_v6  ;;  %v4980_v38 = vmul.f32 %v8264_v46, %v10921_v5  ;;  %v4392_v47 = vrot.slane %v4391_v10, 1  ;;  %v3770_v58 = vsub.f32 %v10910_v41, %v3433_v51  ;;  %v11054_v46 = vpop.xlane.xlu1 %2001 }
 0x341   : > { %v3435_v20 = vrot.slane %v3434_v9, 4  ;;  %v4766_v11 = vrot.slane %v4765_v14, 4  ;;  %v3455_v60 = vmax.f32 %v11033_v63, %v11035_v33  ;;  %vm2934_vm5 = vcmp.lt.s32.totalorder %v12659_v25, %v2719_v28 }
 0x342   : > { %v5090_v26 = vpack.c.bf16 %v4980_v38, %v4979_v0  ;;  %v4393_v43 = vadd.f32 %v4392_v47, %v4391_v10  ;;  %v3771_v6 = vsub.f32 %v10912_v45, %v3433_v51  ;;  %v3425_v27 = vrot.slane %v3424_v56, 1  ;;  %v11052_v51 = vpop.xlane.xlu0 %1998 }
 0x343   : > { %v4767_v5 = vadd.f32 %v4766_v11, %v4765_v14  ;;  %vm2935_vm6 = vcmp.lt.s32.totalorder %v12661_v53, %v2719_v28  ;;  %v3444_v30 = vrot.slane %v3443_v22, 2  ;;  %v7144_v41 = vsel %vm2934_vm5, 1.0, %v12663_v32 }
 0x344   : > { %5224 = vperm.xlu0 %7690, %v5090_v26   ;;  %v4833_v37 = vmax.f32 %v4393_v43, 1e-30  ;;  %v7145_v12 = vsel %vm2935_vm6, 1.0, %v12663_v32  ;;  %8271 = vpow2.f32 %v3930_v16  ;;  %v3436_v29 = vmax.f32 %v3434_v9, %v3435_v20 }
 0x345   : > { %v4768_v8 = vrot.slane %v4767_v5, 2  ;;  %v11050_v10 = vmul.f32 %v11003_v13, %v7144_v41  ;;  %v3940_v42 = vmul.f32 1.442695, %v3770_v58  ;;  %v3456_v45 = vrot.slane %v3455_v60, 4 }
 0x346   : > { %v8266_v49 = vpop.eup %8265  ;;  %8273 = vrcp.f32 %v4833_v37  ;;  %v11057_v14 = vmul.f32 %v11007_v50, %v7145_v12  ;;  %v3942_v38 = vmul.f32 1.442695, %v3771_v6  ;;  %v3426_v47 = vmax.f32 %v3424_v56, %v3425_v27  ;;  %v11075_v41 = vpop.xlane.xlu0 %2016 }
 0x347   : > { %v11059_v0 = vpop.eup %8267  ;;  %v5063_v9 = vmul.f32 %v8266_v49, %v10945_v39  ;;  %v5064_v16 = vmul.f32 %v8266_v49, %v10950_v59  ;;  %v4769_v13 = vadd.f32 %v4768_v8, %v4767_v5  ;;  %v3445_v28 = vmax.f32 %v3443_v22, %v3444_v30  ;;  %v11077_v12 = vpop.xlane.xlu1 %2019 }
 0x348   : > { %12695 = vst [vmem:[#allocation33_spill] sm:$0xff] %v11059_v0  ;;  %v4412_v58 = vsel %vm4240_vm11, %v11050_v10, 0.0  ;;  %v4413_v20 = vsel %vm4240_vm11, %v11057_v14, 0.0  ;;  %v8270_v11 = vpop.eup %8269  ;;  %v3437_v26 = vrot.slane %v3436_v29, 2  ;;  %8275 = vpow2.f32 %v3940_v42 }
 0x349   : > { %v5132_v50 = vpack.c.bf16 %v5064_v16, %v5063_v9  ;;  %v4770_v43 = vrot.slane %v4769_v13, 1  ;;  %v4414_v37 = vadd.f32 %v4413_v20, %v4412_v58  ;;  %v3457_v6 = vmax.f32 %v3455_v60, %v3456_v45 }
 0x34a   : > { %v3448_v39 = vmax.f32 %v11052_v51, %v11054_v46  ;;  %v2391_v59 = vcombine.high %v10958_v36, %v10958_v36  ;;  %v11072_v56 = vmax.f32 %v11025_v21, %v3703_v40  ;;  %8277 = vpow2.f32 %v3942_v38 }
 0x34b   : > { %5434 = vperm.xlu0 %7690, %v5132_v50   ;;  %v4771_v22 = vadd.f32 %v4770_v43, %v4769_v13  ;;  %v4415_v27 = vrot.slane %v4414_v37, 4  ;;  %v3768_v5 = vsub.f32 %v10939_v44, %v3426_v47  ;;  %v3446_v30 = vrot.slane %v3445_v28, 1 }
 0x34c   : > { %v2715_v60 = vrot.slane %v2391_v59, %v9423_v55  ;;  %v2346_v8 = vcombine.high %v10844_v48, %v10844_v48  ;;  %v3769_v36 = vsub.f32 %v10941_v1, %v3426_v47  ;;  %v3438_v21 = vmax.f32 %v3436_v29, %v3437_v26 }
 0x34d   : > { %v4875_v40 = vmax.f32 %v4771_v22, 1e-30  ;;  %v4416_v49 = vadd.f32 %v4415_v27, %v4414_v37  ;;  %v3458_v42 = vrot.slane %v3457_v6, 2  ;;  %v3449_v45 = vrot.slane %v3448_v39, 4  ;;  %v11096_v22 = vpop.xlane.xlu0 %2010  ;;  %v11098_v27 = vpop.xlane.xlu1 %2013 }
 0x34e   : > { %vm2932_vm7 = vcmp.lt.s32.totalorder %v12659_v25, %v2715_v60  ;;  %vm2933_vm8 = vcmp.lt.s32.totalorder %v12661_v53, %v2715_v60  ;;  %v8272_v44 = vpop.eup %8271  ;;  %v3469_v38 = vmax.f32 %v11075_v41, %v11077_v12  ;;  %v3447_v13 = vmax.f32 %v3445_v28, %v3446_v30 }
 0x34f   : > { %8279 = vrcp.f32 %v4875_v40  ;;  %v4417_v9 = vrot.slane %v4416_v49, 2  ;;  %v7142_v16 = vsel %vm2932_vm7, 1.0, %v12663_v32  ;;  %v7143_v1 = vsel %vm2933_vm8, 1.0, %v12663_v32 }
 0x350   : > { %v8274_v48 = vpop.eup %8273  ;;  %v11089_v29 = vmul.f32 %v8270_v11, %v7142_v16  ;;  %v11092_v47 = vrot.slane %v2346_v8, %v9365_v23  ;;  %v3439_v58 = vrot.slane %v3438_v21, 1  ;;  %v3936_v43 = vmul.f32 1.442695, %v3768_v5 }
 0x351   : > { %v4977_v20 = vmul.f32 %v8274_v48, %v10978_v15  ;;  %v4978_v26 = vmul.f32 %v8274_v48, %v10986_v62  ;;  %v4418_v50 = vadd.f32 %v4417_v9, %v4416_v49  ;;  %v3459_v37 = vmax.f32 %v3457_v6, %v3458_v42 }
 0x352   : > { %v3450_v59 = vmax.f32 %v3448_v39, %v3449_v45  ;;  %v11100_v28 = vmul.f32 %v8272_v44, %v7143_v1  ;;  %v3470_v11 = vrot.slane %v3469_v38, 4  ;;  %v4403_v8 = vsel %vm4240_vm11, %v11089_v29, 0.0  ;;  %v8276_v40 = vpop.eup %8275 }
 0x353   : > { %v5089_v30 = vpack.c.bf16 %v4978_v26, %v4977_v20  ;;  %v4419_v60 = vrot.slane %v4418_v50, 1  ;;  %v3705_v15 = vrot.slane %v11072_v56, 1  ;;  %v3938_v62 = vmul.f32 1.442695, %v3769_v36 }
 0x354   : > { %v4404_v6 = vsel %vm4240_vm11, %v11100_v28, 0.0  ;;  %v2362_v39 = vcombine.high %v11092_v47, %v11092_v47  ;;  %v8278_v5 = vpop.eup %8277  ;;  %v3774_v49 = vsub.f32 %v10981_v54, %v3447_v13  ;;  %v3440_v42 = vmax.f32 %v3438_v21, %v3439_v58 }
 0x355   : > { %v3462_v45 = vmax.f32 %v11096_v22, %v11098_v27  ;;  %5219 = vperm.xlu1 %7689, %v5089_v30   ;;  %v4420_v44 = vadd.f32 %v4419_v60, %v4418_v50  ;;  %8281 = vpow2.f32 %v3936_v43  ;;  %v3775_v9 = vsub.f32 %v10983_v52, %v3447_v13 }
 0x356   : > { %v4405_v16 = vadd.f32 %v4404_v6, %v4403_v8  ;;  %v11114_v36 = vrot.slane %v2362_v39, %v9365_v23  ;;  %v3460_v48 = vrot.slane %v3459_v37, 1  ;;  %v3451_v1 = vrot.slane %v3450_v59, 2 }
 0x357   : > { %v3471_v20 = vmax.f32 %v3469_v38, %v3470_v11  ;;  %v4836_v26 = vmax.f32 %v4420_v44, 1e-30  ;;  %8283 = vpow2.f32 %v3938_v62  ;;  %v11118_v54 = vmax.f32 %v10960_v31, %v10962_v35 }
 0x358   : > { %v4406_v21 = vrot.slane %v4405_v16, 4  ;;  %v2727_v58 = vrot.slane %v11114_v36, %v9423_v55  ;;  %v3948_v43 = vmul.f32 1.442695, %v3774_v49  ;;  %v3772_v52 = vsub.f32 %v11011_v34, %v3440_v42 }
 0x359   : > { %v8280_v50 = vpop.eup %8279  ;;  %v3463_v13 = vrot.slane %v3462_v45, 4  ;;  %8285 = vrcp.f32 %v4836_v26  ;;  %v3950_v30 = vmul.f32 1.442695, %v3775_v9  ;;  %v3461_v8 = vmax.f32 %v3459_v37, %v3460_v48 }
 0x35a   : > { %v5061_v60 = vmul.f32 %v8280_v50, %v11021_v18  ;;  %v5062_v38 = vmul.f32 %v8280_v50, %v11023_v57  ;;  %v4407_v11 = vadd.f32 %v4406_v21, %v4405_v16  ;;  %v3452_v62 = vmax.f32 %v3450_v59, %v3451_v1 }
 0x35b   : > { %v3472_v6 = vrot.slane %v3471_v20, 2  ;;  %vm2938_vm9 = vcmp.lt.s32.totalorder %v12659_v25, %v2727_v58  ;;  %vm2939_vm10 = vcmp.lt.s32.totalorder %v12661_v53, %v2727_v58  ;;  %v3773_v34 = vsub.f32 %v11013_v19, %v3440_v42 }
 0x35c   : > { %v5131_v39 = vpack.c.bf16 %v5062_v38, %v5061_v60  ;;  %v4408_v44 = vrot.slane %v4407_v11, 2  ;;  %v7148_v49 = vsel %vm2938_vm9, 1.0, %v12663_v32  ;;  %v3944_v26 = vmul.f32 1.442695, %v3772_v52  ;;  %v11146_v52 = vpop.xlane.xlu1 %2031 }
 0x35d   : > { %v3464_v9 = vmax.f32 %v3462_v45, %v3463_v13  ;;  %v7149_v18 = vsel %vm2939_vm10, 1.0, %v12663_v32  ;;  %v11130_v16 = vmul.f32 %v8276_v40, %v7148_v49  ;;  %v11136_v59 = vrot.slane %v11092_v47, %v9365_v23  ;;  %v11144_v47 = vpop.xlane.xlu0 %2028 }
 0x35e   : > { %5429 = vperm.xlu0 %7690, %v5131_v39   ;;  %v4409_v57 = vadd.f32 %v4408_v44, %v4407_v11  ;;  %v11132_v37 = vmul.f32 %v8278_v5, %v7149_v18  ;;  %v3715_v48 = vrot.slane %v11118_v54, 4  ;;  %v3778_v1 = vsub.f32 %v11033_v63, %v3461_v8 }
 0x35f   : > { %v3453_v21 = vrot.slane %v3452_v62, 1  ;;  %v3473_v19 = vmax.f32 %v3471_v20, %v3472_v6  ;;  %v8282_v42 = vpop.eup %8281  ;;  %8287 = vpow2.f32 %v3948_v43  ;;  %v4430_v58 = vsel %vm4240_vm11, %v11130_v16, 0.0 }
 0x360   : > { %v4410_v45 = vrot.slane %v4409_v57, 1  ;;  %v4431_v40 = vsel %vm4240_vm11, %v11132_v37, 0.0  ;;  %8289 = vpow2.f32 %v3950_v30  ;;  %v3946_v5 = vmul.f32 1.442695, %v3773_v34 }
 0x361   : > { %v3465_v50 = vrot.slane %v3464_v9, 2  ;;  %v4432_v13 = vadd.f32 %v4431_v40, %v4430_v58  ;;  %v8284_v63 = vpop.eup %8283  ;;  %8291 = vpow2.f32 %v3944_v26  ;;  %v3779_v20 = vsub.f32 %v11035_v33, %v3461_v8 }
 0x362   : > { %v4411_v43 = vadd.f32 %v4410_v45, %v4409_v57  ;;  %v2723_v60 = vrot.slane %v11136_v59, %v9423_v55  ;;  %v3956_v11 = vmul.f32 1.442695, %v3778_v1  ;;  %v3454_v6 = vmax.f32 %v3452_v62, %v3453_v21 }
 0x363   : > { %v8286_v38 = vpop.eup %8285  ;;  %v3474_v39 = vrot.slane %v3473_v19, 1  ;;  %v4433_v30 = vrot.slane %v4432_v13, 4  ;;  %v3483_v44 = vmax.f32 %v11144_v47, %v11146_v52  ;;  %v3466_v26 = vmax.f32 %v3464_v9, %v3465_v50 }
 0x364   : > { %v4983_v49 = vmul.f32 %v8286_v38, %v11050_v10  ;;  %v4984_v34 = vmul.f32 %v8286_v38, %v11057_v14  ;;  %v4835_v18 = vmax.f32 %v4411_v43, 1e-30  ;;  %vm2936_vm12 = vcmp.lt.s32.totalorder %v12659_v25, %v2723_v60 }
 0x365   : > { %v4434_v58 = vadd.f32 %v4433_v30, %v4432_v13  ;;  %vm2937_vm13 = vcmp.lt.s32.totalorder %v12661_v53, %v2723_v60  ;;  %v7146_v8 = vsel %vm2936_vm12, 1.0, %v12663_v32  ;;  %v3958_v57 = vmul.f32 1.442695, %v3779_v20 }
 0x366   : > { %v5092_v33 = vpack.c.bf16 %v4984_v34, %v4983_v49  ;;  %8293 = vrcp.f32 %v4835_v18  ;;  %v7147_v62 = vsel %vm2937_vm13, 1.0, %v12663_v32  ;;  %v11159_v21 = vmul.f32 %v8282_v42, %v7146_v8 }
 0x367   : > { %v4435_v1 = vrot.slane %v4434_v58, 2  ;;  %v11161_v10 = vmul.f32 %v8284_v63, %v7147_v62  ;;  %v11166_v14 = vmax.f32 %v11072_v56, %v3705_v15  ;;  %8295 = vpow2.f32 %v3946_v5 }
 0x368   : > { %v3776_v9 = vsub.f32 %v11052_v51, %v3454_v6  ;;  %5234 = vperm.xlu1 %7689, %v5092_v33   ;;  %v2394_v45 = vcombine.high %v11114_v36, %v11114_v36  ;;  %8297 = vpow2.f32 %v3956_v11  ;;  %v3475_v40 = vmax.f32 %v3473_v19, %v3474_v39 }
 0x369   : > { %v4436_v50 = vadd.f32 %v4435_v1, %v4434_v58  ;;  %v4421_v42 = vsel %vm4240_vm11, %v11159_v21, 0.0  ;;  %v8288_v13 = vpop.eup %8287  ;;  %v3467_v63 = vrot.slane %v3466_v26, 1  ;;  %v3484_v20 = vrot.slane %v3483_v44, 4  ;;  %v11192_v1 = vpop.xlane.xlu1 %2025 }
 0x36a   : > { %v4422_v56 = vsel %vm4240_vm11, %v11161_v10, 0.0  ;;  %v2735_v15 = vrot.slane %v2394_v45, %v9423_v55  ;;  %v8290_v5 = vpop.eup %8289  ;;  %v3716_v51 = vmax.f32 %v11118_v54, %v3715_v48  ;;  %8299 = vpow2.f32 %v3958_v57  ;;  %v11190_v57 = vpop.xlane.xlu0 %2022 }
 0x36b   : > { %v4437_v43 = vrot.slane %v4436_v50, 1  ;;  %v4423_v36 = vadd.f32 %v4422_v56, %v4421_v42  ;;  %v11177_v60 = vpop.eup %8291  ;;  %v3777_v19 = vsub.f32 %v11054_v46, %v3454_v6  ;;  %v3952_v38 = vmul.f32 1.442695, %v3776_v9 }
 0x36c   : > { %vm2942_vm14 = vcmp.lt.s32.totalorder %v12659_v25, %v2735_v15  ;;  %vm2943_vm15 = vcmp.lt.s32.totalorder %v12661_v53, %v2735_v15  ;;  %v3782_v11 = vsub.f32 %v11075_v41, %v3475_v40  ;;  %v3783_v54 = vsub.f32 %v11077_v12, %v3475_v40 }
 0x36d   : > { %v4438_v39 = vadd.f32 %v4437_v43, %v4436_v50  ;;  %v4424_v30 = vrot.slane %v4423_v36, 4  ;;  %v7152_v49 = vsel %vm2942_vm14, 1.0, %v12663_v32  ;;  %v3468_v48 = vmax.f32 %v3466_v26, %v3467_v63 }
 0x36e   : > { %v3485_v34 = vmax.f32 %v3483_v44, %v3484_v20  ;;  %v7153_v18 = vsel %vm2943_vm15, 1.0, %v12663_v32  ;;  %v11186_v46 = vmul.f32 %v8288_v13, %v7152_v49  ;;  %v3717_v62 = vrot.slane %v3716_v51, 2  ;;  %v11220_v49 = vpop.xlane.xlu0 %2040 }
 0x36f   : > { %v4838_v58 = vmax.f32 %v4438_v39, 1e-30  ;;  %v4425_v33 = vadd.f32 %v4424_v30, %v4423_v36  ;;  %v11188_v6 = vmul.f32 %v8290_v5, %v7153_v18  ;;  %8301 = vpow2.f32 %v3952_v38 }
 0x370   : > { %v8294_v8 = vpop.eup %8293  ;;  %v3954_v41 = vmul.f32 1.442695, %v3777_v19  ;;  %v2392_v12 = vcombine.high %v11136_v59, %v11136_v59  ;;  %v3964_v40 = vmul.f32 1.442695, %v3782_v11  ;;  %v3966_v50 = vmul.f32 1.442695, %v3783_v54  ;;  %v11222_v54 = vpop.xlane.xlu1 %2043 }
 0x371   : > { %v4981_v44 = vmul.f32 %v8294_v8, %v11089_v29  ;;  %v4982_v26 = vmul.f32 %v8294_v8, %v11100_v28  ;;  %8303 = vrcp.f32 %v4838_v58  ;;  %v4426_v9 = vrot.slane %v4425_v33, 2  ;;  %v8296_v45 = vpop.eup %8295  ;;  %v11206_v59 = vld [vmem:[%s9357_s27 + $0x18] sm:$0xff] }
 0x372   : > { %v3780_v42 = vsub.f32 %v11096_v22, %v3468_v48  ;;  %v4448_v13 = vsel %vm4240_vm11, %v11186_v46, 0.0  ;;  %v11201_v63 = vpop.eup %8297  ;;  %v3486_v20 = vrot.slane %v3485_v34, 2  ;;  %v4449_v29 = vsel %vm4240_vm11, %v11188_v6, 0.0 }
 0x373   : > { %v5091_v56 = vpack.c.bf16 %v4982_v26, %v4981_v44  ;;  %v4427_v15 = vadd.f32 %v4426_v9, %v4425_v33  ;;  %8305 = vpow2.f32 %v3954_v41  ;;  %v3781_v22 = vsub.f32 %v11098_v27, %v3468_v48 }
 0x374   : > { %v11213_v43 = vpop.eup %8299  ;;  %v3476_v36 = vmax.f32 %v11190_v57, %v11192_v1  ;;  %v4450_v38 = vadd.f32 %v4449_v29, %v4448_v13  ;;  %v2731_v11 = vrot.slane %v2392_v12, %v9423_v55  ;;  %v11218_v39 = vmax.f32 %v3716_v51, %v3717_v62 }
 0x375   : > { %5229 = vperm.xlu1 %7689, %v5091_v56   ;;  %v4428_v19 = vrot.slane %v4427_v15, 1  ;;  %8307 = vpow2.f32 %v3964_v40  ;;  %v3960_v30 = vmul.f32 1.442695, %v3780_v42  ;;  %v2402_v27 = vrot.slane %v11206_v59, %v9365_v23 }
 0x376   : > { %8309 = vpow2.f32 %v3966_v50  ;;  %v11226_v48 = vmax.f32 %v3485_v34, %v3486_v20  ;;  %v4451_v58 = vrot.slane %v4450_v38, 4  ;;  %v3962_v33 = vmul.f32 1.442695, %v3781_v22 }
 0x377   : > { %v4429_v18 = vadd.f32 %v4428_v19, %v4427_v15  ;;  %vm2940_vm0 = vcmp.lt.s32.totalorder %v12659_v25, %v2731_v11  ;;  %vm2941_vm1 = vcmp.lt.s32.totalorder %v12661_v53, %v2731_v11  ;;  %v2410_v51 = vcombine.high %v2402_v27, %v2402_v27 }
 0x378   : > { %v3477_v8 = vrot.slane %v3476_v36, 4  ;;  %v3497_v62 = vmax.f32 %v11220_v49, %v11222_v54  ;;  %v4452_v12 = vadd.f32 %v4451_v58, %v4450_v38  ;;  %8311 = vpow2.f32 %v3960_v30 }
 0x379   : > { %v4837_v41 = vmax.f32 %v4429_v18, 1e-30  ;;  %v8302_v44 = vpop.eup %8301  ;;  %v7150_v26 = vsel %vm2940_vm0, 1.0, %v12663_v32  ;;  %v7151_v34 = vsel %vm2941_vm1, 1.0, %v12663_v32  ;;  %v2432_v9 = vrot.slane %v2410_v51, %v9365_v23 }
 0x37a   : > { %v4453_v50 = vrot.slane %v4452_v12, 2  ;;  %v11236_v42 = vmul.f32 %v11177_v60, %v7150_v26  ;;  %v11239_v13 = vrot.slane %v2402_v27, %v9365_v23  ;;  %v11243_v15 = vmul.f32 %v8296_v45, %v7151_v34 }
 0x37b   : > { %v8304_v40 = vpop.eup %8303  ;;  %8313 = vrcp.f32 %v4837_v41  ;;  %v2743_v29 = vrot.slane %v2432_v9, %v9423_v55  ;;  %v3478_v22 = vmax.f32 %v3476_v36, %v3477_v8  ;;  %v3498_v19 = vrot.slane %v3497_v62, 4 }
 0x37c   : > { %v4987_v20 = vmul.f32 %v8304_v40, %v11130_v16  ;;  %v4988_v56 = vmul.f32 %v8304_v40, %v11132_v37  ;;  %v4454_v38 = vadd.f32 %v4453_v50, %v4452_v12  ;;  %v4439_v11 = vsel %vm4240_vm11, %v11236_v42, 0.0 }
 0x37d   : > { %v8306_v30 = vpop.eup %8305  ;;  %v4440_v27 = vsel %vm4240_vm11, %v11243_v15, 0.0  ;;  %vm2946_vm2 = vcmp.lt.s32.totalorder %v12659_v25, %v2743_v29  ;;  %vm2947_vm3 = vcmp.lt.s32.totalorder %v12661_v53, %v2743_v29  ;;  %8315 = vpow2.f32 %v3962_v33 }
 0x37e   : > { %v5094_v60 = vpack.c.bf16 %v4988_v56, %v4987_v20  ;;  %v3488_v16 = vrot.slane %v11226_v48, 1  ;;  %v4455_v37 = vrot.slane %v4454_v38, 1  ;;  %v4441_v45 = vadd.f32 %v4440_v27, %v4439_v11 }
 0x37f   : > { %v8308_v36 = vpop.eup %8307  ;;  %v7156_v18 = vsel %vm2946_vm2, 1.0, %v12663_v32  ;;  %v7157_v58 = vsel %vm2947_vm3, 1.0, %v12663_v32  ;;  %v2739_v51 = vrot.slane %v11239_v13, %v9423_v55  ;;  %v2442_v8 = vcombine.high %v2432_v9, %v2432_v9 }
 0x380   : > { %5244 = vperm.xlu1 %7689, %v5094_v60   ;;  %v8310_v41 = vpop.eup %8309  ;;  %v3479_v12 = vrot.slane %v3478_v22, 2  ;;  %v4456_v26 = vadd.f32 %v4455_v37, %v4454_v38  ;;  %v4442_v34 = vrot.slane %v4441_v45, 4  ;;  %v11258_v33 = vmul.f32 %v11201_v63, %v7156_v18 }
 0x381   : > { %v11260_v40 = vmax.f32 %v3497_v62, %v3498_v19  ;;  %v11263_v50 = vmul.f32 %v11213_v43, %v7157_v58  ;;  %vm2944_vm4 = vcmp.lt.s32.totalorder %v12659_v25, %v2739_v51  ;;  %vm2945_vm5 = vcmp.lt.s32.totalorder %v12661_v53, %v2739_v51  ;;  %v11285_v51 = vpop.xlane.xlu0 %2034 }
 0x382   : > { %v4840_v20 = vmax.f32 %v4456_v26, 1e-30  ;;  %v4443_v56 = vadd.f32 %v4442_v34, %v4441_v45  ;;  %v4466_v9 = vsel %vm4240_vm11, %v11258_v33, 0.0  ;;  %v7154_v29 = vsel %vm2944_vm4, 1.0, %v12663_v32  ;;  %v11270_v38 = vpop.eup %8311 }
 0x383   : > { %v4467_v63 = vsel %vm4240_vm11, %v11263_v50, 0.0  ;;  %v7155_v62 = vsel %vm2945_vm5, 1.0, %v12663_v32  ;;  %v11275_v43 = vmul.f32 %v8302_v44, %v7154_v29  ;;  %v2751_v19 = vrot.slane %v2442_v8, %v9423_v55  ;;  %v11287_v44 = vpop.xlane.xlu1 %2037 }
 0x384   : > { %8317 = vrcp.f32 %v4840_v20  ;;  %v4444_v60 = vrot.slane %v4443_v56, 2  ;;  %v4468_v27 = vadd.f32 %v4467_v63, %v4466_v9  ;;  %v11278_v37 = vmul.f32 %v8306_v30, %v7155_v62 }
 0x385   : > { %v8314_v11 = vpop.eup %8313  ;;  %v4457_v58 = vsel %vm4240_vm11, %v11275_v43, 0.0  ;;  %vm2950_vm6 = vcmp.lt.s32.totalorder %v12659_v25, %v2751_v19  ;;  %vm2951_vm7 = vcmp.lt.s32.totalorder %v12661_v53, %v2751_v19  ;;  %v2440_v19 = vcombine.high %v11239_v13, %v11239_v13 }
 0x386   : > { %v4985_v45 = vmul.f32 %v8314_v11, %v11159_v21  ;;  %v4986_v18 = vmul.f32 %v8314_v11, %v11161_v10  ;;  %v4445_v8 = vadd.f32 %v4444_v60, %v4443_v56  ;;  %v4469_v26 = vrot.slane %v4468_v27, 4 }
 0x387   : > { %v4458_v34 = vsel %vm4240_vm11, %v11278_v37, 0.0  ;;  %v7160_v10 = vsel %vm2950_vm6, 1.0, %v12663_v32  ;;  %v7161_v20 = vsel %vm2951_vm7, 1.0, %v12663_v32  ;;  %v8316_v9 = vpop.eup %8315  ;;  %v3480_v56 = vmax.f32 %v3478_v22, %v3479_v12 }
 0x388   : > { %v5093_v30 = vpack.c.bf16 %v4986_v18, %v4985_v45  ;;  %v4459_v21 = vadd.f32 %v4458_v34, %v4457_v58  ;;  %v4446_v29 = vrot.slane %v4445_v8, 1  ;;  %v4470_v63 = vadd.f32 %v4469_v26, %v4468_v27 }
 0x389   : > { %v11294_v62 = vmul.f32 %v8308_v36, %v7160_v10  ;;  %v11296_v11 = vmul.f32 %v8310_v41, %v7161_v20  ;;  %v3490_v60 = vmax.f32 %v11285_v51, %v11287_v44  ;;  %v3719_v41 = vrot.slane %v11218_v39, 1  ;;  %v11310_v20 = vpop.xlane.xlu0 %2052 }
 0x38a   : > { %5239 = vperm.xlu1 %7689, %v5093_v30   ;;  %v4460_v5 = vrot.slane %v4459_v21, 4  ;;  %v4447_v45 = vadd.f32 %v4446_v29, %v4445_v8  ;;  %v4471_v18 = vrot.slane %v4470_v63, 2  ;;  %v3489_v22 = vmax.f32 %v11226_v48, %v3488_v16  ;;  %v11312_v29 = vpop.xlane.xlu1 %2055 }
 0x38b   : > { %v4484_v58 = vsel %vm4240_vm11, %v11294_v62, 0.0  ;;  %v4485_v36 = vsel %vm4240_vm11, %v11296_v11, 0.0  ;;  %v3500_v26 = vrot.slane %v11260_v40, 2  ;;  %v2747_v13 = vrot.slane %v2440_v19, %v9423_v55 }
 0x38c   : > { %v4461_v12 = vadd.f32 %v4460_v5, %v4459_v21  ;;  %v4486_v27 = vadd.f32 %v4485_v36, %v4484_v58  ;;  %v4839_v34 = vmax.f32 %v4447_v45, 1e-30  ;;  %v4472_v30 = vadd.f32 %v4471_v18, %v4470_v63 }
 0x38d   : > { %v3481_v8 = vrot.slane %v3480_v56, 1  ;;  %v3491_v10 = vrot.slane %v3490_v60, 4  ;;  %vm2948_vm8 = vcmp.lt.s32.totalorder %v12659_v25, %v2747_v13  ;;  %vm2949_vm9 = vcmp.lt.s32.totalorder %v12661_v53, %v2747_v13 }
 0x38e   : > { %v4462_v28 = vrot.slane %v4461_v12, 2  ;;  %v4487_v61 = vrot.slane %v4486_v27, 4  ;;  %v8318_v17 = vpop.eup %8317  ;;  %8319 = vrcp.f32 %v4839_v34  ;;  %v4473_v24 = vrot.slane %v4472_v30, 1 }
 0x38f   : > { %v4991_v5 = vmul.f32 %v8318_v17, %v11186_v46  ;;  %v4992_v48 = vmul.f32 %v8318_v17, %v11188_v6  ;;  %v3786_v63 = vsub.f32 %v11144_v47, %v3489_v22  ;;  %v3787_v19 = vsub.f32 %v11146_v52, %v3489_v22  ;;  %v11326_v6 = vpop.xlane.xlu0 %2046  ;;  %v11328_v47 = vpop.xlane.xlu1 %2049 }
 0x390   : > { %v4463_v16 = vadd.f32 %v4462_v28, %v4461_v12  ;;  %v4488_v21 = vadd.f32 %v4487_v61, %v4486_v27  ;;  %v4474_v45 = vadd.f32 %v4473_v24, %v4472_v30  ;;  %v7158_v18 = vsel %vm2948_vm8, 1.0, %v12663_v32 }
 0x391   : > { %v5096_v58 = vpack.c.bf16 %v4992_v48, %v4991_v5  ;;  %v7159_v3 = vsel %vm2949_vm9, 1.0, %v12663_v32  ;;  %v3482_v0 = vmax.f32 %v3480_v56, %v3481_v8  ;;  %v3501_v13 = vmax.f32 %v11260_v40, %v3500_v26 }
 0x392   : > { %v4464_v36 = vrot.slane %v4463_v16, 1  ;;  %v4489_v34 = vrot.slane %v4488_v21, 2  ;;  %v4842_v46 = vmax.f32 %v4474_v45, 1e-30  ;;  %v11324_v17 = vmul.f32 %v11270_v38, %v7158_v18 }
 0x393   : > { %v3492_v61 = vmax.f32 %v3490_v60, %v3491_v10  ;;  %5254 = vperm.xlu1 %7689, %v5096_v58   ;;  %v11330_v28 = vmul.f32 %v8316_v9, %v7159_v3  ;;  %v3972_v22 = vmul.f32 1.442695, %v3786_v63  ;;  %v3511_v56 = vmax.f32 %v11310_v20, %v11312_v29  ;;  %v11346_v63 = vpop.xlane.xlu0 %2064 }
 0x394   : > { %v4465_v24 = vadd.f32 %v4464_v36, %v4463_v16  ;;  %v4490_v52 = vadd.f32 %v4489_v34, %v4488_v21  ;;  %8321 = vrcp.f32 %v4842_v46  ;;  %v4475_v40 = vsel %vm4240_vm11, %v11324_v17, 0.0 }
 0x395   : > { %v3720_v38 = vmax.f32 %v11218_v39, %v3719_v41  ;;  %v4476_v27 = vsel %vm4240_vm11, %v11330_v28, 0.0  ;;  %v3974_v26 = vmul.f32 1.442695, %v3787_v19  ;;  %v3784_v30 = vsub.f32 %v11190_v57, %v3482_v0  ;;  %v11348_v57 = vpop.xlane.xlu1 %2067 }
 0x396   : > { %v4841_v60 = vmax.f32 %v4465_v24, 1e-30  ;;  %v4491_v12 = vrot.slane %v4490_v52, 1  ;;  %v3502_v3 = vrot.slane %v3501_v13, 1  ;;  %v4477_v9 = vadd.f32 %v4476_v27, %v4475_v40 }
 0x397   : > { %v12696_v8 = vsub.f32 %v10894_v7, %v11166_v14  ;;  %v3493_v5 = vrot.slane %v3492_v61, 2  ;;  %v3785_v39 = vsub.f32 %v11192_v1, %v3482_v0  ;;  %v3512_v41 = vrot.slane %v3511_v56, 4 }
 0x398   : > { %8323 = vrcp.f32 %v4841_v60  ;;  %v4492_v48 = vadd.f32 %v4491_v12, %v4490_v52  ;;  %v8320_v16 = vpop.eup %8319  ;;  %v2395_v21 = vcombine.high %v11206_v59, %v11206_v59  ;;  %v4478_v18 = vrot.slane %v4477_v9, 4  ;;  %v11360_v12 = vpop.xlane.xlu0 %2058 }
 0x399   : > { %v4096_v10 = vmul.f32 1.442695, %v12696_v8  ;;  %8325 = vpow2.f32 %v3972_v22  ;;  %v4989_v19 = vmul.f32 %v8320_v16, %v11236_v42  ;;  %v4990_v7 = vmul.f32 %v8320_v16, %v11243_v15 }
 0x39a   : > { %v4844_v45 = vmax.f32 %v4492_v48, 1e-30  ;;  %v3852_v58 = vsub.f32 %v10960_v31, %v3720_v38  ;;  %8327 = vpow2.f32 %v3974_v26  ;;  %v3968_v36 = vmul.f32 1.442695, %v3784_v30 }
 0x39b   : > { %v3503_v34 = vmax.f32 %v3501_v13, %v3502_v3  ;;  %v3494_v0 = vmax.f32 %v3492_v61, %v3493_v5  ;;  %v5095_v1 = vpack.c.bf16 %v4990_v7, %v4989_v19  ;;  %v4479_v46 = vadd.f32 %v4478_v18, %v4477_v9 }
 0x39c   : > { %8329 = vrcp.f32 %v4844_v45  ;;  %v12697_v59 = vsub.f32 %v10896_v4, %v11166_v14  ;;  %v3970_v42 = vmul.f32 1.442695, %v3785_v39  ;;  %v2409_v15 = vrot.slane %v2395_v21, %v9365_v23  ;;  %v11362_v4 = vpop.xlane.xlu1 %2061 }
 0x39d   : > { %8331 = vpow2.f32 %v11005_v2  ;;  %v3853_v52 = vsub.f32 %v10962_v35, %v3720_v38  ;;  %v3513_v31 = vmax.f32 %v3511_v56, %v3512_v41  ;;  %5249 = vperm.xlu1 %7689, %v5095_v1   ;;  %v4480_v22 = vrot.slane %v4479_v46, 2 }
 0x39e   : > { %v4098_v24 = vmul.f32 1.442695, %v12697_v59  ;;  %8333 = vpow2.f32 %v4096_v10  ;;  %v8322_v13 = vpop.eup %8321  ;;  %v4104_v61 = vmul.f32 1.442695, %v3852_v58  ;;  %v3790_v40 = vsub.f32 %v11220_v49, %v3503_v34 }
 0x39f   : > { %8335 = vpow2.f32 %v3968_v36  ;;  %v2411_v60 = vcombine.high %v2409_v15, %v2409_v15  ;;  %v3495_v2 = vrot.slane %v3494_v0, 1  ;;  %v4995_v14 = vmul.f32 %v8322_v13, %v11258_v33 }
 0x3a0   : > { %v4996_v27 = vmul.f32 %v8322_v13, %v11263_v50  ;;  %v4481_v26 = vadd.f32 %v4480_v22, %v4479_v46  ;;  %8337 = vpow2.f32 %v3970_v42  ;;  %v3791_v35 = vsub.f32 %v11222_v54, %v3503_v34  ;;  %v11383_v58 = vpop.xlane.xlu1 %2079 }
 0x3a1   : > { %v3504_v56 = vmax.f32 %v11326_v6, %v11328_v47  ;;  %v11370_v38 = vrot.slane %v2411_v60, %v9365_v23  ;;  %8339 = vpow2.f32 %v4098_v24  ;;  %v3514_v30 = vrot.slane %v3513_v31, 2 }
 0x3a2   : > { %v8324_v49 = vpop.eup %8323  ;;  %v5098_v3 = vpack.c.bf16 %v4996_v27, %v4995_v14  ;;  %v4482_v9 = vrot.slane %v4481_v26, 1  ;;  %8341 = vpow2.f32 %v4104_v61  ;;  %v4106_v33 = vmul.f32 1.442695, %v3853_v52 }
 0x3a3   : > { %v8326_v8 = vpop.eup %8325  ;;  %v4993_v50 = vmul.f32 %v8324_v49, %v11275_v43  ;;  %v4994_v10 = vmul.f32 %v8324_v49, %v11278_v37  ;;  %v3980_v5 = vmul.f32 1.442695, %v3790_v40  ;;  %v3496_v54 = vmax.f32 %v3494_v0, %v3495_v2  ;;  %v11381_v37 = vpop.xlane.xlu0 %2076 }
 0x3a4   : > { %5264 = vperm.xlu0 %7690, %v5098_v3   ;;  %v4483_v48 = vadd.f32 %v4482_v9, %v4481_v26  ;;  %v2759_v16 = vrot.slane %v11370_v38, %v9423_v55  ;;  %v8328_v39 = vpop.eup %8327  ;;  %v3982_v41 = vmul.f32 1.442695, %v3791_v35  ;;  %v3505_v21 = vrot.slane %v3504_v56, 4  ;;  %v11415_v26 = vpop.xlane.xlu1 %2073 }
 0x3a5   : > { %v5097_v19 = vpack.c.bf16 %v4994_v10, %v4993_v50  ;;  %v11377_v7 = vrot.slane %v2409_v15, %v9365_v23  ;;  %v3515_v18 = vmax.f32 %v3513_v31, %v3514_v30  ;;  %v3525_v43 = vmax.f32 %v11346_v63, %v11348_v57 }
 0x3a6   : > { %v8330_v45 = vpop.eup %8329  ;;  %v4843_v36 = vmax.f32 %v4483_v48, 1e-30  ;;  %vm2954_vm10 = vcmp.lt.s32.totalorder %v12659_v25, %v2759_v16  ;;  %vm2955_vm12 = vcmp.lt.s32.totalorder %v12661_v53, %v2759_v16  ;;  %v3788_v24 = vsub.f32 %v11285_v51, %v3496_v54 }
 0x3a7   : > { %v11386_v34 = vpop.eup %8331  ;;  %5259 = vperm.xlu1 %7689, %v5097_v19   ;;  %v4999_v0 = vmul.f32 %v8330_v45, %v11294_v62  ;;  %v5000_v1 = vmul.f32 %v8330_v45, %v11296_v11  ;;  %v7164_v46 = vsel %vm2954_vm10, 1.0, %v12663_v32  ;;  %v7165_v42 = vsel %vm2955_vm12, 1.0, %v12663_v32  ;;  %v11413_v27 = vpop.xlane.xlu0 %2070 }
 0x3a8   : > { %v11392_v59 = vpop.eup %8333  ;;  %8343 = vrcp.f32 %v4843_v36  ;;  %v11396_v15 = vmul.f32 %v8326_v8, %v7164_v46  ;;  %v3789_v31 = vsub.f32 %v11287_v44, %v3496_v54  ;;  %v11399_v62 = vmul.f32 %v8328_v39, %v7165_v42 }
 0x3a9   : > { %v8336_v52 = vpop.eup %8335  ;;  %v5100_v22 = vpack.c.bf16 %v5000_v1, %v4999_v0  ;;  %v2755_v11 = vrot.slane %v11377_v7, %v9423_v55  ;;  %8345 = vpow2.f32 %v3980_v5  ;;  %v3516_v13 = vrot.slane %v3515_v18, 1  ;;  %v11436_v1 = vpop.xlane.xlu1 %2091 }
 0x3aa   : > { %v3506_v61 = vmax.f32 %v3504_v56, %v3505_v21  ;;  %v4502_v51 = vsel %vm4240_vm11, %v11396_v15, 0.0  ;;  %v8338_v40 = vpop.eup %8337  ;;  %v3526_v60 = vrot.slane %v3525_v43, 4  ;;  %v4503_v2 = vsel %vm4240_vm11, %v11399_v62, 0.0 }
 0x3ab   : > { %5274 = vperm.xlu0 %7690, %v5100_v22   ;;  %vm2952_vm13 = vcmp.lt.s32.totalorder %v12659_v25, %v2755_v11  ;;  %vm2953_vm14 = vcmp.lt.s32.totalorder %v12661_v53, %v2755_v11  ;;  %v11409_v44 = vpop.eup %8339  ;;  %8347 = vpow2.f32 %v3982_v41  ;;  %v3518_v14 = vmax.f32 %v11360_v12, %v11362_v4  ;;  %v11434_v0 = vpop.xlane.xlu0 %2088 }
 0x3ac   : > { %v4504_v35 = vadd.f32 %v4503_v2, %v4502_v51  ;;  %v7162_v56 = vsel %vm2952_vm13, 1.0, %v12663_v32  ;;  %v11418_v49 = vpop.eup %8341  ;;  %v3976_v30 = vmul.f32 1.442695, %v3788_v24  ;;  %v3978_v3 = vmul.f32 1.442695, %v3789_v31 }
 0x3ad   : > { %12698 = vst [vmem:[#allocation21_spill] sm:$0xff] %v11418_v49  ;;  %v7163_v9 = vsel %vm2953_vm14, 1.0, %v12663_v32  ;;  %v11421_v8 = vmul.f32 %v8336_v52, %v7162_v56  ;;  %v3517_v50 = vmax.f32 %v3515_v18, %v3516_v13  ;;  %v3507_v10 = vrot.slane %v3506_v61, 2 }
 0x3ae   : > { %v4505_v5 = vrot.slane %v4504_v35, 4  ;;  %v11423_v54 = vmul.f32 %v8338_v40, %v7163_v9  ;;  %8349 = vpow2.f32 %v4106_v33  ;;  %v3527_v48 = vmax.f32 %v3525_v43, %v3526_v60 }
 0x3af   : > { %v4493_v16 = vsel %vm4240_vm11, %v11421_v8, 0.0  ;;  %v3519_v39 = vrot.slane %v3518_v14, 4  ;;  %v3539_v41 = vmax.f32 %v11381_v37, %v11383_v58  ;;  %8351 = vpow2.f32 %v3976_v30  ;;  %v11447_v9 = vpop.xlane.xlu0 %2082 }
 0x3b0   : > { %v4506_v21 = vadd.f32 %v4505_v5, %v4504_v35  ;;  %v4494_v19 = vsel %vm4240_vm11, %v11423_v54, 0.0  ;;  %v2443_v18 = vcombine.high %v11370_v38, %v11370_v38  ;;  %8353 = vpow2.f32 %v3978_v3 }
 0x3b1   : > { %v4495_v45 = vadd.f32 %v4494_v19, %v4493_v16  ;;  %v3794_v33 = vsub.f32 %v11310_v20, %v3517_v50  ;;  %v3508_v43 = vmax.f32 %v3506_v61, %v3507_v10  ;;  %v3528_v24 = vrot.slane %v3527_v48, 2 }
 0x3b2   : > { %v8344_v36 = vpop.eup %8343  ;;  %v4507_v46 = vrot.slane %v4506_v21, 2  ;;  %v3520_v11 = vmax.f32 %v3518_v14, %v3519_v39  ;;  %v3540_v13 = vrot.slane %v3539_v41, 4  ;;  %v2767_v51 = vrot.slane %v2443_v18, %v9423_v55 }
 0x3b3   : > { %v4997_v42 = vmul.f32 %v8344_v36, %v11324_v17  ;;  %v4998_v52 = vmul.f32 %v8344_v36, %v11330_v28  ;;  %v4496_v31 = vrot.slane %v4495_v45, 4  ;;  %v8346_v22 = vpop.eup %8345  ;;  %v3795_v20 = vsub.f32 %v11312_v29, %v3517_v50  ;;  %v11449_v50 = vpop.xlane.xlu1 %2085 }
 0x3b4   : > { %v4508_v38 = vadd.f32 %v4507_v46, %v4506_v21  ;;  %v3532_v61 = vmax.f32 %v11413_v27, %v11415_v26  ;;  %v3988_v35 = vmul.f32 1.442695, %v3794_v33  ;;  %v3509_v56 = vrot.slane %v3508_v43, 1 }
 0x3b5   : > { %v5099_v40 = vpack.c.bf16 %v4998_v52, %v4997_v42  ;;  %v4497_v60 = vadd.f32 %v4496_v31, %v4495_v45  ;;  %v8348_v2 = vpop.eup %8347  ;;  %vm2958_vm15 = vcmp.lt.s32.totalorder %v12659_v25, %v2767_v51  ;;  %v3529_v28 = vmax.f32 %v3527_v48, %v3528_v24 }
 0x3b6   : > { %v4509_v17 = vrot.slane %v4508_v38, 1  ;;  %vm2959_vm0 = vcmp.lt.s32.totalorder %v12661_v53, %v2767_v51  ;;  %v7168_v30 = vsel %vm2958_vm15, 1.0, %v12663_v32  ;;  %v3521_v3 = vrot.slane %v3520_v11, 2 }
 0x3b7   : > { %5269 = vperm.xlu0 %7690, %v5099_v40   ;;  %v4498_v14 = vrot.slane %v4497_v60, 2  ;;  %v3541_v29 = vmax.f32 %v3539_v41, %v3540_v13  ;;  %v7169_v5 = vsel %vm2959_vm0, 1.0, %v12663_v32  ;;  %v3533_v39 = vrot.slane %v3532_v61, 4 }
 0x3b8   : > { %v4510_v10 = vadd.f32 %v4509_v17, %v4508_v38  ;;  %v11452_v16 = vpop.eup %8349  ;;  %v11454_v48 = vmul.f32 %v8346_v22, %v7168_v30  ;;  %v11456_v19 = vmul.f32 %v8348_v2, %v7169_v5  ;;  %v3990_v45 = vmul.f32 1.442695, %v3795_v20 }
 0x3b9   : > { %12699 = vst [vmem:[#allocation25_spill] sm:$0xff] %v11452_v16  ;;  %v4499_v21 = vadd.f32 %v4498_v14, %v4497_v60  ;;  %v3510_v18 = vmax.f32 %v3508_v43, %v3509_v56  ;;  %v3553_v41 = vmax.f32 %v11434_v0, %v11436_v1  ;;  %v8352_v33 = vpop.eup %8351  ;;  %v3546_v46 = vmax.f32 %v11447_v9, %v11449_v50 }
 0x3ba   : > { %v4846_v36 = vmax.f32 %v4510_v10, 1e-30  ;;  %v4520_v42 = vsel %vm4240_vm11, %v11454_v48, 0.0  ;;  %v4521_v52 = vsel %vm4240_vm11, %v11456_v19, 0.0  ;;  %v8354_v31 = vpop.eup %8353  ;;  %v3530_v22 = vrot.slane %v3529_v28, 1 }
 0x3bb   : > { %v4500_v24 = vrot.slane %v4499_v21, 1  ;;  %v3522_v13 = vmax.f32 %v3520_v11, %v3521_v3  ;;  %v4522_v43 = vadd.f32 %v4521_v52, %v4520_v42  ;;  %v3542_v38 = vrot.slane %v3541_v29, 2 }
 0x3bc   : > { %8355 = vrcp.f32 %v4846_v36  ;;  %v3534_v51 = vmax.f32 %v3532_v61, %v3533_v39  ;;  %v2441_v40 = vcombine.high %v11377_v7, %v11377_v7  ;;  %v3792_v60 = vsub.f32 %v11326_v6, %v3510_v18  ;;  %v11473_v6 = vpop.xlane.xlu0 %2100  ;;  %v11480_v36 = vld [vmem:[%s9357_s27 + $0x20] sm:$0xff] }
 0x3bd   : > { %v4501_v20 = vadd.f32 %v4500_v24, %v4499_v21  ;;  %8357 = vpow2.f32 %v3988_v35  ;;  %v4523_v2 = vrot.slane %v4522_v43, 4  ;;  %v3554_v56 = vrot.slane %v3553_v41, 4  ;;  %v11471_v35 = vpop.xlane.xlu1 %2187 }
 0x3be   : > { %8359 = vpow2.f32 %v3990_v45  ;;  %v3547_v17 = vrot.slane %v3546_v46, 4  ;;  %v3793_v30 = vsub.f32 %v11328_v47, %v3510_v18  ;;  %v3531_v10 = vmax.f32 %v3529_v28, %v3530_v22 }
 0x3bf   : > { %v4845_v14 = vmax.f32 %v4501_v20, 1e-30  ;;  %v4524_v11 = vadd.f32 %v4523_v2, %v4522_v43  ;;  %v2763_v3 = vrot.slane %v2441_v40, %v9423_v55  ;;  %v3523_v61 = vrot.slane %v3522_v13, 1 }
 0x3c0   : > { %v3543_v5 = vmax.f32 %v3541_v29, %v3542_v38  ;;  %v3535_v39 = vrot.slane %v3534_v51, 2  ;;  %v3984_v7 = vmul.f32 1.442695, %v3792_v60  ;;  %v3555_v47 = vmax.f32 %v3553_v41, %v3554_v56 }
 0x3c1   : > { %8361 = vrcp.f32 %v4845_v14  ;;  %v4525_v21 = vrot.slane %v4524_v11, 2  ;;  %vm2956_vm1 = vcmp.lt.s32.totalorder %v12659_v25, %v2763_v3  ;;  %vm2957_vm2 = vcmp.lt.s32.totalorder %v12661_v53, %v2763_v3  ;;  %v11498_v56 = vpop.xlane.xlu1 %2235 }
 0x3c2   : > { %v3548_v28 = vmax.f32 %v3546_v46, %v3547_v17  ;;  %v7166_v45 = vsel %vm2956_vm1, 1.0, %v12663_v32  ;;  %v7167_v18 = vsel %vm2957_vm2, 1.0, %v12663_v32  ;;  %v3798_v29 = vsub.f32 %v11346_v63, %v3531_v10  ;;  %v11500_v17 = vpop.xlane.xlu0 %2094 }
 0x3c3   : > { %v4526_v24 = vadd.f32 %v4525_v21, %v4524_v11  ;;  %v11483_v42 = vmul.f32 %v8352_v33, %v7166_v45  ;;  %v11485_v52 = vmul.f32 %v8354_v31, %v7167_v18  ;;  %v3799_v22 = vsub.f32 %v11348_v57, %v3531_v10 }
 0x3c4   : > { %v3524_v43 = vmax.f32 %v3522_v13, %v3523_v61  ;;  %v3544_v38 = vrot.slane %v3543_v5, 1  ;;  %v3536_v20 = vmax.f32 %v3534_v51, %v3535_v39  ;;  %v11494_v63 = vrot.slane %v11480_v36, %v9365_v23 }
 0x3c5   : > { %v4527_v46 = vrot.slane %v4526_v24, 1  ;;  %v4511_v40 = vsel %vm4240_vm11, %v11483_v42, 0.0  ;;  %v4512_v60 = vsel %vm4240_vm11, %v11485_v52, 0.0  ;;  %v3556_v33 = vrot.slane %v3555_v47, 2 }
 0x3c6   : > { %v8356_v41 = vpop.eup %8355  ;;  %v3549_v31 = vrot.slane %v3548_v28, 2  ;;  %8363 = vpow2.f32 %v3984_v7  ;;  %v3986_v51 = vmul.f32 1.442695, %v3793_v30  ;;  %v4513_v10 = vadd.f32 %v4512_v60, %v4511_v40  ;;  %v11509_v40 = vpop.xlane.xlu0 %2184 }
 0x3c7   : > { %v5003_v2 = vmul.f32 %v8356_v41, %v11396_v15  ;;  %v5004_v57 = vmul.f32 %v8356_v41, %v11399_v62  ;;  %v8358_v13 = vpop.eup %8357  ;;  %v4528_v14 = vadd.f32 %v4527_v46, %v4526_v24  ;;  %v3996_v3 = vmul.f32 1.442695, %v3798_v29  ;;  %v11511_v60 = vpop.xlane.xlu1 %2103 }
 0x3c8   : > { %v8360_v11 = vpop.eup %8359  ;;  %v3796_v61 = vsub.f32 %v11360_v12, %v3524_v43  ;;  %v3545_v39 = vmax.f32 %v3543_v5, %v3544_v38  ;;  %v3537_v45 = vrot.slane %v3536_v20, 1  ;;  %v4514_v15 = vrot.slane %v4513_v10, 4 }
 0x3c9   : > { %v5102_v21 = vpack.c.bf16 %v5004_v57, %v5003_v2  ;;  %v4848_v18 = vmax.f32 %v4528_v14, 1e-30  ;;  %v2459_v62 = vcombine.high %v11494_v63, %v11494_v63  ;;  %v3998_v30 = vmul.f32 1.442695, %v3799_v22 }
 0x3ca   : > { %v3797_v41 = vsub.f32 %v11362_v4, %v3524_v43  ;;  %v3557_v16 = vmax.f32 %v3555_v47, %v3556_v33  ;;  %v3550_v49 = vmax.f32 %v3548_v28, %v3549_v31  ;;  %v4515_v12 = vadd.f32 %v4514_v15, %v4513_v10 }
 0x3cb   : > { %v8362_v7 = vpop.eup %8361  ;;  %5284 = vperm.xlu0 %7690, %v5102_v21   ;;  %8365 = vrcp.f32 %v4848_v18  ;;  %v3992_v5 = vmul.f32 1.442695, %v3796_v61  ;;  %v3802_v38 = vsub.f32 %v11381_v37, %v3545_v39  ;;  %v3538_v46 = vmax.f32 %v3536_v20, %v3537_v45 }
 0x3cc   : > { %v5001_v24 = vmul.f32 %v8362_v7, %v11421_v8  ;;  %v5002_v29 = vmul.f32 %v8362_v7, %v11423_v54  ;;  %8367 = vpow2.f32 %v3986_v51  ;;  %v4516_v4 = vrot.slane %v4515_v12, 2 }
 0x3cd   : > { %v11514_v47 = vrot.slane %v2459_v62, %v9365_v23  ;;  %8369 = vpow2.f32 %v3996_v3  ;;  %v3994_v8 = vmul.f32 1.442695, %v3797_v41  ;;  %v3803_v54 = vsub.f32 %v11383_v58, %v3545_v39 }
 0x3ce   : > { %v5101_v22 = vpack.c.bf16 %v5002_v29, %v5001_v24  ;;  %v3558_v28 = vrot.slane %v3557_v16, 1  ;;  %8371 = vpow2.f32 %v3998_v30  ;;  %v3551_v43 = vrot.slane %v3550_v49, 1  ;;  %v11538_v29 = vpop.xlane.xlu0 %2232 }
 0x3cf   : > { %v4517_v33 = vadd.f32 %v4516_v4, %v4515_v12  ;;  %v2775_v37 = vrot.slane %v11514_v47, %v9423_v55  ;;  %8373 = vpow2.f32 %v3992_v5  ;;  %v4004_v20 = vmul.f32 1.442695, %v3802_v38 }
 0x3d0   : > { %5279 = vperm.xlu0 %7690, %v5101_v22   ;;  %v3665_v31 = vmax.f32 %v11509_v40, %v11471_v35  ;;  %v3567_v2 = vmax.f32 %v11473_v6, %v11511_v60  ;;  %v11523_v57 = vpop.eup %8363  ;;  %v3800_v58 = vsub.f32 %v11413_v27, %v3538_v46  ;;  %8375 = vpow2.f32 %v3994_v8 }
 0x3d1   : > { %v4518_v51 = vrot.slane %v4517_v33, 1  ;;  %vm2962_vm3 = vcmp.lt.s32.totalorder %v12659_v25, %v2775_v37  ;;  %vm2963_vm4 = vcmp.lt.s32.totalorder %v12661_v53, %v2775_v37  ;;  %v4006_v14 = vmul.f32 1.442695, %v3803_v54 }
 0x3d2   : > { %v3559_v10 = vmax.f32 %v3557_v16, %v3558_v28  ;;  %v7172_v3 = vsel %vm2962_vm3, 1.0, %v12663_v32  ;;  %v3552_v61 = vmax.f32 %v3550_v49, %v3551_v43  ;;  %v7173_v21 = vsel %vm2963_vm4, 1.0, %v12663_v32 }
 0x3d3   : > { %v4519_v39 = vadd.f32 %v4518_v51, %v4517_v33  ;;  %v11530_v45 = vmul.f32 %v8358_v13, %v7172_v3  ;;  %8377 = vpow2.f32 %v4004_v20  ;;  %v3666_v18 = vrot.slane %v3665_v31, 4  ;;  %v11540_v13 = vpop.xlane.xlu1 %2097 }
 0x3d4   : > { %v3568_v15 = vrot.slane %v3567_v2, 4  ;;  %v11532_v27 = vmul.f32 %v8360_v11, %v7173_v21  ;;  %v3801_v7 = vsub.f32 %v11415_v26, %v3538_v46  ;;  %v4000_v30 = vmul.f32 1.442695, %v3800_v58 }
 0x3d5   : > { %v8366_v62 = vpop.eup %8365  ;;  %v4847_v41 = vmax.f32 %v4519_v39, 1e-30  ;;  %v4538_v16 = vsel %vm4240_vm11, %v11530_v45, 0.0  ;;  %v3806_v49 = vsub.f32 %v11434_v0, %v3559_v10  ;;  %v3807_v26 = vsub.f32 %v11436_v1, %v3559_v10 }
 0x3d6   : > { %v8368_v24 = vpop.eup %8367  ;;  %v5007_v12 = vmul.f32 %v8366_v62, %v11454_v48  ;;  %v5008_v11 = vmul.f32 %v8366_v62, %v11456_v19  ;;  %v4539_v5 = vsel %vm4240_vm11, %v11532_v27, 0.0  ;;  %v3804_v38 = vsub.f32 %v11447_v9, %v3552_v61  ;;  %v11558_v9 = vpop.permute.xlu0 %5354 }
 0x3d7   : > { %8379 = vrcp.f32 %v4847_v41  ;;  %v4540_v46 = vadd.f32 %v4539_v5, %v4538_v16  ;;  %v11548_v22 = vpop.eup %8369  ;;  %v3667_v0 = vmax.f32 %v3665_v31, %v3666_v18  ;;  %v3569_v4 = vmax.f32 %v3567_v2, %v3568_v15  ;;  %12700 = vst [vmem:[#allocation18_spill] sm:$0xff] %v11558_v9 }
 0x3d8   : > { %v5104_v8 = vpack.c.bf16 %v5008_v11, %v5007_v12  ;;  %v11552_v54 = vrot.slane %v11494_v63, %v9365_v23  ;;  %v11554_v48 = vpop.eup %8371  ;;  %8381 = vpow2.f32 %v4006_v14  ;;  %v4002_v19 = vmul.f32 1.442695, %v3801_v7  ;;  %v5145_v14 = vpop.permute.xlu1 %5144 }
 0x3d9   : > { %v4541_v28 = vrot.slane %v4540_v46, 4  ;;  %v11556_v43 = vpop.eup %8373  ;;  %8383 = vpow2.f32 %v4000_v30  ;;  %v4012_v1 = vmul.f32 1.442695, %v3806_v49  ;;  %v4014_v37 = vmul.f32 1.442695, %v3807_v26  ;;  %v8450_v26 = vld [vmem:[%s8868_s11 + $0x8] sm:$0xff]  }
 0x3da   : > { %5294 = vperm.xlu0 %7690, %v5104_v8   ;;  %v2771_v33 = vrot.slane %v11552_v54, %v9423_v55  ;;  %v3805_v20 = vsub.f32 %v11449_v50, %v3552_v61  ;;  %v4008_v63 = vmul.f32 1.442695, %v3804_v38  ;;  %v11563_v2 = vpop.eup %8375  ;;  %v3668_v58 = vrot.slane %v3667_v0, 2  ;;  %v5140_v41 = vpop.permute.xlu0 %5139 }
 0x3db   : > { %v4542_v31 = vadd.f32 %v4541_v28, %v4540_v46  ;;  %v3570_v51 = vrot.slane %v3569_v4, 2  ;;  %8385 = vpow2.f32 %v4002_v19  ;;  %v3721_v10 = vmax.f32 %v11538_v29, %v11498_v56  ;;  %v8451_v19 = vld [vmem:[%s8868_s11] sm:$0xff]  }
 0x3dc   : > { %vm2960_vm5 = vcmp.lt.s32.totalorder %v12659_v25, %v2771_v33  ;;  %vm2961_vm6 = vcmp.lt.s32.totalorder %v12661_v53, %v2771_v33  ;;  %8387 = vpow2.f32 %v4012_v1  ;;  %v4010_v18 = vmul.f32 1.442695, %v3805_v20  ;;  %v5155_v38 = vpop.permute.xlu1 %5154 }
 0x3dd   : > { %v4543_v3 = vrot.slane %v4542_v31, 2  ;;  %v7170_v39 = vsel %vm2960_vm5, 1.0, %v12663_v32  ;;  %v11570_v21 = vpop.eup %8377  ;;  %v7171_v50 = vsel %vm2961_vm6, 1.0, %v12663_v32  ;;  %8389 = vpow2.f32 %v4014_v37 }
 0x3de   : > { %v11574_v61 = vmul.f32 %v11523_v57, %v7170_v39  ;;  %v11576_v62 = vmul.f32 %v8368_v24, %v7171_v50  ;;  %8391 = vpow2.f32 %v4008_v63  ;;  %v3669_v7 = vmax.f32 %v3667_v0, %v3668_v58 }
 0x3df   : > { %v4544_v15 = vadd.f32 %v4543_v3, %v4542_v31  ;;  %v3571_v30 = vmax.f32 %v3569_v4, %v3570_v51  ;;  %v3722_v12 = vrot.slane %v3721_v10, 4  ;;  %v3560_v11 = vmax.f32 %v11500_v17, %v11540_v13 }
 0x3e0   : > { %v4529_v16 = vsel %vm4240_vm11, %v11574_v61, 0.0  ;;  %v4530_v5 = vsel %vm4240_vm11, %v11576_v62, 0.0  ;;  %v5458_v24 = vmul.bf16 %v8450_v26, %v5145_v14  ;;  %8393 = vpow2.f32 %v4010_v18 }
 0x3e1   : > { %v8380_v49 = vpop.eup %8379  ;;  %v4545_v57 = vrot.slane %v4544_v15, 1  ;;  %v4531_v4 = vadd.f32 %v4530_v5, %v4529_v16  ;;  %v5457_v28 = vmul.bf16 %v8451_v19, %v5140_v41  ;;  %v3670_v37 = vrot.slane %v3669_v7, 1 }
 0x3e2   : > { %v5005_v46 = vmul.f32 %v8380_v49, %v11483_v42  ;;  %v5006_v0 = vmul.f32 %v8380_v49, %v11485_v52  ;;  %v11587_v8 = vpop.eup %8381  ;;  %v2491_v31 = vcombine.high %v11514_v47, %v11514_v47  ;;  %v3572_v58 = vrot.slane %v3571_v30, 1 }
 0x3e3   : > { %v4546_v1 = vadd.f32 %v4545_v57, %v4544_v15  ;;  %v11590_v33 = vpop.eup %8383  ;;  %v4532_v63 = vrot.slane %v4531_v4, 4  ;;  %v3723_v42 = vmax.f32 %v3721_v10, %v3722_v12  ;;  %v3561_v51 = vrot.slane %v3560_v11, 4  ;;  %v8452_v15 = vld [vmem:[%s8868_s11 + $0x18] sm:$0xff]   ;;  %v5150_v10 = vpop.permute.xlu1 %5149 }
 0x3e4   : > { %v5103_v20 = vpack.c.bf16 %v5006_v0, %v5005_v46  ;;  %v5523_v14 = vunpack.c.l.bf16 %v5458_v24  ;;  %v5524_v3 = vunpack.c.h.bf16 %v5458_v24  ;;  %v2783_v50 = vrot.slane %v2491_v31, %v9423_v55 }
 0x3e5   : > { %v4850_v52 = vmax.f32 %v4546_v1, 1e-30  ;;  %v4533_v39 = vadd.f32 %v4532_v63, %v4531_v4  ;;  %v11595_v18 = vpop.eup %8385  ;;  %v5460_v41 = vmul.bf16 %v8452_v15, %v5155_v38  ;;  %v5521_v16 = vunpack.c.l.bf16 %v5457_v28  ;;  %v11618_v63 = vpop.permute.xlu0 %5349 }
 0x3e6   : > { %5289 = vperm.xlu0 %7690, %v5103_v20   ;;  %v5522_v49 = vunpack.c.h.bf16 %v5457_v28  ;;  %v11598_v57 = vpop.eup %8387  ;;  %v11600_v47 = vmax.f32 %v3669_v7, %v3670_v37  ;;  %vm2966_vm7 = vcmp.lt.s32.totalorder %v12659_v25, %v2783_v50  ;;  %vm2967_vm8 = vcmp.lt.s32.totalorder %v12661_v53, %v2783_v50  ;;  %12701 = vst [vmem:[#allocation32_spill] sm:$0xff] %v11618_v63 }
 0x3e7   : > { %8395 = vrcp.f32 %v4850_v52  ;;  %v4534_v12 = vrot.slane %v4533_v39, 2  ;;  %v11604_v5 = vpop.eup %8389  ;;  %v11606_v26 = vmax.f32 %v3571_v30, %v3572_v58  ;;  %v3724_v24 = vrot.slane %v3723_v42, 2 }
 0x3e8   : > { %v7176_v38 = vsel %vm2966_vm7, 1.0, %v12663_v32  ;;  %v7177_v46 = vsel %vm2967_vm8, 1.0, %v12663_v32  ;;  %v11610_v0 = vpop.eup %8391  ;;  %v3562_v4 = vmax.f32 %v3560_v11, %v3561_v51  ;;  %v5656_v1 = vadd.f32 %v5524_v3, %v5523_v14  ;;  %v8453_v14 = vld [vmem:[%s8868_s11 + $0x10] sm:$0xff]  }
 0x3e9   : > { %v4535_v7 = vadd.f32 %v4534_v12, %v4533_v39  ;;  %v11613_v19 = vmul.f32 %v11548_v22, %v7176_v38  ;;  %v11616_v28 = vmul.f32 %v11554_v48, %v7177_v46  ;;  %v5527_v37 = vunpack.c.l.bf16 %v5460_v41 }
 0x3ea   : > { %v5528_v30 = vunpack.c.h.bf16 %v5460_v41  ;;  %v5649_v20 = vadd.f32 %v5522_v49, %v5521_v16  ;;  %v2489_v22 = vcombine.high %v11552_v54, %v11552_v54  ;;  %v11626_v51 = vpop.eup %8393  ;;  %v3838_v48 = vsub.f32 %v11509_v40, %v11600_v47  ;;  %v11635_v41 = vpop.permute.xlu1 %5164 }
 0x3eb   : > { %v4536_v31 = vrot.slane %v4535_v7, 1  ;;  %v4556_v58 = vsel %vm4240_vm11, %v11613_v19, 0.0  ;;  %v4557_v11 = vsel %vm4240_vm11, %v11616_v28, 0.0  ;;  %v3839_v52 = vsub.f32 %v11471_v35, %v11600_v47 }
 0x3ec   : > { %v5459_v3 = vmul.bf16 %v8453_v14, %v5150_v10  ;;  %v4558_v39 = vadd.f32 %v4557_v11, %v4556_v58  ;;  %v3810_v50 = vsub.f32 %v11473_v6, %v11606_v26  ;;  %v3725_v15 = vmax.f32 %v3723_v42, %v3724_v24 }
 0x3ed   : > { %v4537_v16 = vadd.f32 %v4536_v31, %v4535_v7  ;;  %v2779_v54 = vrot.slane %v2489_v22, %v9423_v55  ;;  %v3563_v49 = vrot.slane %v3562_v4, 2  ;;  %v5657_v12 = vrot.slane %v5656_v1, 4 }
 0x3ee   : > { %v5670_v38 = vadd.f32 %v5528_v30, %v5527_v37  ;;  %v4559_v46 = vrot.slane %v4558_v39, 4  ;;  %v5650_v40 = vrot.slane %v5649_v20, 4  ;;  %v5525_v47 = vunpack.c.l.bf16 %v5459_v3  ;;  %v11644_v37 = vpop.permute.xlu0 %5364 }
 0x3ef   : > { %v4849_v63 = vmax.f32 %v4537_v16, 1e-30  ;;  %vm2964_vm9 = vcmp.lt.s32.totalorder %v12659_v25, %v2779_v54  ;;  %vm2965_vm10 = vcmp.lt.s32.totalorder %v12661_v53, %v2779_v54  ;;  %v5526_v24 = vunpack.c.h.bf16 %v5459_v3  ;;  %12702 = vst [vmem:[#allocation35_spill] sm:$0xff] %v11644_v37 }
 0x3f0   : > { %v4560_v10 = vadd.f32 %v4559_v46, %v4558_v39  ;;  %v7174_v6 = vsel %vm2964_vm9, 1.0, %v12663_v32  ;;  %v7175_v42 = vsel %vm2965_vm10, 1.0, %v12663_v32  ;;  %v3726_v30 = vrot.slane %v3725_v15, 1 }
 0x3f1   : > { %v8396_v35 = vpop.eup %8395  ;;  %8397 = vrcp.f32 %v4849_v63  ;;  %v11647_v11 = vmul.f32 %v11556_v43, %v7174_v6  ;;  %v11650_v22 = vmul.f32 %v11563_v2, %v7175_v42  ;;  %v3811_v14 = vsub.f32 %v11511_v60, %v11606_v26 }
 0x3f2   : > { %v5011_v7 = vmul.f32 %v8396_v35, %v11530_v45  ;;  %v5012_v31 = vmul.f32 %v8396_v35, %v11532_v27  ;;  %v4561_v58 = vrot.slane %v4560_v10, 2  ;;  %v3564_v39 = vmax.f32 %v3562_v4, %v3563_v49  ;;  %v11654_v45 = vpop.permute.xlu1 %5159 }
 0x3f3   : > { %v5658_v3 = vadd.f32 %v5657_v12, %v5656_v1  ;;  %v5651_v27 = vadd.f32 %v5650_v40, %v5649_v20  ;;  %v4547_v63 = vsel %vm4240_vm11, %v11647_v11, 0.0  ;;  %v4548_v43 = vsel %vm4240_vm11, %v11650_v22, 0.0  ;;  %v11662_v12 = vpop.permute.xlu0 %5359 }
 0x3f4   : > { %v5106_v16 = vpack.c.bf16 %v5012_v31, %v5011_v7  ;;  %v4562_v54 = vadd.f32 %v4561_v58, %v4560_v10  ;;  %v4076_v46 = vmul.f32 1.442695, %v3838_v48  ;;  %v5671_v35 = vrot.slane %v5670_v38, 4  ;;  %12703 = vst [vmem:[#allocation14_spill] sm:$0xff] %v11662_v12 }
 0x3f5   : > { %v5663_v2 = vadd.f32 %v5526_v24, %v5525_v47  ;;  %v4549_v6 = vadd.f32 %v4548_v43, %v4547_v63  ;;  %v4078_v42 = vmul.f32 1.442695, %v3839_v52  ;;  %v3727_v60 = vmax.f32 %v3725_v15, %v3726_v30 }
 0x3f6   : > { %5304 = vperm.xlu0 %7690, %v5106_v16   ;;  %v4563_v26 = vrot.slane %v4562_v54, 1  ;;  %v2444_v4 = vcombine.high %v11480_v36, %v11480_v36  ;;  %v4020_v1 = vmul.f32 1.442695, %v3810_v50  ;;  %v3565_v20 = vrot.slane %v3564_v39, 1  ;;  %v11665_v52 = vpop.permute.xlu1 %5174 }
 0x3f7   : > { %v5659_v49 = vrot.slane %v5658_v3, 2  ;;  %v4550_v40 = vrot.slane %v4549_v6, 4  ;;  %v4022_v10 = vmul.f32 1.442695, %v3811_v14  ;;  %v5652_v7 = vrot.slane %v5651_v27, 2 }
 0x3f8   : > { %v4564_v31 = vadd.f32 %v4563_v26, %v4562_v54  ;;  %v2458_v48 = vrot.slane %v2444_v4, %v9365_v23  ;;  %8399 = vpow2.f32 %v4076_v46  ;;  %v5672_v47 = vadd.f32 %v5671_v35, %v5670_v38  ;;  %v11675_v26 = vpop.permute.xlu0 %5374 }
 0x3f9   : > { %v5664_v24 = vrot.slane %v5663_v2, 4  ;;  %v4551_v15 = vadd.f32 %v4550_v40, %v4549_v6  ;;  %8401 = vpow2.f32 %v4078_v42  ;;  %v3854_v36 = vsub.f32 %v11538_v29, %v3727_v60  ;;  %v8454_v42 = vld [vmem:[%s8868_s11 + $0x28] sm:$0xff]   ;;  %12704 = vst [vmem:[#allocation28_spill] sm:$0xff] %v11675_v26 }
 0x3fa   : > { %v4852_v50 = vmax.f32 %v4564_v31, 1e-30  ;;  %v2460_v30 = vcombine.high %v2458_v48, %v2458_v48  ;;  %v3855_v16 = vsub.f32 %v11498_v56, %v3727_v60  ;;  %v11669_v14 = vmax.f32 %v3564_v39, %v3565_v20 }
 0x3fb   : > { %v8398_v58 = vpop.eup %8397  ;;  %v5660_v54 = vadd.f32 %v5659_v49, %v5658_v3  ;;  %v4552_v63 = vrot.slane %v4551_v15, 2  ;;  %v5653_v43 = vadd.f32 %v5652_v7, %v5651_v27  ;;  %v5673_v35 = vrot.slane %v5672_v47, 2 }
 0x3fc   : > { %v5009_v38 = vmul.f32 %v8398_v58, %v11574_v61  ;;  %v5010_v46 = vmul.f32 %v8398_v58, %v11576_v62  ;;  %8403 = vrcp.f32 %v4852_v50  ;;  %v5665_v6 = vadd.f32 %v5664_v24, %v5663_v2  ;;  %v11682_v61 = vpop.permute.xlu1 %5169 }
 0x3fd   : > { %v5462_v29 = vmul.bf16 %v8454_v42, %v11635_v41  ;;  %v4553_v4 = vadd.f32 %v4552_v63, %v4551_v15  ;;  %8405 = vpow2.f32 %v4020_v1  ;;  %v11678_v39 = vrot.slane %v2460_v30, %v9365_v23  ;;  %v11697_v15 = vpop.permute.xlu0 %5369 }
 0x3fe   : > { %v5105_v56 = vpack.c.bf16 %v5010_v46, %v5009_v38  ;;  %8407 = vpow2.f32 %v4022_v10  ;;  %v4108_v3 = vmul.f32 1.442695, %v3854_v36  ;;  %v11680_v27 = vmul.f32 1.442695, %v3855_v16  ;;  %12705 = vst [vmem:[#allocation37_spill] sm:$0xff] %v11697_v15 }
 0x3ff   : > { %v4554_v62 = vrot.slane %v4553_v4, 1  ;;  %v3808_v2 = vsub.f32 %v11500_v17, %v11669_v14  ;;  %v5661_v60 = vrot.slane %v5660_v54, 1  ;;  %v5654_v41 = vrot.slane %v5653_v43, 1 }
 0x400   : > { %5299 = vperm.xlu1 %7689, %v5105_v56   ;;  %v2791_v1 = vrot.slane %v11678_v39, %v9423_v55  ;;  %v5674_v20 = vadd.f32 %v5673_v35, %v5672_v47  ;;  %v5666_v49 = vrot.slane %v5665_v6, 2  ;;  %v5531_v40 = vunpack.c.l.bf16 %v5462_v29  ;;  %v11706_v46 = vpop.permute.xlu1 %5379 }
 0x401   : > { %v4555_v7 = vadd.f32 %v4554_v62, %v4553_v4  ;;  %v5532_v10 = vunpack.c.h.bf16 %v5462_v29  ;;  %v11691_v31 = vrot.slane %v2458_v48, %v9365_v23  ;;  %8409 = vpow2.f32 %v4108_v3  ;;  %12706 = vst [vmem:[#allocation29_spill] sm:$0xff] %v11706_v46  ;;  %v8455_v29 = vld [vmem:[%s8868_s11 + $0x20] sm:$0xff]  }
 0x402   : > { %vm2970_vm12 = vcmp.lt.s32.totalorder %v12659_v25, %v2791_v1  ;;  %vm2971_vm13 = vcmp.lt.s32.totalorder %v12661_v53, %v2791_v1  ;;  %v11693_v24 = vpop.eup %8399  ;;  %v3809_v17 = vsub.f32 %v11540_v13, %v11669_v14  ;;  %v5662_v30 = vadd.f32 %v5661_v60, %v5660_v54 }
 0x403   : > { %v4851_v47 = vmax.f32 %v4555_v7, 1e-30  ;;  %v7180_v36 = vsel %vm2970_vm12, 1.0, %v12663_v32  ;;  %v11700_v50 = vpop.eup %8401  ;;  %v5655_v58 = vadd.f32 %v5654_v41, %v5653_v43  ;;  %v7181_v16 = vsel %vm2971_vm13, 1.0, %v12663_v32 }
 0x404   : > { %v11704_v48 = vmul.f32 %v11570_v21, %v7180_v36  ;;  %v4016_v63 = vmul.f32 1.442695, %v3808_v2  ;;  %v5667_v38 = vadd.f32 %v5666_v49, %v5665_v6  ;;  %v11709_v13 = vmul.f32 %v11587_v8, %v7181_v16  ;;  %v11726_v49 = vpop.permute.xlu0 %5384  ;;  %v5185_v36 = vpop.permute.xlu1 %5184 }
 0x405   : > { %8411 = vrcp.f32 %v4851_v47  ;;  %v5675_v35 = vrot.slane %v5674_v20, 1  ;;  %v5684_v42 = vadd.f32 %v5532_v10, %v5531_v40  ;;  %v2787_v43 = vrot.slane %v11691_v31, %v9423_v55  ;;  %12707 = vst [vmem:[#allocation17_spill] sm:$0xff] %v11726_v49 }
 0x406   : > { %v8404_v14 = vpop.eup %8403  ;;  %v4574_v54 = vsel %vm4240_vm11, %v11704_v48, 0.0  ;;  %v5461_v21 = vmul.bf16 %v8455_v29, %v11654_v45  ;;  %v4575_v8 = vsel %vm4240_vm11, %v11709_v13, 0.0  ;;  %v6106_v3 = vpack.c.bf16 %v5662_v30, %v5662_v30 }
 0x407   : > { %v5015_v6 = vmul.f32 %v8404_v14, %v11613_v19  ;;  %v5016_v4 = vmul.f32 %v8404_v14, %v11616_v28  ;;  %v11721_v56 = vpop.eup %8405  ;;  %v6105_v62 = vpack.c.bf16 %v5655_v58, %v5655_v58  ;;  %v4576_v2 = vadd.f32 %v4575_v8, %v4574_v54 }
 0x408   : > { %vm2968_vm14 = vcmp.lt.s32.totalorder %v12659_v25, %v2787_v43  ;;  %v11724_v60 = vpop.eup %8407  ;;  %v5668_v41 = vrot.slane %v5667_v38, 1  ;;  %vm2969_vm15 = vcmp.lt.s32.totalorder %v12661_v53, %v2787_v43  ;;  %v11730_v28 = vadd.f32 %v5675_v35, %v5674_v20 }
 0x409   : > { %v5108_v1 = vpack.c.bf16 %v5016_v4, %v5015_v6  ;;  %v7178_v19 = vsel %vm2968_vm14, 1.0, %v12663_v32  ;;  %v5685_v45 = vrot.slane %v5684_v42, 4  ;;  %v4577_v40 = vrot.slane %v4576_v2, 4 }
 0x40a   : > { %v7179_v7 = vsel %vm2969_vm15, 1.0, %v12663_v32  ;;  %v5529_v10 = vunpack.c.l.bf16 %v5461_v21  ;;  %v5530_v47 = vunpack.c.h.bf16 %v5461_v21  ;;  %v11734_v30 = vmul.f32 %v11590_v33, %v7178_v19 }
 0x40b   : > { %5314 = vperm.xlu1 %7689, %v5108_v1   ;;  %v11737_v58 = vmul.f32 %v11595_v18, %v7179_v7  ;;  %8413 = vpow2.f32 %v11680_v27  ;;  %v11740_v16 = vmul.f32 1.442695, %v3809_v17  ;;  %v6257_v20 = vunpack.c.l.b16 %v6105_v62  ;;  %v11742_v35 = vpop.eup %8409 }
 0x40c   : > { %v4578_v14 = vadd.f32 %v4577_v40, %v4576_v2  ;;  %vm6321_vm0 = vcmask 1041409   ;;  %v11744_v54 = vadd.f32 %v5668_v41, %v5667_v38  ;;  %v4565_v43 = vsel %vm4240_vm11, %v11734_v30, 0.0  ;;  %v5205_v38 = vpop.permute.xlu0 %5204  ;;  %v8456_v41 = vld [vmem:[%s8868_s11 + $0x30] sm:$0xff]  }
 0x40d   : > { %v4566_v33 = vsel %vm4240_vm11, %v11737_v58, 0.0  ;;  %v6258_v18 = vunpack.c.l.b16 %v6106_v3  ;;  %v5686_v29 = vadd.f32 %v5685_v45, %v5684_v42  ;;  %8415 = vpow2.f32 %v4016_v63  ;;  %v11763_v45 = vpop.permute.xlu1 %5394 }
 0x40e   : > { %v4579_v21 = vrot.slane %v4578_v14, 2  ;;  %v4567_v27 = vadd.f32 %v4566_v33, %v4565_v43  ;;  %v5677_v4 = vadd.f32 %v5530_v47, %v5529_v10  ;;  %v2492_v8 = vcombine.high %v11678_v39, %v11678_v39  ;;  %12708 = vst [vmem:[#allocation24_spill] sm:$0xff] %v11763_v45  ;;  %v8457_v47 = vld [vmem:[%s8868_s11 + $0x48] sm:$0xff]   ;;  %v8459_v33 = vld [vmem:[%s8868_s11 + $0x38] sm:$0xff]  }
 0x40f   : > { %v8412_v17 = vpop.eup %8411  ;;  %v11755_v62 = vsel %vm6321_vm0, %v6258_v18, %v6257_v20  ;;  %v5463_v1 = vmul.bf16 %v8456_v41, %v11682_v61  ;;  %v5687_v40 = vrot.slane %v5686_v29, 2  ;;  %v11771_v18 = vmul.bf16 %v8459_v33, %v11665_v52 }
 0x410   : > { %v5013_v3 = vmul.f32 %v8412_v17, %v11647_v11  ;;  %v5014_v42 = vmul.f32 %v8412_v17, %v11650_v22  ;;  %v4580_v2 = vadd.f32 %v4579_v21, %v4578_v14  ;;  %v4568_v19 = vrot.slane %v4567_v27, 4  ;;  %v8458_v22 = vld [vmem:[%s8868_s11 + $0x68] sm:$0xff]  }
 0x411   : > { %v2799_v39 = vrot.slane %v2492_v8, %v9423_v55  ;;  %v5466_v11 = vmul.bf16 %v8457_v47, %v5185_v36  ;;  %v5678_v20 = vrot.slane %v5677_v4, 4  ;;  %v5470_v14 = vmul.bf16 %v8458_v22, %v5205_v38  ;;  %v8460_v47 = vld [vmem:[%s8868_s11 + $0x60] sm:$0xff]  }
 0x412   : > { %v5107_v7 = vpack.c.bf16 %v5014_v42, %v5013_v3  ;;  %v4581_v10 = vrot.slane %v4580_v2, 1  ;;  %v4569_v43 = vadd.f32 %v4568_v19, %v4567_v27  ;;  %v5533_v17 = vunpack.c.l.bf16 %v5463_v1  ;;  %v5200_v3 = vpop.permute.xlu0 %5199 }
 0x413   : > { %vm2974_vm1 = vcmp.lt.s32.totalorder %v12659_v25, %v2799_v39  ;;  %vm2975_vm2 = vcmp.lt.s32.totalorder %v12661_v53, %v2799_v39  ;;  %v5534_v8 = vunpack.c.h.bf16 %v5463_v1  ;;  %v5539_v41 = vunpack.c.l.bf16 %v5466_v11  ;;  %v5180_v1 = vpop.permute.xlu1 %5179 }
 0x414   : > { %5309 = vperm.xlu1 %7689, %v5107_v7   ;;  %v4582_v61 = vadd.f32 %v4581_v10, %v4580_v2  ;;  %v7184_v21 = vsel %vm2974_vm1, 1.0, %v12663_v32  ;;  %v4570_v36 = vrot.slane %v4569_v43, 2  ;;  %v7185_v38 = vsel %vm2975_vm2, 1.0, %v12663_v32 }
 0x415   : > { %v11776_v27 = vpop.eup %8413  ;;  %v11779_v52 = vmul.f32 %v11598_v57, %v7184_v21  ;;  %v11782_v2 = vmul.f32 %v11604_v5, %v7185_v38  ;;  %v5540_v19 = vunpack.c.h.bf16 %v5466_v11  ;;  %v5547_v39 = vunpack.c.l.bf16 %v5470_v14 }
 0x416   : > { %v4854_v42 = vmax.f32 %v4582_v61, 1e-30  ;;  %v5548_v7 = vunpack.c.h.bf16 %v5470_v14  ;;  %v4571_v10 = vadd.f32 %v4570_v36, %v4569_v43  ;;  %v5469_v22 = vmul.bf16 %v8460_v47, %v5200_v3  ;;  %v8461_v43 = vld [vmem:[%s8868_s11 + $0x40] sm:$0xff]  }
 0x417   : > { %v4592_v33 = vsel %vm4240_vm11, %v11779_v52, 0.0  ;;  %v4593_v61 = vsel %vm4240_vm11, %v11782_v2, 0.0  ;;  %v11789_v57 = vpop.eup %8415  ;;  %v5679_v21 = vadd.f32 %v5678_v20, %v5677_v4  ;;  %v5691_v5 = vadd.f32 %v5534_v8, %v5533_v17 }
 0x418   : > { %8417 = vrcp.f32 %v4854_v42  ;;  %v4572_v38 = vrot.slane %v4571_v10, 1  ;;  %v4594_v11 = vadd.f32 %v4593_v61, %v4592_v33  ;;  %v5688_v6 = vadd.f32 %v5687_v40, %v5686_v29 }
 0x419   : > { %v5535_v14 = vunpack.c.l.bf16 %v11771_v18  ;;  %v5465_v36 = vmul.bf16 %v8461_v43, %v5180_v1  ;;  %v2490_v3 = vcombine.high %v11691_v31, %v11691_v31  ;;  %v5536_v42 = vunpack.c.h.bf16 %v11771_v18 }
 0x41a   : > { %v5712_v47 = vadd.f32 %v5540_v19, %v5539_v41  ;;  %v4573_v63 = vadd.f32 %v4572_v38, %v4571_v10  ;;  %v4595_v45 = vrot.slane %v4594_v11, 4  ;;  %v5740_v49 = vadd.f32 %v5548_v7, %v5547_v39 }
 0x41b   : > { %v5545_v46 = vunpack.c.l.bf16 %v5469_v22  ;;  %v5546_v15 = vunpack.c.h.bf16 %v5469_v22  ;;  %v2795_v4 = vrot.slane %v2490_v3, %v9423_v55  ;;  %vm6323_vm3 = vcmask 1042434   ;;  %v5215_v3 = vpop.permute.xlu0 %5214 }
 0x41c   : > { %v5680_v20 = vrot.slane %v5679_v21, 2  ;;  %v5692_v29 = vrot.slane %v5691_v5, 4  ;;  %v4853_v40 = vmax.f32 %v4573_v63, 1e-30  ;;  %v4596_v17 = vadd.f32 %v4595_v45, %v4594_v11 }
 0x41d   : > { %v5537_v8 = vunpack.c.l.bf16 %v5465_v36  ;;  %v5538_v1 = vunpack.c.h.bf16 %v5465_v36  ;;  %vm2972_vm4 = vcmp.lt.s32.totalorder %v12659_v25, %v2795_v4  ;;  %vm2973_vm5 = vcmp.lt.s32.totalorder %v12661_v53, %v2795_v4 }
 0x41e   : > { %v12709_v31 = vpack.c.bf16 %v11744_v54, %v11744_v54  ;;  %v5713_v41 = vrot.slane %v5712_v47, 4  ;;  %8419 = vrcp.f32 %v4853_v40  ;;  %v4597_v19 = vrot.slane %v4596_v17, 2 }
 0x41f   : > { %v5741_v39 = vrot.slane %v5740_v49, 4  ;;  %v5733_v7 = vadd.f32 %v5546_v15, %v5545_v46  ;;  %v7182_v10 = vsel %vm2972_vm4, 1.0, %v12663_v32  ;;  %v7183_v63 = vsel %vm2973_vm5, 1.0, %v12663_v32 }
 0x420   : > { %v6259_v18 = vunpack.c.l.b16 %v12709_v31  ;;  %v5681_v45 = vadd.f32 %v5680_v20, %v5679_v21  ;;  %v4598_v22 = vadd.f32 %v4597_v19, %v4596_v17  ;;  %v11805_v33 = vmul.f32 %v11610_v0, %v7182_v10 }
 0x421   : > { %v11808_v61 = vmul.f32 %v11626_v51, %v7183_v63  ;;  %v5689_v54 = vrot.slane %v5688_v6, 1  ;;  %v5698_v11 = vadd.f32 %v5536_v42, %v5535_v14  ;;  %v5693_v43 = vadd.f32 %v5692_v29, %v5691_v5  ;;  %v11816_v42 = vpop.permute.xlu1 %5389  ;;  %v5425_v63 = vpop.permute.xlu0 %5424 }
 0x422   : > { %v8418_v38 = vpop.eup %8417  ;;  %v5705_v36 = vadd.f32 %v5538_v1, %v5537_v8  ;;  %v4599_v4 = vrot.slane %v4598_v22, 1  ;;  %v4583_v21 = vsel %vm4240_vm11, %v11805_v33, 0.0  ;;  %v5714_v20 = vadd.f32 %v5713_v41, %v5712_v47  ;;  %12710 = vst [vmem:[#allocation22_spill] sm:$0xff] %v11816_v42 }
 0x423   : > { %v5019_v15 = vmul.f32 %v8418_v38, %v11704_v48  ;;  %v5020_v46 = vmul.f32 %v8418_v38, %v11709_v13  ;;  %v5742_v0 = vadd.f32 %v5741_v39, %v5740_v49  ;;  %v5734_v40 = vrot.slane %v5733_v7, 4  ;;  %v8462_v38 = vld [vmem:[%s8868_s11 + $0x78] sm:$0xff]  }
 0x424   : > { %v4584_v51 = vsel %vm4240_vm11, %v11808_v61, 0.0  ;;  %v5682_v17 = vrot.slane %v5681_v45, 1  ;;  %v4600_v14 = vadd.f32 %v4599_v4, %v4598_v22  ;;  %8421 = vpow2.f32 %v11740_v16 }
 0x425   : > { %v5110_v31 = vpack.c.bf16 %v5020_v46, %v5019_v15  ;;  %v4585_v5 = vadd.f32 %v4584_v51, %v4583_v21  ;;  %v12711_v48 = vpack.c.bf16 %v11730_v28, %v11730_v28  ;;  %v5694_v47 = vrot.slane %v5693_v43, 2 }
 0x426   : > { %v5706_v49 = vrot.slane %v5705_v36, 4  ;;  %v11824_v29 = vadd.f32 %v5689_v54, %v5688_v6  ;;  %v5699_v8 = vrot.slane %v5698_v11, 4  ;;  %v4856_v1 = vmax.f32 %v4600_v14, 1e-30 }
 0x427   : > { %v11822_v13 = vunpack.c.l.b16 %v12711_v48  ;;  %5324 = vperm.xlu1 %7689, %v5110_v31   ;;  %v4586_v41 = vrot.slane %v4585_v5, 4  ;;  %v11828_v19 = vsel %vm6323_vm3, %v6259_v18, %v11755_v62  ;;  %v5715_v39 = vrot.slane %v5714_v20, 2  ;;  %v7771_v62 = vld [vmem:[%s12488_s5 + $0x40] sm:$0xff]   ;;  %v12712_v48 = vld [vmem:[#allocation23_spill] sm:$0xff] }
 0x428   : > { %v5743_v16 = vrot.slane %v5742_v0, 2  ;;  %v5735_v10 = vadd.f32 %v5734_v40, %v5733_v7  ;;  %v8420_v28 = vpop.eup %8419  ;;  %v11830_v22 = vadd.f32 %v5682_v17, %v5681_v45  ;;  %8423 = vrcp.f32 %v4856_v1  ;;  %v7772_v18 = vld [vmem:[%s12488_s5] sm:$0xff]   ;;  %v8463_v40 = vld [vmem:[%s8868_s11 + $0x1c8] sm:$0xff]   ;;  %7353 = vmatprep.subr.bf16.mxu1 %v7771_v62  ;;  %v8464_v1 = vld [vmem:[%s8868_s11 + $0x58] sm:$0xff]  }
 0x429   : > { %v5472_v6 = vmul.bf16 %v8462_v38, %v5215_v3  ;;  %v4587_v54 = vadd.f32 %v4586_v41, %v4585_v5  ;;  %v5695_v15 = vadd.f32 %v5694_v47, %v5693_v43  ;;  %v5017_v46 = vmul.f32 %v8420_v28, %v11734_v30  ;;  %v5195_v30 = vpop.permute.xlu1 %5194  ;;  %7354 = vmatpush3.bf16.msra.mxu1 %v7772_v18  ;;  %v7774_v62 = vld [vmem:[%s12488_s5 + $0x8] sm:$0xff]  }
 0x42a   : > { %v5018_v4 = vmul.f32 %v8420_v28, %v11737_v58  ;;  %v5707_v21 = vadd.f32 %v5706_v49, %v5705_v36  ;;  %v6110_v7 = vpack.c.bf16 %v11824_v29, %v11824_v29  ;;  %v5700_v45 = vadd.f32 %v5699_v8, %v5698_v11 }
 0x42b   : > { %v4588_v3 = vrot.slane %v4587_v54, 2  ;;  %v5514_v43 = vmul.bf16 %v8463_v40, %v5425_v63  ;;  %v5716_v51 = vadd.f32 %v5715_v39, %v5714_v20  ;;  %v5744_v58 = vadd.f32 %v5743_v16, %v5742_v0 }
 0x42c   : > { %v5109_v36 = vpack.c.bf16 %v5018_v4, %v5017_v46  ;;  %v5736_v17 = vrot.slane %v5735_v10, 2  ;;  %v5551_v31 = vunpack.c.l.bf16 %v5472_v6  ;;  %v5552_v14 = vunpack.c.h.bf16 %v5472_v6  ;;  %v7773_v4 = vld [vmem:[%s12488_s5 + $0x48] sm:$0xff]  }
 0x42d   : > { %v4589_v5 = vadd.f32 %v4588_v3, %v4587_v54  ;;  %v2807_v47 = vrot.slane %v12712_v48, %v9423_v55  ;;  %v6109_v11 = vpack.c.bf16 %v11830_v22, %v11830_v22  ;;  %v5696_v49 = vrot.slane %v5695_v15, 1  ;;  %7355 = vmatprep.subr.bf16.mxu1 %v7773_v4 }
 0x42e   : > { %5319 = vperm.xlu1 %7689, %v5109_v36   ;;  %v5708_v8 = vrot.slane %v5707_v21, 2  ;;  %v5468_v41 = vmul.bf16 %v8464_v1, %v5195_v30  ;;  %v5635_v0 = vunpack.c.l.bf16 %v5514_v43  ;;  %v5636_v39 = vunpack.c.h.bf16 %v5514_v43  ;;  %v11850_v16 = vpop.eup %8421  ;;  %7356 = vmatpush3.bf16.msra.mxu1 %v7774_v62 }
 0x42f   : > { %v4590_v20 = vrot.slane %v4589_v5, 1  ;;  %vm2978_vm6 = vcmp.lt.s32.totalorder %v12659_v25, %v2807_v47  ;;  %v5701_v63 = vrot.slane %v5700_v45, 2  ;;  %v5717_v28 = vrot.slane %v5716_v51, 1 }
 0x430   : > { %v5745_v38 = vrot.slane %v5744_v58, 1  ;;  %vm2979_vm7 = vcmp.lt.s32.totalorder %v12661_v53, %v2807_v47  ;;  %v5737_v6 = vadd.f32 %v5736_v17, %v5735_v10  ;;  %v5754_v54 = vadd.f32 %v5552_v14, %v5551_v31  ;;  %v5210_v10 = vpop.permute.xlu0 %5209 }
 0x431   : > { %v4591_v22 = vadd.f32 %v4590_v20, %v4589_v5  ;;  %v7188_v46 = vsel %vm2978_vm6, 1.0, %v12663_v32  ;;  %v5697_v18 = vadd.f32 %v5696_v49, %v5695_v15  ;;  %v5709_v3 = vadd.f32 %v5708_v8, %v5707_v21  ;;  %v7775_v21 = vld [vmem:[%s12488_s5 + $0x50] sm:$0xff]  }
 0x432   : > { %v5543_v40 = vunpack.c.l.bf16 %v5468_v41  ;;  %v5544_v43 = vunpack.c.h.bf16 %v5468_v41  ;;  %v8424_v30 = vpop.eup %8423  ;;  %v6048_v48 = vadd.f32 %v5636_v39, %v5635_v0  ;;  %v7189_v17 = vsel %vm2979_vm7, 1.0, %v12663_v32  ;;  %v8465_v20 = vld [vmem:[%s8868_s11 + $0x70] sm:$0xff]   ;;  %7357 = vmatprep.subr.bf16.mxu1 %v7775_v21  ;;  %v5190_v39 = vpop.permute.xlu1 %5189 }
 0x433   : > { %v4855_v36 = vmax.f32 %v4591_v22, 1e-30  ;;  %v11862_v31 = vmul.f32 %v11721_v56, %v7188_v46  ;;  %v5718_v14 = vadd.f32 %v5717_v28, %v5716_v51  ;;  %v5746_v5 = vadd.f32 %v5745_v38, %v5744_v58  ;;  %v7776_v22 = vld [vmem:[%s12488_s5 + $0x10] sm:$0xff]  }
 0x434   : > { %v5023_v47 = vmul.f32 %v8424_v30, %v11779_v52  ;;  %v5024_v15 = vmul.f32 %v8424_v30, %v11782_v2  ;;  %v11869_v49 = vadd.f32 %v5701_v63, %v5700_v45  ;;  %v5738_v8 = vrot.slane %v5737_v6, 1  ;;  %7358 = vmatpush3.bf16.msra.mxu1 %v7776_v22  ;;  %v8468_v22 = vld [vmem:[%s8868_s11 + $0x1c0] sm:$0xff]  }
 0x435   : > { %v5755_v1 = vrot.slane %v5754_v54, 4  ;;  %8425 = vrcp.f32 %v4855_v36  ;;  %v5710_v56 = vrot.slane %v5709_v3, 1  ;;  %v5471_v0 = vmul.bf16 %v8465_v20, %v5210_v10 }
 0x436   : > { %v5112_v41 = vpack.c.bf16 %v5024_v15, %v5023_v47  ;;  %v11873_v51 = vmul.f32 %v11724_v60, %v7189_v17  ;;  %v6111_v52 = vpack.c.bf16 %v5697_v18, %v5697_v18  ;;  %v6049_v2 = vrot.slane %v6048_v48, 4  ;;  %v7778_v15 = vld [vmem:[%s12488_s5 + $0x18] sm:$0xff]  }
 0x437   : > { %v5726_v58 = vadd.f32 %v5544_v43, %v5543_v40  ;;  %v4610_v28 = vsel %vm4240_vm11, %v11862_v31, 0.0  ;;  %v11880_v45 = vunpack.c.l.b16 %v6110_v7  ;;  %v6114_v63 = vpack.c.bf16 %v5718_v14, %v5718_v14 }
 0x438   : > { %v6118_v38 = vpack.c.bf16 %v5746_v5, %v5746_v5  ;;  %5334 = vperm.xlu1 %7689, %v5112_v41   ;;  %v4611_v60 = vsel %vm4240_vm11, %v11873_v51, 0.0  ;;  %v11887_v46 = vunpack.c.l.b16 %v6109_v11  ;;  %v11889_v4 = vadd.f32 %v5738_v8, %v5737_v6  ;;  %v12713_v5 = vld [vmem:[#allocation47_spill] sm:$0xff]  ;;  %v8467_v8 = vld [vmem:[%s8868_s11 + $0x50] sm:$0xff]  }
 0x439   : > { %v11891_v62 = vadd.f32 %v5755_v1, %v5754_v54  ;;  %v4612_v29 = vadd.f32 %v4611_v60, %v4610_v28  ;;  %v11894_v18 = vadd.f32 %v5710_v56, %v5709_v3  ;;  %v5549_v40 = vunpack.c.l.bf16 %v5471_v0  ;;  %v8466_v54 = vld [vmem:[%s9357_s27 + $0x38] sm:$0xff]  ;;  %v5420_v56 = vpop.permute.xlu1 %5419 }
 0x43a   : > { %v5550_v43 = vunpack.c.h.bf16 %v5471_v0  ;;  %v11896_v30 = vunpack.c.l.b16 %v6111_v52  ;;  %v6050_v36 = vadd.f32 %v6049_v2, %v6048_v48  ;;  %v5727_v10 = vrot.slane %v5726_v58, 4  ;;  %v7777_v3 = vld [vmem:[%s12488_s5 + $0x58] sm:$0xff]  }
 0x43b   : > { %v4613_v17 = vrot.slane %v4612_v29, 4  ;;  %v11898_v11 = vunpack.c.l.b16 %v6114_v63  ;;  %v11900_v6 = vunpack.c.l.b16 %v6118_v38  ;;  %v2591_v14 = vcombine.high %v8466_v54, %v8466_v54  ;;  %7359 = vmatprep.subr.bf16.mxu1 %v7777_v3 }
 0x43c   : > { %v2803_v47 = vrot.slane %v12713_v5, %v9423_v55  ;;  %v6117_v48 = vpack.c.bf16 %v11889_v4, %v11889_v4  ;;  %v5757_v21 = vrot.slane %v11891_v62, 2  ;;  %v5467_v1 = vmul.bf16 %v8467_v8, %v5190_v39  ;;  %7360 = vmatpush3.bf16.msra.mxu1 %v7778_v15  ;;  %v7779_v8 = vld [vmem:[%s12488_s5 + $0x60] sm:$0xff]   ;;  %v7786_v4 = vld [vmem:[%s12488_s5 + $0x38] sm:$0xff]  }
 0x43d   : > { %v4614_v41 = vadd.f32 %v4613_v17, %v4612_v29  ;;  %v6113_v20 = vpack.c.bf16 %v11894_v18, %v11894_v18  ;;  %v5747_v0 = vadd.f32 %v5550_v43, %v5549_v40  ;;  %v11918_v52 = vrot.slane %v2591_v14, %v9365_v23  ;;  %7361 = vmatprep.subr.bf16.mxu1 %v7779_v8 }
 0x43e   : > { %vm2976_vm8 = vcmp.lt.s32.totalorder %v12659_v25, %v2803_v47  ;;  %v6051_v28 = vrot.slane %v6050_v36, 2  ;;  %v5728_v63 = vadd.f32 %v5727_v10, %v5726_v58  ;;  %vm2977_vm9 = vcmp.lt.s32.totalorder %v12661_v53, %v2803_v47  ;;  %v7780_v47 = vld [vmem:[%s12488_s5 + $0x20] sm:$0xff]  }
 0x43f   : > { %v8426_v2 = vpop.eup %8425  ;;  %v4615_v38 = vrot.slane %v4614_v41, 2  ;;  %v5513_v29 = vmul.bf16 %v8468_v22, %v5420_v56  ;;  %v11927_v18 = vrot.slane %v11918_v52, %v9365_v23  ;;  %v5541_v40 = vunpack.c.l.bf16 %v5467_v1  ;;  %v7782_v22 = vld [vmem:[%s12488_s5 + $0x28] sm:$0xff]  }
 0x440   : > { %v5021_v39 = vmul.f32 %v8426_v2, %v11805_v33  ;;  %v5022_v60 = vmul.f32 %v8426_v2, %v11808_v61  ;;  %v5542_v43 = vunpack.c.h.bf16 %v5467_v1  ;;  %v7186_v58 = vsel %vm2976_vm8, 1.0, %v12663_v32  ;;  %7362 = vmatpush3.bf16.msra.mxu1 %v7780_v47 }
 0x441   : > { %v4616_v17 = vadd.f32 %v4615_v38, %v4614_v41  ;;  %v5748_v54 = vrot.slane %v5747_v0, 4  ;;  %v2883_v33 = vrot.slane %v11927_v18, %v9423_v55  ;;  %v7187_v61 = vsel %vm2977_vm9, 1.0, %v12663_v32 }
 0x442   : > { %v5111_v10 = vpack.c.bf16 %v5022_v60, %v5021_v39  ;;  %v6052_v14 = vadd.f32 %v6051_v28, %v6050_v36  ;;  %v5729_v5 = vrot.slane %v5728_v63, 2  ;;  %v11936_v15 = vmul.f32 %v11789_v57, %v7186_v58  ;;  %v7781_v28 = vld [vmem:[%s12488_s5 + $0x68] sm:$0xff]  }
 0x443   : > { %v4617_v3 = vrot.slane %v4616_v17, 1  ;;  %v5633_v1 = vunpack.c.l.bf16 %v5513_v29  ;;  %vm3016_vm10 = vcmp.lt.s32.totalorder %v12659_v25, %v2883_v33  ;;  %vm3017_vm12 = vcmp.lt.s32.totalorder %v12661_v53, %v2883_v33  ;;  %7363 = vmatprep.subr.bf16.mxu1 %v7781_v28 }
 0x444   : > { %5329 = vperm.xlu1 %7689, %v5111_v10   ;;  %v11947_v36 = vmul.f32 %v11850_v16, %v7187_v61  ;;  %v5634_v57 = vunpack.c.h.bf16 %v5513_v29  ;;  %v7226_v56 = vsel %vm3016_vm10, 1.0, %v12663_v32  ;;  %v7227_v2 = vsel %vm3017_vm12, 1.0, %v12663_v32  ;;  %7364 = vmatpush3.bf16.msra.mxu1 %v7782_v22 }
 0x445   : > { %v4618_v41 = vadd.f32 %v4617_v3, %v4616_v17  ;;  %v5719_v38 = vadd.f32 %v5542_v43, %v5541_v40  ;;  %v11955_v39 = vmul.f32 %v11392_v59, %v7226_v56  ;;  %v11958_v60 = vmul.f32 %v11409_v44, %v7227_v2  ;;  %v7783_v59 = vld [vmem:[%s12488_s5 + $0x70] sm:$0xff]  }
 0x446   : > { %v4601_v16 = vsel %vm4240_vm11, %v11936_v15, 0.0  ;;  %v6053_v29 = vrot.slane %v6052_v14, 1  ;;  %v5749_v17 = vadd.f32 %v5748_v54, %v5747_v0  ;;  %v4602_v40 = vsel %vm4240_vm11, %v11947_v36, 0.0  ;;  %7365 = vmatprep.subr.bf16.mxu1 %v7783_v59 }
 0x447   : > { %v4858_v58 = vmax.f32 %v4618_v41, 1e-30  ;;  %v11971_v44 = vadd.f32 %v5757_v21, %v11891_v62  ;;  %v4781_v43 = vsel %vm4240_vm11, %v11955_v39, 0.0  ;;  %v4782_v0 = vsel %vm4240_vm11, %v11958_v60, 0.0  ;;  %v8469_v41 = vld [vmem:[%s9357_s27 + $0x30] sm:$0xff]  ;;  %s11994_s27 = scalar_lea.vmem %s12485_s2, %s7032_s24  ;;  %s8656_s24 = smov [#allocation7]  }
 0x448   : > { %v4603_v10 = vadd.f32 %v4602_v40, %v4601_v16  ;;  %v11977_v54 = vadd.f32 %v5729_v5, %v5728_v63  ;;  %v6041_v33 = vadd.f32 %v5634_v57, %v5633_v1  ;;  %v4783_v61 = vadd.f32 %v4782_v0, %v4781_v43  ;;  %v7784_v21 = vld [vmem:[%s12488_s5 + $0x30] sm:$0xff]   ;;  %s8581_s29 = sshll.u32 %s8656_s24, 4  ;;  %s8582_s29 = int_to_ptr.vmem [resolvable:$false] %s8581_s29 }
 0x449   : > { %8427 = vrcp.f32 %v4858_v58  ;;  %v6265_v3 = vunpack.c.l.b16 %v6113_v20  ;;  %v2607_v47 = vcombine.high %v11918_v52, %v11918_v52  ;;  %v2542_v62 = vcombine.high %v8469_v41, %v8469_v41  ;;  %v7785_v20 = vld [vmem:[%s12488_s5 + $0x78] sm:$0xff]   ;;  %7366 = vmatpush3.bf16.msra.mxu1 %v7784_v21  ;;  %v12715_v52 = vld [vmem:[#allocation16_spill] sm:$0xff] }
 0x44a   : > { %v4604_v8 = vrot.slane %v4603_v10, 4  ;;  %v11986_v56 = vadd.f32 %v6053_v29, %v6052_v14  ;;  %v5750_v63 = vrot.slane %v5749_v17, 2  ;;  %v5720_v5 = vrot.slane %v5719_v38, 4  ;;  %7367 = vmatprep.subr.bf16.mxu1 %v7785_v20 }
 0x44b   : > { %v4784_v2 = vrot.slane %v4783_v61, 4  ;;  %v11998_v57 = vrot.slane %v2607_v47, %v9365_v23  ;;  %v12001_v14 = vrot.slane %v2542_v62, %v9365_v23  ;;  %v12006_v28 = vunpack.c.l.b16 %v6117_v48 }
 0x44c   : > { %v4605_v1 = vadd.f32 %v4604_v8, %v4603_v10  ;;  %v5731_v16 = vrot.slane %v11977_v54, 1  ;;  %v6042_v22 = vrot.slane %v6041_v33, 4  ;;  %v12011_v58 = vsel %vm6321_vm0, %v11898_v11, %v6265_v3 }
 0x44d   : > { %v4785_v29 = vadd.f32 %v4784_v2, %v4783_v61  ;;  %v2887_v59 = vrot.slane %v11998_v57, %v9423_v55  ;;  %v12017_v43 = vrot.slane %v12001_v14, %v9365_v23  ;;  %v6162_v48 = vpack.c.bf16 %v11986_v56, %v11986_v56  ;;  %v5225_v61 = vpop.permute.xlu0 %5224  ;;  %7368 = vmatpush3.bf16.msra.mxu1 %v7786_v4 }
 0x44e   : > { %v4606_v40 = vrot.slane %v4605_v1, 2  ;;  %v12024_v0 = vadd.f32 %v5750_v63, %v5749_v17  ;;  %v5721_v11 = vadd.f32 %v5720_v5, %v5719_v38  ;;  %v6043_v47 = vadd.f32 %v6042_v22, %v6041_v33  ;;  %v12714_v63 = vld [vmem:[#allocation33_spill] sm:$0xff] }
 0x44f   : > { %v4786_v10 = vrot.slane %v4785_v29, 2  ;;  %vm3018_vm13 = vcmp.lt.s32.totalorder %v12659_v25, %v2887_v59  ;;  %vm3019_vm14 = vcmp.lt.s32.totalorder %v12661_v53, %v2887_v59  ;;  %v2851_v8 = vrot.slane %v12017_v43, %v9423_v55 }
 0x450   : > { %v4607_v3 = vadd.f32 %v4606_v40, %v4605_v1  ;;  %v7228_v62 = vsel %vm3018_vm13, 1.0, %v12663_v32  ;;  %v7229_v21 = vsel %vm3019_vm14, 1.0, %v12663_v32  ;;  %v2637_v1 = vcombine.high %v11927_v18, %v11927_v18 }
 0x451   : > { %v4787_v41 = vadd.f32 %v4786_v10, %v4785_v29  ;;  %v12033_v38 = vmul.f32 %v12714_v63, %v7228_v62  ;;  %v12036_v5 = vmul.f32 %v11386_v34, %v7229_v21  ;;  %vm3000_vm15 = vcmp.lt.s32.totalorder %v12659_v25, %v2851_v8  ;;  %v12050_v63 = vpop.permute.xlu0 %5434 }
 0x452   : > { %v4608_v17 = vrot.slane %v4607_v3, 1  ;;  %vm3001_vm1 = vcmp.lt.s32.totalorder %v12661_v53, %v2851_v8  ;;  %v7210_v33 = vsel %vm3000_vm15, 1.0, %v12663_v32  ;;  %v6044_v59 = vrot.slane %v6043_v47, 2 }
 0x453   : > { %v8428_v2 = vpop.eup %8427  ;;  %v4788_v20 = vrot.slane %v4787_v41, 1  ;;  %v4790_v34 = vsel %vm4240_vm11, %v12033_v38, 0.0  ;;  %v4791_v4 = vsel %vm4240_vm11, %v12036_v5, 0.0  ;;  %v7211_v8 = vsel %vm3001_vm1, 1.0, %v12663_v32 }
 0x454   : > { %v5027_v22 = vmul.f32 %v8428_v2, %v11862_v31  ;;  %v5028_v29 = vmul.f32 %v8428_v2, %v11873_v51  ;;  %v4609_v40 = vadd.f32 %v4608_v17, %v4607_v3  ;;  %v4792_v18 = vadd.f32 %v4791_v4, %v4790_v34  ;;  %v12716_v2 = vld [vmem:[#allocation49_spill] sm:$0xff]  ;;  %v8470_v4 = vld [vmem:[%s8868_s11 + $0x88] sm:$0xff]  }
 0x455   : > { %v4789_v10 = vadd.f32 %v4788_v20, %v4787_v41  ;;  %v12053_v31 = vmul.f32 %v12715_v52, %v7210_v33  ;;  %v12056_v51 = vadd.f32 %v5731_v16, %v11977_v54  ;;  %v5722_v3 = vrot.slane %v5721_v11, 2  ;;  %v5430_v34 = vpop.permute.xlu0 %5429 }
 0x456   : > { %v5114_v62 = vpack.c.bf16 %v5028_v29, %v5027_v22  ;;  %v4857_v21 = vmax.f32 %v4609_v40, 1e-30  ;;  %v12059_v41 = vmul.f32 %v12716_v2, %v7211_v8  ;;  %v4793_v20 = vrot.slane %v4792_v18, 4 }
 0x457   : > { %v4877_v17 = vmax.f32 %v4789_v10, 1e-30  ;;  %v4709_v22 = vsel %vm4240_vm11, %v12053_v31, 0.0  ;;  %v2891_v29 = vrot.slane %v2637_v1, %v9423_v55  ;;  %v6045_v33 = vadd.f32 %v6044_v59, %v6043_v47 }
 0x458   : > { %5344 = vperm.xlu0 %7690, %v5114_v62   ;;  %8429 = vrcp.f32 %v4857_v21  ;;  %v4710_v54 = vsel %vm4240_vm11, %v12059_v41, 0.0  ;;  %v4794_v16 = vadd.f32 %v4793_v20, %v4792_v18  ;;  %v5723_v10 = vadd.f32 %v5722_v3, %v5721_v11  ;;  %v12717_v21 = vld [vmem:[#allocation21_spill] sm:$0xff]  ;;  %v8471_v11 = vld [vmem:[%s8868_s11 + $0x1d0] sm:$0xff]  }
 0x459   : > { %8431 = vrcp.f32 %v4877_v17  ;;  %v4711_v40 = vadd.f32 %v4710_v54, %v4709_v22  ;;  %vm3020_vm2 = vcmp.lt.s32.totalorder %v12659_v25, %v2891_v29  ;;  %vm3021_vm4 = vcmp.lt.s32.totalorder %v12661_v53, %v2891_v29  ;;  %v12718_v18 = vld [vmem:[#allocation25_spill] sm:$0xff] }
 0x45a   : > { %v12070_v8 = vmul.bf16 %v8470_v4, %v5225_v61  ;;  %v7230_v1 = vsel %vm3020_vm2, 1.0, %v12663_v32  ;;  %v7231_v47 = vsel %vm3021_vm4, 1.0, %v12663_v32  ;;  %v4795_v59 = vrot.slane %v4794_v16, 2 }
 0x45b   : > { %v4712_v62 = vrot.slane %v4711_v40, 4  ;;  %v12075_v17 = vmul.f32 %v12717_v21, %v7230_v1  ;;  %v12078_v2 = vmul.f32 %v12718_v18, %v7231_v47  ;;  %v6046_v20 = vrot.slane %v6045_v33, 1 }
 0x45c   : > { %v2558_v22 = vcombine.high %v12001_v14, %v12001_v14  ;;  %v5515_v3 = vmul.bf16 %v8471_v11, %v5430_v34  ;;  %v2639_v61 = vcombine.high %v11998_v57, %v11998_v57  ;;  %v4796_v29 = vadd.f32 %v4795_v59, %v4794_v16 }
 0x45d   : > { %v4713_v54 = vadd.f32 %v4712_v62, %v4711_v40  ;;  %v4799_v4 = vsel %vm4240_vm11, %v12075_v17, 0.0  ;;  %v4800_v1 = vsel %vm4240_vm11, %v12078_v2, 0.0  ;;  %v12092_v47 = vunpack.c.l.b16 %v6162_v48 }
 0x45e   : > { %v4801_v21 = vadd.f32 %v4800_v1, %v4799_v4  ;;  %v12095_v14 = vrot.slane %v2558_v22, %v9365_v23  ;;  %v5637_v34 = vunpack.c.l.bf16 %v5515_v3  ;;  %v4797_v16 = vrot.slane %v4796_v29, 1 }
 0x45f   : > { %v4714_v40 = vrot.slane %v4713_v54, 2  ;;  %v5638_v59 = vunpack.c.h.bf16 %v5515_v3  ;;  %v5724_v62 = vrot.slane %v5723_v10, 1  ;;  %v2895_v7 = vrot.slane %v2639_v61, %v9423_v55 }
 0x460   : > { %v4802_v18 = vrot.slane %v4801_v21, 4  ;;  %v2855_v11 = vrot.slane %v12095_v14, %v9423_v55  ;;  %v12101_v48 = vadd.f32 %v6046_v20, %v6045_v33  ;;  %v5556_v4 = vunpack.c.h.bf16 %v12070_v8 }
 0x461   : > { %v4798_v23 = vadd.f32 %v4797_v16, %v4796_v29  ;;  %v4715_v22 = vadd.f32 %v4714_v40, %v4713_v54  ;;  %v6055_v42 = vadd.f32 %v5638_v59, %v5637_v34  ;;  %vm3022_vm6 = vcmp.lt.s32.totalorder %v12659_v25, %v2895_v7  ;;  %v12719_v54 = vld [vmem:[#allocation38_spill] sm:$0xff] }
 0x462   : > { %v8430_v56 = vpop.eup %8429  ;;  %v4803_v3 = vadd.f32 %v4802_v18, %v4801_v21  ;;  %vm3002_vm5 = vcmp.lt.s32.totalorder %v12659_v25, %v2855_v11  ;;  %vm3003_vm7 = vcmp.lt.s32.totalorder %v12661_v53, %v2855_v11  ;;  %v12720_v34 = vld [vmem:[#allocation42_spill] sm:$0xff]  ;;  %vm3023_vm8 = vcmp.lt.s32.totalorder %v12661_v53, %v2895_v7 }
 0x463   : > { %v8432_v1 = vpop.eup %8431  ;;  %v5025_v52 = vmul.f32 %v8430_v56, %v11936_v15  ;;  %v5026_v57 = vmul.f32 %v8430_v56, %v11947_v36  ;;  %v4878_v37 = vmax.f32 %v4798_v23, 1e-30  ;;  %v4716_v61 = vrot.slane %v4715_v22, 1 }
 0x464   : > { %v5065_v26 = vmul.f32 %v8432_v1, %v11955_v39  ;;  %v5066_v12 = vmul.f32 %v8432_v1, %v11958_v60  ;;  %v4804_v33 = vrot.slane %v4803_v3, 2  ;;  %v7212_v36 = vsel %vm3002_vm5, 1.0, %v12663_v32 }
 0x465   : > { %v5113_v9 = vpack.c.bf16 %v5026_v57, %v5025_v52  ;;  %8433 = vrcp.f32 %v4878_v37  ;;  %v4717_v29 = vadd.f32 %v4716_v61, %v4715_v22  ;;  %v7213_v39 = vsel %vm3003_vm7, 1.0, %v12663_v32  ;;  %v5220_v61 = vpop.permute.xlu1 %5219 }
 0x466   : > { %v5133_v20 = vpack.c.bf16 %v5066_v12, %v5065_v26  ;;  %v4805_v15 = vadd.f32 %v4804_v33, %v4803_v3  ;;  %v2588_v60 = vcombine.high %v12017_v43, %v12017_v43  ;;  %v12116_v21 = vmul.f32 %v12719_v54, %v7212_v36 }
 0x467   : > { %5339 = vperm.xlu1 %7689, %v5113_v9   ;;  %v4869_v52 = vmax.f32 %v4717_v29, 1e-30  ;;  %v12119_v12 = vmul.f32 %v12720_v34, %v7213_v39  ;;  %v6056_v37 = vrot.slane %v6055_v42, 4  ;;  %v12121_v26 = vadd.f32 %v5724_v62, %v5723_v10 }
 0x468   : > { %5439 = vperm.xlu0 %7690, %v5133_v20   ;;  %v4806_v9 = vrot.slane %v4805_v15, 1  ;;  %v7232_v57 = vsel %vm3022_vm6, 1.0, %v12663_v32  ;;  %v4718_v43 = vsel %vm4240_vm11, %v12116_v21, 0.0  ;;  %v7233_v10 = vsel %vm3023_vm8, 1.0, %v12663_v32 }
 0x469   : > { %8435 = vrcp.f32 %v4869_v52  ;;  %v4719_v16 = vsel %vm4240_vm11, %v12119_v12, 0.0  ;;  %v6057_v40 = vadd.f32 %v6056_v37, %v6055_v42  ;;  %v12133_v62 = vmul.f32 %v11742_v35, %v7232_v57 }
 0x46a   : > { %v4807_v59 = vadd.f32 %v4806_v9, %v4805_v15  ;;  %v4720_v18 = vadd.f32 %v4719_v16, %v4718_v43  ;;  %v6161_v11 = vpack.c.bf16 %v12101_v48, %v12101_v48  ;;  %v12138_v56 = vmul.f32 %v11776_v27, %v7233_v10  ;;  %v12723_v16 = vld [vmem:[#allocation20_spill] sm:$0xff] }
 0x46b   : > { %v6058_v7 = vrot.slane %v6057_v40, 2  ;;  %v2859_v23 = vrot.slane %v2588_v60, %v9423_v55  ;;  %v4808_v42 = vsel %vm4240_vm11, %v12133_v62, 0.0  ;;  %v2590_v3 = vcombine.high %v12095_v14, %v12095_v14  ;;  %v12722_v60 = vld [vmem:[#allocation19_spill] sm:$0xff] }
 0x46c   : > { %v4879_v22 = vmax.f32 %v4807_v59, 1e-30  ;;  %v4721_v1 = vrot.slane %v4720_v18, 4  ;;  %v4809_v33 = vsel %vm4240_vm11, %v12138_v56, 0.0  ;;  %v12721_v15 = vunpack.c.l.bf16 %v12070_v8 }
 0x46d   : > { %v6059_v35 = vadd.f32 %v6058_v7, %v6057_v40  ;;  %vm3004_vm9 = vcmp.lt.s32.totalorder %v12659_v25, %v2859_v23  ;;  %vm3005_vm10 = vcmp.lt.s32.totalorder %v12661_v53, %v2859_v23  ;;  %v4810_v48 = vadd.f32 %v4809_v33, %v4808_v42 }
 0x46e   : > { %8437 = vrcp.f32 %v4879_v22  ;;  %v4722_v27 = vadd.f32 %v4721_v1, %v4720_v18  ;;  %v7214_v20 = vsel %vm3004_vm9, 1.0, %v12663_v32  ;;  %v5768_v36 = vadd.f32 %v5556_v4, %v12721_v15  ;;  %v12163_v4 = vpop.permute.xlu1 %5234 }
 0x46f   : > { %v8434_v29 = vpop.eup %8433  ;;  %v6060_v39 = vrot.slane %v6059_v35, 1  ;;  %v7215_v14 = vsel %vm3005_vm10, 1.0, %v12663_v32  ;;  %v12154_v52 = vmul.f32 %v12722_v60, %v7214_v20  ;;  %v4811_v9 = vrot.slane %v4810_v48, 4 }
 0x470   : > { %v5067_v54 = vmul.f32 %v8434_v29, %v12033_v38  ;;  %v5068_v34 = vmul.f32 %v8434_v29, %v12036_v5  ;;  %v4723_v37 = vrot.slane %v4722_v27, 2  ;;  %v6313_v57 = vunpack.c.l.b16 %v6161_v11 }
 0x471   : > { %v6061_v43 = vadd.f32 %v6060_v39, %v6059_v35  ;;  %v12159_v40 = vmul.f32 %v12723_v16, %v7215_v14  ;;  %v4727_v8 = vsel %vm4240_vm11, %v12154_v52, 0.0  ;;  %v4812_v10 = vadd.f32 %v4811_v9, %v4810_v48 }
 0x472   : > { %v5134_v59 = vpack.c.bf16 %v5068_v34, %v5067_v54  ;;  %v4724_v18 = vadd.f32 %v4723_v37, %v4722_v27  ;;  %v2863_v7 = vrot.slane %v2590_v3, %v9423_v55  ;;  %v6115_v5 = vpack.c.bf16 %v12121_v26, %v12121_v26  ;;  %v12175_v26 = vpop.permute.xlu1 %5229  ;;  %v8472_v34 = vld [vmem:[%s8868_s11 + $0x80] sm:$0xff]  }
 0x473   : > { %v8436_v38 = vpop.eup %8435  ;;  %v5769_v23 = vrot.slane %v5768_v36, 4  ;;  %v6163_v11 = vpack.c.bf16 %v6061_v43, %v6061_v43  ;;  %v4728_v22 = vsel %vm4240_vm11, %v12159_v40, 0.0  ;;  %v4813_v33 = vrot.slane %v4812_v10, 2 }
 0x474   : > { %5444 = vperm.xlu0 %7690, %v5134_v59   ;;  %v5049_v1 = vmul.f32 %v8436_v38, %v12053_v31  ;;  %v5050_v42 = vmul.f32 %v8436_v38, %v12059_v41  ;;  %v4725_v35 = vrot.slane %v4724_v18, 1  ;;  %v6377_v27 = vsel %vm6321_vm0, %v12092_v47, %v6313_v57 }
 0x475   : > { %v6315_v55 = vunpack.c.l.b16 %v6163_v11  ;;  %v4729_v3 = vadd.f32 %v4728_v22, %v4727_v8  ;;  %vm3006_vm12 = vcmp.lt.s32.totalorder %v12659_v25, %v2863_v7  ;;  %v4814_v29 = vadd.f32 %v4813_v33, %v4812_v10  ;;  %v12211_v22 = vpop.permute.xlu0 %5264 }
 0x476   : > { %v5125_v48 = vpack.c.bf16 %v5050_v42, %v5049_v1  ;;  %v4726_v20 = vadd.f32 %v4725_v35, %v4724_v18  ;;  %vm3007_vm13 = vcmp.lt.s32.totalorder %v12661_v53, %v2863_v7  ;;  %v6267_v31 = vunpack.c.l.b16 %v6115_v5  ;;  %v12189_v43 = vpop.permute.xlu1 %5244 }
 0x477   : > { %v12179_v41 = vsel %vm6323_vm3, %v6315_v55, %v6377_v27  ;;  %v4730_v15 = vrot.slane %v4729_v3, 4  ;;  %v7216_v39 = vsel %vm3006_vm12, 1.0, %v12663_v32  ;;  %v4815_v60 = vrot.slane %v4814_v29, 1 }
 0x478   : > { %v8438_v47 = vpop.eup %8437  ;;  %5399 = vperm.xlu1 %7689, %v5125_v48   ;;  %v4870_v14 = vmax.f32 %v4726_v20, 1e-30  ;;  %v7217_v25 = vsel %vm3007_vm13, 1.0, %v12663_v32  ;;  %v12184_v54 = vmul.f32 %v11693_v24, %v7216_v39  ;;  %v5473_v37 = vmul.bf16 %v8472_v34, %v5220_v61 }
 0x479   : > { %v5069_v53 = vmul.f32 %v8438_v47, %v12075_v17  ;;  %v5070_v9 = vmul.f32 %v8438_v47, %v12078_v2  ;;  %v4731_v57 = vadd.f32 %v4730_v15, %v4729_v3  ;;  %v4816_v16 = vadd.f32 %v4815_v60, %v4814_v29  ;;  %v8473_v3 = vld [vmem:[%s8868_s11 + $0x1d8] sm:$0xff]  }
 0x47a   : > { %8439 = vrcp.f32 %v4870_v14  ;;  %v12192_v8 = vmul.f32 %v11700_v50, %v7217_v25  ;;  %v4736_v32 = vsel %vm4240_vm11, %v12184_v54, 0.0  ;;  %v6116_v24 = vpack.c.bf16 %v12056_v51, %v12056_v51  ;;  %v12216_v33 = vpop.permute.xlu1 %5239 }
 0x47b   : > { %v12724_v61 = vrot.slane %v12024_v0, 1  ;;  %v5135_v59 = vpack.c.bf16 %v5070_v9, %v5069_v53  ;;  %v4732_v2 = vrot.slane %v4731_v57, 2  ;;  %v5770_v18 = vadd.f32 %v5769_v23, %v5768_v36 }
 0x47c   : > { %v4880_v10 = vmax.f32 %v4816_v16, 1e-30  ;;  %v4737_v7 = vsel %vm4240_vm11, %v12192_v8, 0.0  ;;  %vm6325_vm14 = vcmask 1043459   ;;  %v6336_v50 = vsel %vm6323_vm3, %v6267_v31, %v12011_v58 }
 0x47d   : > { %v5753_v17 = vadd.f32 %v12724_v61, %v12024_v0  ;;  %v5553_v38 = vunpack.c.l.bf16 %v5473_v37  ;;  %5449 = vperm.xlu0 %7690, %v5135_v59   ;;  %v4733_v5 = vadd.f32 %v4732_v2, %v4731_v57  ;;  %v4738_v51 = vadd.f32 %v4737_v7, %v4736_v32 }
 0x47e   : > { %8441 = vrcp.f32 %v4880_v10  ;;  %v12725_v0 = vrot.slane %v11869_v49, 1  ;;  %v12726_v36 = vrot.slane %v11971_v44, 1  ;;  %vm6327_vm15 = vcmask 1044484   ;;  %v12227_v60 = vpop.permute.xlu1 %5254  ;;  %v7787_v10 = vld [vmem:[%s11994_s27] sm:$0xff]  }
 0x47f   : > { %v5554_v1 = vunpack.c.h.bf16 %v5473_v37  ;;  %v4734_v42 = vrot.slane %v4733_v5, 1  ;;  %v4739_v58 = vrot.slane %v4738_v51, 4  ;;  %v6326_v35 = vsel %vm6325_vm14, %v11822_v13, %v11828_v19  ;;  %v12223_v13 = vpop.permute.xlu0 %5274 }
 0x480   : > { %v5704_v11 = vadd.f32 %v12725_v0, %v11869_v49  ;;  %v5760_v23 = vadd.f32 %v12726_v36, %v11971_v44  ;;  %v6268_v27 = vunpack.c.l.b16 %v6116_v24  ;;  %v6119_v55 = vpack.c.bf16 %v5753_v17, %v5753_v17 }
 0x481   : > { %v6328_v49 = vsel %vm6327_vm15, %v11887_v46, %v6326_v35  ;;  %vm6329_vm11 = vcmask 1045509   ;;  %v5516_v44 = vmul.bf16 %v8473_v3, %v12050_v63  ;;  %v4735_v48 = vadd.f32 %v4734_v42, %v4733_v5 }
 0x482   : > { %v4740_v20 = vadd.f32 %v4739_v58, %v4738_v51  ;;  %vm6331_vm1 = vcmask 1046534   ;;  %v5771_v29 = vrot.slane %v5770_v18, 2  ;;  %v6112_v31 = vpack.c.bf16 %v5704_v11, %v5704_v11  ;;  %v8474_v11 = vld [vmem:[%s8868_s11 + $0x98] sm:$0xff]   ;;  %v8475_v58 = vld [vmem:[%s8868_s11 + $0x90] sm:$0xff]  }
 0x483   : > { %v6120_v15 = vpack.c.bf16 %v5760_v23, %v5760_v23  ;;  %v6337_v39 = vsel %vm6325_vm14, %v6268_v27, %v6336_v50  ;;  %v5761_v19 = vadd.f32 %v5554_v1, %v5553_v38  ;;  %v4871_v47 = vmax.f32 %v4735_v48, 1e-30  ;;  %v5250_v38 = vpop.permute.xlu1 %5249 }
 0x484   : > { %v4741_v14 = vrot.slane %v4740_v20, 2  ;;  %v6330_v46 = vsel %vm6329_vm11, %v11880_v45, %v6328_v49  ;;  %v8440_v25 = vpop.eup %8439  ;;  %v6271_v63 = vunpack.c.l.b16 %v6119_v55  ;;  %vm6333_vm2 = vcmask 1047559  }
 0x485   : > { %v6332_v34 = vsel %vm6331_vm1, %v11896_v30, %v6330_v46  ;;  %v6338_v37 = vsel %vm6327_vm15, %v12006_v28, %v6337_v39  ;;  %v5051_v53 = vmul.f32 %v8440_v25, %v12116_v21  ;;  %v5052_v9 = vmul.f32 %v8440_v25, %v12119_v12  ;;  %v12240_v12 = vpop.permute.xlu0 %5269  ;;  %v8477_v39 = vld [vmem:[%s8868_s11 + $0xa8] sm:$0xff]  }
 0x486   : > { %8443 = vrcp.f32 %v4871_v47  ;;  %v4742_v57 = vadd.f32 %v4741_v14, %v4740_v20  ;;  %v5772_v16 = vadd.f32 %v5771_v29, %v5770_v18  ;;  %v6264_v45 = vunpack.c.l.b16 %v6112_v31  ;;  %v8476_v29 = vld [vmem:[%s8868_s11 + $0xa0] sm:$0xff]   ;;  %v8479_v46 = vld [vmem:[%s8868_s11 + $0xc8] sm:$0xff]  }
 0x487   : > { %v6272_v32 = vunpack.c.l.b16 %v6120_v15  ;;  %v6339_v24 = vsel %vm6329_vm11, %v11900_v6, %v6338_v37  ;;  %v5762_v61 = vrot.slane %v5761_v19, 4  ;;  %v5126_v17 = vpack.c.bf16 %v5052_v9, %v5051_v53  ;;  %v8478_v47 = vld [vmem:[%s8868_s11 + $0xc0] sm:$0xff]  }
 0x488   : > { %v4743_v30 = vrot.slane %v4742_v57, 1  ;;  %v6340_v59 = vsel %vm6331_vm1, %v6271_v63, %v6339_v24  ;;  %v8442_v28 = vpop.eup %8441  ;;  %v6334_v21 = vsel %vm6333_vm2, %v6264_v45, %v6332_v34  ;;  %v5773_v5 = vrot.slane %v5772_v16, 1 }
 0x489   : > { %v6341_v2 = vsel %vm6333_vm2, %v6272_v32, %v6340_v59  ;;  %5404 = vperm.xlu1 %7689, %v5126_v17   ;;  %v5071_v18 = vmul.f32 %v8442_v28, %v12133_v62  ;;  %v5072_v6 = vmul.f32 %v8442_v28, %v12138_v56  ;;  %v5639_v51 = vunpack.c.l.bf16 %v5516_v44  ;;  %v5260_v62 = vpop.permute.xlu1 %5259 }
 0x48a   : > { %v4744_v7 = vadd.f32 %v4743_v30, %v4742_v57  ;;  %v6384_v50 = vpack.c.b16 %v6341_v2, %v6334_v21  ;;  %v5640_v0 = vunpack.c.h.bf16 %v5516_v44  ;;  %v5476_v36 = vmul.bf16 %v8474_v11, %v12163_v4  ;;  %v5285_v4 = vpop.permute.xlu0 %5284  ;;  %v8481_v30 = vld [vmem:[%s8868_s11 + $0xd8] sm:$0xff]  }
 0x48b   : > { %v5763_v23 = vadd.f32 %v5762_v61, %v5761_v19  ;;  %v5136_v1 = vpack.c.bf16 %v5072_v6, %v5071_v18  ;;  %v5475_v35 = vmul.bf16 %v8475_v58, %v12175_v26  ;;  %v5774_v56 = vadd.f32 %v5773_v5, %v5772_v16  ;;  %v8480_v16 = vld [vmem:[%s8868_s11 + $0xb0] sm:$0xff]   ;;  %v8482_v11 = vld [vmem:[%s8868_s11 + $0xb8] sm:$0xff]  }
 0x48c   : > { %v4872_v42 = vmax.f32 %v4744_v7, 1e-30  ;;  %6559 = vmatprep.mubr.bf16.mxu1 %v6384_v50  ;;  %v6062_v27 = vadd.f32 %v5640_v0, %v5639_v51  ;;  %v5559_v55 = vunpack.c.l.bf16 %v5476_v36  ;;  %v5560_v49 = vunpack.c.h.bf16 %v5476_v36 }
 0x48d   : > { %6560 = vmatmul.mubr.bf16.vlgmr.msra.gmra.mrb[44].mxu1 %v7787_v10  ;;  %5454 = vperm.xlu0 %7690, %v5136_v1   ;;  %v5764_v44 = vrot.slane %v5763_v23, 2  ;;  %v5557_v48 = vunpack.c.l.bf16 %v5475_v35  ;;  %v5558_v20 = vunpack.c.h.bf16 %v5475_v35  ;;  %v5477_v31 = vmul.bf16 %v8476_v29, %v12216_v33  ;;  %v8483_v35 = vld [vmem:[%s8868_s11 + $0xd0] sm:$0xff]  }
 0x48e   : > { %8445 = vrcp.f32 %v4872_v42  ;;  %v5478_v19 = vmul.bf16 %v8477_v39, %v12189_v43  ;;  %v5481_v14 = vmul.bf16 %v8478_v47, %v5260_v62  ;;  %v5482_v25 = vmul.bf16 %v8479_v46, %v12211_v22  ;;  %v5280_v24 = vpop.permute.xlu0 %5279 }
 0x48f   : > { %v6122_v63 = vpack.c.bf16 %v5774_v56, %v5774_v56  ;;  %v6063_v34 = vrot.slane %v6062_v27, 4  ;;  %v5782_v53 = vadd.f32 %v5560_v49, %v5559_v55  ;;  %v5775_v9 = vadd.f32 %v5558_v20, %v5557_v48  ;;  %v8484_v56 = vld [vmem:[%s8868_s11 + $0xe8] sm:$0xff]  }
 0x490   : > { %v8444_v3 = vpop.eup %8443  ;;  %v5561_v33 = vunpack.c.l.bf16 %v5477_v31  ;;  %v5562_v57 = vunpack.c.h.bf16 %v5477_v31  ;;  %v12259_v45 = vadd.f32 %v5764_v44, %v5763_v23  ;;  %v5569_v43 = vunpack.c.l.bf16 %v5481_v14 }
 0x491   : > { %v5053_v26 = vmul.f32 %v8444_v3, %v12154_v52  ;;  %v5054_v15 = vmul.f32 %v8444_v3, %v12159_v40  ;;  %v5479_v52 = vmul.bf16 %v8480_v16, %v5250_v38  ;;  %v5563_v40 = vunpack.c.l.bf16 %v5478_v19 }
 0x492   : > { %v5570_v32 = vunpack.c.h.bf16 %v5481_v14  ;;  %v5564_v61 = vunpack.c.h.bf16 %v5478_v19  ;;  %v5571_v17 = vunpack.c.l.bf16 %v5482_v25  ;;  %v5572_v22 = vunpack.c.h.bf16 %v5482_v25  ;;  %v5295_v55 = vpop.permute.xlu0 %5294  ;;  %v8485_v19 = vld [vmem:[%s8868_s11 + $0xe0] sm:$0xff]  }
 0x493   : > { %v5127_v37 = vpack.c.bf16 %v5054_v15, %v5053_v26  ;;  %v5484_v59 = vmul.bf16 %v8481_v30, %v12223_v13  ;;  %v12263_v28 = vunpack.c.l.b16 %v6122_v63  ;;  %v12265_v21 = vadd.f32 %v6063_v34, %v6062_v27  ;;  %v8486_v63 = vld [vmem:[%s8868_s11 + $0xf8] sm:$0xff]  }
 0x494   : > { %v5783_v2 = vrot.slane %v5782_v53, 4  ;;  %v5776_v18 = vrot.slane %v5775_v9, 4  ;;  %v5789_v6 = vadd.f32 %v5562_v57, %v5561_v33  ;;  %v5565_v7 = vunpack.c.l.bf16 %v5479_v52 }
 0x495   : > { %5409 = vperm.xlu1 %7689, %v5127_v37   ;;  %v5566_v50 = vunpack.c.h.bf16 %v5479_v52  ;;  %v5766_v38 = vrot.slane %v12259_v45, 1  ;;  %v5817_v0 = vadd.f32 %v5570_v32, %v5569_v43  ;;  %v5796_v13 = vadd.f32 %v5564_v61, %v5563_v40 }
 0x496   : > { %v5480_v36 = vmul.bf16 %v8482_v11, %v12227_v60  ;;  %v5824_v23 = vadd.f32 %v5572_v22, %v5571_v17  ;;  %v5575_v1 = vunpack.c.l.bf16 %v5484_v59  ;;  %v5576_v58 = vunpack.c.h.bf16 %v5484_v59  ;;  %v5290_v57 = vpop.permute.xlu0 %5289 }
 0x497   : > { %v5483_v62 = vmul.bf16 %v8483_v35, %v12240_v12  ;;  %v5486_v27 = vmul.bf16 %v8484_v56, %v5285_v4  ;;  %v12275_v49 = vadd.f32 %v5783_v2, %v5782_v53  ;;  %v5803_v3 = vadd.f32 %v5566_v50, %v5565_v7  ;;  %v8487_v2 = vld [vmem:[%s8868_s11 + $0xf0] sm:$0xff]  }
 0x498   : > { %v8446_v10 = vpop.eup %8445  ;;  %v5818_v44 = vrot.slane %v5817_v0, 4  ;;  %v5797_v29 = vrot.slane %v5796_v13, 4  ;;  %v5567_v31 = vunpack.c.l.bf16 %v5480_v36  ;;  %v5568_v26 = vunpack.c.h.bf16 %v5480_v36 }
 0x499   : > { %v5055_v5 = vmul.f32 %v8446_v10, %v12184_v54  ;;  %v5056_v51 = vmul.f32 %v8446_v10, %v12192_v8  ;;  %v5777_v54 = vadd.f32 %v5776_v18, %v5775_v9  ;;  %v5790_v8 = vrot.slane %v5789_v6, 4 }
 0x49a   : > { %v5573_v60 = vunpack.c.l.bf16 %v5483_v62  ;;  %v5574_v48 = vunpack.c.h.bf16 %v5483_v62  ;;  %v5579_v20 = vunpack.c.l.bf16 %v5486_v27  ;;  %v5825_v15 = vrot.slane %v5824_v23, 4 }
 0x49b   : > { %v5128_v42 = vpack.c.bf16 %v5056_v51, %v5055_v5  ;;  %v5838_v12 = vadd.f32 %v5576_v58, %v5575_v1  ;;  %v5580_v4 = vunpack.c.h.bf16 %v5486_v27  ;;  %v5485_v47 = vmul.bf16 %v8485_v19, %v5280_v24 }
 0x49c   : > { %v5831_v39 = vadd.f32 %v5574_v48, %v5573_v60  ;;  %v5778_v14 = vrot.slane %v5777_v54, 2  ;;  %v5791_v46 = vadd.f32 %v5790_v8, %v5789_v6  ;;  %v5804_v25 = vrot.slane %v5803_v3, 4 }
 0x49d   : > { %5414 = vperm.xlu1 %7689, %v5128_v42   ;;  %v5488_v34 = vmul.bf16 %v8486_v63, %v5295_v55  ;;  %v5819_v37 = vadd.f32 %v5818_v44, %v5817_v0  ;;  %v5852_v9 = vadd.f32 %v5580_v4, %v5579_v20  ;;  %v5577_v33 = vunpack.c.l.bf16 %v5485_v47 }
 0x49e   : > { %v5832_v53 = vrot.slane %v5831_v39, 4  ;;  %v5798_v16 = vadd.f32 %v5797_v29, %v5796_v13  ;;  %v5810_v52 = vadd.f32 %v5568_v26, %v5567_v31  ;;  %v5578_v40 = vunpack.c.h.bf16 %v5485_v47 }
 0x49f   : > { %v5583_v43 = vunpack.c.l.bf16 %v5488_v34  ;;  %v5826_v32 = vadd.f32 %v5825_v15, %v5824_v23  ;;  %v5839_v61 = vrot.slane %v5838_v12, 4  ;;  %v5584_v22 = vunpack.c.h.bf16 %v5488_v34 }
 0x4a0   : > { %v5833_v17 = vadd.f32 %v5832_v53, %v5831_v39  ;;  %v5779_v24 = vadd.f32 %v5778_v14, %v5777_v54  ;;  %v5792_v30 = vrot.slane %v5791_v46, 2  ;;  %v5845_v59 = vadd.f32 %v5578_v40, %v5577_v33 }
 0x4a1   : > { %v5487_v10 = vmul.bf16 %v8487_v2, %v5290_v57  ;;  %v5805_v18 = vadd.f32 %v5804_v25, %v5803_v3  ;;  %v5820_v6 = vrot.slane %v5819_v37, 2  ;;  %v5853_v7 = vrot.slane %v5852_v9, 4 }
 0x4a2   : > { %v5866_v50 = vadd.f32 %v5584_v22, %v5583_v43  ;;  %v5834_v5 = vrot.slane %v5833_v17, 2  ;;  %v5846_v51 = vrot.slane %v5845_v59, 4  ;;  %v5811_v11 = vrot.slane %v5810_v52, 4 }
 0x4a3   : > { %v5581_v0 = vunpack.c.l.bf16 %v5487_v10  ;;  %v5582_v13 = vunpack.c.h.bf16 %v5487_v10  ;;  %v5827_v36 = vrot.slane %v5826_v32, 2  ;;  %v5840_v1 = vadd.f32 %v5839_v61, %v5838_v12 }
 0x4a4   : > { %v5867_v23 = vrot.slane %v5866_v50, 4  ;;  %v5785_v42 = vrot.slane %v12275_v49, 2  ;;  %v5799_v58 = vrot.slane %v5798_v16, 2  ;;  %v5847_v35 = vadd.f32 %v5846_v51, %v5845_v59 }
 0x4a5   : > { %v5859_v62 = vadd.f32 %v5582_v13, %v5581_v0  ;;  %v5780_v56 = vrot.slane %v5779_v24, 1  ;;  %v5793_v27 = vadd.f32 %v5792_v30, %v5791_v46  ;;  %v5821_v55 = vadd.f32 %v5820_v6, %v5819_v37  ;;  %v12285_v46 = vpop.permute.xlu1 %5299 }
 0x4a6   : > { %v5854_v54 = vadd.f32 %v5853_v7, %v5852_v9  ;;  %v5806_v8 = vrot.slane %v5805_v18, 2  ;;  %v5835_v3 = vadd.f32 %v5834_v5, %v5833_v17  ;;  %v5848_v44 = vrot.slane %v5847_v35, 2 }
 0x4a7   : > { %v5860_v60 = vrot.slane %v5859_v62, 4  ;;  %v5812_v48 = vadd.f32 %v5811_v11, %v5810_v52  ;;  %v5828_v20 = vadd.f32 %v5827_v36, %v5826_v32  ;;  %v5841_v29 = vrot.slane %v5840_v1, 2 }
 0x4a8   : > { %v5868_v31 = vadd.f32 %v5867_v23, %v5866_v50  ;;  %v5767_v26 = vadd.f32 %v5766_v38, %v12259_v45  ;;  %v5786_v15 = vadd.f32 %v5785_v42, %v12275_v49  ;;  %v5800_v12 = vadd.f32 %v5799_v58, %v5798_v16 }
 0x4a9   : > { %v5861_v39 = vadd.f32 %v5860_v60, %v5859_v62  ;;  %v5781_v4 = vadd.f32 %v5780_v56, %v5779_v24  ;;  %v5794_v19 = vrot.slane %v5793_v27, 1  ;;  %v5822_v47 = vrot.slane %v5821_v55, 1 }
 0x4aa   : > { %v5855_v14 = vrot.slane %v5854_v54, 2  ;;  %v5807_v25 = vadd.f32 %v5806_v8, %v5805_v18  ;;  %v5836_v63 = vrot.slane %v5835_v3, 1  ;;  %v5849_v34 = vadd.f32 %v5848_v44, %v5847_v35  ;;  %v12288_v18 = vpop.permute.xlu1 %5314 }
 0x4ab   : > { %v5862_v37 = vrot.slane %v5861_v39, 2  ;;  %v5813_v53 = vrot.slane %v5812_v48, 2  ;;  %v5829_v9 = vrot.slane %v5828_v20, 1  ;;  %v5842_v33 = vadd.f32 %v5841_v29, %v5840_v1 }
 0x4ac   : > { %v5869_v57 = vrot.slane %v5868_v31, 2  ;;  %v6065_v45 = vrot.slane %v12265_v21, 2  ;;  %v6121_v38 = vpack.c.bf16 %v5767_v26, %v5767_v26  ;;  %v5787_v49 = vrot.slane %v5786_v15, 1 }
 0x4ad   : > { %v5863_v16 = vadd.f32 %v5862_v37, %v5861_v39  ;;  %v6123_v52 = vpack.c.bf16 %v5781_v4, %v5781_v4  ;;  %v5801_v40 = vrot.slane %v5800_v12, 1  ;;  %v5823_v43 = vadd.f32 %v5822_v47, %v5821_v55  ;;  %v7792_v55 = vld [vmem:[#allocation5 + $0x8] sm:$0xff]  }
 0x4ae   : > { %v5856_v32 = vadd.f32 %v5855_v14, %v5854_v54  ;;  %v5795_v61 = vadd.f32 %v5794_v19, %v5793_v27  ;;  %v5808_v17 = vrot.slane %v5807_v25, 1  ;;  %v5837_v22 = vadd.f32 %v5836_v63, %v5835_v3  ;;  %v7791_v27 = vld [vmem:[#allocation5] sm:$0xff]   ;;  %v12294_v29 = vpop.permute.xlu1 %5309 }
 0x4af   : > { %v5850_v24 = vrot.slane %v5849_v34, 1  ;;  %v5814_v30 = vadd.f32 %v5813_v53, %v5812_v48  ;;  %v5830_v59 = vadd.f32 %v5829_v9, %v5828_v20  ;;  %v5843_v2 = vrot.slane %v5842_v33, 1  ;;  %7561 = vmatprep.subr.bf16.mxu1 %v7791_v27 }
 0x4b0   : > { %v5870_v10 = vadd.f32 %v5869_v57, %v5868_v31  ;;  %v6066_v6 = vadd.f32 %v6065_v45, %v12265_v21  ;;  %v6273_v7 = vunpack.c.l.b16 %v6121_v38  ;;  %v5788_v50 = vadd.f32 %v5787_v49, %v5786_v15  ;;  %7562 = vmatpush3.bf16.msra.mxu1 %v7791_v27  ;;  %v8489_v27 = vld [vmem:[%s8868_s11 + $0x108] sm:$0xff]  }
 0x4b1   : > { %v5864_v5 = vrot.slane %v5863_v16, 1  ;;  %v6275_v51 = vunpack.c.l.b16 %v6123_v52  ;;  %v5802_v0 = vadd.f32 %v5801_v40, %v5800_v12  ;;  %v6129_v13 = vpack.c.bf16 %v5823_v43, %v5823_v43  ;;  %7563 = vmatprep.subr.bf16.mxu1 %v7792_v55  ;;  %v7794_v43 = vld [vmem:[#allocation5 + $0x18] sm:$0xff]  }
 0x4b2   : > { %v5857_v11 = vrot.slane %v5856_v32, 1  ;;  %v6125_v36 = vpack.c.bf16 %v5795_v61, %v5795_v61  ;;  %v5809_v1 = vadd.f32 %v5808_v17, %v5807_v25  ;;  %v6131_v23 = vpack.c.bf16 %v5837_v22, %v5837_v22  ;;  %v12299_v49 = vpop.permute.xlu1 %5324  ;;  %v12727_v61 = vld [vmem:[#allocation18_spill] sm:$0xff] }
 0x4b3   : > { %v5851_v42 = vadd.f32 %v5850_v24, %v5849_v34  ;;  %v5815_v58 = vrot.slane %v5814_v30, 1  ;;  %v6130_v35 = vpack.c.bf16 %v5830_v59, %v5830_v59  ;;  %v5844_v62 = vadd.f32 %v5843_v2, %v5842_v33 }
 0x4b4   : > { %v5871_v56 = vrot.slane %v5870_v10, 1  ;;  %v6067_v54 = vrot.slane %v6066_v6, 1  ;;  %v6342_v21 = vsel %vm6321_vm0, %v12263_v28, %v6273_v7  ;;  %v6124_v8 = vpack.c.bf16 %v5788_v50, %v5788_v50  ;;  %v7793_v28 = vld [vmem:[#allocation5 + $0x10] sm:$0xff]   ;;  %7564 = vmatpush3.bf16.msra.mxu1 %v7792_v55 }
 0x4b5   : > { %v5865_v3 = vadd.f32 %v5864_v5, %v5863_v16  ;;  %v6343_v44 = vsel %vm6323_vm3, %v6275_v51, %v6342_v21  ;;  %v6126_v60 = vpack.c.bf16 %v5802_v0, %v5802_v0  ;;  %v6281_v48 = vunpack.c.l.b16 %v6129_v13  ;;  %7565 = vmatprep.subr.bf16.mxu1 %v7793_v28 }
 0x4b6   : > { %v5858_v20 = vadd.f32 %v5857_v11, %v5856_v32  ;;  %v6277_v31 = vunpack.c.l.b16 %v6125_v36  ;;  %v6127_v26 = vpack.c.bf16 %v5809_v1, %v5809_v1  ;;  %v6283_v15 = vunpack.c.l.b16 %v6131_v23  ;;  %v8488_v32 = vld [vmem:[%s8868_s11 + $0x158] sm:$0xff]   ;;  %v5320_v11 = vpop.permute.xlu1 %5319  ;;  %v7788_v23 = vld [vmem:[%s11994_s27 + $0x8] sm:$0xff]  }
 0x4b7   : > { %v6133_v12 = vpack.c.bf16 %v5851_v42, %v5851_v42  ;;  %v6282_v39 = vunpack.c.l.b16 %v6130_v35  ;;  %v6132_v4 = vpack.c.bf16 %v5844_v62, %v5844_v62  ;;  %v5816_v19 = vadd.f32 %v5815_v58, %v5814_v30  ;;  %v5305_v35 = vpop.permute.xlu0 %5304 }
 0x4b8   : > { %v5872_v47 = vadd.f32 %v5871_v56, %v5870_v10  ;;  %v6276_v14 = vunpack.c.l.b16 %v6124_v8  ;;  %v6135_v25 = vpack.c.bf16 %v5865_v3, %v5865_v3  ;;  %v6068_v63 = vadd.f32 %v6067_v54, %v6066_v6  ;;  %7566 = vmatpush3.bf16.msra.mxu1 %v7793_v28  ;;  %v8490_v54 = vld [vmem:[%s8868_s11 + $0x100] sm:$0xff]   ;;  %v8491_v8 = vld [vmem:[%s8868_s11 + $0x110] sm:$0xff]  }
 0x4b9   : > { %v6278_v34 = vunpack.c.l.b16 %v6126_v60  ;;  %v6349_v37 = vsel %vm6321_vm0, %v6282_v39, %v6281_v48  ;;  %v6134_v53 = vpack.c.bf16 %v5858_v20, %v5858_v20  ;;  %v6279_v9 = vunpack.c.l.b16 %v6127_v26  ;;  %7567 = vmatprep.subr.bf16.mxu1 %v7794_v43  ;;  %v8492_v48 = vld [vmem:[%s8868_s11 + $0x150] sm:$0xff]   ;;  %v8493_v39 = vld [vmem:[%s8868_s11 + $0x118] sm:$0xff]   ;;  %v8494_v28 = vld [vmem:[%s8868_s11 + $0x120] sm:$0xff]  }
 0x4ba   : > { %v6350_v33 = vsel %vm6323_vm3, %v6283_v15, %v6349_v37  ;;  %v6285_v57 = vunpack.c.l.b16 %v6133_v12  ;;  %v6344_v45 = vsel %vm6325_vm14, %v6276_v14, %v6343_v44  ;;  %v6284_v38 = vunpack.c.l.b16 %v6132_v4  ;;  %v5335_v44 = vpop.permute.xlu1 %5334  ;;  %v12728_v20 = vld [vmem:[#allocation32_spill] sm:$0xff] }
 0x4bb   : > { %v6128_v16 = vpack.c.bf16 %v5816_v19, %v5816_v19  ;;  %v6136_v52 = vpack.c.bf16 %v5872_v47, %v5872_v47  ;;  %v6345_v40 = vsel %vm6327_vm15, %v6277_v31, %v6344_v45  ;;  %v5500_v17 = vmul.bf16 %v8488_v32, %v12727_v61  ;;  %v8497_v45 = vld [vmem:[%s8868_s11 + $0x178] sm:$0xff]  }
 0x4bc   : > { %v6287_v22 = vunpack.c.l.b16 %v6135_v25  ;;  %v6286_v24 = vunpack.c.l.b16 %v6134_v53  ;;  %v6346_v30 = vsel %vm6329_vm11, %v6278_v34, %v6345_v40  ;;  %v6351_v59 = vsel %vm6325_vm14, %v6284_v38, %v6350_v33  ;;  %7568 = vmatpush3.bf16.msra.mxu1 %v7794_v43  ;;  %v12729_v34 = vld [vmem:[#allocation35_spill] sm:$0xff]  ;;  %v12730_v33 = vld [vmem:[#allocation14_spill] sm:$0xff]  ;;  %v12731_v38 = vld [vmem:[#allocation28_spill] sm:$0xff] }
 0x4bd   : > { %v6347_v2 = vsel %vm6331_vm1, %v6279_v9, %v6346_v30  ;;  %v6352_v10 = vsel %vm6327_vm15, %v6285_v57, %v6351_v59  ;;  %v6164_v6 = vpack.c.bf16 %v6068_v63, %v6068_v63  ;;  %v6280_v7 = vunpack.c.l.b16 %v6128_v16  ;;  %v8495_v63 = vld [vmem:[%s8868_s11 + $0x168] sm:$0xff]   ;;  %v8496_v9 = vld [vmem:[%s8868_s11 + $0x160] sm:$0xff]  }
 0x4be   : > { %v6288_v50 = vunpack.c.l.b16 %v6136_v52  ;;  %v6353_v5 = vsel %vm6329_vm11, %v6286_v24, %v6352_v10  ;;  %v5607_v51 = vunpack.c.l.bf16 %v5500_v17  ;;  %v5608_v0 = vunpack.c.h.bf16 %v5500_v17  ;;  %v8498_v24 = vld [vmem:[%s8868_s11 + $0x130] sm:$0xff]  }
 0x4bf   : > { %v6354_v13 = vsel %vm6331_vm1, %v6287_v22, %v6353_v5  ;;  %v6348_v36 = vsel %vm6333_vm2, %v6280_v7, %v6347_v2  ;;  %v6316_v58 = vunpack.c.l.b16 %v6164_v6  ;;  %v5490_v55 = vmul.bf16 %v8489_v27, %v5305_v35  ;;  %v8499_v6 = vld [vmem:[%s8868_s11 + $0x128] sm:$0xff]  }
 0x4c0   : > { %v6355_v1 = vsel %vm6333_vm2, %v6288_v50, %v6354_v13  ;;  %v5950_v62 = vadd.f32 %v5608_v0, %v5607_v51  ;;  %v5489_v21 = vmul.bf16 %v8490_v54, %v12285_v46  ;;  %v5491_v3 = vmul.bf16 %v8491_v8, %v12294_v29  ;;  %v8500_v0 = vld [vmem:[%s8868_s11 + $0x170] sm:$0xff]   ;;  %v12732_v13 = vld [vmem:[#allocation37_spill] sm:$0xff] }
 0x4c1   : > { %v6385_v42 = vpack.c.b16 %v6355_v1, %v6348_v36  ;;  %v12315_v56 = vsel %vm6325_vm14, %v6316_v58, %v12179_v41  ;;  %v5499_v31 = vmul.bf16 %v8492_v48, %v12728_v20  ;;  %v5587_v26 = vunpack.c.l.bf16 %v5490_v55 }
 0x4c2   : > { %v5951_v60 = vrot.slane %v5950_v62, 4  ;;  %v5588_v15 = vunpack.c.h.bf16 %v5490_v55  ;;  %v5585_v41 = vunpack.c.l.bf16 %v5489_v21  ;;  %v5586_v12 = vunpack.c.h.bf16 %v5489_v21  ;;  %v8501_v55 = vld [vmem:[%s8868_s11 + $0x148] sm:$0xff]  }
 0x4c3   : > { %6567 = vmatprep.mubr.bf16.mxu1 %v6385_v42  ;;  %v5492_v4 = vmul.bf16 %v8493_v39, %v12288_v18  ;;  %v5589_v46 = vunpack.c.l.bf16 %v5491_v3  ;;  %v5590_v19 = vunpack.c.h.bf16 %v5491_v3  ;;  %v5493_v29 = vmul.bf16 %v8494_v28, %v5320_v11  ;;  %v5330_v53 = vpop.permute.xlu1 %5329  ;;  %v8502_v3 = vld [vmem:[%s8868_s11 + $0x138] sm:$0xff]  }
 0x4c4   : > { %6568 = vmatmul.mubr.bf16.gmra.mrb[48].mxu1 %v7788_v23  ;;  %v5952_v47 = vadd.f32 %v5951_v60, %v5950_v62  ;;  %v5605_v14 = vunpack.c.l.bf16 %v5499_v31  ;;  %v5606_v25 = vunpack.c.h.bf16 %v5499_v31  ;;  %v5502_v37 = vmul.bf16 %v8495_v63, %v12729_v34 }
 0x4c5   : > { %v5501_v57 = vmul.bf16 %v8496_v9, %v12730_v33  ;;  %v5504_v16 = vmul.bf16 %v8497_v45, %v12731_v38  ;;  %v5880_v18 = vadd.f32 %v5588_v15, %v5587_v26  ;;  %v5873_v52 = vadd.f32 %v5586_v12, %v5585_v41 }
 0x4c6   : > { %v5591_v40 = vunpack.c.l.bf16 %v5492_v4  ;;  %v5592_v43 = vunpack.c.h.bf16 %v5492_v4  ;;  %v5887_v32 = vadd.f32 %v5590_v19, %v5589_v46  ;;  %v5953_v61 = vrot.slane %v5952_v47, 2 }
 0x4c7   : > { %v5593_v17 = vunpack.c.l.bf16 %v5493_v29  ;;  %v5594_v22 = vunpack.c.h.bf16 %v5493_v29  ;;  %v5495_v30 = vmul.bf16 %v8498_v24, %v5330_v53  ;;  %v5943_v59 = vadd.f32 %v5606_v25, %v5605_v14 }
 0x4c8   : > { %v5611_v2 = vunpack.c.l.bf16 %v5502_v37  ;;  %v5612_v10 = vunpack.c.h.bf16 %v5502_v37  ;;  %v5494_v7 = vmul.bf16 %v8499_v6, %v12299_v49  ;;  %v5609_v50 = vunpack.c.l.bf16 %v5501_v57 }
 0x4c9   : > { %v5610_v5 = vunpack.c.h.bf16 %v5501_v57  ;;  %v5615_v51 = vunpack.c.l.bf16 %v5504_v16  ;;  %v5503_v11 = vmul.bf16 %v8500_v0, %v12732_v13  ;;  %v5881_v36 = vrot.slane %v5880_v18, 4 }
 0x4ca   : > { %v5874_v1 = vrot.slane %v5873_v52, 4  ;;  %v5894_v23 = vadd.f32 %v5592_v43, %v5591_v40  ;;  %v5888_v42 = vrot.slane %v5887_v32, 4  ;;  %v5901_v35 = vadd.f32 %v5594_v22, %v5593_v17 }
 0x4cb   : > { %v5597_v62 = vunpack.c.l.bf16 %v5495_v30  ;;  %v5598_v27 = vunpack.c.h.bf16 %v5495_v30  ;;  %v5616_v21 = vunpack.c.h.bf16 %v5504_v16  ;;  %v5595_v8 = vunpack.c.l.bf16 %v5494_v7 }
 0x4cc   : > { %v5596_v49 = vunpack.c.h.bf16 %v5494_v7  ;;  %v5496_v60 = vmul.bf16 %v8502_v3, %v5335_v44  ;;  %v5613_v48 = vunpack.c.l.bf16 %v5503_v11  ;;  %v5614_v20 = vunpack.c.h.bf16 %v5503_v11 }
 0x4cd   : > { %v5954_v15 = vadd.f32 %v5953_v61, %v5952_v47  ;;  %v5882_v41 = vadd.f32 %v5881_v36, %v5880_v18  ;;  %v5875_v12 = vadd.f32 %v5874_v1, %v5873_v52  ;;  %v5895_v39 = vrot.slane %v5894_v23, 4  ;;  %v7795_v18 = vld [vmem:[#allocation5 + $0x20] sm:$0xff]  }
 0x4ce   : > { %v5889_v4 = vadd.f32 %v5888_v42, %v5887_v32  ;;  %v5902_v46 = vrot.slane %v5901_v35, 4  ;;  %v5915_v19 = vadd.f32 %v5598_v27, %v5597_v62  ;;  %v5944_v29 = vrot.slane %v5943_v59, 4  ;;  %7569 = vmatprep.subr.bf16.mxu1 %v7795_v18  ;;  %v8503_v27 = vld [vmem:[%s8868_s11 + $0x140] sm:$0xff]  }
 0x4cf   : > { %v5908_v14 = vadd.f32 %v5596_v49, %v5595_v8  ;;  %v5599_v25 = vunpack.c.l.bf16 %v5496_v60  ;;  %v5600_v63 = vunpack.c.h.bf16 %v5496_v60  ;;  %v5964_v34 = vadd.f32 %v5612_v10, %v5611_v2  ;;  %7570 = vmatpush3.bf16.msra.mxu1 %v7795_v18 }
 0x4d0   : > { %v5957_v37 = vadd.f32 %v5610_v5, %v5609_v50  ;;  %v5978_v53 = vadd.f32 %v5616_v21, %v5615_v51  ;;  %v5971_v44 = vadd.f32 %v5614_v20, %v5613_v48  ;;  %v5883_v9 = vrot.slane %v5882_v41, 2 }
 0x4d1   : > { %v5876_v33 = vrot.slane %v5875_v12, 2  ;;  %v5896_v45 = vadd.f32 %v5895_v39, %v5894_v23  ;;  %v5890_v47 = vrot.slane %v5889_v4, 2  ;;  %v5903_v38 = vadd.f32 %v5902_v46, %v5901_v35 }
 0x4d2   : > { %v5916_v16 = vrot.slane %v5915_v19, 4  ;;  %v5955_v52 = vrot.slane %v5954_v15, 1  ;;  %v5945_v40 = vadd.f32 %v5944_v29, %v5943_v59  ;;  %v5909_v43 = vrot.slane %v5908_v14, 4 }
 0x4d3   : > { %v5922_v32 = vadd.f32 %v5600_v63, %v5599_v25  ;;  %v5965_v61 = vrot.slane %v5964_v34, 4  ;;  %v5958_v17 = vrot.slane %v5957_v37, 4  ;;  %v5979_v22 = vrot.slane %v5978_v53, 4 }
 0x4d4   : > { %v5972_v24 = vrot.slane %v5971_v44, 4  ;;  %v5884_v30 = vadd.f32 %v5883_v9, %v5882_v41  ;;  %v5877_v2 = vadd.f32 %v5876_v33, %v5875_v12  ;;  %v5897_v6 = vrot.slane %v5896_v45, 2 }
 0x4d5   : > { %v5891_v7 = vadd.f32 %v5890_v47, %v5889_v4  ;;  %v5904_v50 = vrot.slane %v5903_v38, 2  ;;  %v5917_v5 = vadd.f32 %v5916_v16, %v5915_v19  ;;  %v12340_v51 = vadd.f32 %v5955_v52, %v5954_v15 }
 0x4d6   : > { %v5946_v0 = vrot.slane %v5945_v40, 2  ;;  %v5910_v59 = vadd.f32 %v5909_v43, %v5908_v14  ;;  %v5923_v13 = vrot.slane %v5922_v32, 4  ;;  %v5966_v11 = vadd.f32 %v5965_v61, %v5964_v34 }
 0x4d7   : > { %v5345_v58 = vpop.permute.xlu0 %5344  ;;  %v5959_v36 = vadd.f32 %v5958_v17, %v5957_v37  ;;  %v5980_v1 = vadd.f32 %v5979_v22, %v5978_v53  ;;  %v5973_v23 = vadd.f32 %v5972_v24, %v5971_v44  ;;  %v5878_v35 = vrot.slane %v5877_v2, 1 }
 0x4d8   : > { %v5498_v54 = vmul.bf16 %v8501_v55, %v5345_v58  ;;  %v5885_v58 = vrot.slane %v5884_v30, 1  ;;  %v5892_v21 = vrot.slane %v5891_v7, 1  ;;  %v5905_v8 = vadd.f32 %v5904_v50, %v5903_v38 }
 0x4d9   : > { %v5918_v49 = vrot.slane %v5917_v5, 2  ;;  %v5911_v3 = vrot.slane %v5910_v59, 2  ;;  %v5924_v60 = vadd.f32 %v5923_v13, %v5922_v32  ;;  %v5960_v15 = vrot.slane %v5959_v36, 2 }
 0x4da   : > { %v5603_v31 = vunpack.c.l.bf16 %v5498_v54  ;;  %v5604_v26 = vunpack.c.h.bf16 %v5498_v54  ;;  %v5898_v54 = vadd.f32 %v5897_v6, %v5896_v45  ;;  %v5981_v41 = vrot.slane %v5980_v1, 2 }
 0x4db   : > { %v5974_v12 = vrot.slane %v5973_v23, 2  ;;  %v5879_v39 = vadd.f32 %v5878_v35, %v5877_v2  ;;  %v5906_v29 = vrot.slane %v5905_v8, 1  ;;  %v5919_v14 = vadd.f32 %v5918_v49, %v5917_v5 }
 0x4dc   : > { %v5936_v28 = vadd.f32 %v5604_v26, %v5603_v31  ;;  %v5947_v31 = vadd.f32 %v5946_v0, %v5945_v40  ;;  %v5967_v26 = vrot.slane %v5966_v11, 2  ;;  %v5899_v19 = vrot.slane %v5898_v54, 1 }
 0x4dd   : > { %v5886_v25 = vadd.f32 %v5885_v58, %v5884_v30  ;;  %v5912_v63 = vadd.f32 %v5911_v3, %v5910_v59  ;;  %v5925_v34 = vrot.slane %v5924_v60, 2  ;;  %v5961_v9 = vadd.f32 %v5960_v15, %v5959_v36 }
 0x4de   : > { %v5937_v57 = vrot.slane %v5936_v28, 4  ;;  %v5948_v53 = vrot.slane %v5947_v31, 1  ;;  %v5968_v44 = vadd.f32 %v5967_v26, %v5966_v11  ;;  %v5982_v33 = vadd.f32 %v5981_v41, %v5980_v1 }
 0x4df   : > { %v6137_v45 = vpack.c.bf16 %v5879_v39, %v5879_v39  ;;  %v5900_v16 = vadd.f32 %v5899_v19, %v5898_v54  ;;  %v5907_v52 = vadd.f32 %v5906_v29, %v5905_v8  ;;  %v5920_v40 = vrot.slane %v5919_v14, 1  ;;  %v8504_v29 = vld [vmem:[%s8868_s11 + $0x180] sm:$0xff]  }
 0x4e0   : > { %v5938_v10 = vadd.f32 %v5937_v57, %v5936_v28  ;;  %v5893_v28 = vadd.f32 %v5892_v21, %v5891_v7  ;;  %v5975_v57 = vadd.f32 %v5974_v12, %v5973_v23  ;;  %v6138_v43 = vpack.c.bf16 %v5886_v25, %v5886_v25 }
 0x4e1   : > { %v5913_v32 = vrot.slane %v5912_v63, 1  ;;  %v5926_v61 = vadd.f32 %v5925_v34, %v5924_v60  ;;  %v5949_v22 = vadd.f32 %v5948_v53, %v5947_v31  ;;  %v5969_v24 = vrot.slane %v5968_v44, 1 }
 0x4e2   : > { %v5939_v62 = vrot.slane %v5938_v10, 2  ;;  %v6139_v18 = vpack.c.bf16 %v5893_v28, %v5893_v28  ;;  %v5962_v30 = vrot.slane %v5961_v9, 1  ;;  %v5983_v2 = vrot.slane %v5982_v33, 1 }
 0x4e3   : > { %v6289_v6 = vunpack.c.l.b16 %v6137_v45  ;;  %v6140_v5 = vpack.c.bf16 %v5900_v16, %v5900_v16  ;;  %v6141_v59 = vpack.c.bf16 %v5907_v52, %v5907_v52  ;;  %v5921_v13 = vadd.f32 %v5920_v40, %v5919_v14  ;;  %v12733_v14 = vld [vmem:[#allocation29_spill] sm:$0xff]  ;;  %v8505_v45 = vld [vmem:[%s8868_s11 + $0x188] sm:$0xff]   ;;  %v8506_v52 = vld [vmem:[%s8868_s11 + $0x190] sm:$0xff]  }
 0x4e4   : > { %v5940_v4 = vadd.f32 %v5939_v62, %v5938_v10  ;;  %v5976_v10 = vrot.slane %v5975_v57, 1  ;;  %v6291_v0 = vunpack.c.l.b16 %v6139_v18  ;;  %v6290_v11 = vunpack.c.l.b16 %v6138_v43  ;;  %v12735_v40 = vld [vmem:[#allocation22_spill] sm:$0xff] }
 0x4e5   : > { %v5914_v36 = vadd.f32 %v5913_v32, %v5912_v63  ;;  %v5927_v1 = vrot.slane %v5926_v61, 1  ;;  %v6147_v58 = vpack.c.bf16 %v5949_v22, %v5949_v22  ;;  %v5970_v35 = vadd.f32 %v5969_v24, %v5968_v44 }
 0x4e6   : > { %v5340_v42 = vpop.permute.xlu1 %5339  ;;  %v5941_v47 = vrot.slane %v5940_v4, 1  ;;  %v5963_v62 = vadd.f32 %v5962_v30, %v5961_v9  ;;  %v6292_v49 = vunpack.c.l.b16 %v6140_v5  ;;  %v6293_v60 = vunpack.c.l.b16 %v6141_v59  ;;  %v8507_v59 = vld [vmem:[%s8868_s11 + $0x198] sm:$0xff]  }
 0x4e7   : > { %v5497_v55 = vmul.bf16 %v8503_v27, %v5340_v42  ;;  %v6148_v42 = vpack.c.bf16 %v12340_v51, %v12340_v51  ;;  %v5977_v27 = vadd.f32 %v5976_v10, %v5975_v57  ;;  %v5440_v21 = vpop.permute.xlu0 %5439  ;;  %v5928_v26 = vadd.f32 %v5927_v1, %v5926_v61 }
 0x4e8   : > { %v5942_v7 = vadd.f32 %v5941_v47, %v5940_v4  ;;  %v5984_v15 = vadd.f32 %v5983_v2, %v5982_v33  ;;  %v6299_v41 = vunpack.c.l.b16 %v6147_v58  ;;  %v6149_v12 = vpack.c.bf16 %v5963_v62, %v5963_v62  ;;  %v12734_v47 = vld [vmem:[#allocation17_spill] sm:$0xff]  ;;  %v7789_v62 = vld [vmem:[%s11994_s27 + $0x10] sm:$0xff]  }
 0x4e9   : > { %v5601_v48 = vunpack.c.l.bf16 %v5497_v55  ;;  %v5602_v20 = vunpack.c.h.bf16 %v5497_v55  ;;  %v6356_v55 = vsel %vm6321_vm0, %v6290_v11, %v6289_v6  ;;  %v6300_v51 = vunpack.c.l.b16 %v6148_v42 }
 0x4ea   : > { %v6146_v54 = vpack.c.bf16 %v5942_v7, %v5942_v7  ;;  %v6357_v3 = vsel %vm6323_vm3, %v6291_v0, %v6356_v55  ;;  %v6150_v39 = vpack.c.bf16 %v5970_v35, %v5970_v35  ;;  %v6151_v28 = vpack.c.bf16 %v5977_v27, %v5977_v27  ;;  %v8508_v27 = vld [vmem:[%s8868_s11 + $0x1e0] sm:$0xff]  }
 0x4eb   : > { %v5929_v46 = vadd.f32 %v5602_v20, %v5601_v48  ;;  %v6143_v48 = vpack.c.bf16 %v5921_v13, %v5921_v13  ;;  %v6142_v20 = vpack.c.bf16 %v5914_v36, %v5914_v36  ;;  %v6358_v19 = vsel %vm6325_vm14, %v6292_v49, %v6357_v3  ;;  %v12736_v13 = vld [vmem:[#allocation24_spill] sm:$0xff] }
 0x4ec   : > { %v6298_v4 = vunpack.c.l.b16 %v6146_v54  ;;  %v5505_v25 = vmul.bf16 %v8504_v29, %v12733_v14  ;;  %v6359_v34 = vsel %vm6327_vm15, %v6293_v60, %v6358_v19  ;;  %v6144_v9 = vpack.c.bf16 %v5928_v26, %v5928_v26  ;;  %v8509_v54 = vld [vmem:[%s8868_s11 + $0x1a0] sm:$0xff]   ;;  %v8510_v60 = vld [vmem:[%s8868_s11 + $0x1e8] sm:$0xff]  }
 0x4ed   : > { %v5930_v37 = vrot.slane %v5929_v46, 4  ;;  %v6295_v63 = vunpack.c.l.b16 %v6143_v48  ;;  %v6152_v33 = vpack.c.bf16 %v5984_v15, %v5984_v15  ;;  %v6301_v57 = vunpack.c.l.b16 %v6149_v12 }
 0x4ee   : > { %v6302_v18 = vunpack.c.l.b16 %v6150_v39  ;;  %v5507_v43 = vmul.bf16 %v8506_v52, %v12735_v40  ;;  %v5617_v22 = vunpack.c.l.bf16 %v5505_v25  ;;  %v5618_v2 = vunpack.c.h.bf16 %v5505_v25 }
 0x4ef   : > { %v5931_v38 = vadd.f32 %v5930_v37, %v5929_v46  ;;  %v6294_v37 = vunpack.c.l.b16 %v6142_v20  ;;  %v6296_v6 = vunpack.c.l.b16 %v6144_v9  ;;  %v6304_v7 = vunpack.c.l.b16 %v6152_v33 }
 0x4f0   : > { %v5508_v11 = vmul.bf16 %v8507_v59, %v12736_v13  ;;  %v5621_v1 = vunpack.c.l.bf16 %v5507_v43  ;;  %v5517_v55 = vmul.bf16 %v8508_v27, %v5440_v21  ;;  %v5985_v3 = vadd.f32 %v5618_v2, %v5617_v22 }
 0x4f1   : > { %v5932_v17 = vrot.slane %v5931_v38, 2  ;;  %v6360_v32 = vsel %vm6329_vm11, %v6294_v37, %v6359_v34  ;;  %v8512_v34 = vld [vmem:[%s8868_s11 + $0x1a8] sm:$0xff]  }
 0x4f2   : > { %v6361_v24 = vsel %vm6331_vm1, %v6295_v63, %v6360_v32  ;;  %v5623_v15 = vunpack.c.l.bf16 %v5508_v11  ;;  %v5641_v12 = vunpack.c.l.bf16 %v5517_v55  ;;  %v5642_v39 = vunpack.c.h.bf16 %v5517_v55 }
 0x4f3   : > { %v5933_v50 = vadd.f32 %v5932_v17, %v5931_v38  ;;  %v5445_v44 = vpop.permute.xlu0 %5444  ;;  %v5506_v38 = vmul.bf16 %v8505_v45, %v12734_v47  ;;  %v6303_v17 = vunpack.c.l.b16 %v6151_v28  ;;  %v6362_v58 = vsel %vm6333_vm2, %v6296_v6, %v6361_v24 }
 0x4f4   : > { %v5518_v48 = vmul.bf16 %v8510_v60, %v5445_v44  ;;  %v5986_v21 = vrot.slane %v5985_v3, 4  ;;  %v6069_v9 = vadd.f32 %v5642_v39, %v5641_v12 }
 0x4f5   : > { %v5934_v23 = vrot.slane %v5933_v50, 1  ;;  %v5619_v5 = vunpack.c.l.bf16 %v5506_v38  ;;  %v5620_v0 = vunpack.c.h.bf16 %v5506_v38 }
 0x4f6   : > { %v5643_v19 = vunpack.c.l.bf16 %v5518_v48  ;;  %v5644_v28 = vunpack.c.h.bf16 %v5518_v48  ;;  %v5987_v47 = vadd.f32 %v5986_v21, %v5985_v3  ;;  %v6070_v22 = vrot.slane %v6069_v9, 4 }
 0x4f7   : > { %v5935_v8 = vadd.f32 %v5934_v23, %v5933_v50  ;;  %v5400_v10 = vpop.permute.xlu1 %5399  ;;  %v5622_v23 = vunpack.c.h.bf16 %v5507_v43  ;;  %v5992_v20 = vadd.f32 %v5620_v0, %v5619_v5  ;;  %v8513_v43 = vld [vmem:[%s8868_s11 + $0x1f8] sm:$0xff]  }
 0x4f8   : > { %v6076_v38 = vadd.f32 %v5644_v28, %v5643_v19 }
 0x4f9   : > { %v6145_v31 = vpack.c.bf16 %v5935_v8, %v5935_v8  ;;  %v5509_v8 = vmul.bf16 %v8509_v54, %v5400_v10  ;;  %v5993_v14 = vrot.slane %v5992_v20, 4 }
 0x4fa   : > { %v6077_v10 = vrot.slane %v6076_v38, 4 }
 0x4fb   : > { %v6297_v46 = vunpack.c.l.b16 %v6145_v31  ;;  %v8511_v31 = vld [vmem:[%s8868_s11 + $0x1f0] sm:$0xff]  }
 0x4fc   : > { %v5450_v42 = vpop.permute.xlu0 %5449 }
 0x4fd   : > { %v6363_v53 = vsel %vm6321_vm0, %v6298_v4, %v6297_v46  ;;  %v5519_v26 = vmul.bf16 %v8511_v31, %v5450_v42  ;;  %v5625_v4 = vunpack.c.l.bf16 %v5509_v8  ;;  %v5626_v46 = vunpack.c.h.bf16 %v5509_v8 }
 0x4fe   : > { %v6364_v16 = vsel %vm6323_vm3, %v6299_v41, %v6363_v53  ;;  %v5999_v41 = vadd.f32 %v5622_v23, %v5621_v1  ;;  %v6078_v42 = vadd.f32 %v6077_v10, %v6076_v38 }
 0x4ff   : > { %v6365_v61 = vsel %vm6325_vm14, %v6300_v51, %v6364_v16  ;;  %v5624_v51 = vunpack.c.h.bf16 %v5508_v11  ;;  %v5645_v25 = vunpack.c.l.bf16 %v5519_v26  ;;  %v5646_v63 = vunpack.c.h.bf16 %v5519_v26 }
 0x500   : > { %v6366_v30 = vsel %vm6327_vm15, %v6301_v57, %v6365_v61  ;;  %v6000_v44 = vrot.slane %v5999_v41, 4  ;;  %v6013_v33 = vadd.f32 %v5626_v46, %v5625_v4  ;;  %v6071_v11 = vadd.f32 %v6070_v22, %v6069_v9 }
 0x501   : > { %v6367_v50 = vsel %vm6329_vm11, %v6302_v18, %v6366_v30  ;;  %v6006_v53 = vadd.f32 %v5624_v51, %v5623_v15  ;;  %v5994_v18 = vadd.f32 %v5993_v14, %v5992_v20  ;;  %v6083_v52 = vadd.f32 %v5646_v63, %v5645_v25  ;;  %v7796_v25 = vld [vmem:[#allocation5 + $0x28] sm:$0xff]  }
 0x502   : > { %v6368_v36 = vsel %vm6331_vm1, %v6303_v17, %v6367_v50  ;;  %v6001_v17 = vadd.f32 %v6000_v44, %v5999_v41  ;;  %v6014_v24 = vrot.slane %v6013_v33, 4  ;;  %v6072_v20 = vrot.slane %v6071_v11, 2  ;;  %7571 = vmatprep.subr.bf16.mxu1 %v7796_v25 }
 0x503   : > { %v6369_v35 = vsel %vm6333_vm2, %v6304_v7, %v6368_v36  ;;  %v6007_v61 = vrot.slane %v6006_v53, 4  ;;  %v5988_v7 = vrot.slane %v5987_v47, 2  ;;  %v5995_v50 = vrot.slane %v5994_v18, 2  ;;  %7572 = vmatpush3.bf16.msra.mxu1 %v7796_v25 }
 0x504   : > { %v6386_v49 = vpack.c.b16 %v6369_v35, %v6362_v58  ;;  %v6084_v5 = vrot.slane %v6083_v52, 4  ;;  %v6002_v13 = vrot.slane %v6001_v17, 2  ;;  %v6015_v36 = vadd.f32 %v6014_v24, %v6013_v33  ;;  %v8514_v35 = vld [vmem:[%s8868_s11 + $0x1b0] sm:$0xff]  }
 0x505   : > { %v6008_v59 = vadd.f32 %v6007_v61, %v6006_v53  ;;  %v5989_v27 = vadd.f32 %v5988_v7, %v5987_v47  ;;  %v5996_v55 = vadd.f32 %v5995_v50, %v5994_v18  ;;  %v6079_v26 = vrot.slane %v6078_v42, 2  ;;  %v8515_v53 = vld [vmem:[%s8868_s11 + $0x1b8] sm:$0xff]  }
 0x506   : > { %6575 = vmatprep.mubr.bf16.mxu1 %v6386_v49  ;;  %v6085_v54 = vadd.f32 %v6084_v5, %v6083_v52  ;;  %v6003_v48 = vadd.f32 %v6002_v13, %v6001_v17  ;;  %v6016_v31 = vrot.slane %v6015_v36, 2  ;;  %v6073_v28 = vadd.f32 %v6072_v20, %v6071_v11 }
 0x507   : > { %6576 = vmatmul.mubr.bf16.gmra.mrb[52].mxu1 %v7789_v62  ;;  %v6009_v60 = vrot.slane %v6008_v59, 2  ;;  %v5990_v41 = vrot.slane %v5989_v27, 1  ;;  %v5997_v12 = vrot.slane %v5996_v55, 1  ;;  %v6080_v63 = vadd.f32 %v6079_v26, %v6078_v42  ;;  %v7797_v42 = vld [vmem:[#allocation5 + $0x30] sm:$0xff]  }
 0x508   : > { %v5405_v29 = vpop.permute.xlu1 %5404  ;;  %v6086_v39 = vrot.slane %v6085_v54, 2  ;;  %v6004_v19 = vrot.slane %v6003_v48, 1  ;;  %7573 = vmatprep.subr.bf16.mxu1 %v7797_v42 }
 0x509   : > { %v5510_v37 = vmul.bf16 %v8512_v34, %v5405_v29  ;;  %v6010_v21 = vadd.f32 %v6009_v60, %v6008_v59  ;;  %v6017_v29 = vadd.f32 %v6016_v31, %v6015_v36  ;;  %v5991_v9 = vadd.f32 %v5990_v41, %v5989_v27  ;;  %7574 = vmatpush3.bf16.msra.mxu1 %v7797_v42 }
 0x50a   : > { %v5998_v33 = vadd.f32 %v5997_v12, %v5996_v55  ;;  %v6005_v52 = vadd.f32 %v6004_v19, %v6003_v48 }
 0x50b   : > { %v5627_v57 = vunpack.c.l.bf16 %v5510_v37  ;;  %v5628_v45 = vunpack.c.h.bf16 %v5510_v37  ;;  %v6011_v18 = vrot.slane %v6010_v21, 1  ;;  %v6153_v7 = vpack.c.bf16 %v5991_v9, %v5991_v9 }
 0x50c   : > { %v5455_v16 = vpop.permute.xlu0 %5454  ;;  %v6155_v50 = vpack.c.bf16 %v6005_v52, %v6005_v52 }
 0x50d   : > { %v6020_v40 = vadd.f32 %v5628_v45, %v5627_v57  ;;  %v5520_v32 = vmul.bf16 %v8513_v43, %v5455_v16  ;;  %v6087_v57 = vadd.f32 %v6086_v39, %v6085_v54  ;;  %v6018_v43 = vrot.slane %v6017_v29, 1 }
 0x50e   : > { %v6012_v59 = vadd.f32 %v6011_v18, %v6010_v21  ;;  %v6305_v55 = vunpack.c.l.b16 %v6153_v7  ;;  %v6307_v54 = vunpack.c.l.b16 %v6155_v50 }
 0x50f   : > { %v5647_v30 = vunpack.c.l.bf16 %v5520_v32  ;;  %v5648_v2 = vunpack.c.h.bf16 %v5520_v32  ;;  %v6021_v6 = vrot.slane %v6020_v40, 4  ;;  %v6081_v32 = vrot.slane %v6080_v63, 1 }
 0x510   : > { %v6088_v24 = vrot.slane %v6087_v57, 1 }
 0x511   : > { %v6090_v0 = vadd.f32 %v5648_v2, %v5647_v30  ;;  %v6022_v58 = vadd.f32 %v6021_v6, %v6020_v40  ;;  %v6074_v40 = vrot.slane %v6073_v28, 1  ;;  %v6154_v30 = vpack.c.bf16 %v5998_v33, %v5998_v33 }
 0x512   : > { %v6082_v13 = vadd.f32 %v6081_v32, %v6080_v63 }
 0x513   : > { %v6091_v1 = vrot.slane %v6090_v0, 4  ;;  %v6023_v15 = vrot.slane %v6022_v58, 2  ;;  %v6075_v5 = vadd.f32 %v6074_v40, %v6073_v28 }
 0x514   : > { %v5410_v23 = vpop.permute.xlu1 %5409  ;;  %v6166_v60 = vpack.c.bf16 %v6082_v13, %v6082_v13 }
 0x515   : > { %v5511_v62 = vmul.bf16 %v8514_v35, %v5410_v23  ;;  %v6092_v8 = vadd.f32 %v6091_v1, %v6090_v0  ;;  %v6024_v34 = vadd.f32 %v6023_v15, %v6022_v58  ;;  %v6019_v0 = vadd.f32 %v6018_v43, %v6017_v29  ;;  %v7798_v58 = vld [vmem:[#allocation5 + $0x38] sm:$0xff]  }
 0x516   : > { %v6089_v1 = vadd.f32 %v6088_v24, %v6087_v57  ;;  %v6306_v35 = vunpack.c.l.b16 %v6154_v30  ;;  %7575 = vmatprep.subr.bf16.mxu1 %v7798_v58  ;;  %v6318_v21 = vunpack.c.l.b16 %v6166_v60 }
 0x517   : > { %v5629_v49 = vunpack.c.l.bf16 %v5511_v62  ;;  %v5630_v3 = vunpack.c.h.bf16 %v5511_v62  ;;  %v6093_v4 = vrot.slane %v6092_v8, 2  ;;  %v6025_v61 = vrot.slane %v6024_v34, 1  ;;  %7576 = vmatpush3.bf16.msra.mxu1 %v7798_v58  ;;  %v7800_v58 = vld [vmem:[%s12492_s9 + $0x8] sm:$0xff]  }
 0x518   : > { %v6167_v31 = vpack.c.bf16 %v6089_v1, %v6089_v1  ;;  %v6370_v15 = vsel %vm6321_vm0, %v6306_v35, %v6305_v55  ;;  %v7801_v35 = vld [vmem:[%s12492_s9 + $0x10] sm:$0xff]   ;;  %v7804_v55 = vld [vmem:[%s12492_s9 + $0x28] sm:$0xff]  }
 0x519   : > { %v6027_v51 = vadd.f32 %v5630_v3, %v5629_v49  ;;  %v6094_v45 = vadd.f32 %v6093_v4, %v6092_v8  ;;  %v6026_v11 = vadd.f32 %v6025_v61, %v6024_v34  ;;  %v6165_v8 = vpack.c.bf16 %v6075_v5, %v6075_v5 }
 0x51a   : > { %v6157_v49 = vpack.c.bf16 %v6019_v0, %v6019_v0  ;;  %v6156_v3 = vpack.c.bf16 %v6012_v59, %v6012_v59  ;;  %v6371_v12 = vsel %vm6323_vm3, %v6307_v54, %v6370_v15  ;;  %v6319_v29 = vunpack.c.l.b16 %v6167_v31 }
 0x51b   : > { %v6028_v46 = vrot.slane %v6027_v51, 4  ;;  %v6095_v2 = vrot.slane %v6094_v45, 1  ;;  %v6158_v48 = vpack.c.bf16 %v6026_v11, %v6026_v11  ;;  %v6317_v39 = vunpack.c.l.b16 %v6165_v8 }
 0x51c   : > { %v5415_v14 = vpop.permute.xlu1 %5414  ;;  %v6309_v4 = vunpack.c.l.b16 %v6157_v49 }
 0x51d   : > { %v6029_v37 = vadd.f32 %v6028_v46, %v6027_v51  ;;  %v5512_v44 = vmul.bf16 %v8515_v53, %v5415_v14  ;;  %v6096_v27 = vadd.f32 %v6095_v2, %v6094_v45  ;;  %v6308_v46 = vunpack.c.l.b16 %v6156_v3 }
 0x51e   : > { %v6310_v19 = vunpack.c.l.b16 %v6158_v48  ;;  %v6380_v53 = vsel %vm6327_vm15, %v6317_v39, %v12315_v56  ;;  %v12392_v56 = vld [vmem:[%s12489_s6] ss:$0 sm:$0xff] }
 0x51f   : > { %v6030_v47 = vrot.slane %v6029_v37, 2  ;;  %v5631_v38 = vunpack.c.l.bf16 %v5512_v44  ;;  %v5632_v16 = vunpack.c.h.bf16 %v5512_v44  ;;  %v6168_v41 = vpack.c.bf16 %v6096_v27, %v6096_v27  ;;  %v7803_v27 = vld [vmem:[%s12492_s9 + $0x20] sm:$0xff]  }
 0x520   : > { %v6372_v34 = vsel %vm6325_vm14, %v6308_v46, %v6371_v12  ;;  %v6381_v33 = vsel %vm6329_vm11, %v6318_v21, %v6380_v53  ;;  %v7806_v12 = vld [vmem:[%s12492_s9 + $0x38] sm:$0xff]  }
 0x521   : > { %v6031_v17 = vadd.f32 %v6030_v47, %v6029_v37  ;;  %v6034_v22 = vadd.f32 %v5632_v16, %v5631_v38  ;;  %v6320_v63 = vunpack.c.l.b16 %v6168_v41  ;;  %v6373_v37 = vsel %vm6327_vm15, %v6309_v4, %v6372_v34  ;;  %v7790_v16 = vld [vmem:[%s11994_s27 + $0x18] sm:$0xff]   ;;  %v7805_v41 = vld [vmem:[%s12492_s9 + $0x30] sm:$0xff]   ;;  %s452_s27 = scalar_lea.vmem [#allocation7], %s7028_s30  ;;  %s8583_s30 = scalar_lea.vmem %s8582_s29, 2048 }
 0x522   : > { %v6374_v9 = vsel %vm6329_vm11, %v6310_v19, %v6373_v37  ;;  %v6382_v45 = vsel %vm6331_vm1, %v6319_v29, %v6381_v33  ;;  %v7255_v37 = vld [vmem:[%s12491_s8] ss:$0 sm:$0xff]  ;;  %s6910_s14 = sshll.u32 %s452_s27, 4  ;;  %s12434_s14 = int_to_ptr.vmem [resolvable:$true] %s6910_s14 }
 0x523   : > { %v6032_v10 = vrot.slane %v6031_v17, 1  ;;  %v6035_v6 = vrot.slane %v6034_v22, 4  ;;  %v6383_v38 = vsel %vm6333_vm2, %v6320_v63, %v6382_v45  ;;  %s8577_s25 = scalar_lea.vmem %s12434_s14, 1024  ;;  %p8584_p13 = scmp.lt.s32.totalorder %s12434_s14, %s8582_s29 }
 0x524   : > { %p8578_p6 = scmp.ne.s32.totalorder %s12434_s14, %s8577_s25  ;;  %p8585_p3 = scmp.lt.s32.totalorder %s8583_s30, %s8577_s25 }
 0x525   : > { %v6036_v36 = vadd.f32 %v6035_v6, %v6034_v22  ;;  %v6033_v23 = vadd.f32 %v6032_v10, %v6031_v17  ;;  %v7799_v6 = vld [vmem:[%s12492_s9] sm:$0xff]  }
 0x526   : > { %7585 = vmatprep.subr.bf16.mxu1 %v7799_v6  ;;  %p8579_p8 = pnand %p8578_p6, %p8813_p12  ;;  %p8586_p7 = por %p8585_p3, %p8584_p13 }
 0x527   : > { %v6037_v62 = vrot.slane %v6036_v36, 2  ;;  %v6159_v26 = vpack.c.bf16 %v6033_v23, %v6033_v23 }
 0x528   : > { %p8580_p10 = pneg %p8579_p8 }
 0x529   : > { %v6038_v20 = vadd.f32 %v6037_v62, %v6036_v36  ;;  %v6311_v14 = vunpack.c.l.b16 %v6159_v26  ;;  %v7802_v62 = vld [vmem:[%s12492_s9 + $0x18] sm:$0xff]  }
 0x52a   : > { %p8587_p9 = pnand %p8586_p7, %p8580_p10 }
 0x52b   : > { %v6039_v51 = vrot.slane %v6038_v20, 1  ;;  %v6375_v57 = vsel %vm6331_vm1, %v6311_v14, %v6374_v9 }
 0x52d   : > { %v6040_v28 = vadd.f32 %v6039_v51, %v6038_v20 }
 0x52f   : > { %v6160_v25 = vpack.c.bf16 %v6040_v28, %v6040_v28 }
 0x531   : > { %v6312_v44 = vunpack.c.l.b16 %v6160_v25 }
 0x533   : > { %v6376_v47 = vsel %vm6333_vm2, %v6312_v44, %v6375_v57 }
 0x534   : > { %v6387_v18 = vpack.c.b16 %v6383_v38, %v6376_v47 }
 0x536   : > { %6583 = vmatprep.mubr.bf16.mxu1 %v6387_v18 }
 0x537   : > { %6584 = vmatmul.mubr.bf16.gmra.mrb[56].mxu1 %v7790_v16 }
 0x560   : > { %v7369_v52 = vpop.f32.mrb[44].mxu1 }
 0x561   : > { %v7370_v40 = vpop.f32.mrb[45].mxu1 }
 0x562   : > { %v7371_v43 = vadd.f32 %v7370_v40, %v7369_v52  ;;  %v7372_v32 = vpop.f32.mrb[46].mxu1 }
 0x563   : > { %v7373_v61 = vpop.f32.mrb[47].mxu1 }
 0x564   : > { %v6562_v17 = vadd.f32 %v7371_v43, %v12392_v56  ;;  %v7374_v22 = vadd.f32 %v7373_v61, %v7372_v32 }
 0x566   : > { %v6592_v24 = vmax.f32 %v6562_v17, 0.0  ;;  %v6565_v30 = vadd.f32 %v7374_v22, %v12392_v56 }
 0x568   : > { %v6593_v2 = vmax.f32 %v6565_v30, 0.0 }
 0x56a   : > { %v6600_v10 = vpack.c.bf16 %v6593_v2, %v6592_v24 }
 0x56c   : > { %7577 = vmatprep.mubr.bf16.mxu1 %v6600_v10 }
 0x597   : > { %v7375_v7 = vpop.f32.mrb[48].mxu1 }
 0x598   : > { %v7376_v50 = vpop.f32.mrb[49].mxu1 }
 0x599   : > { %v7377_v5 = vadd.f32 %v7376_v50, %v7375_v7  ;;  %v7378_v0 = vpop.f32.mrb[50].mxu1 }
 0x59a   : > { %v7379_v59 = vpop.f32.mrb[51].mxu1 }
 0x59b   : > { %v6570_v13 = vadd.f32 %v7377_v5, %v12392_v56  ;;  %v7380_v11 = vadd.f32 %v7379_v59, %v7378_v0 }
 0x59d   : > { %v6594_v36 = vmax.f32 %v6570_v13, 0.0  ;;  %v6573_v1 = vadd.f32 %v7380_v11, %v12392_v56  ;;  %v7264_v13 = vld [vmem:[%s12493_s10] ss:$0 sm:$0xff] }
 0x59f   : > { %v6595_v23 = vmax.f32 %v6573_v1, 0.0 }
 0x5a1   : > { %v6601_v42 = vpack.c.bf16 %v6595_v23, %v6594_v36 }
 0x5a3   : > { %7578 = vmatmul.mubr.bf16.vlgmr.msra.gmra.mrb[60].mxu1 %v6601_v42 }
 0x5a4   : > { %7586 = vmatpush3.bf16.msra.mxu1 %v7799_v6 }
 0x5a5   : > { %7587 = vmatprep.subr.bf16.mxu1 %v7800_v58 }
 0x5a8   : > { %7588 = vmatpush3.bf16.msra.mxu1 %v7800_v58 }
 0x5a9   : > { %7589 = vmatprep.subr.bf16.mxu1 %v7801_v35 }
 0x5ac   : > { %7590 = vmatpush3.bf16.msra.mxu1 %v7801_v35 }
 0x5ad   : > { %7591 = vmatprep.subr.bf16.mxu1 %v7802_v62 }
 0x5b0   : > { %7592 = vmatpush3.bf16.msra.mxu1 %v7802_v62 }
 0x5b1   : > { %7593 = vmatprep.subr.bf16.mxu1 %v7803_v27 }
 0x5b4   : > { %7594 = vmatpush3.bf16.msra.mxu1 %v7803_v27 }
 0x5b5   : > { %7595 = vmatprep.subr.bf16.mxu1 %v7804_v55 }
 0x5b8   : > { %7596 = vmatpush3.bf16.msra.mxu1 %v7804_v55 }
 0x5b9   : > { %7597 = vmatprep.subr.bf16.mxu1 %v7805_v41 }
 0x5bc   : > { %7598 = vmatpush3.bf16.msra.mxu1 %v7805_v41 }
 0x5bd   : > { %7599 = vmatprep.subr.bf16.mxu1 %v7806_v12 }
 0x5c0   : > { %7600 = vmatpush3.bf16.msra.mxu1 %v7806_v12 }
 0x5da   : > { %v7381_v54 = vpop.f32.mrb[52].mxu1 }
 0x5db   : > { %v7382_v8 = vpop.f32.mrb[53].mxu1 }
 0x5dc   : > { %v7383_v49 = vadd.f32 %v7382_v8, %v7381_v54  ;;  %v7384_v3 = vpop.f32.mrb[54].mxu1 }
 0x5dd   : > { %v7385_v60 = vpop.f32.mrb[55].mxu1 }
 0x5de   : > { %v6578_v48 = vadd.f32 %v7383_v49, %v12392_v56  ;;  %v7386_v20 = vadd.f32 %v7385_v60, %v7384_v3 }
 0x5e0   : > { %v6596_v31 = vmax.f32 %v6578_v48, 0.0  ;;  %v6581_v26 = vadd.f32 %v7386_v20, %v12392_v56 }
 0x5e2   : > { %v6597_v15 = vmax.f32 %v6581_v26, 0.0 }
 0x5e4   : > { %v6602_v51 = vpack.c.bf16 %v6597_v15, %v6596_v31 }
 0x5e6   : > { %7581 = vmatprep.mubr.bf16.mxu1 %v6602_v51 }
 0x60a   : > { %v7387_v39 = vpop.f32.mrb[56].mxu1 }
 0x60b   : > { %v7388_v4 = vpop.f32.mrb[57].mxu1 }
 0x60c   : > { %v7389_v46 = vadd.f32 %v7388_v4, %v7387_v39  ;;  %v7390_v21 = vpop.f32.mrb[58].mxu1 }
 0x60d   : > { %v7391_v19 = vpop.f32.mrb[59].mxu1 }
 0x60e   : > { %v6586_v28 = vadd.f32 %v7389_v46, %v12392_v56  ;;  %v7392_v29 = vadd.f32 %v7391_v19, %v7390_v21 }
 0x610   : > { %v6589_v14 = vadd.f32 %v7392_v29, %v12392_v56  ;;  %v6598_v25 = vmax.f32 %v6586_v28, 0.0 }
 0x612   : > { %v6599_v63 = vmax.f32 %v6589_v14, 0.0 }
 0x614   : > { %v6603_v34 = vpack.c.bf16 %v6599_v63, %v6598_v25 }
 0x616   : > { %7582 = vmatmul.mubr.bf16.gmra.mrb[64].mxu1 %v6603_v34 }
 0x676   : > { %v7579_v53 = vpop.f32.mrb[60].mxu1 }
 0x677   : > { %v6718_v44 = vadd.f32 %v7579_v53, %v7255_v37  ;;  %v6709_v9 = vpop.f32.mrb[61].mxu1 }
 0x678   : > { %v6710_v33 = vadd.f32 %v7255_v37, %v6709_v9  ;;  %v7580_v57 = vpop.f32.mrb[62].mxu1 }
 0x679   : > { %v6742_v45 = vmax.f32 %v6718_v44, 0.0  ;;  %v6721_v47 = vadd.f32 %v7580_v57, %v7255_v37  ;;  %v6712_v38 = vpop.f32.mrb[63].mxu1 }
 0x67a   : > { %v6740_v16 = vmax.f32 %v6710_v33, 0.0  ;;  %v6713_v18 = vadd.f32 %v7255_v37, %v6712_v38 }
 0x67b   : > { %v6743_v52 = vmax.f32 %v6721_v47, 0.0 }
 0x67c   : > { %v6741_v56 = vmax.f32 %v6713_v18, 0.0 }
 0x67d   : > { %v6749_v40 = vpack.c.bf16 %v6743_v52, %v6742_v45 }
 0x67e   : > { %v6748_v43 = vpack.c.bf16 %v6741_v56, %v6740_v16 }
 0x680   : > { %7601 = vmatprep.mubr.bf16.mxu1 %v6748_v43 }
 0x681   : > { %7602 = vmatmul.mubr.bf16.vlgmr.msra.gmra.mrb[68].mxu1 %v6749_v40 }
 0x6e9   : > { %v7583_v32 = vpop.f32.mrb[64].mxu1 }
 0x6ea   : > { %v6734_v61 = vadd.f32 %v7583_v32, %v7255_v37  ;;  %v6725_v17 = vpop.f32.mrb[65].mxu1 }
 0x6eb   : > { %v6726_v22 = vadd.f32 %v7255_v37, %v6725_v17  ;;  %v7584_v24 = vpop.f32.mrb[66].mxu1 }
 0x6ec   : > { %v6737_v30 = vadd.f32 %v7584_v24, %v7255_v37  ;;  %v6728_v2 = vpop.f32.mrb[67].mxu1  ;;  %v6746_v6 = vmax.f32 %v6734_v61, 0.0 }
 0x6ed   : > { %v6729_v10 = vadd.f32 %v7255_v37, %v6728_v2  ;;  %v6744_v50 = vmax.f32 %v6726_v22, 0.0 }
 0x6ee   : > { %v6747_v7 = vmax.f32 %v6737_v30, 0.0 }
 0x6ef   : > { %v6745_v5 = vmax.f32 %v6729_v10, 0.0 }
 0x6f0   : > { %v6751_v0 = vpack.c.bf16 %v6747_v7, %v6746_v6 }
 0x6f1   : > { %v6750_v59 = vpack.c.bf16 %v6745_v5, %v6744_v50 }
 0x6f3   : > { %7605 = vmatprep.mubr.bf16.mxu1 %v6750_v59 }
 0x6f4   : > { %7606 = vmatmul.mubr.bf16.gmra.mrb[72].mxu1 %v6751_v0 }
 0x754   : > { %v7603_v11 = vpop.f32.mrb[68].mxu1 }
 0x755   : > { %v6866_v36 = vadd.f32 %v7603_v11, %v7264_v13  ;;  %v6857_v1 = vpop.f32.mrb[69].mxu1 }
 0x756   : > { %v6858_v23 = vadd.f32 %v7264_v13, %v6857_v1  ;;  %v7604_v42 = vpop.f32.mrb[70].mxu1 }
 0x757   : > { %6890 = vst [vmem:[%s452_s27 + $0x10] sm:$0xff] %v6866_v36  ;;  %v6869_v58 = vadd.f32 %v7604_v42, %v7264_v13  ;;  %v6860_v35 = vpop.f32.mrb[71].mxu1 }
 0x758   : > { %6888 = vst [vmem:[%s452_s27] sm:$0xff] %v6858_v23  ;;  %v6861_v62 = vadd.f32 %v7264_v13, %v6860_v35 }
 0x759   : > { %6891 = vst [vmem:[%s452_s27 + $0x18] sm:$0xff] %v6869_v58 }
 0x75a   : > { %6889 = vst [vmem:[%s452_s27 + $0x8] sm:$0xff] %v6861_v62 }
 0x7c7   : > { %v7607_v27 = vpop.f32.mrb[72].mxu1 }
 0x7c8   : > { %v6882_v55 = vadd.f32 %v7607_v27, %v7264_v13  ;;  %v6873_v54 = vpop.f32.mrb[73].mxu1 }
 0x7c9   : > { %v6874_v8 = vadd.f32 %v7264_v13, %v6873_v54  ;;  %v7608_v49 = vpop.f32.mrb[74].mxu1 }
 0x7ca   : > { %6894 = vst [vmem:[%s452_s27 + $0x30] sm:$0xff] %v6882_v55  ;;  %v6885_v3 = vadd.f32 %v7608_v49, %v7264_v13  ;;  %v6876_v60 = vpop.f32.mrb[75].mxu1 }
 0x7cb   : > { %6892 = vst [vmem:[%s452_s27 + $0x20] sm:$0xff] %v6874_v8  ;;  %v6877_v48 = vadd.f32 %v7264_v13, %v6876_v60 }
 0x7cc   : > { %6895 = vst [vmem:[%s452_s27 + $0x38] sm:$0xff] %v6885_v3 }
 0x7cd   : > { %6893 = vst [vmem:[%s452_s27 + $0x28] sm:$0xff] %v6877_v48 }
 0x7ce   : > { %8590 = shalt.err (!%p8587_p9)
}
 0x7cf   : > { %s8591_s23 = scalar_lea.hbm %s12439_s28, 1024  ;;  %s8595_s17 = scalar_lea.hbm %s12737_s13, 2048 }
 0x7d0   : > { %p8592_p1 = scmp.ne.s32.totalorder %s12439_s28, %s8591_s23  ;;  %p8596_p11 = scmp.lt.u32.totalorder %s12439_s28, %s12737_s13 }
 0x7d1   : > { %p8597_p2 = scmp.lt.u32.totalorder %s8595_s17, %s8591_s23  ;;  %p8599_p6 = scmp.lt.u32.totalorder %s8591_s23, %s12439_s28 }
 0x7d2   : > { %p8593_p0 = pnand %p8592_p1, %p8813_p12 }
 0x7d3   : > { %p8598_p4 = por %p8597_p2, %p8596_p11 }
 0x7d4   : > { %p8594_p5 = pneg %p8593_p0 }
 0x7d5   : > { %p8600_p8 = por %p8599_p6, %p8598_p4 }
 0x7d7   : > { %p8601_p10 = pnand %p8600_p8, %p8594_p5 }
 0x7d9   : > { %8604 = shalt.err (!%p8601_p10)
}
 0x7da   : > { %s8657_s25 = smov 128   ;;  %s8658_s24 = smov 8  }
 0x7db   : > { %7631 = dma.vmem_to_hbm [thread:$0]  (%p8813_p12), %s12434_s14, 1024, %s12439_s28, %s6897_s21, %s8657_s25, %s8657_s25, %s8658_s24  }
 0x7dc PF: > { %s12738_s29 = sld [smem:[#allocation11_spill]]  ;;  %s12739_s30 = sld [smem:[#allocation12_spill]] }
 0x7dd   : > { %p12741_p3 = scmp.ge.s32.totalorder %s8647_s20, 2 }
 0x7e2   : > { %s6925_s12 = sand.u32 1, %s12738_s29   ;;  %p12740_p13 = scmp.ne.s32.totalorder %s12739_s30, 0 }
 0x7e3   : > { %s6926_s23 = scalar_lea.sflag [#allocation4], %s6925_s12 }
 0x7e4   : > { %p7642_p7 = pnand %p12741_p3, %p12740_p13 }
 0x7e6   : > { %8630 = dma.done.wait (!%p7642_p7), %s6926_s23, 1024  }
 0x7e7   : > { %8632 = vsyncadd (!%p7642_p7), %s6926_s23, 4294966272  ;;  %s12742_s20 = sld [smem:[#allocation13_spill]]  ;;  %s12743_s17 = smov %s8639_s18 }
 0x7e8   : > { %s12744_s18 = smov %s8643_s19  ;;  %s12745_s19 = smov %s8809_s15 }
 0x7ed   : > { %p25_p9 = scmp.ge.s32.totalorder %s12742_s20, 4  }
 0x7ef   :  { %27 = sbr.rel (!%p25_p9) target bundleno = 8 (0x8), region = 119 }
 0x7f6   :  { %6931 = vsyncpa [#allocation3], 1 }
 0x7f7   :  { %6933 = vsyncpa [#allocation3 + $0x1], 1 }
 0x7f8   :  { %6934 = vsyncpa [#allocation6], 1 }
 0x7f9   :  { %6935 = vsyncpa [#allocation4], 1 }
 0x7fa   :  { %6937 = vsyncpa [#allocation4 + $0x1], 1 }

</bundles_post_ra>
